<compile_context>
chip_gen: v7x
topology: tpu7x:2x2x1
jax: 0.10.0
libtpu: 0.0.40
codegen_flags: <defaults>
</compile_context>

<pallas_src>
import functools

import jax
import jax.numpy as jnp
from jax import lax
from jax.experimental import pallas as pl
from jax.experimental.pallas import tpu as pltpu

# ---- model hyper-parameters (from the PyTorch module) ----
N_EMBD = 64
BLOCK_SIZE = 16          # max sequence length T
N_HEAD = 4
HEAD_SIZE = N_EMBD // N_HEAD
N_LAYER = 4
VOCAB_SIZE = 65          # len(chars) of tiny-shakespeare-like corpus (synthetic)
FFN_DIM = 4 * N_EMBD
LN_EPS = 1e-5
V_PAD = 128              # lane-dense padded vocab width (embedding rows / logits cols)


def _layernorm(x, w, b):
    mu = jnp.mean(x, axis=-1, keepdims=True)
    var = jnp.mean((x - mu) ** 2, axis=-1, keepdims=True)
    return (x - mu) * lax.rsqrt(var + LN_EPS) * w + b


def _bigram_kernel(
    ids_ref,                                 # (B*T, 1) int32 token ids
    tok_emb_ref,                             # (V_PAD, C) f32  (rows 65..127 zero)
    pos_emb_ref,                             # (BLOCK_SIZE, C) f32
    ln1w_ref, ln1b_ref,                      # (L, C) f32
    wqkv_ref,                                # (L, C, 3C) bf16, head-major, q pre-scaled
    projw_ref, projb_ref,                    # (L, C, C) bf16, (L, C) f32
    ln2w_ref, ln2b_ref,                      # (L, C) f32
    fc1w_ref, fc1b_ref,                      # (L, C, 4C) bf16, (L, 4C) f32
    fc2w_ref, fc2b_ref,                      # (L, 4C, C) bf16, (L, C) f32
    lnfw_ref, lnfb_ref,                      # (1, C) f32
    lmw_ref, lmb_ref,                        # (C, V_PAD) bf16, (1, V_PAD) f32
    out_ref,                                 # (B*T, V_PAD) f32 (lane-dense)
    *, batch, seq,
):
    B, T = batch, seq
    C, D, H = N_EMBD, HEAD_SIZE, N_HEAD
    M = B * T                                # flattened rows
    N = H * B                                # merged (head, batch) batch dim
    bf16 = jnp.bfloat16

    # ---- token + position embedding, fused in-kernel ----
    # Gather(tok_emb, ids) as a one-hot MXU matmul: no dynamic indexing, exact
    # for the padded zero rows (ids < 65), one dispatch saved per forward.
    lane = lax.broadcasted_iota(jnp.int32, (M, V_PAD), 1)
    onehot = (ids_ref[...] == lane).astype(jnp.float32)               # (M, 128)
    x = jnp.dot(onehot, tok_emb_ref[...],
                preferred_element_type=jnp.float32)                   # (M, C)
    pos = jnp.broadcast_to(pos_emb_ref[0:T, :][None], (B, T, C)).reshape(M, C)
    x = x + pos                                                       # f32 residual stream

    # Additive causal mask: keep it (1, T, T) and broadcast at the add site.
    # Finite sentinel (-1e30) keeps the s - max step NaN-free.
    row = lax.broadcasted_iota(jnp.int32, (1, T, T), 1)
    col = lax.broadcasted_iota(jnp.int32, (1, T, T), 2)
    mask_add = jnp.where(col <= row, 0.0, -1e30).astype(jnp.float32)  # (1, T, T)

    for l in range(N_LAYER):
        # -------- attention: x = x + proj(concat_h(attn_h(ln1(x)))) --------
        y = _layernorm(x, ln1w_ref[l], ln1b_ref[l])                   # (M, C) f32
        # One fused MXU matmul; attention scale already folded into q columns.
        qkv = jnp.dot(y.astype(bf16), wqkv_ref[l],
                      preferred_element_type=jnp.float32)             # (M, 3C)

        # Head-major column layout: per head h the 3D-wide block [q_h|k_h|v_h].
        # H lane slices + one stack + leading-dim reshapes -> (H*B, T, 3D).
        hb = jnp.stack(
            [qkv[:, h * 3 * D:(h + 1) * 3 * D].reshape(B, T, 3 * D)
             for h in range(H)],
            axis=0).reshape(N, T, 3 * D)
        q = hb[..., 0:D].astype(bf16)
        k = hb[..., D:2 * D].astype(bf16)
        v = hb[..., 2 * D:3 * D].astype(bf16)

        # Batched over the merged (head, batch) dim; f32 accumulation.
        s = jnp.einsum('ntd,nsd->nts', q, k,
                       preferred_element_type=jnp.float32) + mask_add # (N, T, T)
        s = s - jnp.max(s, axis=-1, keepdims=True)
        p = jnp.exp(s)
        p = p * pl.reciprocal(jnp.sum(p, axis=-1, keepdims=True), approx=True)
        # dropout(p) is identity in eval mode
        ctx = jnp.einsum('nts,nsd->ntd', p.astype(bf16), v,
                         preferred_element_type=jnp.float32)          # (N, T, D)

        # Concat heads back onto the lane axis (one concat) and do a single
        # (M, C) @ (C, C) projection instead of 4 K=16 matmul-accumulates.
        ctx = ctx.reshape(H, M, D)                                    # leading reshape
        sa_in = jnp.concatenate([ctx[h] for h in range(H)], axis=-1)  # (M, C)
        x = x + jnp.dot(sa_in.astype(bf16), projw_ref[l],
                        preferred_element_type=jnp.float32) + projb_ref[l]

        # -------- feed-forward: x = x + fc2(relu(fc1(ln2(x)))) --------
        y2 = _layernorm(x, ln2w_ref[l], ln2b_ref[l])                  # (M, C) f32
        h1 = jnp.dot(y2.astype(bf16), fc1w_ref[l],
                     preferred_element_type=jnp.float32) + fc1b_ref[l]
        h1 = jnp.maximum(h1, 0.0)
        x = x + jnp.dot(h1.astype(bf16), fc2w_ref[l],
                        preferred_element_type=jnp.float32) + fc2b_ref[l]

    # ---- final layernorm + lane-dense LM head (65 -> 128 padded columns) ----
    xf = _layernorm(x, lnfw_ref[0], lnfb_ref[0])
    out_ref[...] = (jnp.dot(xf.astype(bf16), lmw_ref[...],
                            preferred_element_type=jnp.float32)
                    + lmb_ref[0]).astype(out_ref.dtype)


def prepare_params(params):
    """One-time packing of raw parameters into kernel-ready operands.

    Hoisted out of the per-call forward path: fused head-major QKV weight with
    the attention scale folded into q, 128-padded embedding / LM head, and
    bf16 casts for all MXU weight operands (elementwise math stays f32 —
    v5e-safe). NOTE: weights are assumed input-major (in, out); transpose
    PyTorch nn.Linear weights ((out, in)) before calling with real checkpoints.
    """
    L, C, H, D, V = N_LAYER, N_EMBD, N_HEAD, HEAD_SIZE, VOCAB_SIZE
    f32, bf16 = jnp.float32, jnp.bfloat16
    scale = float(C) ** -0.5          # PyTorch Head scales by n_embd**-0.5 (full C)

    # Fused head-major QKV: per head h the columns are [ q_h | k_h | v_h ].
    wq = (params['wq'] * scale).reshape(L, C, H, D)   # fold attention scale into q
    wk = params['wk'].reshape(L, C, H, D)
    wv = params['wv'].reshape(L, C, H, D)
    wqkv = jnp.stack([wq, wk, wv], axis=3).reshape(L, C, 3 * C)

    tok_emb_pad = jnp.zeros((V_PAD, C), f32).at[:V].set(params['tok_emb'])
    lm_w = jnp.zeros((C, V_PAD), f32).at[:, :V].set(params['lm_w'])
    lm_b = jnp.zeros((1, V_PAD), f32).at[:, :V].set(params['lm_b'])

    return {
        'tok_emb_pad': tok_emb_pad,
        'pos_emb': params['pos_emb'].astype(f32),
        'ln1_w': params['ln1_w'], 'ln1_b': params['ln1_b'],
        'wqkv': wqkv.astype(bf16),
        'proj_w': params['proj_w'].astype(bf16), 'proj_b': params['proj_b'],
        'ln2_w': params['ln2_w'], 'ln2_b': params['ln2_b'],
        'fc1_w': params['fc1_w'].astype(bf16), 'fc1_b': params['fc1_b'],
        'fc2_w': params['fc2_w'].astype(bf16), 'fc2_b': params['fc2_b'],
        'lnf_w': params['lnf_w'], 'lnf_b': params['lnf_b'],
        'lm_w': lm_w.astype(bf16), 'lm_b': lm_b,
    }


@jax.jit
def bigram_forward(idx, prep):
    """Forward pass; returns (logits (B, T, vocab_size), loss=None)."""
    B, T = idx.shape
    assert T <= BLOCK_SIZE
    ids = idx.reshape(B * T, 1).astype(jnp.int32)

    kernel_inputs = (
        ids, prep['tok_emb_pad'], prep['pos_emb'],
        prep['ln1_w'], prep['ln1_b'],
        prep['wqkv'],
        prep['proj_w'], prep['proj_b'],
        prep['ln2_w'], prep['ln2_b'],
        prep['fc1_w'], prep['fc1_b'],
        prep['fc2_w'], prep['fc2_b'],
        prep['lnf_w'], prep['lnf_b'],
        prep['lm_w'], prep['lm_b'],
    )

    # Single invocation (no grid): whole-array VMEM residency (~0.5 MiB total),
    # no pointless double-buffering of 18 tiny operands.
    vmem = pl.BlockSpec(memory_space=pltpu.MemorySpace.VMEM)
    logits_pad = pl.pallas_call(
        functools.partial(_bigram_kernel, batch=B, seq=T),
        out_shape=jax.ShapeDtypeStruct((B * T, V_PAD), jnp.float32),
        in_specs=[vmem] * len(kernel_inputs),
        out_specs=vmem,
        compiler_params=pltpu.CompilerParams(vmem_limit_bytes=32 * 1024 * 1024),
    )(*kernel_inputs)

    logits = logits_pad[:, :VOCAB_SIZE].reshape(B, T, VOCAB_SIZE)
    return logits, None


def init_params(key):
    """Deterministic synthetic parameter init (shapes match nn.Module __init__),
    stored input-major (in, out) so that y @ W is the forward projection."""
    ks = jax.random.split(key, 16)
    std = 0.02
    L, C, F, V = N_LAYER, N_EMBD, FFN_DIM, VOCAB_SIZE
    n = lambda k, shape: (std * jax.random.normal(k, shape)).astype(jnp.float32)
    return {
        'tok_emb': n(ks[0], (V, C)),
        'pos_emb': n(ks[1], (BLOCK_SIZE, C)),
        'ln1_w': jnp.ones((L, C), jnp.float32),
        'ln1_b': jnp.zeros((L, C), jnp.float32),
        'wq': n(ks[2], (L, C, C)),
        'wk': n(ks[3], (L, C, C)),
        'wv': n(ks[4], (L, C, C)),
        'proj_w': n(ks[5], (L, C, C)),
        'proj_b': jnp.zeros((L, C), jnp.float32),
        'ln2_w': jnp.ones((L, C), jnp.float32),
        'ln2_b': jnp.zeros((L, C), jnp.float32),
        'fc1_w': n(ks[6], (L, C, F)),
        'fc1_b': jnp.zeros((L, F), jnp.float32),
        'fc2_w': n(ks[7], (L, F, C)),
        'fc2_b': jnp.zeros((L, C), jnp.float32),
        'lnf_w': jnp.ones((1, C), jnp.float32),
        'lnf_b': jnp.zeros((1, C), jnp.float32),
        'lm_w': n(ks[8], (C, V)),
        'lm_b': jnp.zeros((1, V), jnp.float32),
    }


if __name__ == "__main__":
    key = jax.random.PRNGKey(0)
    pkey, ikey = jax.random.split(key)
    params = init_params(pkey)
    prep = prepare_params(params)   # one-time weight packing (hoisted out of forward)

    B, T = 2, BLOCK_SIZE            # (2, 16) token ids
    idx = jax.random.randint(ikey, (B, T), 0, VOCAB_SIZE, dtype=jnp.int32)

    logits, loss = bigram_forward(idx, prep)
    logits = jax.block_until_ready(logits)
    assert logits.shape == (B, T, VOCAB_SIZE)
    assert loss is None
    assert bool(jnp.all(jnp.isfinite(logits)))
    print("KERNEL_OK")
</pallas_src>

<mosaic_0001>
module attributes {stable_mosaic.version = 11 : i64} {
  func.func @_bigram_kernel(%arg0: memref<32x1xi32, #tpu.memory_space<vmem>>, %arg1: memref<128x64xf32, #tpu.memory_space<vmem>>, %arg2: memref<16x64xf32, #tpu.memory_space<vmem>>, %arg3: memref<4x64xf32, #tpu.memory_space<vmem>>, %arg4: memref<4x64xf32, #tpu.memory_space<vmem>>, %arg5: memref<4x64x192xbf16, #tpu.memory_space<vmem>>, %arg6: memref<4x64x64xbf16, #tpu.memory_space<vmem>>, %arg7: memref<4x64xf32, #tpu.memory_space<vmem>>, %arg8: memref<4x64xf32, #tpu.memory_space<vmem>>, %arg9: memref<4x64xf32, #tpu.memory_space<vmem>>, %arg10: memref<4x64x256xbf16, #tpu.memory_space<vmem>>, %arg11: memref<4x256xf32, #tpu.memory_space<vmem>>, %arg12: memref<4x256x64xbf16, #tpu.memory_space<vmem>>, %arg13: memref<4x64xf32, #tpu.memory_space<vmem>>, %arg14: memref<1x64xf32, #tpu.memory_space<vmem>>, %arg15: memref<1x64xf32, #tpu.memory_space<vmem>>, %arg16: memref<64x128xbf16, #tpu.memory_space<vmem>>, %arg17: memref<1x128xf32, #tpu.memory_space<vmem>>, %arg18: memref<32x128xf32, #tpu.memory_space<vmem>>) attributes {dimension_semantics = [], scalar_prefetch = 0 : i64, scratch_operands = 0 : i64, tpu.core_type = #tpu.core_type<tc>} {
    %0 = tpu.iota {dimensions = array<i32: 1>} : vector<32x128xi32>
    %c0 = arith.constant 0 : index
    %c0_0 = arith.constant 0 : index
    %1 = vector.load %arg0[%c0, %c0_0] : memref<32x1xi32, #tpu.memory_space<vmem>>, vector<32x1xi32>
    %2 = vector.broadcast %1 : vector<32x1xi32> to vector<32x128xi32>
    %3 = arith.cmpi eq, %2, %0 : vector<32x128xi32>
    %4 = arith.extui %3 : vector<32x128xi1> to vector<32x128xi32>
    %5 = arith.sitofp %4 : vector<32x128xi32> to vector<32x128xf32>
    %c0_1 = arith.constant 0 : index
    %c0_2 = arith.constant 0 : index
    %6 = vector.load %arg1[%c0_1, %c0_2] : memref<128x64xf32, #tpu.memory_space<vmem>>, vector<128x64xf32>
    %cst = arith.constant dense<0.000000e+00> : vector<32x64xf32>
    %7 = tpu.matmul %5, %6, %cst {dimension_numbers = #tpu.dot_dimension_numbers<[1], [0], [0], [1], [0, 0, 1, 1], [], []>} : vector<32x128xf32>, vector<128x64xf32>, vector<32x64xf32> -> vector<32x64xf32>
    %c0_3 = arith.constant 0 : index
    %c0_4 = arith.constant 0 : index
    %8 = vector.load %arg2[%c0_3, %c0_4] : memref<16x64xf32, #tpu.memory_space<vmem>>, vector<16x64xf32>
    %9 = vector.shape_cast %8 : vector<16x64xf32> to vector<1x16x64xf32>
    %10 = vector.shape_cast %9 : vector<1x16x64xf32> to vector<1x16x64xf32>
    %11 = vector.broadcast %10 : vector<1x16x64xf32> to vector<2x16x64xf32>
    %12 = vector.shape_cast %11 : vector<2x16x64xf32> to vector<32x64xf32>
    %13 = arith.addf %7, %12 : vector<32x64xf32>
    %14 = tpu.iota {dimensions = array<i32: 1>} : vector<1x16x16xi32>
    %15 = tpu.iota {dimensions = array<i32: 2>} : vector<1x16x16xi32>
    %16 = arith.cmpi sle, %15, %14 : vector<1x16x16xi32>
    %cst_5 = arith.constant 0.000000e+00 : f32
    %cst_6 = arith.constant -1.000000e+30 : f32
    %17 = vector.broadcast %cst_5 : f32 to vector<1x16x16xf32>
    %18 = vector.broadcast %cst_6 : f32 to vector<1x16x16xf32>
    %19 = arith.select %16, %17, %18 : vector<1x16x16xi1>, vector<1x16x16xf32>
    %c0_7 = arith.constant 0 : index
    %c0_8 = arith.constant 0 : index
    %20 = vector.load %arg3[%c0_7, %c0_8] : memref<4x64xf32, #tpu.memory_space<vmem>>, vector<1x64xf32>
    %21 = vector.shape_cast %20 : vector<1x64xf32> to vector<64xf32>
    %c0_9 = arith.constant 0 : index
    %c0_10 = arith.constant 0 : index
    %22 = vector.load %arg4[%c0_9, %c0_10] : memref<4x64xf32, #tpu.memory_space<vmem>>, vector<1x64xf32>
    %23 = vector.shape_cast %22 : vector<1x64xf32> to vector<64xf32>
    %cst_11 = arith.constant dense<0.000000e+00> : vector<32xf32>
    %24 = vector.multi_reduction <add>, %13, %cst_11 [1] : vector<32x64xf32> to vector<32xf32>
    %25 = vector.shape_cast %24 : vector<32xf32> to vector<32x1xf32>
    %cst_12 = arith.constant 6.400000e+01 : f32
    %26 = vector.broadcast %cst_12 : f32 to vector<32x1xf32>
    %27 = arith.divf %25, %26 : vector<32x1xf32>
    %28 = vector.broadcast %27 : vector<32x1xf32> to vector<32x64xf32>
    %29 = arith.subf %13, %28 : vector<32x64xf32>
    %30 = arith.mulf %29, %29 : vector<32x64xf32>
    %cst_13 = arith.constant dense<0.000000e+00> : vector<32xf32>
    %31 = vector.multi_reduction <add>, %30, %cst_13 [1] : vector<32x64xf32> to vector<32xf32>
    %32 = vector.shape_cast %31 : vector<32xf32> to vector<32x1xf32>
    %cst_14 = arith.constant 6.400000e+01 : f32
    %33 = vector.broadcast %cst_14 : f32 to vector<32x1xf32>
    %34 = arith.divf %32, %33 : vector<32x1xf32>
    %35 = vector.broadcast %27 : vector<32x1xf32> to vector<32x64xf32>
    %36 = arith.subf %13, %35 : vector<32x64xf32>
    %cst_15 = arith.constant 9.99999974E-6 : f32
    %37 = vector.broadcast %cst_15 : f32 to vector<32x1xf32>
    %38 = arith.addf %34, %37 : vector<32x1xf32>
    %39 = math.rsqrt %38 : vector<32x1xf32>
    %40 = vector.broadcast %39 : vector<32x1xf32> to vector<32x64xf32>
    %41 = arith.mulf %36, %40 : vector<32x64xf32>
    %42 = vector.shape_cast %21 : vector<64xf32> to vector<1x64xf32>
    %43 = vector.broadcast %42 : vector<1x64xf32> to vector<32x64xf32>
    %44 = arith.mulf %41, %43 : vector<32x64xf32>
    %45 = vector.shape_cast %23 : vector<64xf32> to vector<1x64xf32>
    %46 = vector.broadcast %45 : vector<1x64xf32> to vector<32x64xf32>
    %47 = arith.addf %44, %46 : vector<32x64xf32>
    %48 = arith.truncf %47 : vector<32x64xf32> to vector<32x64xbf16>
    %c0_16 = arith.constant 0 : index
    %c0_17 = arith.constant 0 : index
    %c0_18 = arith.constant 0 : index
    %49 = vector.load %arg5[%c0_16, %c0_17, %c0_18] : memref<4x64x192xbf16, #tpu.memory_space<vmem>>, vector<1x64x192xbf16>
    %50 = vector.shape_cast %49 : vector<1x64x192xbf16> to vector<64x192xbf16>
    %cst_19 = arith.constant dense<0.000000e+00> : vector<32x192xf32>
    %51 = tpu.matmul %48, %50, %cst_19 {dimension_numbers = #tpu.dot_dimension_numbers<[1], [0], [0], [1], [0, 0, 1, 1], [], []>} : vector<32x64xbf16>, vector<64x192xbf16>, vector<32x192xf32> -> vector<32x192xf32>
    %52 = vector.extract_strided_slice %51 {offsets = [0, 0], sizes = [32, 48], strides = [1, 1]} : vector<32x192xf32> to vector<32x48xf32>
    %53 = vector.shape_cast %52 : vector<32x48xf32> to vector<2x16x48xf32>
    %54 = vector.extract_strided_slice %51 {offsets = [0, 48], sizes = [32, 48], strides = [1, 1]} : vector<32x192xf32> to vector<32x48xf32>
    %55 = vector.shape_cast %54 : vector<32x48xf32> to vector<2x16x48xf32>
    %56 = vector.extract_strided_slice %51 {offsets = [0, 96], sizes = [32, 48], strides = [1, 1]} : vector<32x192xf32> to vector<32x48xf32>
    %57 = vector.shape_cast %56 : vector<32x48xf32> to vector<2x16x48xf32>
    %58 = vector.extract_strided_slice %51 {offsets = [0, 144], sizes = [32, 48], strides = [1, 1]} : vector<32x192xf32> to vector<32x48xf32>
    %59 = vector.shape_cast %58 : vector<32x48xf32> to vector<2x16x48xf32>
    %60 = vector.shape_cast %53 : vector<2x16x48xf32> to vector<1x2x16x48xf32>
    %61 = vector.shape_cast %55 : vector<2x16x48xf32> to vector<1x2x16x48xf32>
    %62 = vector.shape_cast %57 : vector<2x16x48xf32> to vector<1x2x16x48xf32>
    %63 = vector.shape_cast %59 : vector<2x16x48xf32> to vector<1x2x16x48xf32>
    %64 = tpu.concatenate %60, %61, %62, %63 in 0 : vector<1x2x16x48xf32>, vector<1x2x16x48xf32>, vector<1x2x16x48xf32>, vector<1x2x16x48xf32> -> vector<4x2x16x48xf32>
    %65 = vector.shape_cast %64 : vector<4x2x16x48xf32> to vector<8x16x48xf32>
    %66 = vector.extract_strided_slice %65 {offsets = [0, 0, 0], sizes = [8, 16, 16], strides = [1, 1, 1]} : vector<8x16x48xf32> to vector<8x16x16xf32>
    %67 = arith.truncf %66 : vector<8x16x16xf32> to vector<8x16x16xbf16>
    %68 = vector.extract_strided_slice %65 {offsets = [0, 0, 16], sizes = [8, 16, 16], strides = [1, 1, 1]} : vector<8x16x48xf32> to vector<8x16x16xf32>
    %69 = arith.truncf %68 : vector<8x16x16xf32> to vector<8x16x16xbf16>
    %70 = vector.extract_strided_slice %65 {offsets = [0, 0, 32], sizes = [8, 16, 16], strides = [1, 1, 1]} : vector<8x16x48xf32> to vector<8x16x16xf32>
    %71 = arith.truncf %70 : vector<8x16x16xf32> to vector<8x16x16xbf16>
    "tpu.trace_start"() <{level = 10 : i32, message = "ntd,nsd->nts"}> : () -> ()
    %cst_20 = arith.constant dense<0.000000e+00> : vector<8x16x16xf32>
    %72 = tpu.matmul %67, %69, %cst_20 {dimension_numbers = #tpu.dot_dimension_numbers<[2], [2], [1], [1], [0, 0, 0, 1, 1, 1], [0], [0]>} : vector<8x16x16xbf16>, vector<8x16x16xbf16>, vector<8x16x16xf32> -> vector<8x16x16xf32>
    "tpu.trace_stop"() : () -> ()
    %73 = vector.broadcast %19 : vector<1x16x16xf32> to vector<8x16x16xf32>
    %74 = arith.addf %72, %73 : vector<8x16x16xf32>
    %cst_21 = arith.constant dense<0xFF800000> : vector<8x16xf32>
    %75 = vector.multi_reduction <maximumf>, %74, %cst_21 [2] : vector<8x16x16xf32> to vector<8x16xf32>
    %76 = vector.shape_cast %75 : vector<8x16xf32> to vector<8x16x1xf32>
    %77 = vector.broadcast %76 : vector<8x16x1xf32> to vector<8x16x16xf32>
    %78 = arith.subf %74, %77 : vector<8x16x16xf32>
    %79 = math.exp %78 : vector<8x16x16xf32>
    %cst_22 = arith.constant dense<0.000000e+00> : vector<8x16xf32>
    %80 = vector.multi_reduction <add>, %79, %cst_22 [2] : vector<8x16x16xf32> to vector<8x16xf32>
    %81 = vector.shape_cast %80 : vector<8x16xf32> to vector<8x16x1xf32>
    %82 = tpu.reciprocal %81 {approx = true} : vector<8x16x1xf32> -> vector<8x16x1xf32>
    %83 = vector.broadcast %82 : vector<8x16x1xf32> to vector<8x16x16xf32>
    %84 = arith.mulf %79, %83 : vector<8x16x16xf32>
    %85 = arith.truncf %84 : vector<8x16x16xf32> to vector<8x16x16xbf16>
    "tpu.trace_start"() <{level = 10 : i32, message = "nts,nsd->ntd"}> : () -> ()
    %cst_23 = arith.constant dense<0.000000e+00> : vector<8x16x16xf32>
    %86 = tpu.matmul %85, %71, %cst_23 {dimension_numbers = #tpu.dot_dimension_numbers<[2], [1], [1], [2], [0, 0, 0, 1, 1, 2], [0], [0]>} : vector<8x16x16xbf16>, vector<8x16x16xbf16>, vector<8x16x16xf32> -> vector<8x16x16xf32>
    "tpu.trace_stop"() : () -> ()
    %87 = vector.shape_cast %86 : vector<8x16x16xf32> to vector<4x32x16xf32>
    %88 = vector.extract_strided_slice %87 {offsets = [0, 0, 0], sizes = [1, 32, 16], strides = [1, 1, 1]} : vector<4x32x16xf32> to vector<1x32x16xf32>
    %89 = vector.shape_cast %88 : vector<1x32x16xf32> to vector<32x16xf32>
    %90 = vector.extract_strided_slice %87 {offsets = [1, 0, 0], sizes = [1, 32, 16], strides = [1, 1, 1]} : vector<4x32x16xf32> to vector<1x32x16xf32>
    %91 = vector.shape_cast %90 : vector<1x32x16xf32> to vector<32x16xf32>
    %92 = vector.extract_strided_slice %87 {offsets = [2, 0, 0], sizes = [1, 32, 16], strides = [1, 1, 1]} : vector<4x32x16xf32> to vector<1x32x16xf32>
    %93 = vector.shape_cast %92 : vector<1x32x16xf32> to vector<32x16xf32>
    %94 = vector.extract_strided_slice %87 {offsets = [3, 0, 0], sizes = [1, 32, 16], strides = [1, 1, 1]} : vector<4x32x16xf32> to vector<1x32x16xf32>
    %95 = vector.shape_cast %94 : vector<1x32x16xf32> to vector<32x16xf32>
    %96 = tpu.concatenate %89, %91, %93, %95 in 1 : vector<32x16xf32>, vector<32x16xf32>, vector<32x16xf32>, vector<32x16xf32> -> vector<32x64xf32>
    %97 = arith.truncf %96 : vector<32x64xf32> to vector<32x64xbf16>
    %c0_24 = arith.constant 0 : index
    %c0_25 = arith.constant 0 : index
    %c0_26 = arith.constant 0 : index
    %98 = vector.load %arg6[%c0_24, %c0_25, %c0_26] : memref<4x64x64xbf16, #tpu.memory_space<vmem>>, vector<1x64x64xbf16>
    %99 = vector.shape_cast %98 : vector<1x64x64xbf16> to vector<64x64xbf16>
    %cst_27 = arith.constant dense<0.000000e+00> : vector<32x64xf32>
    %100 = tpu.matmul %97, %99, %cst_27 {dimension_numbers = #tpu.dot_dimension_numbers<[1], [0], [0], [1], [0, 0, 1, 1], [], []>} : vector<32x64xbf16>, vector<64x64xbf16>, vector<32x64xf32> -> vector<32x64xf32>
    %101 = arith.addf %13, %100 : vector<32x64xf32>
    %c0_28 = arith.constant 0 : index
    %c0_29 = arith.constant 0 : index
    %102 = vector.load %arg7[%c0_28, %c0_29] : memref<4x64xf32, #tpu.memory_space<vmem>>, vector<1x64xf32>
    %103 = vector.shape_cast %102 : vector<1x64xf32> to vector<64xf32>
    %104 = vector.shape_cast %103 : vector<64xf32> to vector<1x64xf32>
    %105 = vector.broadcast %104 : vector<1x64xf32> to vector<32x64xf32>
    %106 = arith.addf %101, %105 : vector<32x64xf32>
    %c0_30 = arith.constant 0 : index
    %c0_31 = arith.constant 0 : index
    %107 = vector.load %arg8[%c0_30, %c0_31] : memref<4x64xf32, #tpu.memory_space<vmem>>, vector<1x64xf32>
    %108 = vector.shape_cast %107 : vector<1x64xf32> to vector<64xf32>
    %c0_32 = arith.constant 0 : index
    %c0_33 = arith.constant 0 : index
    %109 = vector.load %arg9[%c0_32, %c0_33] : memref<4x64xf32, #tpu.memory_space<vmem>>, vector<1x64xf32>
    %110 = vector.shape_cast %109 : vector<1x64xf32> to vector<64xf32>
    %cst_34 = arith.constant dense<0.000000e+00> : vector<32xf32>
    %111 = vector.multi_reduction <add>, %106, %cst_34 [1] : vector<32x64xf32> to vector<32xf32>
    %112 = vector.shape_cast %111 : vector<32xf32> to vector<32x1xf32>
    %cst_35 = arith.constant 6.400000e+01 : f32
    %113 = vector.broadcast %cst_35 : f32 to vector<32x1xf32>
    %114 = arith.divf %112, %113 : vector<32x1xf32>
    %115 = vector.broadcast %114 : vector<32x1xf32> to vector<32x64xf32>
    %116 = arith.subf %106, %115 : vector<32x64xf32>
    %117 = arith.mulf %116, %116 : vector<32x64xf32>
    %cst_36 = arith.constant dense<0.000000e+00> : vector<32xf32>
    %118 = vector.multi_reduction <add>, %117, %cst_36 [1] : vector<32x64xf32> to vector<32xf32>
    %119 = vector.shape_cast %118 : vector<32xf32> to vector<32x1xf32>
    %cst_37 = arith.constant 6.400000e+01 : f32
    %120 = vector.broadcast %cst_37 : f32 to vector<32x1xf32>
    %121 = arith.divf %119, %120 : vector<32x1xf32>
    %122 = vector.broadcast %114 : vector<32x1xf32> to vector<32x64xf32>
    %123 = arith.subf %106, %122 : vector<32x64xf32>
    %cst_38 = arith.constant 9.99999974E-6 : f32
    %124 = vector.broadcast %cst_38 : f32 to vector<32x1xf32>
    %125 = arith.addf %121, %124 : vector<32x1xf32>
    %126 = math.rsqrt %125 : vector<32x1xf32>
    %127 = vector.broadcast %126 : vector<32x1xf32> to vector<32x64xf32>
    %128 = arith.mulf %123, %127 : vector<32x64xf32>
    %129 = vector.shape_cast %108 : vector<64xf32> to vector<1x64xf32>
    %130 = vector.broadcast %129 : vector<1x64xf32> to vector<32x64xf32>
    %131 = arith.mulf %128, %130 : vector<32x64xf32>
    %132 = vector.shape_cast %110 : vector<64xf32> to vector<1x64xf32>
    %133 = vector.broadcast %132 : vector<1x64xf32> to vector<32x64xf32>
    %134 = arith.addf %131, %133 : vector<32x64xf32>
    %135 = arith.truncf %134 : vector<32x64xf32> to vector<32x64xbf16>
    %c0_39 = arith.constant 0 : index
    %c0_40 = arith.constant 0 : index
    %c0_41 = arith.constant 0 : index
    %136 = vector.load %arg10[%c0_39, %c0_40, %c0_41] : memref<4x64x256xbf16, #tpu.memory_space<vmem>>, vector<1x64x256xbf16>
    %137 = vector.shape_cast %136 : vector<1x64x256xbf16> to vector<64x256xbf16>
    %cst_42 = arith.constant dense<0.000000e+00> : vector<32x256xf32>
    %138 = tpu.matmul %135, %137, %cst_42 {dimension_numbers = #tpu.dot_dimension_numbers<[1], [0], [0], [1], [0, 0, 1, 1], [], []>} : vector<32x64xbf16>, vector<64x256xbf16>, vector<32x256xf32> -> vector<32x256xf32>
    %c0_43 = arith.constant 0 : index
    %c0_44 = arith.constant 0 : index
    %139 = vector.load %arg11[%c0_43, %c0_44] : memref<4x256xf32, #tpu.memory_space<vmem>>, vector<1x256xf32>
    %140 = vector.shape_cast %139 : vector<1x256xf32> to vector<256xf32>
    %141 = vector.shape_cast %140 : vector<256xf32> to vector<1x256xf32>
    %142 = vector.broadcast %141 : vector<1x256xf32> to vector<32x256xf32>
    %143 = arith.addf %138, %142 : vector<32x256xf32>
    %cst_45 = arith.constant 0.000000e+00 : f32
    %144 = vector.broadcast %cst_45 : f32 to vector<32x256xf32>
    %145 = arith.maximumf %143, %144 : vector<32x256xf32>
    %146 = arith.truncf %145 : vector<32x256xf32> to vector<32x256xbf16>
    %c0_46 = arith.constant 0 : index
    %c0_47 = arith.constant 0 : index
    %c0_48 = arith.constant 0 : index
    %147 = vector.load %arg12[%c0_46, %c0_47, %c0_48] : memref<4x256x64xbf16, #tpu.memory_space<vmem>>, vector<1x256x64xbf16>
    %148 = vector.shape_cast %147 : vector<1x256x64xbf16> to vector<256x64xbf16>
    %cst_49 = arith.constant dense<0.000000e+00> : vector<32x64xf32>
    %149 = tpu.matmul %146, %148, %cst_49 {dimension_numbers = #tpu.dot_dimension_numbers<[1], [0], [0], [1], [0, 0, 1, 1], [], []>} : vector<32x256xbf16>, vector<256x64xbf16>, vector<32x64xf32> -> vector<32x64xf32>
    %150 = arith.addf %106, %149 : vector<32x64xf32>
    %c0_50 = arith.constant 0 : index
    %c0_51 = arith.constant 0 : index
    %151 = vector.load %arg13[%c0_50, %c0_51] : memref<4x64xf32, #tpu.memory_space<vmem>>, vector<1x64xf32>
    %152 = vector.shape_cast %151 : vector<1x64xf32> to vector<64xf32>
    %153 = vector.shape_cast %152 : vector<64xf32> to vector<1x64xf32>
    %154 = vector.broadcast %153 : vector<1x64xf32> to vector<32x64xf32>
    %155 = arith.addf %150, %154 : vector<32x64xf32>
    %c1 = arith.constant 1 : index
    %c0_52 = arith.constant 0 : index
    %156 = vector.load %arg3[%c1, %c0_52] : memref<4x64xf32, #tpu.memory_space<vmem>>, vector<1x64xf32>
    %157 = vector.shape_cast %156 : vector<1x64xf32> to vector<64xf32>
    %c1_53 = arith.constant 1 : index
    %c0_54 = arith.constant 0 : index
    %158 = vector.load %arg4[%c1_53, %c0_54] : memref<4x64xf32, #tpu.memory_space<vmem>>, vector<1x64xf32>
    %159 = vector.shape_cast %158 : vector<1x64xf32> to vector<64xf32>
    %cst_55 = arith.constant dense<0.000000e+00> : vector<32xf32>
    %160 = vector.multi_reduction <add>, %155, %cst_55 [1] : vector<32x64xf32> to vector<32xf32>
    %161 = vector.shape_cast %160 : vector<32xf32> to vector<32x1xf32>
    %cst_56 = arith.constant 6.400000e+01 : f32
    %162 = vector.broadcast %cst_56 : f32 to vector<32x1xf32>
    %163 = arith.divf %161, %162 : vector<32x1xf32>
    %164 = vector.broadcast %163 : vector<32x1xf32> to vector<32x64xf32>
    %165 = arith.subf %155, %164 : vector<32x64xf32>
    %166 = arith.mulf %165, %165 : vector<32x64xf32>
    %cst_57 = arith.constant dense<0.000000e+00> : vector<32xf32>
    %167 = vector.multi_reduction <add>, %166, %cst_57 [1] : vector<32x64xf32> to vector<32xf32>
    %168 = vector.shape_cast %167 : vector<32xf32> to vector<32x1xf32>
    %cst_58 = arith.constant 6.400000e+01 : f32
    %169 = vector.broadcast %cst_58 : f32 to vector<32x1xf32>
    %170 = arith.divf %168, %169 : vector<32x1xf32>
    %171 = vector.broadcast %163 : vector<32x1xf32> to vector<32x64xf32>
    %172 = arith.subf %155, %171 : vector<32x64xf32>
    %cst_59 = arith.constant 9.99999974E-6 : f32
    %173 = vector.broadcast %cst_59 : f32 to vector<32x1xf32>
    %174 = arith.addf %170, %173 : vector<32x1xf32>
    %175 = math.rsqrt %174 : vector<32x1xf32>
    %176 = vector.broadcast %175 : vector<32x1xf32> to vector<32x64xf32>
    %177 = arith.mulf %172, %176 : vector<32x64xf32>
    %178 = vector.shape_cast %157 : vector<64xf32> to vector<1x64xf32>
    %179 = vector.broadcast %178 : vector<1x64xf32> to vector<32x64xf32>
    %180 = arith.mulf %177, %179 : vector<32x64xf32>
    %181 = vector.shape_cast %159 : vector<64xf32> to vector<1x64xf32>
    %182 = vector.broadcast %181 : vector<1x64xf32> to vector<32x64xf32>
    %183 = arith.addf %180, %182 : vector<32x64xf32>
    %184 = arith.truncf %183 : vector<32x64xf32> to vector<32x64xbf16>
    %c1_60 = arith.constant 1 : index
    %c0_61 = arith.constant 0 : index
    %c0_62 = arith.constant 0 : index
    %185 = vector.load %arg5[%c1_60, %c0_61, %c0_62] : memref<4x64x192xbf16, #tpu.memory_space<vmem>>, vector<1x64x192xbf16>
    %186 = vector.shape_cast %185 : vector<1x64x192xbf16> to vector<64x192xbf16>
    %cst_63 = arith.constant dense<0.000000e+00> : vector<32x192xf32>
    %187 = tpu.matmul %184, %186, %cst_63 {dimension_numbers = #tpu.dot_dimension_numbers<[1], [0], [0], [1], [0, 0, 1, 1], [], []>} : vector<32x64xbf16>, vector<64x192xbf16>, vector<32x192xf32> -> vector<32x192xf32>
    %188 = vector.extract_strided_slice %187 {offsets = [0, 0], sizes = [32, 48], strides = [1, 1]} : vector<32x192xf32> to vector<32x48xf32>
    %189 = vector.shape_cast %188 : vector<32x48xf32> to vector<2x16x48xf32>
    %190 = vector.extract_strided_slice %187 {offsets = [0, 48], sizes = [32, 48], strides = [1, 1]} : vector<32x192xf32> to vector<32x48xf32>
    %191 = vector.shape_cast %190 : vector<32x48xf32> to vector<2x16x48xf32>
    %192 = vector.extract_strided_slice %187 {offsets = [0, 96], sizes = [32, 48], strides = [1, 1]} : vector<32x192xf32> to vector<32x48xf32>
    %193 = vector.shape_cast %192 : vector<32x48xf32> to vector<2x16x48xf32>
    %194 = vector.extract_strided_slice %187 {offsets = [0, 144], sizes = [32, 48], strides = [1, 1]} : vector<32x192xf32> to vector<32x48xf32>
    %195 = vector.shape_cast %194 : vector<32x48xf32> to vector<2x16x48xf32>
    %196 = vector.shape_cast %189 : vector<2x16x48xf32> to vector<1x2x16x48xf32>
    %197 = vector.shape_cast %191 : vector<2x16x48xf32> to vector<1x2x16x48xf32>
    %198 = vector.shape_cast %193 : vector<2x16x48xf32> to vector<1x2x16x48xf32>
    %199 = vector.shape_cast %195 : vector<2x16x48xf32> to vector<1x2x16x48xf32>
    %200 = tpu.concatenate %196, %197, %198, %199 in 0 : vector<1x2x16x48xf32>, vector<1x2x16x48xf32>, vector<1x2x16x48xf32>, vector<1x2x16x48xf32> -> vector<4x2x16x48xf32>
    %201 = vector.shape_cast %200 : vector<4x2x16x48xf32> to vector<8x16x48xf32>
    %202 = vector.extract_strided_slice %201 {offsets = [0, 0, 0], sizes = [8, 16, 16], strides = [1, 1, 1]} : vector<8x16x48xf32> to vector<8x16x16xf32>
    %203 = arith.truncf %202 : vector<8x16x16xf32> to vector<8x16x16xbf16>
    %204 = vector.extract_strided_slice %201 {offsets = [0, 0, 16], sizes = [8, 16, 16], strides = [1, 1, 1]} : vector<8x16x48xf32> to vector<8x16x16xf32>
    %205 = arith.truncf %204 : vector<8x16x16xf32> to vector<8x16x16xbf16>
    %206 = vector.extract_strided_slice %201 {offsets = [0, 0, 32], sizes = [8, 16, 16], strides = [1, 1, 1]} : vector<8x16x48xf32> to vector<8x16x16xf32>
    %207 = arith.truncf %206 : vector<8x16x16xf32> to vector<8x16x16xbf16>
    "tpu.trace_start"() <{level = 10 : i32, message = "ntd,nsd->nts"}> : () -> ()
    %cst_64 = arith.constant dense<0.000000e+00> : vector<8x16x16xf32>
    %208 = tpu.matmul %203, %205, %cst_64 {dimension_numbers = #tpu.dot_dimension_numbers<[2], [2], [1], [1], [0, 0, 0, 1, 1, 1], [0], [0]>} : vector<8x16x16xbf16>, vector<8x16x16xbf16>, vector<8x16x16xf32> -> vector<8x16x16xf32>
    "tpu.trace_stop"() : () -> ()
    %209 = vector.broadcast %19 : vector<1x16x16xf32> to vector<8x16x16xf32>
    %210 = arith.addf %208, %209 : vector<8x16x16xf32>
    %cst_65 = arith.constant dense<0xFF800000> : vector<8x16xf32>
    %211 = vector.multi_reduction <maximumf>, %210, %cst_65 [2] : vector<8x16x16xf32> to vector<8x16xf32>
    %212 = vector.shape_cast %211 : vector<8x16xf32> to vector<8x16x1xf32>
    %213 = vector.broadcast %212 : vector<8x16x1xf32> to vector<8x16x16xf32>
    %214 = arith.subf %210, %213 : vector<8x16x16xf32>
    %215 = math.exp %214 : vector<8x16x16xf32>
    %cst_66 = arith.constant dense<0.000000e+00> : vector<8x16xf32>
    %216 = vector.multi_reduction <add>, %215, %cst_66 [2] : vector<8x16x16xf32> to vector<8x16xf32>
    %217 = vector.shape_cast %216 : vector<8x16xf32> to vector<8x16x1xf32>
    %218 = tpu.reciprocal %217 {approx = true} : vector<8x16x1xf32> -> vector<8x16x1xf32>
    %219 = vector.broadcast %218 : vector<8x16x1xf32> to vector<8x16x16xf32>
    %220 = arith.mulf %215, %219 : vector<8x16x16xf32>
    %221 = arith.truncf %220 : vector<8x16x16xf32> to vector<8x16x16xbf16>
    "tpu.trace_start"() <{level = 10 : i32, message = "nts,nsd->ntd"}> : () -> ()
    %cst_67 = arith.constant dense<0.000000e+00> : vector<8x16x16xf32>
    %222 = tpu.matmul %221, %207, %cst_67 {dimension_numbers = #tpu.dot_dimension_numbers<[2], [1], [1], [2], [0, 0, 0, 1, 1, 2], [0], [0]>} : vector<8x16x16xbf16>, vector<8x16x16xbf16>, vector<8x16x16xf32> -> vector<8x16x16xf32>
    "tpu.trace_stop"() : () -> ()
    %223 = vector.shape_cast %222 : vector<8x16x16xf32> to vector<4x32x16xf32>
    %224 = vector.extract_strided_slice %223 {offsets = [0, 0, 0], sizes = [1, 32, 16], strides = [1, 1, 1]} : vector<4x32x16xf32> to vector<1x32x16xf32>
    %225 = vector.shape_cast %224 : vector<1x32x16xf32> to vector<32x16xf32>
    %226 = vector.extract_strided_slice %223 {offsets = [1, 0, 0], sizes = [1, 32, 16], strides = [1, 1, 1]} : vector<4x32x16xf32> to vector<1x32x16xf32>
    %227 = vector.shape_cast %226 : vector<1x32x16xf32> to vector<32x16xf32>
    %228 = vector.extract_strided_slice %223 {offsets = [2, 0, 0], sizes = [1, 32, 16], strides = [1, 1, 1]} : vector<4x32x16xf32> to vector<1x32x16xf32>
    %229 = vector.shape_cast %228 : vector<1x32x16xf32> to vector<32x16xf32>
    %230 = vector.extract_strided_slice %223 {offsets = [3, 0, 0], sizes = [1, 32, 16], strides = [1, 1, 1]} : vector<4x32x16xf32> to vector<1x32x16xf32>
    %231 = vector.shape_cast %230 : vector<1x32x16xf32> to vector<32x16xf32>
    %232 = tpu.concatenate %225, %227, %229, %231 in 1 : vector<32x16xf32>, vector<32x16xf32>, vector<32x16xf32>, vector<32x16xf32> -> vector<32x64xf32>
    %233 = arith.truncf %232 : vector<32x64xf32> to vector<32x64xbf16>
    %c1_68 = arith.constant 1 : index
    %c0_69 = arith.constant 0 : index
    %c0_70 = arith.constant 0 : index
    %234 = vector.load %arg6[%c1_68, %c0_69, %c0_70] : memref<4x64x64xbf16, #tpu.memory_space<vmem>>, vector<1x64x64xbf16>
    %235 = vector.shape_cast %234 : vector<1x64x64xbf16> to vector<64x64xbf16>
    %cst_71 = arith.constant dense<0.000000e+00> : vector<32x64xf32>
    %236 = tpu.matmul %233, %235, %cst_71 {dimension_numbers = #tpu.dot_dimension_numbers<[1], [0], [0], [1], [0, 0, 1, 1], [], []>} : vector<32x64xbf16>, vector<64x64xbf16>, vector<32x64xf32> -> vector<32x64xf32>
    %237 = arith.addf %155, %236 : vector<32x64xf32>
    %c1_72 = arith.constant 1 : index
    %c0_73 = arith.constant 0 : index
    %238 = vector.load %arg7[%c1_72, %c0_73] : memref<4x64xf32, #tpu.memory_space<vmem>>, vector<1x64xf32>
    %239 = vector.shape_cast %238 : vector<1x64xf32> to vector<64xf32>
    %240 = vector.shape_cast %239 : vector<64xf32> to vector<1x64xf32>
    %241 = vector.broadcast %240 : vector<1x64xf32> to vector<32x64xf32>
    %242 = arith.addf %237, %241 : vector<32x64xf32>
    %c1_74 = arith.constant 1 : index
    %c0_75 = arith.constant 0 : index
    %243 = vector.load %arg8[%c1_74, %c0_75] : memref<4x64xf32, #tpu.memory_space<vmem>>, vector<1x64xf32>
    %244 = vector.shape_cast %243 : vector<1x64xf32> to vector<64xf32>
    %c1_76 = arith.constant 1 : index
    %c0_77 = arith.constant 0 : index
    %245 = vector.load %arg9[%c1_76, %c0_77] : memref<4x64xf32, #tpu.memory_space<vmem>>, vector<1x64xf32>
    %246 = vector.shape_cast %245 : vector<1x64xf32> to vector<64xf32>
    %cst_78 = arith.constant dense<0.000000e+00> : vector<32xf32>
    %247 = vector.multi_reduction <add>, %242, %cst_78 [1] : vector<32x64xf32> to vector<32xf32>
    %248 = vector.shape_cast %247 : vector<32xf32> to vector<32x1xf32>
    %cst_79 = arith.constant 6.400000e+01 : f32
    %249 = vector.broadcast %cst_79 : f32 to vector<32x1xf32>
    %250 = arith.divf %248, %249 : vector<32x1xf32>
    %251 = vector.broadcast %250 : vector<32x1xf32> to vector<32x64xf32>
    %252 = arith.subf %242, %251 : vector<32x64xf32>
    %253 = arith.mulf %252, %252 : vector<32x64xf32>
    %cst_80 = arith.constant dense<0.000000e+00> : vector<32xf32>
    %254 = vector.multi_reduction <add>, %253, %cst_80 [1] : vector<32x64xf32> to vector<32xf32>
    %255 = vector.shape_cast %254 : vector<32xf32> to vector<32x1xf32>
    %cst_81 = arith.constant 6.400000e+01 : f32
    %256 = vector.broadcast %cst_81 : f32 to vector<32x1xf32>
    %257 = arith.divf %255, %256 : vector<32x1xf32>
    %258 = vector.broadcast %250 : vector<32x1xf32> to vector<32x64xf32>
    %259 = arith.subf %242, %258 : vector<32x64xf32>
    %cst_82 = arith.constant 9.99999974E-6 : f32
    %260 = vector.broadcast %cst_82 : f32 to vector<32x1xf32>
    %261 = arith.addf %257, %260 : vector<32x1xf32>
    %262 = math.rsqrt %261 : vector<32x1xf32>
    %263 = vector.broadcast %262 : vector<32x1xf32> to vector<32x64xf32>
    %264 = arith.mulf %259, %263 : vector<32x64xf32>
    %265 = vector.shape_cast %244 : vector<64xf32> to vector<1x64xf32>
    %266 = vector.broadcast %265 : vector<1x64xf32> to vector<32x64xf32>
    %267 = arith.mulf %264, %266 : vector<32x64xf32>
    %268 = vector.shape_cast %246 : vector<64xf32> to vector<1x64xf32>
    %269 = vector.broadcast %268 : vector<1x64xf32> to vector<32x64xf32>
    %270 = arith.addf %267, %269 : vector<32x64xf32>
    %271 = arith.truncf %270 : vector<32x64xf32> to vector<32x64xbf16>
    %c1_83 = arith.constant 1 : index
    %c0_84 = arith.constant 0 : index
    %c0_85 = arith.constant 0 : index
    %272 = vector.load %arg10[%c1_83, %c0_84, %c0_85] : memref<4x64x256xbf16, #tpu.memory_space<vmem>>, vector<1x64x256xbf16>
    %273 = vector.shape_cast %272 : vector<1x64x256xbf16> to vector<64x256xbf16>
    %cst_86 = arith.constant dense<0.000000e+00> : vector<32x256xf32>
    %274 = tpu.matmul %271, %273, %cst_86 {dimension_numbers = #tpu.dot_dimension_numbers<[1], [0], [0], [1], [0, 0, 1, 1], [], []>} : vector<32x64xbf16>, vector<64x256xbf16>, vector<32x256xf32> -> vector<32x256xf32>
    %c1_87 = arith.constant 1 : index
    %c0_88 = arith.constant 0 : index
    %275 = vector.load %arg11[%c1_87, %c0_88] : memref<4x256xf32, #tpu.memory_space<vmem>>, vector<1x256xf32>
    %276 = vector.shape_cast %275 : vector<1x256xf32> to vector<256xf32>
    %277 = vector.shape_cast %276 : vector<256xf32> to vector<1x256xf32>
    %278 = vector.broadcast %277 : vector<1x256xf32> to vector<32x256xf32>
    %279 = arith.addf %274, %278 : vector<32x256xf32>
    %cst_89 = arith.constant 0.000000e+00 : f32
    %280 = vector.broadcast %cst_89 : f32 to vector<32x256xf32>
    %281 = arith.maximumf %279, %280 : vector<32x256xf32>
    %282 = arith.truncf %281 : vector<32x256xf32> to vector<32x256xbf16>
    %c1_90 = arith.constant 1 : index
    %c0_91 = arith.constant 0 : index
    %c0_92 = arith.constant 0 : index
    %283 = vector.load %arg12[%c1_90, %c0_91, %c0_92] : memref<4x256x64xbf16, #tpu.memory_space<vmem>>, vector<1x256x64xbf16>
    %284 = vector.shape_cast %283 : vector<1x256x64xbf16> to vector<256x64xbf16>
    %cst_93 = arith.constant dense<0.000000e+00> : vector<32x64xf32>
    %285 = tpu.matmul %282, %284, %cst_93 {dimension_numbers = #tpu.dot_dimension_numbers<[1], [0], [0], [1], [0, 0, 1, 1], [], []>} : vector<32x256xbf16>, vector<256x64xbf16>, vector<32x64xf32> -> vector<32x64xf32>
    %286 = arith.addf %242, %285 : vector<32x64xf32>
    %c1_94 = arith.constant 1 : index
    %c0_95 = arith.constant 0 : index
    %287 = vector.load %arg13[%c1_94, %c0_95] : memref<4x64xf32, #tpu.memory_space<vmem>>, vector<1x64xf32>
    %288 = vector.shape_cast %287 : vector<1x64xf32> to vector<64xf32>
    %289 = vector.shape_cast %288 : vector<64xf32> to vector<1x64xf32>
    %290 = vector.broadcast %289 : vector<1x64xf32> to vector<32x64xf32>
    %291 = arith.addf %286, %290 : vector<32x64xf32>
    %c2 = arith.constant 2 : index
    %c0_96 = arith.constant 0 : index
    %292 = vector.load %arg3[%c2, %c0_96] : memref<4x64xf32, #tpu.memory_space<vmem>>, vector<1x64xf32>
    %293 = vector.shape_cast %292 : vector<1x64xf32> to vector<64xf32>
    %c2_97 = arith.constant 2 : index
    %c0_98 = arith.constant 0 : index
    %294 = vector.load %arg4[%c2_97, %c0_98] : memref<4x64xf32, #tpu.memory_space<vmem>>, vector<1x64xf32>
    %295 = vector.shape_cast %294 : vector<1x64xf32> to vector<64xf32>
    %cst_99 = arith.constant dense<0.000000e+00> : vector<32xf32>
    %296 = vector.multi_reduction <add>, %291, %cst_99 [1] : vector<32x64xf32> to vector<32xf32>
    %297 = vector.shape_cast %296 : vector<32xf32> to vector<32x1xf32>
    %cst_100 = arith.constant 6.400000e+01 : f32
    %298 = vector.broadcast %cst_100 : f32 to vector<32x1xf32>
    %299 = arith.divf %297, %298 : vector<32x1xf32>
    %300 = vector.broadcast %299 : vector<32x1xf32> to vector<32x64xf32>
    %301 = arith.subf %291, %300 : vector<32x64xf32>
    %302 = arith.mulf %301, %301 : vector<32x64xf32>
    %cst_101 = arith.constant dense<0.000000e+00> : vector<32xf32>
    %303 = vector.multi_reduction <add>, %302, %cst_101 [1] : vector<32x64xf32> to vector<32xf32>
    %304 = vector.shape_cast %303 : vector<32xf32> to vector<32x1xf32>
    %cst_102 = arith.constant 6.400000e+01 : f32
    %305 = vector.broadcast %cst_102 : f32 to vector<32x1xf32>
    %306 = arith.divf %304, %305 : vector<32x1xf32>
    %307 = vector.broadcast %299 : vector<32x1xf32> to vector<32x64xf32>
    %308 = arith.subf %291, %307 : vector<32x64xf32>
    %cst_103 = arith.constant 9.99999974E-6 : f32
    %309 = vector.broadcast %cst_103 : f32 to vector<32x1xf32>
    %310 = arith.addf %306, %309 : vector<32x1xf32>
    %311 = math.rsqrt %310 : vector<32x1xf32>
    %312 = vector.broadcast %311 : vector<32x1xf32> to vector<32x64xf32>
    %313 = arith.mulf %308, %312 : vector<32x64xf32>
    %314 = vector.shape_cast %293 : vector<64xf32> to vector<1x64xf32>
    %315 = vector.broadcast %314 : vector<1x64xf32> to vector<32x64xf32>
    %316 = arith.mulf %313, %315 : vector<32x64xf32>
    %317 = vector.shape_cast %295 : vector<64xf32> to vector<1x64xf32>
    %318 = vector.broadcast %317 : vector<1x64xf32> to vector<32x64xf32>
    %319 = arith.addf %316, %318 : vector<32x64xf32>
    %320 = arith.truncf %319 : vector<32x64xf32> to vector<32x64xbf16>
    %c2_104 = arith.constant 2 : index
    %c0_105 = arith.constant 0 : index
    %c0_106 = arith.constant 0 : index
    %321 = vector.load %arg5[%c2_104, %c0_105, %c0_106] : memref<4x64x192xbf16, #tpu.memory_space<vmem>>, vector<1x64x192xbf16>
    %322 = vector.shape_cast %321 : vector<1x64x192xbf16> to vector<64x192xbf16>
    %cst_107 = arith.constant dense<0.000000e+00> : vector<32x192xf32>
    %323 = tpu.matmul %320, %322, %cst_107 {dimension_numbers = #tpu.dot_dimension_numbers<[1], [0], [0], [1], [0, 0, 1, 1], [], []>} : vector<32x64xbf16>, vector<64x192xbf16>, vector<32x192xf32> -> vector<32x192xf32>
    %324 = vector.extract_strided_slice %323 {offsets = [0, 0], sizes = [32, 48], strides = [1, 1]} : vector<32x192xf32> to vector<32x48xf32>
    %325 = vector.shape_cast %324 : vector<32x48xf32> to vector<2x16x48xf32>
    %326 = vector.extract_strided_slice %323 {offsets = [0, 48], sizes = [32, 48], strides = [1, 1]} : vector<32x192xf32> to vector<32x48xf32>
    %327 = vector.shape_cast %326 : vector<32x48xf32> to vector<2x16x48xf32>
    %328 = vector.extract_strided_slice %323 {offsets = [0, 96], sizes = [32, 48], strides = [1, 1]} : vector<32x192xf32> to vector<32x48xf32>
    %329 = vector.shape_cast %328 : vector<32x48xf32> to vector<2x16x48xf32>
    %330 = vector.extract_strided_slice %323 {offsets = [0, 144], sizes = [32, 48], strides = [1, 1]} : vector<32x192xf32> to vector<32x48xf32>
    %331 = vector.shape_cast %330 : vector<32x48xf32> to vector<2x16x48xf32>
    %332 = vector.shape_cast %325 : vector<2x16x48xf32> to vector<1x2x16x48xf32>
    %333 = vector.shape_cast %327 : vector<2x16x48xf32> to vector<1x2x16x48xf32>
    %334 = vector.shape_cast %329 : vector<2x16x48xf32> to vector<1x2x16x48xf32>
    %335 = vector.shape_cast %331 : vector<2x16x48xf32> to vector<1x2x16x48xf32>
    %336 = tpu.concatenate %332, %333, %334, %335 in 0 : vector<1x2x16x48xf32>, vector<1x2x16x48xf32>, vector<1x2x16x48xf32>, vector<1x2x16x48xf32> -> vector<4x2x16x48xf32>
    %337 = vector.shape_cast %336 : vector<4x2x16x48xf32> to vector<8x16x48xf32>
    %338 = vector.extract_strided_slice %337 {offsets = [0, 0, 0], sizes = [8, 16, 16], strides = [1, 1, 1]} : vector<8x16x48xf32> to vector<8x16x16xf32>
    %339 = arith.truncf %338 : vector<8x16x16xf32> to vector<8x16x16xbf16>
    %340 = vector.extract_strided_slice %337 {offsets = [0, 0, 16], sizes = [8, 16, 16], strides = [1, 1, 1]} : vector<8x16x48xf32> to vector<8x16x16xf32>
    %341 = arith.truncf %340 : vector<8x16x16xf32> to vector<8x16x16xbf16>
    %342 = vector.extract_strided_slice %337 {offsets = [0, 0, 32], sizes = [8, 16, 16], strides = [1, 1, 1]} : vector<8x16x48xf32> to vector<8x16x16xf32>
    %343 = arith.truncf %342 : vector<8x16x16xf32> to vector<8x16x16xbf16>
    "tpu.trace_start"() <{level = 10 : i32, message = "ntd,nsd->nts"}> : () -> ()
    %cst_108 = arith.constant dense<0.000000e+00> : vector<8x16x16xf32>
    %344 = tpu.matmul %339, %341, %cst_108 {dimension_numbers = #tpu.dot_dimension_numbers<[2], [2], [1], [1], [0, 0, 0, 1, 1, 1], [0], [0]>} : vector<8x16x16xbf16>, vector<8x16x16xbf16>, vector<8x16x16xf32> -> vector<8x16x16xf32>
    "tpu.trace_stop"() : () -> ()
    %345 = vector.broadcast %19 : vector<1x16x16xf32> to vector<8x16x16xf32>
    %346 = arith.addf %344, %345 : vector<8x16x16xf32>
    %cst_109 = arith.constant dense<0xFF800000> : vector<8x16xf32>
    %347 = vector.multi_reduction <maximumf>, %346, %cst_109 [2] : vector<8x16x16xf32> to vector<8x16xf32>
    %348 = vector.shape_cast %347 : vector<8x16xf32> to vector<8x16x1xf32>
    %349 = vector.broadcast %348 : vector<8x16x1xf32> to vector<8x16x16xf32>
    %350 = arith.subf %346, %349 : vector<8x16x16xf32>
    %351 = math.exp %350 : vector<8x16x16xf32>
    %cst_110 = arith.constant dense<0.000000e+00> : vector<8x16xf32>
    %352 = vector.multi_reduction <add>, %351, %cst_110 [2] : vector<8x16x16xf32> to vector<8x16xf32>
    %353 = vector.shape_cast %352 : vector<8x16xf32> to vector<8x16x1xf32>
    %354 = tpu.reciprocal %353 {approx = true} : vector<8x16x1xf32> -> vector<8x16x1xf32>
    %355 = vector.broadcast %354 : vector<8x16x1xf32> to vector<8x16x16xf32>
    %356 = arith.mulf %351, %355 : vector<8x16x16xf32>
    %357 = arith.truncf %356 : vector<8x16x16xf32> to vector<8x16x16xbf16>
    "tpu.trace_start"() <{level = 10 : i32, message = "nts,nsd->ntd"}> : () -> ()
    %cst_111 = arith.constant dense<0.000000e+00> : vector<8x16x16xf32>
    %358 = tpu.matmul %357, %343, %cst_111 {dimension_numbers = #tpu.dot_dimension_numbers<[2], [1], [1], [2], [0, 0, 0, 1, 1, 2], [0], [0]>} : vector<8x16x16xbf16>, vector<8x16x16xbf16>, vector<8x16x16xf32> -> vector<8x16x16xf32>
    "tpu.trace_stop"() : () -> ()
    %359 = vector.shape_cast %358 : vector<8x16x16xf32> to vector<4x32x16xf32>
    %360 = vector.extract_strided_slice %359 {offsets = [0, 0, 0], sizes = [1, 32, 16], strides = [1, 1, 1]} : vector<4x32x16xf32> to vector<1x32x16xf32>
    %361 = vector.shape_cast %360 : vector<1x32x16xf32> to vector<32x16xf32>
    %362 = vector.extract_strided_slice %359 {offsets = [1, 0, 0], sizes = [1, 32, 16], strides = [1, 1, 1]} : vector<4x32x16xf32> to vector<1x32x16xf32>
    %363 = vector.shape_cast %362 : vector<1x32x16xf32> to vector<32x16xf32>
    %364 = vector.extract_strided_slice %359 {offsets = [2, 0, 0], sizes = [1, 32, 16], strides = [1, 1, 1]} : vector<4x32x16xf32> to vector<1x32x16xf32>
    %365 = vector.shape_cast %364 : vector<1x32x16xf32> to vector<32x16xf32>
    %366 = vector.extract_strided_slice %359 {offsets = [3, 0, 0], sizes = [1, 32, 16], strides = [1, 1, 1]} : vector<4x32x16xf32> to vector<1x32x16xf32>
    %367 = vector.shape_cast %366 : vector<1x32x16xf32> to vector<32x16xf32>
    %368 = tpu.concatenate %361, %363, %365, %367 in 1 : vector<32x16xf32>, vector<32x16xf32>, vector<32x16xf32>, vector<32x16xf32> -> vector<32x64xf32>
    %369 = arith.truncf %368 : vector<32x64xf32> to vector<32x64xbf16>
    %c2_112 = arith.constant 2 : index
    %c0_113 = arith.constant 0 : index
    %c0_114 = arith.constant 0 : index
    %370 = vector.load %arg6[%c2_112, %c0_113, %c0_114] : memref<4x64x64xbf16, #tpu.memory_space<vmem>>, vector<1x64x64xbf16>
    %371 = vector.shape_cast %370 : vector<1x64x64xbf16> to vector<64x64xbf16>
    %cst_115 = arith.constant dense<0.000000e+00> : vector<32x64xf32>
    %372 = tpu.matmul %369, %371, %cst_115 {dimension_numbers = #tpu.dot_dimension_numbers<[1], [0], [0], [1], [0, 0, 1, 1], [], []>} : vector<32x64xbf16>, vector<64x64xbf16>, vector<32x64xf32> -> vector<32x64xf32>
    %373 = arith.addf %291, %372 : vector<32x64xf32>
    %c2_116 = arith.constant 2 : index
    %c0_117 = arith.constant 0 : index
    %374 = vector.load %arg7[%c2_116, %c0_117] : memref<4x64xf32, #tpu.memory_space<vmem>>, vector<1x64xf32>
    %375 = vector.shape_cast %374 : vector<1x64xf32> to vector<64xf32>
    %376 = vector.shape_cast %375 : vector<64xf32> to vector<1x64xf32>
    %377 = vector.broadcast %376 : vector<1x64xf32> to vector<32x64xf32>
    %378 = arith.addf %373, %377 : vector<32x64xf32>
    %c2_118 = arith.constant 2 : index
    %c0_119 = arith.constant 0 : index
    %379 = vector.load %arg8[%c2_118, %c0_119] : memref<4x64xf32, #tpu.memory_space<vmem>>, vector<1x64xf32>
    %380 = vector.shape_cast %379 : vector<1x64xf32> to vector<64xf32>
    %c2_120 = arith.constant 2 : index
    %c0_121 = arith.constant 0 : index
    %381 = vector.load %arg9[%c2_120, %c0_121] : memref<4x64xf32, #tpu.memory_space<vmem>>, vector<1x64xf32>
    %382 = vector.shape_cast %381 : vector<1x64xf32> to vector<64xf32>
    %cst_122 = arith.constant dense<0.000000e+00> : vector<32xf32>
    %383 = vector.multi_reduction <add>, %378, %cst_122 [1] : vector<32x64xf32> to vector<32xf32>
    %384 = vector.shape_cast %383 : vector<32xf32> to vector<32x1xf32>
    %cst_123 = arith.constant 6.400000e+01 : f32
    %385 = vector.broadcast %cst_123 : f32 to vector<32x1xf32>
    %386 = arith.divf %384, %385 : vector<32x1xf32>
    %387 = vector.broadcast %386 : vector<32x1xf32> to vector<32x64xf32>
    %388 = arith.subf %378, %387 : vector<32x64xf32>
    %389 = arith.mulf %388, %388 : vector<32x64xf32>
    %cst_124 = arith.constant dense<0.000000e+00> : vector<32xf32>
    %390 = vector.multi_reduction <add>, %389, %cst_124 [1] : vector<32x64xf32> to vector<32xf32>
    %391 = vector.shape_cast %390 : vector<32xf32> to vector<32x1xf32>
    %cst_125 = arith.constant 6.400000e+01 : f32
    %392 = vector.broadcast %cst_125 : f32 to vector<32x1xf32>
    %393 = arith.divf %391, %392 : vector<32x1xf32>
    %394 = vector.broadcast %386 : vector<32x1xf32> to vector<32x64xf32>
    %395 = arith.subf %378, %394 : vector<32x64xf32>
    %cst_126 = arith.constant 9.99999974E-6 : f32
    %396 = vector.broadcast %cst_126 : f32 to vector<32x1xf32>
    %397 = arith.addf %393, %396 : vector<32x1xf32>
    %398 = math.rsqrt %397 : vector<32x1xf32>
    %399 = vector.broadcast %398 : vector<32x1xf32> to vector<32x64xf32>
    %400 = arith.mulf %395, %399 : vector<32x64xf32>
    %401 = vector.shape_cast %380 : vector<64xf32> to vector<1x64xf32>
    %402 = vector.broadcast %401 : vector<1x64xf32> to vector<32x64xf32>
    %403 = arith.mulf %400, %402 : vector<32x64xf32>
    %404 = vector.shape_cast %382 : vector<64xf32> to vector<1x64xf32>
    %405 = vector.broadcast %404 : vector<1x64xf32> to vector<32x64xf32>
    %406 = arith.addf %403, %405 : vector<32x64xf32>
    %407 = arith.truncf %406 : vector<32x64xf32> to vector<32x64xbf16>
    %c2_127 = arith.constant 2 : index
    %c0_128 = arith.constant 0 : index
    %c0_129 = arith.constant 0 : index
    %408 = vector.load %arg10[%c2_127, %c0_128, %c0_129] : memref<4x64x256xbf16, #tpu.memory_space<vmem>>, vector<1x64x256xbf16>
    %409 = vector.shape_cast %408 : vector<1x64x256xbf16> to vector<64x256xbf16>
    %cst_130 = arith.constant dense<0.000000e+00> : vector<32x256xf32>
    %410 = tpu.matmul %407, %409, %cst_130 {dimension_numbers = #tpu.dot_dimension_numbers<[1], [0], [0], [1], [0, 0, 1, 1], [], []>} : vector<32x64xbf16>, vector<64x256xbf16>, vector<32x256xf32> -> vector<32x256xf32>
    %c2_131 = arith.constant 2 : index
    %c0_132 = arith.constant 0 : index
    %411 = vector.load %arg11[%c2_131, %c0_132] : memref<4x256xf32, #tpu.memory_space<vmem>>, vector<1x256xf32>
    %412 = vector.shape_cast %411 : vector<1x256xf32> to vector<256xf32>
    %413 = vector.shape_cast %412 : vector<256xf32> to vector<1x256xf32>
    %414 = vector.broadcast %413 : vector<1x256xf32> to vector<32x256xf32>
    %415 = arith.addf %410, %414 : vector<32x256xf32>
    %cst_133 = arith.constant 0.000000e+00 : f32
    %416 = vector.broadcast %cst_133 : f32 to vector<32x256xf32>
    %417 = arith.maximumf %415, %416 : vector<32x256xf32>
    %418 = arith.truncf %417 : vector<32x256xf32> to vector<32x256xbf16>
    %c2_134 = arith.constant 2 : index
    %c0_135 = arith.constant 0 : index
    %c0_136 = arith.constant 0 : index
    %419 = vector.load %arg12[%c2_134, %c0_135, %c0_136] : memref<4x256x64xbf16, #tpu.memory_space<vmem>>, vector<1x256x64xbf16>
    %420 = vector.shape_cast %419 : vector<1x256x64xbf16> to vector<256x64xbf16>
    %cst_137 = arith.constant dense<0.000000e+00> : vector<32x64xf32>
    %421 = tpu.matmul %418, %420, %cst_137 {dimension_numbers = #tpu.dot_dimension_numbers<[1], [0], [0], [1], [0, 0, 1, 1], [], []>} : vector<32x256xbf16>, vector<256x64xbf16>, vector<32x64xf32> -> vector<32x64xf32>
    %422 = arith.addf %378, %421 : vector<32x64xf32>
    %c2_138 = arith.constant 2 : index
    %c0_139 = arith.constant 0 : index
    %423 = vector.load %arg13[%c2_138, %c0_139] : memref<4x64xf32, #tpu.memory_space<vmem>>, vector<1x64xf32>
    %424 = vector.shape_cast %423 : vector<1x64xf32> to vector<64xf32>
    %425 = vector.shape_cast %424 : vector<64xf32> to vector<1x64xf32>
    %426 = vector.broadcast %425 : vector<1x64xf32> to vector<32x64xf32>
    %427 = arith.addf %422, %426 : vector<32x64xf32>
    %c3 = arith.constant 3 : index
    %c0_140 = arith.constant 0 : index
    %428 = vector.load %arg3[%c3, %c0_140] : memref<4x64xf32, #tpu.memory_space<vmem>>, vector<1x64xf32>
    %429 = vector.shape_cast %428 : vector<1x64xf32> to vector<64xf32>
    %c3_141 = arith.constant 3 : index
    %c0_142 = arith.constant 0 : index
    %430 = vector.load %arg4[%c3_141, %c0_142] : memref<4x64xf32, #tpu.memory_space<vmem>>, vector<1x64xf32>
    %431 = vector.shape_cast %430 : vector<1x64xf32> to vector<64xf32>
    %cst_143 = arith.constant dense<0.000000e+00> : vector<32xf32>
    %432 = vector.multi_reduction <add>, %427, %cst_143 [1] : vector<32x64xf32> to vector<32xf32>
    %433 = vector.shape_cast %432 : vector<32xf32> to vector<32x1xf32>
    %cst_144 = arith.constant 6.400000e+01 : f32
    %434 = vector.broadcast %cst_144 : f32 to vector<32x1xf32>
    %435 = arith.divf %433, %434 : vector<32x1xf32>
    %436 = vector.broadcast %435 : vector<32x1xf32> to vector<32x64xf32>
    %437 = arith.subf %427, %436 : vector<32x64xf32>
    %438 = arith.mulf %437, %437 : vector<32x64xf32>
    %cst_145 = arith.constant dense<0.000000e+00> : vector<32xf32>
    %439 = vector.multi_reduction <add>, %438, %cst_145 [1] : vector<32x64xf32> to vector<32xf32>
    %440 = vector.shape_cast %439 : vector<32xf32> to vector<32x1xf32>
    %cst_146 = arith.constant 6.400000e+01 : f32
    %441 = vector.broadcast %cst_146 : f32 to vector<32x1xf32>
    %442 = arith.divf %440, %441 : vector<32x1xf32>
    %443 = vector.broadcast %435 : vector<32x1xf32> to vector<32x64xf32>
    %444 = arith.subf %427, %443 : vector<32x64xf32>
    %cst_147 = arith.constant 9.99999974E-6 : f32
    %445 = vector.broadcast %cst_147 : f32 to vector<32x1xf32>
    %446 = arith.addf %442, %445 : vector<32x1xf32>
    %447 = math.rsqrt %446 : vector<32x1xf32>
    %448 = vector.broadcast %447 : vector<32x1xf32> to vector<32x64xf32>
    %449 = arith.mulf %444, %448 : vector<32x64xf32>
    %450 = vector.shape_cast %429 : vector<64xf32> to vector<1x64xf32>
    %451 = vector.broadcast %450 : vector<1x64xf32> to vector<32x64xf32>
    %452 = arith.mulf %449, %451 : vector<32x64xf32>
    %453 = vector.shape_cast %431 : vector<64xf32> to vector<1x64xf32>
    %454 = vector.broadcast %453 : vector<1x64xf32> to vector<32x64xf32>
    %455 = arith.addf %452, %454 : vector<32x64xf32>
    %456 = arith.truncf %455 : vector<32x64xf32> to vector<32x64xbf16>
    %c3_148 = arith.constant 3 : index
    %c0_149 = arith.constant 0 : index
    %c0_150 = arith.constant 0 : index
    %457 = vector.load %arg5[%c3_148, %c0_149, %c0_150] : memref<4x64x192xbf16, #tpu.memory_space<vmem>>, vector<1x64x192xbf16>
    %458 = vector.shape_cast %457 : vector<1x64x192xbf16> to vector<64x192xbf16>
    %cst_151 = arith.constant dense<0.000000e+00> : vector<32x192xf32>
    %459 = tpu.matmul %456, %458, %cst_151 {dimension_numbers = #tpu.dot_dimension_numbers<[1], [0], [0], [1], [0, 0, 1, 1], [], []>} : vector<32x64xbf16>, vector<64x192xbf16>, vector<32x192xf32> -> vector<32x192xf32>
    %460 = vector.extract_strided_slice %459 {offsets = [0, 0], sizes = [32, 48], strides = [1, 1]} : vector<32x192xf32> to vector<32x48xf32>
    %461 = vector.shape_cast %460 : vector<32x48xf32> to vector<2x16x48xf32>
    %462 = vector.extract_strided_slice %459 {offsets = [0, 48], sizes = [32, 48], strides = [1, 1]} : vector<32x192xf32> to vector<32x48xf32>
    %463 = vector.shape_cast %462 : vector<32x48xf32> to vector<2x16x48xf32>
    %464 = vector.extract_strided_slice %459 {offsets = [0, 96], sizes = [32, 48], strides = [1, 1]} : vector<32x192xf32> to vector<32x48xf32>
    %465 = vector.shape_cast %464 : vector<32x48xf32> to vector<2x16x48xf32>
    %466 = vector.extract_strided_slice %459 {offsets = [0, 144], sizes = [32, 48], strides = [1, 1]} : vector<32x192xf32> to vector<32x48xf32>
    %467 = vector.shape_cast %466 : vector<32x48xf32> to vector<2x16x48xf32>
    %468 = vector.shape_cast %461 : vector<2x16x48xf32> to vector<1x2x16x48xf32>
    %469 = vector.shape_cast %463 : vector<2x16x48xf32> to vector<1x2x16x48xf32>
    %470 = vector.shape_cast %465 : vector<2x16x48xf32> to vector<1x2x16x48xf32>
    %471 = vector.shape_cast %467 : vector<2x16x48xf32> to vector<1x2x16x48xf32>
    %472 = tpu.concatenate %468, %469, %470, %471 in 0 : vector<1x2x16x48xf32>, vector<1x2x16x48xf32>, vector<1x2x16x48xf32>, vector<1x2x16x48xf32> -> vector<4x2x16x48xf32>
    %473 = vector.shape_cast %472 : vector<4x2x16x48xf32> to vector<8x16x48xf32>
    %474 = vector.extract_strided_slice %473 {offsets = [0, 0, 0], sizes = [8, 16, 16], strides = [1, 1, 1]} : vector<8x16x48xf32> to vector<8x16x16xf32>
    %475 = arith.truncf %474 : vector<8x16x16xf32> to vector<8x16x16xbf16>
    %476 = vector.extract_strided_slice %473 {offsets = [0, 0, 16], sizes = [8, 16, 16], strides = [1, 1, 1]} : vector<8x16x48xf32> to vector<8x16x16xf32>
    %477 = arith.truncf %476 : vector<8x16x16xf32> to vector<8x16x16xbf16>
    %478 = vector.extract_strided_slice %473 {offsets = [0, 0, 32], sizes = [8, 16, 16], strides = [1, 1, 1]} : vector<8x16x48xf32> to vector<8x16x16xf32>
    %479 = arith.truncf %478 : vector<8x16x16xf32> to vector<8x16x16xbf16>
    "tpu.trace_start"() <{level = 10 : i32, message = "ntd,nsd->nts"}> : () -> ()
    %cst_152 = arith.constant dense<0.000000e+00> : vector<8x16x16xf32>
    %480 = tpu.matmul %475, %477, %cst_152 {dimension_numbers = #tpu.dot_dimension_numbers<[2], [2], [1], [1], [0, 0, 0, 1, 1, 1], [0], [0]>} : vector<8x16x16xbf16>, vector<8x16x16xbf16>, vector<8x16x16xf32> -> vector<8x16x16xf32>
    "tpu.trace_stop"() : () -> ()
    %481 = vector.broadcast %19 : vector<1x16x16xf32> to vector<8x16x16xf32>
    %482 = arith.addf %480, %481 : vector<8x16x16xf32>
    %cst_153 = arith.constant dense<0xFF800000> : vector<8x16xf32>
    %483 = vector.multi_reduction <maximumf>, %482, %cst_153 [2] : vector<8x16x16xf32> to vector<8x16xf32>
    %484 = vector.shape_cast %483 : vector<8x16xf32> to vector<8x16x1xf32>
    %485 = vector.broadcast %484 : vector<8x16x1xf32> to vector<8x16x16xf32>
    %486 = arith.subf %482, %485 : vector<8x16x16xf32>
    %487 = math.exp %486 : vector<8x16x16xf32>
    %cst_154 = arith.constant dense<0.000000e+00> : vector<8x16xf32>
    %488 = vector.multi_reduction <add>, %487, %cst_154 [2] : vector<8x16x16xf32> to vector<8x16xf32>
    %489 = vector.shape_cast %488 : vector<8x16xf32> to vector<8x16x1xf32>
    %490 = tpu.reciprocal %489 {approx = true} : vector<8x16x1xf32> -> vector<8x16x1xf32>
    %491 = vector.broadcast %490 : vector<8x16x1xf32> to vector<8x16x16xf32>
    %492 = arith.mulf %487, %491 : vector<8x16x16xf32>
    %493 = arith.truncf %492 : vector<8x16x16xf32> to vector<8x16x16xbf16>
    "tpu.trace_start"() <{level = 10 : i32, message = "nts,nsd->ntd"}> : () -> ()
    %cst_155 = arith.constant dense<0.000000e+00> : vector<8x16x16xf32>
    %494 = tpu.matmul %493, %479, %cst_155 {dimension_numbers = #tpu.dot_dimension_numbers<[2], [1], [1], [2], [0, 0, 0, 1, 1, 2], [0], [0]>} : vector<8x16x16xbf16>, vector<8x16x16xbf16>, vector<8x16x16xf32> -> vector<8x16x16xf32>
    "tpu.trace_stop"() : () -> ()
    %495 = vector.shape_cast %494 : vector<8x16x16xf32> to vector<4x32x16xf32>
    %496 = vector.extract_strided_slice %495 {offsets = [0, 0, 0], sizes = [1, 32, 16], strides = [1, 1, 1]} : vector<4x32x16xf32> to vector<1x32x16xf32>
    %497 = vector.shape_cast %496 : vector<1x32x16xf32> to vector<32x16xf32>
    %498 = vector.extract_strided_slice %495 {offsets = [1, 0, 0], sizes = [1, 32, 16], strides = [1, 1, 1]} : vector<4x32x16xf32> to vector<1x32x16xf32>
    %499 = vector.shape_cast %498 : vector<1x32x16xf32> to vector<32x16xf32>
    %500 = vector.extract_strided_slice %495 {offsets = [2, 0, 0], sizes = [1, 32, 16], strides = [1, 1, 1]} : vector<4x32x16xf32> to vector<1x32x16xf32>
    %501 = vector.shape_cast %500 : vector<1x32x16xf32> to vector<32x16xf32>
    %502 = vector.extract_strided_slice %495 {offsets = [3, 0, 0], sizes = [1, 32, 16], strides = [1, 1, 1]} : vector<4x32x16xf32> to vector<1x32x16xf32>
    %503 = vector.shape_cast %502 : vector<1x32x16xf32> to vector<32x16xf32>
    %504 = tpu.concatenate %497, %499, %501, %503 in 1 : vector<32x16xf32>, vector<32x16xf32>, vector<32x16xf32>, vector<32x16xf32> -> vector<32x64xf32>
    %505 = arith.truncf %504 : vector<32x64xf32> to vector<32x64xbf16>
    %c3_156 = arith.constant 3 : index
    %c0_157 = arith.constant 0 : index
    %c0_158 = arith.constant 0 : index
    %506 = vector.load %arg6[%c3_156, %c0_157, %c0_158] : memref<4x64x64xbf16, #tpu.memory_space<vmem>>, vector<1x64x64xbf16>
    %507 = vector.shape_cast %506 : vector<1x64x64xbf16> to vector<64x64xbf16>
    %cst_159 = arith.constant dense<0.000000e+00> : vector<32x64xf32>
    %508 = tpu.matmul %505, %507, %cst_159 {dimension_numbers = #tpu.dot_dimension_numbers<[1], [0], [0], [1], [0, 0, 1, 1], [], []>} : vector<32x64xbf16>, vector<64x64xbf16>, vector<32x64xf32> -> vector<32x64xf32>
    %509 = arith.addf %427, %508 : vector<32x64xf32>
    %c3_160 = arith.constant 3 : index
    %c0_161 = arith.constant 0 : index
    %510 = vector.load %arg7[%c3_160, %c0_161] : memref<4x64xf32, #tpu.memory_space<vmem>>, vector<1x64xf32>
    %511 = vector.shape_cast %510 : vector<1x64xf32> to vector<64xf32>
    %512 = vector.shape_cast %511 : vector<64xf32> to vector<1x64xf32>
    %513 = vector.broadcast %512 : vector<1x64xf32> to vector<32x64xf32>
    %514 = arith.addf %509, %513 : vector<32x64xf32>
    %c3_162 = arith.constant 3 : index
    %c0_163 = arith.constant 0 : index
    %515 = vector.load %arg8[%c3_162, %c0_163] : memref<4x64xf32, #tpu.memory_space<vmem>>, vector<1x64xf32>
    %516 = vector.shape_cast %515 : vector<1x64xf32> to vector<64xf32>
    %c3_164 = arith.constant 3 : index
    %c0_165 = arith.constant 0 : index
    %517 = vector.load %arg9[%c3_164, %c0_165] : memref<4x64xf32, #tpu.memory_space<vmem>>, vector<1x64xf32>
    %518 = vector.shape_cast %517 : vector<1x64xf32> to vector<64xf32>
    %cst_166 = arith.constant dense<0.000000e+00> : vector<32xf32>
    %519 = vector.multi_reduction <add>, %514, %cst_166 [1] : vector<32x64xf32> to vector<32xf32>
    %520 = vector.shape_cast %519 : vector<32xf32> to vector<32x1xf32>
    %cst_167 = arith.constant 6.400000e+01 : f32
    %521 = vector.broadcast %cst_167 : f32 to vector<32x1xf32>
    %522 = arith.divf %520, %521 : vector<32x1xf32>
    %523 = vector.broadcast %522 : vector<32x1xf32> to vector<32x64xf32>
    %524 = arith.subf %514, %523 : vector<32x64xf32>
    %525 = arith.mulf %524, %524 : vector<32x64xf32>
    %cst_168 = arith.constant dense<0.000000e+00> : vector<32xf32>
    %526 = vector.multi_reduction <add>, %525, %cst_168 [1] : vector<32x64xf32> to vector<32xf32>
    %527 = vector.shape_cast %526 : vector<32xf32> to vector<32x1xf32>
    %cst_169 = arith.constant 6.400000e+01 : f32
    %528 = vector.broadcast %cst_169 : f32 to vector<32x1xf32>
    %529 = arith.divf %527, %528 : vector<32x1xf32>
    %530 = vector.broadcast %522 : vector<32x1xf32> to vector<32x64xf32>
    %531 = arith.subf %514, %530 : vector<32x64xf32>
    %cst_170 = arith.constant 9.99999974E-6 : f32
    %532 = vector.broadcast %cst_170 : f32 to vector<32x1xf32>
    %533 = arith.addf %529, %532 : vector<32x1xf32>
    %534 = math.rsqrt %533 : vector<32x1xf32>
    %535 = vector.broadcast %534 : vector<32x1xf32> to vector<32x64xf32>
    %536 = arith.mulf %531, %535 : vector<32x64xf32>
    %537 = vector.shape_cast %516 : vector<64xf32> to vector<1x64xf32>
    %538 = vector.broadcast %537 : vector<1x64xf32> to vector<32x64xf32>
    %539 = arith.mulf %536, %538 : vector<32x64xf32>
    %540 = vector.shape_cast %518 : vector<64xf32> to vector<1x64xf32>
    %541 = vector.broadcast %540 : vector<1x64xf32> to vector<32x64xf32>
    %542 = arith.addf %539, %541 : vector<32x64xf32>
    %543 = arith.truncf %542 : vector<32x64xf32> to vector<32x64xbf16>
    %c3_171 = arith.constant 3 : index
    %c0_172 = arith.constant 0 : index
    %c0_173 = arith.constant 0 : index
    %544 = vector.load %arg10[%c3_171, %c0_172, %c0_173] : memref<4x64x256xbf16, #tpu.memory_space<vmem>>, vector<1x64x256xbf16>
    %545 = vector.shape_cast %544 : vector<1x64x256xbf16> to vector<64x256xbf16>
    %cst_174 = arith.constant dense<0.000000e+00> : vector<32x256xf32>
    %546 = tpu.matmul %543, %545, %cst_174 {dimension_numbers = #tpu.dot_dimension_numbers<[1], [0], [0], [1], [0, 0, 1, 1], [], []>} : vector<32x64xbf16>, vector<64x256xbf16>, vector<32x256xf32> -> vector<32x256xf32>
    %c3_175 = arith.constant 3 : index
    %c0_176 = arith.constant 0 : index
    %547 = vector.load %arg11[%c3_175, %c0_176] : memref<4x256xf32, #tpu.memory_space<vmem>>, vector<1x256xf32>
    %548 = vector.shape_cast %547 : vector<1x256xf32> to vector<256xf32>
    %549 = vector.shape_cast %548 : vector<256xf32> to vector<1x256xf32>
    %550 = vector.broadcast %549 : vector<1x256xf32> to vector<32x256xf32>
    %551 = arith.addf %546, %550 : vector<32x256xf32>
    %cst_177 = arith.constant 0.000000e+00 : f32
    %552 = vector.broadcast %cst_177 : f32 to vector<32x256xf32>
    %553 = arith.maximumf %551, %552 : vector<32x256xf32>
    %554 = arith.truncf %553 : vector<32x256xf32> to vector<32x256xbf16>
    %c3_178 = arith.constant 3 : index
    %c0_179 = arith.constant 0 : index
    %c0_180 = arith.constant 0 : index
    %555 = vector.load %arg12[%c3_178, %c0_179, %c0_180] : memref<4x256x64xbf16, #tpu.memory_space<vmem>>, vector<1x256x64xbf16>
    %556 = vector.shape_cast %555 : vector<1x256x64xbf16> to vector<256x64xbf16>
    %cst_181 = arith.constant dense<0.000000e+00> : vector<32x64xf32>
    %557 = tpu.matmul %554, %556, %cst_181 {dimension_numbers = #tpu.dot_dimension_numbers<[1], [0], [0], [1], [0, 0, 1, 1], [], []>} : vector<32x256xbf16>, vector<256x64xbf16>, vector<32x64xf32> -> vector<32x64xf32>
    %558 = arith.addf %514, %557 : vector<32x64xf32>
    %c3_182 = arith.constant 3 : index
    %c0_183 = arith.constant 0 : index
    %559 = vector.load %arg13[%c3_182, %c0_183] : memref<4x64xf32, #tpu.memory_space<vmem>>, vector<1x64xf32>
    %560 = vector.shape_cast %559 : vector<1x64xf32> to vector<64xf32>
    %561 = vector.shape_cast %560 : vector<64xf32> to vector<1x64xf32>
    %562 = vector.broadcast %561 : vector<1x64xf32> to vector<32x64xf32>
    %563 = arith.addf %558, %562 : vector<32x64xf32>
    %c0_184 = arith.constant 0 : index
    %c0_185 = arith.constant 0 : index
    %564 = vector.load %arg14[%c0_184, %c0_185] : memref<1x64xf32, #tpu.memory_space<vmem>>, vector<1x64xf32>
    %565 = vector.shape_cast %564 : vector<1x64xf32> to vector<64xf32>
    %c0_186 = arith.constant 0 : index
    %c0_187 = arith.constant 0 : index
    %566 = vector.load %arg15[%c0_186, %c0_187] : memref<1x64xf32, #tpu.memory_space<vmem>>, vector<1x64xf32>
    %567 = vector.shape_cast %566 : vector<1x64xf32> to vector<64xf32>
    %cst_188 = arith.constant dense<0.000000e+00> : vector<32xf32>
    %568 = vector.multi_reduction <add>, %563, %cst_188 [1] : vector<32x64xf32> to vector<32xf32>
    %569 = vector.shape_cast %568 : vector<32xf32> to vector<32x1xf32>
    %cst_189 = arith.constant 6.400000e+01 : f32
    %570 = vector.broadcast %cst_189 : f32 to vector<32x1xf32>
    %571 = arith.divf %569, %570 : vector<32x1xf32>
    %572 = vector.broadcast %571 : vector<32x1xf32> to vector<32x64xf32>
    %573 = arith.subf %563, %572 : vector<32x64xf32>
    %574 = arith.mulf %573, %573 : vector<32x64xf32>
    %cst_190 = arith.constant dense<0.000000e+00> : vector<32xf32>
    %575 = vector.multi_reduction <add>, %574, %cst_190 [1] : vector<32x64xf32> to vector<32xf32>
    %576 = vector.shape_cast %575 : vector<32xf32> to vector<32x1xf32>
    %cst_191 = arith.constant 6.400000e+01 : f32
    %577 = vector.broadcast %cst_191 : f32 to vector<32x1xf32>
    %578 = arith.divf %576, %577 : vector<32x1xf32>
    %579 = vector.broadcast %571 : vector<32x1xf32> to vector<32x64xf32>
    %580 = arith.subf %563, %579 : vector<32x64xf32>
    %cst_192 = arith.constant 9.99999974E-6 : f32
    %581 = vector.broadcast %cst_192 : f32 to vector<32x1xf32>
    %582 = arith.addf %578, %581 : vector<32x1xf32>
    %583 = math.rsqrt %582 : vector<32x1xf32>
    %584 = vector.broadcast %583 : vector<32x1xf32> to vector<32x64xf32>
    %585 = arith.mulf %580, %584 : vector<32x64xf32>
    %586 = vector.shape_cast %565 : vector<64xf32> to vector<1x64xf32>
    %587 = vector.broadcast %586 : vector<1x64xf32> to vector<32x64xf32>
    %588 = arith.mulf %585, %587 : vector<32x64xf32>
    %589 = vector.shape_cast %567 : vector<64xf32> to vector<1x64xf32>
    %590 = vector.broadcast %589 : vector<1x64xf32> to vector<32x64xf32>
    %591 = arith.addf %588, %590 : vector<32x64xf32>
    %592 = arith.truncf %591 : vector<32x64xf32> to vector<32x64xbf16>
    %c0_193 = arith.constant 0 : index
    %c0_194 = arith.constant 0 : index
    %593 = vector.load %arg16[%c0_193, %c0_194] : memref<64x128xbf16, #tpu.memory_space<vmem>>, vector<64x128xbf16>
    %cst_195 = arith.constant dense<0.000000e+00> : vector<32x128xf32>
    %594 = tpu.matmul %592, %593, %cst_195 {dimension_numbers = #tpu.dot_dimension_numbers<[1], [0], [0], [1], [0, 0, 1, 1], [], []>} : vector<32x64xbf16>, vector<64x128xbf16>, vector<32x128xf32> -> vector<32x128xf32>
    %c0_196 = arith.constant 0 : index
    %c0_197 = arith.constant 0 : index
    %595 = vector.load %arg17[%c0_196, %c0_197] : memref<1x128xf32, #tpu.memory_space<vmem>>, vector<1x128xf32>
    %596 = vector.shape_cast %595 : vector<1x128xf32> to vector<128xf32>
    %597 = vector.shape_cast %596 : vector<128xf32> to vector<1x128xf32>
    %598 = vector.broadcast %597 : vector<1x128xf32> to vector<32x128xf32>
    %599 = arith.addf %594, %598 : vector<32x128xf32>
    %c0_198 = arith.constant 0 : index
    %c0_199 = arith.constant 0 : index
    %600 = vector.load %arg18[%c0_198, %c0_199] : memref<32x128xf32, #tpu.memory_space<vmem>>, vector<32x128xf32>
    tpu.vector_store %arg18[%c0_198, %c0_199], %599 {strides = array<i32>} : memref<32x128xf32, #tpu.memory_space<vmem>>, vector<32x128xf32>,
    return
  }
}

</mosaic_0001>

<bundles_post_ra>
// kernel: bigram_forward.1
= control target key start
LH: loop header
LB: loop body
LE: loop exit
PB: predicated region body
PF: predicated region fallthrough
CT: control target
= control target key end

     0   :  { %s12027_s0 = inlined_call_operand.vmem [shape: s32[32,1], index: 0, kind: input, shape index: {}]   ;;  %s12028_s1 = inlined_call_operand.vmem [shape: f32[128,64], index: 1, kind: input, shape index: {}]   ;;  %s12029_s2 = inlined_call_operand.vmem [shape: f32[16,64], index: 2, kind: input, shape index: {}]   ;;  %s12030_s3 = inlined_call_operand.vmem [shape: f32[4,64], index: 3, kind: input, shape index: {}]   ;;  %s12031_s4 = inlined_call_operand.vmem [shape: f32[4,64], index: 4, kind: input, shape index: {}]   ;;  %s12032_s5 = inlined_call_operand.vmem [shape: bf16[4,64,192], index: 5, kind: input, shape index: {}]   ;;  %s12033_s6 = inlined_call_operand.vmem [shape: bf16[4,64,64], index: 6, kind: input, shape index: {}]   ;;  %s12034_s7 = inlined_call_operand.vmem [shape: f32[4,64], index: 7, kind: input, shape index: {}]   ;;  %s12035_s8 = inlined_call_operand.vmem [shape: f32[4,64], index: 8, kind: input, shape index: {}]   ;;  %s12036_s9 = inlined_call_operand.vmem [shape: f32[4,64], index: 9, kind: input, shape index: {}]   ;;  %s12037_s10 = inlined_call_operand.vmem [shape: bf16[4,64,256], index: 10, kind: input, shape index: {}]   ;;  %s12038_s11 = inlined_call_operand.vmem [shape: f32[4,256], index: 11, kind: input, shape index: {}]   ;;  %s12039_s12 = inlined_call_operand.vmem [shape: bf16[4,256,64], index: 12, kind: input, shape index: {}]   ;;  %s12040_s13 = inlined_call_operand.vmem [shape: f32[4,64], index: 13, kind: input, shape index: {}]   ;;  %s12041_s14 = inlined_call_operand.vmem [shape: f32[1,64], index: 14, kind: input, shape index: {}]   ;;  %s12042_s15 = inlined_call_operand.vmem [shape: f32[1,64], index: 15, kind: input, shape index: {}]   ;;  %s12043_s16 = inlined_call_operand.vmem [shape: bf16[64,128], index: 16, kind: input, shape index: {}]   ;;  %s12044_s17 = inlined_call_operand.vmem [shape: f32[1,128], index: 17, kind: input, shape index: {}]   ;;  %s12045_s18 = inlined_call_operand.hbm [shape: f32[32,128], index: 18, kind: output, shape index: {}]  }
   0x1   :  { %12055 = sst [smem:[#allocation5_spill]] %s12027_s0 }
   0x2   :  { %12056 = sst [smem:[#allocation6_spill]] %s12028_s1 }
   0x3   :  { %12057 = sst [smem:[#allocation7_spill]] %s12029_s2 }
   0x4   :  { %s12058_s29 = sld [smem:[#allocation5_spill]]  ;;  %v9519_v2 = vmov 0   ;;  %s12059_s20 = sld [smem:[#allocation6_spill]] }
   0x5   :  { %8706 = vset.pattern.permute.xlu1 %v9519_v2  ;;  %8705 = vset.pattern.permute.xlu0 %v9519_v2 }
   0x6   :  { %361 = vmatprep.mubr.bf16.mxu1 %v9519_v2 }
   0xa   :  { %v65_v0 = vld [vmem:[%s12058_s29 + $0x10] sm:$0xff]  ;;  %v63_v1 = vld [vmem:[%s12058_s29] sm:$0xff]  ;;  %v92_v4 = vld [vmem:[%s12059_s20 + $0x8] sm:$0xff] }
   0xb   :  { %v91_v3 = vld [vmem:[%s12059_s20] sm:$0xff]  ;;  %74 = vperm.xlu1 %8706, %v65_v0   ;;  %68 = vperm.xlu0 %8705, %v63_v1   ;;  %v66_v5 = vld [vmem:[%s12058_s29 + $0x18] sm:$0xff]  ;;  %v93_v7 = vld [vmem:[%s12059_s20 + $0x10] sm:$0xff] }
   0xc   :  { %v8659_v6 = vpack.c.bf16 %v92_v4, %v91_v3  ;;  %v94_v8 = vld [vmem:[%s12059_s20 + $0x18] sm:$0xff]  ;;  %v64_v9 = vld [vmem:[%s12058_s29 + $0x8] sm:$0xff]  ;;  %v95_v11 = vld [vmem:[%s12059_s20 + $0x20] sm:$0xff] }
   0xd   :  { %v8663_v10 = vpack.c.bf16 %v94_v8, %v93_v7  ;;  %v96_v12 = vld [vmem:[%s12059_s20 + $0x28] sm:$0xff]  ;;  %v97_v14 = vld [vmem:[%s12059_s20 + $0x30] sm:$0xff]  ;;  %v98_v15 = vld [vmem:[%s12059_s20 + $0x38] sm:$0xff] }
   0xe   :  { %8660 = vmatprep.subr.bf16.mxu0 %v8659_v6  ;;  %v8667_v13 = vpack.c.bf16 %v96_v12, %v95_v11  ;;  %v99_v16 = vld [vmem:[%s12059_s20 + $0x40] sm:$0xff]  ;;  %v8671_v17 = vpack.c.bf16 %v98_v15, %v97_v14  ;;  %v100_v18 = vld [vmem:[%s12059_s20 + $0x48] sm:$0xff]  ;;  %v101_v19 = vld [vmem:[%s12059_s20 + $0x50] sm:$0xff] }
   0xf   :  { %8662 = vmatpush3.bf16.msra.mxu0 %v8659_v6  ;;  %77 = vperm.xlu1 %8706, %v66_v5   ;;  %v102_v20 = vld [vmem:[%s12059_s20 + $0x58] sm:$0xff]  ;;  %v8675_v21 = vpack.c.bf16 %v100_v18, %v99_v16  ;;  %v103_v22 = vld [vmem:[%s12059_s20 + $0x60] sm:$0xff]  ;;  %v104_v23 = vld [vmem:[%s12059_s20 + $0x68] sm:$0xff] }
  0x10   :  { %71 = vperm.xlu0 %8705, %v64_v9   ;;  %8664 = vmatprep.subr.bf16.mxu0 %v8663_v10  ;;  %v8679_v24 = vpack.c.bf16 %v102_v20, %v101_v19  ;;  %v105_v25 = vld [vmem:[%s12059_s20 + $0x70] sm:$0xff]  ;;  %v106_v26 = vld [vmem:[%s12059_s20 + $0x78] sm:$0xff]  ;;  %v8683_v27 = vpack.c.bf16 %v104_v23, %v103_v22 }
  0x11   :  { %v8687_v28 = vpack.c.bf16 %v106_v26, %v105_v25 }
  0x13   :  { %8666 = vmatpush3.bf16.msra.mxu0 %v8663_v10 }
  0x14   :  { %8668 = vmatprep.subr.bf16.mxu0 %v8667_v13 }
  0x17   :  { %8670 = vmatpush3.bf16.msra.mxu0 %v8667_v13 }
  0x18   :  { %8672 = vmatprep.subr.bf16.mxu0 %v8671_v17 }
  0x1b   :  { %8674 = vmatpush3.bf16.msra.mxu0 %v8671_v17 }
  0x1c   :  { %8676 = vmatprep.subr.bf16.mxu0 %v8675_v21 }
  0x1f   :  { %8678 = vmatpush3.bf16.msra.mxu0 %v8675_v21 }
  0x20   :  { %8680 = vmatprep.subr.bf16.mxu0 %v8679_v24 }
  0x23   :  { %8682 = vmatpush3.bf16.msra.mxu0 %v8679_v24 }
  0x24   :  { %8684 = vmatprep.subr.bf16.mxu0 %v8683_v27 }
  0x27   :  { %8686 = vmatpush3.bf16.msra.mxu0 %v8683_v27 }
  0x28   :  { %8688 = vmatprep.subr.bf16.mxu0 %v8687_v28 }
  0x2b   :  { %8690 = vmatpush3.bf16.msra.mxu0 %v8687_v28 }
  0x2c   :  { %23 = vsyncpa [#allocation3], 0  ;;  %v61_v29 = vlaneseq  ;;  %v9520_v33 = vmov 1.0   ;;  %s12060_s27 = sld [smem:[#allocation7_spill]]  ;;  %vm203_vm4 = vcmask 523264   ;;  %s9521_s2 = smov 80  }
  0x2d   :  { %v8987_v7 = vld [vmem:[%s12032_s5 + $0x4] ss:$8 sps:$4 sm:$0xff]   ;;  %v8989_v8 = vld [vmem:[%s12032_s5] ss:$8 sps:$4 sm:$0xff]   ;;  %v8990_v9 = vld [vmem:[%s12032_s5 + $0x14] ss:$8 sps:$4 sm:$0xff]  }
  0x2e   :  { %v9692_v30 = vand.u32 127, %v61_v29  ;;  %329 = vmatprep.subr.bf16.mxu1 %v8987_v7  ;;  %v8992_v10 = vld [vmem:[%s12032_s5 + $0x10] ss:$8 sps:$4 sm:$0xff]   ;;  %v8993_v11 = vld [vmem:[%s12032_s5 + $0x24] ss:$8 sps:$4 sm:$0xff]   ;;  %s9522_s29 = smov 32  }
  0x2f   :  { %330 = vmatpush1.bf16.msra.mxu1 %v8989_v8  ;;  %v8995_v12 = vld [vmem:[%s12032_s5 + $0x20] ss:$8 sps:$4 sm:$0xff]   ;;  %v8996_v13 = vld [vmem:[%s12032_s5 + $0x34] ss:$8 sps:$4 sm:$0xff]   ;;  %v8998_v14 = vld [vmem:[%s12032_s5 + $0x30] ss:$8 sps:$4 sm:$0xff]  }
  0x30   :  { %331 = vmatprep.subr.bf16.mxu1 %v8990_v9  ;;  %v7451_v28 = vld [vmem:[%s12030_s3] ss:$0 sm:$0xff]  ;;  %v9523_v8 = vmov 0.0   ;;  %vm9524_vm5 = vmmov 0   ;;  %s9525_s23 = smov 112   ;;  %vm418_vm6 = vcmask 261120  }
  0x31   :  { %8215 = vmatprep.subr.bf16.mxu0 %v9523_v8  ;;  %vm450_vm7 = vcmask 130048   ;;  %s12053_s24 = smov 96   ;;  %s12051_s26 = smov 16   ;;  %vm1464_vm10 = vcmask 392192  }
  0x32   :  { %v108_v36 = vld [vmem:[%s12060_s27 + $0x8] sm:$0xff]  ;;  %v107_v37 = vld [vmem:[%s12060_s27] sm:$0xff]  ;;  %s12049_s21 = smov 48   ;;  %s12061_s0 = smov 48  }
  0x33   :  { %332 = vmatpush1.bf16.msra.mxu1 %v8992_v10 }
  0x34   :  { %333 = vmatprep.subr.bf16.mxu1 %v8993_v11 }
  0x37   :  { %334 = vmatpush1.bf16.msra.mxu1 %v8995_v12 }
  0x38   :  { %335 = vmatprep.subr.bf16.mxu1 %v8996_v13 }
  0x3b   :  { %336 = vmatpush1.bf16.msra.mxu1 %v8998_v14 }
  0x3c   :  { %8227 = vmatprep.subr.bf16.mxu1 %v9523_v8 }
  0x8a   :  { %v75_v31 = vpop.permute.xlu1 %74  ;;  %v69_v32 = vpop.permute.xlu0 %68 }
  0x8b   :  { %vm79_vm0 = vcmp.eq.s32.totalorder %v69_v32, %v9692_v30  ;;  %vm81_vm1 = vcmp.eq.s32.totalorder %v75_v31, %v9692_v30 }
  0x8c   :  { %8209 = vmatprep.mubr.msk.f32.mxu0 %vm79_vm0, %v9520_v33 }
  0x8e   :  { %v78_v35 = vpop.permute.xlu1 %77 }
  0x8f   :  { %v72_v34 = vpop.permute.xlu0 %71  ;;  %vm82_vm3 = vcmp.eq.s32.totalorder %v78_v35, %v9692_v30 }
  0x90   :  { %vm80_vm2 = vcmp.eq.s32.totalorder %v72_v34, %v9692_v30 }
  0x91   :  { %8210 = vmatmul.mubr.msk.f32.vlgmr.msra.gmra.mrb[0].mxu0 %vm80_vm2, %v9520_v33 }
  0x92   :  { %8212 = vmatprep.mubr.msk.f32.mxu0 %vm81_vm1, %v9520_v33 }
  0x95   :  { %8213 = vmatmul.mubr.msk.f32.gmra.mrb[2].mxu0 %vm82_vm3, %v9520_v33  ;;  %v7452_v33 = vld [vmem:[%s12031_s4] ss:$0 sm:$0xff] }
  0x96   :  { %8217 = vmatprep.mubr.msk.bf16.mxu0 %vm9524_vm5, %v9523_v8 }
 0x164   :  { %v8211_v38 = vpop.f32.mrb[0].mxu0 }
 0x165   :  { %v9704_v39 = vadd.f32 %v8211_v38, %v108_v36  ;;  %v175_v40 = vpop.f32.mrb[1].mxu0 }
 0x166   :  { %v9706_v41 = vadd.f32 %v175_v40, %v107_v37 }
 0x167   :  { %v207_v42 = vsel %vm203_vm4, %v9704_v39, 0.0 }
 0x168   :  { %208 = vadd.xlane.f32.xlu1 %v207_v42  ;;  %v8214_v43 = vpop.f32.mrb[2].mxu0  ;;  %v204_v44 = vsel %vm203_vm4, %v9706_v41, 0.0 }
 0x169   :  { %v185_v45 = vpop.f32.mrb[3].mxu0  ;;  %205 = vadd.xlane.f32.xlu0 %v204_v44  ;;  %v9714_v47 = vadd.f32 %v8214_v43, %v108_v36 }
 0x16a   :  { %v9712_v46 = vadd.f32 %v185_v45, %v107_v37 }
 0x16b   :  { %v213_v49 = vsel %vm203_vm4, %v9714_v47, 0.0 }
 0x16c   :  { %v210_v48 = vsel %vm203_vm4, %v9712_v46, 0.0 }
 0x16d   :  { %211 = vadd.xlane.f32.xlu0 %v210_v48 }
 0x171   :  { %214 = vadd.xlane.f32.xlu0 %v213_v49 }
 0x1f5   :  { %v209_v50 = vpop.xlane.xlu1 %208 }
 0x1f6   :  { %v218_v51 = vmul.f32 0.015625, %v209_v50  ;;  %v206_v52 = vpop.xlane.xlu0 %205 }
 0x1f7   :  { %v217_v53 = vmul.f32 0.015625, %v206_v52 }
 0x1f8   :  { %v222_v54 = vsub.f32 %v9704_v39, %v218_v51 }
 0x1f9   :  { %v221_v55 = vsub.f32 %v9706_v41, %v217_v53 }
 0x1fa   :  { %v212_v56 = vpop.xlane.xlu0 %211  ;;  %v226_v57 = vmul.f32 %v222_v54, %v222_v54 }
 0x1fb   :  { %v219_v58 = vmul.f32 0.015625, %v212_v56  ;;  %v225_v59 = vmul.f32 %v221_v55, %v221_v55 }
 0x1fc   :  { %v232_v60 = vsel %vm203_vm4, %v226_v57, 0.0 }
 0x1fd   :  { %v223_v61 = vsub.f32 %v9712_v46, %v219_v58  ;;  %233 = vadd.xlane.f32.xlu0 %v232_v60  ;;  %v229_v62 = vsel %vm203_vm4, %v225_v59, 0.0 }
 0x1fe   :  { %230 = vadd.xlane.f32.xlu1 %v229_v62  ;;  %v215_v63 = vpop.xlane.xlu0 %214 }
 0x1ff   :  { %v220_v0 = vmul.f32 0.015625, %v215_v63  ;;  %v227_v1 = vmul.f32 %v223_v61, %v223_v61 }
 0x201   :  { %v224_v3 = vsub.f32 %v9714_v47, %v220_v0  ;;  %v235_v4 = vsel %vm203_vm4, %v227_v1, 0.0 }
 0x202   :  { %236 = vadd.xlane.f32.xlu1 %v235_v4 }
 0x203   :  { %v228_v5 = vmul.f32 %v224_v3, %v224_v3 }
 0x205   :  { %v238_v6 = vsel %vm203_vm4, %v228_v5, 0.0 }
 0x206   :  { %239 = vadd.xlane.f32.xlu0 %v238_v6 }
 0x28a   :  { %v234_v15 = vpop.xlane.xlu0 %233 }
 0x28b   :  { %v242_v16 = vmul.f32 0.015625, %v234_v15  ;;  %v231_v17 = vpop.xlane.xlu1 %230 }
 0x28c   :  { %v241_v18 = vmul.f32 0.015625, %v231_v17 }
 0x28d   :  { %v246_v19 = vadd.f32 1e-05, %v242_v16 }
 0x28e   :  { %v245_v20 = vadd.f32 1e-05, %v241_v18 }
 0x28f   :  { %9167 = vrsqrt.f32 %v246_v19  ;;  %v237_v21 = vpop.xlane.xlu1 %236 }
 0x290   :  { %9169 = vrsqrt.f32 %v245_v20  ;;  %v243_v22 = vmul.f32 0.015625, %v237_v21 }
 0x292   :  { %v247_v23 = vadd.f32 1e-05, %v243_v22 }
 0x293   :  { %v240_v24 = vpop.xlane.xlu0 %239 }
 0x294   :  { %9171 = vrsqrt.f32 %v247_v23  ;;  %v244_v25 = vmul.f32 0.015625, %v240_v24 }
 0x296   :  { %v248_v26 = vadd.f32 1e-05, %v244_v25 }
 0x298   :  { %9173 = vrsqrt.f32 %v248_v26 }
 0x299   :  { %v9168_v27 = vpop.eup %9167 }
 0x29a   :  { %v9170_v31 = vpop.eup %9169  ;;  %v254_v32 = vmul.f32 %v9168_v27, %v222_v54 }
 0x29b   :  { %v253_v34 = vmul.f32 %v9170_v31, %v221_v55 }
 0x29c   :  { %v262_v35 = vmul.f32 %v7451_v28, %v254_v32 }
 0x29d   :  { %v261_v36 = vmul.f32 %v7451_v28, %v253_v34 }
 0x29e   :  { %v9172_v37 = vpop.eup %9171  ;;  %v270_v38 = vadd.f32 %v7452_v33, %v262_v35 }
 0x29f   :  { %v269_v40 = vadd.f32 %v7452_v33, %v261_v36  ;;  %v255_v42 = vmul.f32 %v9172_v37, %v223_v61 }
 0x2a1   :  { %v273_v43 = vpack.c.bf16 %v270_v38, %v269_v40  ;;  %v263_v48 = vmul.f32 %v7451_v28, %v255_v42 }
 0x2a2   :  { %v9174_v44 = vpop.eup %9173 }
 0x2a3   :  { %7461 = vmatmul.mubr.msk.bf16.vlgmr.msra.gmra.mrb[0].mxu1 %vm203_vm4, %v273_v43  ;;  %v256_v45 = vmul.f32 %v9174_v44, %v224_v3  ;;  %v271_v50 = vadd.f32 %v7452_v33, %v263_v48 }
 0x2a4   :  { %371 = vmatprep.mubr.bf16.mxu1 %v9519_v2 }
 0x2a5   :  { %v264_v49 = vmul.f32 %v7451_v28, %v256_v45 }
 0x2a7   :  { %v272_v51 = vadd.f32 %v7452_v33, %v264_v49 }
 0x2a9   :  { %v274_v52 = vpack.c.bf16 %v272_v51, %v271_v50 }
 0x2ab   :  { %7462 = vmatmul.mubr.msk.bf16.gmra.mrb[4].mxu1 %vm203_vm4, %v274_v52 }
 0x2ac   :  { %8229 = vmatprep.mubr.msk.bf16.mxu1 %vm9524_vm5, %v9523_v8 }
 0x376   :  { %v363_v53 = vpop.f32.mrb[0].mxu1 }
 0x377   :  { %v365_v54 = vpop.f32.mrb[1].mxu1 }
 0x378   :  { %v8717_v55 = vpack.i.bf16 %v365_v54, %v363_v53  ;;  %v367_v56 = vpop.f32.mrb[2].mxu1 }
 0x379   :  { %v8707_v57 = vpack.i.bf16 %v367_v56, %v363_v53  ;;  %v9761_v58 = vpack.c.bf16 %v367_v56, %v363_v53  ;;  %v369_v59 = vpop.f32.mrb[3].mxu1 }
 0x37a   :  { %v8737_v60 = vpack.i.bf16 %v369_v59, %v365_v54  ;;  %v8722_v61 = vpack.i.bf16 %v369_v59, %v367_v56 }
 0x37b   :  { %8708 = vrot.lane.b32.xlu1 %v8707_v57, %s9521_s2 }
 0x37e   :  { %v373_v62 = vpop.f32.mrb[4].mxu1 }
 0x37f   :  { %8718 = vrot.lane.b32.xlu1 %v8717_v55, %s9522_s29  ;;  %v375_v63 = vpop.f32.mrb[5].mxu1 }
 0x380   :  { %v8727_v0 = vpack.i.bf16 %v375_v63, %v373_v62  ;;  %v377_v1 = vpop.f32.mrb[6].mxu1 }
 0x381   :  { %v8712_v3 = vpack.i.bf16 %v377_v1, %v373_v62  ;;  %v9765_v4 = vpack.c.bf16 %v377_v1, %v373_v62  ;;  %v379_v5 = vpop.f32.mrb[7].mxu1 }
 0x382   :  { %v8742_v6 = vpack.i.bf16 %v379_v5, %v375_v63  ;;  %v8732_v7 = vpack.i.bf16 %v379_v5, %v377_v1 }
 0x383   :  { %8723 = vrot.lane.b32.xlu1 %v8722_v61, %s9522_s29  ;;  %8713 = vrot.lane.b32.xlu0 %v8712_v3, %s9521_s2  ;;  %v9863_v3 = vshrl.u32 %v61_v29, 7 }
 0x385   :  { %v196_v5 = vadd.s32 8, %v9863_v3  ;;  %vm197_vm8 = vcmp.le.s32.totalorder %v9692_v30, %v9863_v3 }
 0x387   :  { %8728 = vrot.lane.b32.xlu0 %v8727_v0, %s9522_s29  ;;  %8733 = vrot.lane.b32.xlu1 %v8732_v7, %s9522_s29  ;;  %vm198_vm9 = vcmp.le.s32.totalorder %v9692_v30, %v196_v5 }
 0x38b   :  { %8738 = vrot.lane.b32.xlu0 %v8737_v60, %s9525_s23  ;;  %8743 = vrot.lane.b32.xlu1 %v8742_v6, %s9525_s23  ;;  %v9527_v6 = vmov -1e+30  }
 0x38c   :  { %v9869_v7 = vsel %vm197_vm8, 0.0, %v9527_v6 }
 0x38f   :  { %448 = vrot.lane.b32.xlu0 %v9761_v58, %s9525_s23  ;;  %499 = vrot.lane.b32.xlu1 %v9765_v4, %s9525_s23 }
 0x3ed   :  { %v8709_v9 = vpop.permute.xlu1 %8708 }
 0x3ee   :  { %v8711_v10 = vunpack.i.h.bf16 %v8709_v9  ;;  %v8710_v11 = vunpack.i.l.bf16 %v8709_v9  ;;  %v9871_v9 = vsel %vm198_vm9, 0.0, %v9527_v6 }
 0x3f0   :  { %v9783_v12 = vpack.c.bf16 %v8711_v10, %v8710_v11 }
 0x3f1   :  { %v8719_v13 = vpop.permute.xlu1 %8718 }
 0x3f2   :  { %549 = vrot.lane.b32.xlu0 %v9783_v12, %s9525_s23  ;;  %v8721_v14 = vunpack.i.h.bf16 %v8719_v13  ;;  %v8720_v15 = vunpack.i.l.bf16 %v8719_v13 }
 0x3f4   :  { %v419_v23 = vsel %vm418_vm6, %v8720_v15, %v8721_v14 }
 0x3f5   :  { %v8724_v16 = vpop.permute.xlu1 %8723  ;;  %v8714_v17 = vpop.permute.xlu0 %8713 }
 0x3f6   :  { %v8726_v18 = vunpack.i.h.bf16 %v8724_v16  ;;  %v8725_v19 = vunpack.i.l.bf16 %v8724_v16  ;;  %v8716_v20 = vunpack.i.h.bf16 %v8714_v17  ;;  %v8715_v21 = vunpack.i.l.bf16 %v8714_v17 }
 0x3f8   :  { %v9787_v22 = vpack.c.bf16 %v8716_v20, %v8715_v21  ;;  %v420_v24 = vsel %vm418_vm6, %v8725_v19, %v8726_v18 }
 0x3f9   :  { %v8729_v25 = vpop.permute.xlu0 %8728  ;;  %v8734_v26 = vpop.permute.xlu1 %8733  ;;  %v9791_v27 = vpack.c.bf16 %v420_v24, %v419_v23 }
 0x3fa   :  { %v8731_v28 = vunpack.i.h.bf16 %v8729_v25  ;;  %v8730_v31 = vunpack.i.l.bf16 %v8729_v25  ;;  %v8736_v32 = vunpack.i.h.bf16 %v8734_v26  ;;  %v8735_v33 = vunpack.i.l.bf16 %v8734_v26  ;;  %599 = vrot.lane.b32.xlu1 %v9787_v22, %s9525_s23 }
 0x3fb   :  { %649 = vrot.lane.b32.xlu0 %v9791_v27, %s9525_s23 }
 0x3fc   :  { %v421_v34 = vsel %vm418_vm6, %v8730_v31, %v8731_v28  ;;  %v422_v35 = vsel %vm418_vm6, %v8735_v33, %v8736_v32 }
 0x3fd   :  { %v8739_v36 = vpop.permute.xlu0 %8738  ;;  %v8744_v37 = vpop.permute.xlu1 %8743  ;;  %v9799_v38 = vpack.c.bf16 %v422_v35, %v421_v34 }
 0x3fe   :  { %v8741_v40 = vunpack.i.h.bf16 %v8739_v36  ;;  %v8740_v42 = vunpack.i.l.bf16 %v8739_v36  ;;  %v8746_v43 = vunpack.i.h.bf16 %v8744_v37  ;;  %v8745_v44 = vunpack.i.l.bf16 %v8744_v37 }
 0x3ff   :  { %699 = vrot.lane.b32.xlu1 %v9799_v38, %s9525_s23 }
 0x400   :  { %v9803_v45 = vpack.c.bf16 %v8741_v40, %v8740_v42  ;;  %v9805_v48 = vpack.c.bf16 %v8746_v43, %v8745_v44 }
 0x401   :  { %v449_v49 = vpop.permute.xlu0 %448  ;;  %v500_v51 = vpop.permute.xlu1 %499 }
 0x402   :  { %v455_v50 = vsel %vm450_vm7, %v449_v49, 0  ;;  %749 = vrot.lane.b32.xlu0 %v9803_v45, %s9525_s23  ;;  %v505_v52 = vsel %vm450_vm7, %v500_v51, 0 }
 0x403   :  { %8216 = vmatpush3.bf16.xpose.msra.mxu0 %v455_v50  ;;  %799 = vrot.lane.b32.xlu1 %v9805_v48, %s9525_s23 }
 0x404   :  { %8221 = vmatprep.subr.bf16.mxu0 %v9523_v8 }
 0x407   :  { %1032 = vrot.lane.b32.xlu1 %v9761_v58, %s12053_s24 }
 0x40a   :  { %8218 = vmatmul.mubr.msk.bf16.vlgmr.msra.gmra.mrb[4].mxu0 %vm450_vm7, %v9761_v58 }
 0x40b   :  { %8222 = vmatpush3.bf16.xpose.msra.mxu0 %v505_v52  ;;  %8223 = vmatprep.mubr.msk.bf16.mxu0 %vm9524_vm5, %v9523_v8 }
 0x40c   :  { %8233 = vmatprep.subr.bf16.mxu0 %v9523_v8 }
 0x412   :  { %8224 = vmatmul.mubr.msk.bf16.vlgmr.msra.gmra.mrb[8].mxu0 %vm450_vm7, %v9765_v4 }
 0x413   :  { %8235 = vmatprep.mubr.msk.bf16.mxu0 %vm9524_vm5, %v9523_v8 }
 0x464   :  { %v550_v53 = vpop.permute.xlu0 %549 }
 0x465   :  { %v555_v54 = vsel %vm450_vm7, %v550_v53, 0 }
 0x466   :  { %8228 = vmatpush3.bf16.xpose.msra.mxu1 %v555_v54 }
 0x467   :  { %8239 = vmatprep.subr.bf16.mxu1 %v9523_v8 }
 0x46c   :  { %v600_v55 = vpop.permute.xlu1 %599 }
 0x46d   :  { %v605_v56 = vsel %vm450_vm7, %v600_v55, 0  ;;  %8230 = vmatmul.mubr.msk.bf16.vlgmr.msra.gmra.mrb[8].mxu1 %vm450_vm7, %v9783_v12  ;;  %v650_v57 = vpop.permute.xlu0 %649 }
 0x46e   :  { %v655_v58 = vsel %vm450_vm7, %v650_v57, 0  ;;  %8234 = vmatpush3.bf16.xpose.msra.mxu0 %v605_v56  ;;  %8241 = vmatprep.mubr.msk.bf16.mxu1 %vm9524_vm5, %v9523_v8 }
 0x46f   :  { %8240 = vmatpush3.bf16.xpose.msra.mxu1 %v655_v58  ;;  %8245 = vmatprep.subr.bf16.mxu0 %v9523_v8 }
 0x470   :  { %8251 = vmatprep.subr.bf16.mxu1 %v9523_v8 }
 0x471   :  { %v700_v59 = vpop.permute.xlu1 %699 }
 0x472   :  { %v705_v61 = vsel %vm450_vm7, %v700_v59, 0 }
 0x474   :  { %v750_v60 = vpop.permute.xlu0 %749 }
 0x475   :  { %v755_v62 = vsel %vm450_vm7, %v750_v60, 0  ;;  %8236 = vmatmul.mubr.msk.bf16.vlgmr.msra.gmra.mrb[12].mxu0 %vm450_vm7, %v9787_v22  ;;  %v800_v63 = vpop.permute.xlu1 %799 }
 0x476   :  { %8242 = vmatmul.mubr.msk.bf16.vlgmr.msra.gmra.mrb[12].mxu1 %vm450_vm7, %v9791_v27  ;;  %8246 = vmatpush3.bf16.xpose.msra.mxu0 %v705_v61  ;;  %v805_v0 = vsel %vm450_vm7, %v800_v63, 0 }
 0x477   :  { %8252 = vmatpush3.bf16.xpose.msra.mxu1 %v755_v62  ;;  %8247 = vmatprep.mubr.msk.bf16.mxu0 %vm9524_vm5, %v9523_v8 }
 0x478   :  { %8253 = vmatprep.mubr.msk.bf16.mxu1 %vm9524_vm5, %v9523_v8  ;;  %8257 = vmatprep.subr.bf16.mxu0 %v9523_v8 }
 0x479   :  { %8263 = vmatprep.subr.bf16.mxu1 %v9523_v8  ;;  %v1033_v1 = vpop.permute.xlu1 %1032 }
 0x47d   :  { %8248 = vmatmul.mubr.msk.bf16.vlgmr.msra.gmra.mrb[16].mxu0 %vm450_vm7, %v9799_v38 }
 0x47e   :  { %8254 = vmatmul.mubr.msk.bf16.vlgmr.msra.gmra.mrb[16].mxu1 %vm450_vm7, %v9803_v45  ;;  %8258 = vmatpush3.bf16.xpose.msra.mxu0 %v805_v0 }
 0x47f   :  { %8264 = vmatpush3.bf16.msra.mxu1 %v1033_v1  ;;  %8259 = vmatprep.mubr.msk.bf16.mxu0 %vm9524_vm5, %v9523_v8 }
 0x480   :  { %8269 = vmatprep.subr.bf16.mxu0 %v9523_v8  ;;  %8265 = vmatprep.mubr.msk.bf16.mxu1 %vm9524_vm5, %v9523_v8 }
 0x481   :  { %8275 = vmatprep.subr.bf16.mxu1 %v9523_v8 }
 0x485   :  { %8260 = vmatmul.mubr.msk.bf16.vlgmr.msra.gmra.mrb[20].mxu0 %vm450_vm7, %v9805_v48 }
 0x486   :  { %8271 = vmatprep.mubr.msk.bf16.mxu0 %vm9524_vm5, %v9523_v8 }
 0x4dd   :  { %v491_v10 = vpop.f32.mrb[4].mxu0 }
 0x4de   :  { %v9874_v11 = vadd.f32 %v491_v10, %v9869_v7  ;;  %v8219_v13 = vpop.f32.mrb[5].mxu0 }
 0x4df   :  { %v494_v14 = vpop.f32.mrb[6].mxu0 }
 0x4e0   :  { %v9877_v29 = vadd.f32 %v494_v14, %v9871_v9  ;;  %v8220_v15 = vpop.f32.mrb[7].mxu0  ;;  %v848_v16 = vsel %vm450_vm7, %v9874_v11, -inf }
 0x4e1   :  { %849 = vmax.xlane.f32.xlu0 %v848_v16 }
 0x4e2   :  { %v851_v30 = vsel %vm450_vm7, %v9877_v29, -inf }
 0x4e3   :  { %852 = vmax.xlane.f32.xlu1 %v851_v30 }
 0x4e5   :  { %v541_v17 = vpop.f32.mrb[8].mxu0 }
 0x4e6   :  { %v9884_v18 = vadd.f32 %v541_v17, %v9869_v7  ;;  %v8225_v19 = vpop.f32.mrb[9].mxu0 }
 0x4e7   :  { %v544_v20 = vpop.f32.mrb[10].mxu0 }
 0x4e8   :  { %v9887_v21 = vadd.f32 %v544_v20, %v9871_v9  ;;  %v8226_v23 = vpop.f32.mrb[11].mxu0  ;;  %v854_v24 = vsel %vm450_vm7, %v9884_v18, -inf }
 0x4e9   :  { %855 = vmax.xlane.f32.xlu0 %v854_v24 }
 0x4ea   :  { %v857_v25 = vsel %vm450_vm7, %v9887_v21, -inf }
 0x4ed   :  { %858 = vmax.xlane.f32.xlu0 %v857_v25 }
 0x540   :  { %v591_v26 = vpop.f32.mrb[8].mxu1 }
 0x541   :  { %v9894_v28 = vadd.f32 %v591_v26, %v9869_v7  ;;  %v8231_v31 = vpop.f32.mrb[9].mxu1 }
 0x542   :  { %v594_v32 = vpop.f32.mrb[10].mxu1 }
 0x543   :  { %v9897_v33 = vadd.f32 %v594_v32, %v9871_v9  ;;  %v8232_v34 = vpop.f32.mrb[11].mxu1  ;;  %v860_v35 = vsel %vm450_vm7, %v9894_v28, -inf }
 0x544   :  { %861 = vmax.xlane.f32.xlu1 %v860_v35 }
 0x545   :  { %v863_v36 = vsel %vm450_vm7, %v9897_v33, -inf }
 0x546   :  { %864 = vmax.xlane.f32.xlu0 %v863_v36 }
 0x548   :  { %v641_v37 = vpop.f32.mrb[12].mxu0 }
 0x549   :  { %v9904_v40 = vadd.f32 %v641_v37, %v9869_v7  ;;  %v8237_v42 = vpop.f32.mrb[13].mxu0  ;;  %v691_v43 = vpop.f32.mrb[12].mxu1 }
 0x54a   :  { %v644_v44 = vpop.f32.mrb[14].mxu0  ;;  %v8243_v49 = vpop.f32.mrb[13].mxu1  ;;  %v9907_v50 = vadd.f32 %v691_v43, %v9869_v7 }
 0x54b   :  { %v9910_v51 = vadd.f32 %v644_v44, %v9871_v9  ;;  %v8238_v52 = vpop.f32.mrb[15].mxu0  ;;  %v694_v53 = vpop.f32.mrb[14].mxu1  ;;  %v866_v54 = vsel %vm450_vm7, %v9904_v40, -inf }
 0x54c   :  { %867 = vmax.xlane.f32.xlu1 %v866_v54  ;;  %v8244_v55 = vpop.f32.mrb[15].mxu1  ;;  %v9915_v56 = vadd.f32 %v694_v53, %v9871_v9  ;;  %v872_v58 = vsel %vm450_vm7, %v9907_v50, -inf }
 0x54d   :  { %v869_v57 = vsel %vm450_vm7, %v9910_v51, -inf }
 0x54e   :  { %870 = vmax.xlane.f32.xlu0 %v869_v57  ;;  %v875_v63 = vsel %vm450_vm7, %v9915_v56, -inf }
 0x550   :  { %v741_v59 = vpop.f32.mrb[16].mxu0  ;;  %873 = vmax.xlane.f32.xlu1 %v872_v58 }
 0x551   :  { %v9922_v60 = vadd.f32 %v741_v59, %v9869_v7  ;;  %v8249_v61 = vpop.f32.mrb[17].mxu0  ;;  %v791_v62 = vpop.f32.mrb[16].mxu1 }
 0x552   :  { %v744_v0 = vpop.f32.mrb[18].mxu0  ;;  %876 = vmax.xlane.f32.xlu0 %v875_v63  ;;  %v8255_v1 = vpop.f32.mrb[17].mxu1  ;;  %v9927_v5 = vadd.f32 %v791_v62, %v9869_v7 }
 0x553   :  { %v9930_v6 = vadd.f32 %v744_v0, %v9871_v9  ;;  %v8250_v10 = vpop.f32.mrb[19].mxu0  ;;  %v794_v13 = vpop.f32.mrb[18].mxu1  ;;  %v878_v14 = vsel %vm450_vm7, %v9922_v60, -inf }
 0x554   :  { %879 = vmax.xlane.f32.xlu1 %v878_v14  ;;  %v8256_v15 = vpop.f32.mrb[19].mxu1  ;;  %v9935_v16 = vadd.f32 %v794_v13, %v9871_v9  ;;  %v884_v17 = vsel %vm450_vm7, %v9927_v5, -inf }
 0x555   :  { %v881_v30 = vsel %vm450_vm7, %v9930_v6, -inf }
 0x556   :  { %882 = vmax.xlane.f32.xlu0 %v881_v30  ;;  %v887_v24 = vsel %vm450_vm7, %v9935_v16, -inf }
 0x558   :  { %v841_v19 = vpop.f32.mrb[20].mxu0  ;;  %885 = vmax.xlane.f32.xlu1 %v884_v17 }
 0x559   :  { %v9942_v20 = vadd.f32 %v841_v19, %v9869_v7  ;;  %v8261_v23 = vpop.f32.mrb[21].mxu0 }
 0x55a   :  { %v844_v25 = vpop.f32.mrb[22].mxu0  ;;  %888 = vmax.xlane.f32.xlu0 %v887_v24 }
 0x55b   :  { %v9947_v26 = vadd.f32 %v844_v25, %v9871_v9  ;;  %v8262_v31 = vpop.f32.mrb[23].mxu0  ;;  %v890_v32 = vsel %vm450_vm7, %v9942_v20, -inf }
 0x55c   :  { %891 = vmax.xlane.f32.xlu1 %v890_v32 }
 0x55d   :  { %v893_v34 = vsel %vm450_vm7, %v9947_v26, -inf }
 0x55e   :  { %894 = vmax.xlane.f32.xlu0 %v893_v34 }
 0x56d   :  { %1126 = vrot.lane.b32.xlu1 %v9783_v12, %s12053_s24 }
 0x56e   :  { %v850_v35 = vpop.xlane.xlu0 %849 }
 0x56f   :  { %v896_v12 = vsub.f32 %v9874_v11, %v850_v35 }
 0x570   :  { %v853_v37 = vpop.xlane.xlu1 %852 }
 0x571   :  { %1173 = vrot.lane.b32.xlu1 %v9787_v22, %s12053_s24  ;;  %v897_v42 = vsub.f32 %v9877_v29, %v853_v37  ;;  %v912_v49 = vmul.f32 1.442695, %v896_v12 }
 0x573   :  { %v914_v44 = vmul.f32 1.442695, %v897_v42 }
 0x574   :  { %1079 = vrot.lane.b32.xlu0 %v9765_v4, %s12053_s24 }
 0x575   :  { %1267 = vrot.lane.b32.xlu1 %v9799_v38, %s12053_s24  ;;  %9175 = vpow2.f32 %v914_v44 }
 0x576   :  { %v856_v36 = vpop.xlane.xlu0 %855  ;;  %9177 = vpow2.f32 %v912_v49 }
 0x577   :  { %v898_v4 = vsub.f32 %v9884_v18, %v856_v36 }
 0x578   :  { %1220 = vrot.lane.b32.xlu0 %v9791_v27, %s12053_s24 }
 0x579   :  { %v916_v38 = vmul.f32 1.442695, %v898_v4 }
 0x57a   :  { %v859_v43 = vpop.xlane.xlu0 %858 }
 0x57b   :  { %v899_v22 = vsub.f32 %v9887_v21, %v859_v43 }
 0x57d   :  { %v918_v52 = vmul.f32 1.442695, %v899_v22 }
 0x57f   :  { %9179 = vpow2.f32 %v918_v52  ;;  %v9967_v27 = vpop.eup %9175 }
 0x580   :  { %9181 = vpow2.f32 %v916_v38  ;;  %v9969_v53 = vpop.eup %9177  ;;  %v947_v29 = vsel %vm450_vm7, %v9967_v27, 0.0 }
 0x581   :  { %v944_v21 = vsel %vm450_vm7, %v9969_v53, 0.0 }
 0x589   :  { %v9973_v11 = vpop.eup %9179 }
 0x58a   :  { %v9977_v18 = vpop.eup %9181  ;;  %v953_v54 = vsel %vm450_vm7, %v9973_v11, 0.0 }
 0x58b   :  { %v950_v55 = vsel %vm450_vm7, %v9977_v18, 0.0 }
 0x597   :  { %948 = vadd.xlane.f32.xlu0 %v947_v29 }
 0x599   :  { %945 = vadd.xlane.f32.xlu1 %v944_v21 }
 0x59b   :  { %954 = vadd.xlane.f32.xlu0 %v953_v54 }
 0x59d   :  { %951 = vadd.xlane.f32.xlu1 %v950_v55 }
 0x5d1   :  { %v862_v57 = vpop.xlane.xlu1 %861 }
 0x5d2   :  { %v900_v58 = vsub.f32 %v9894_v28, %v862_v57 }
 0x5d3   :  { %v865_v59 = vpop.xlane.xlu0 %864 }
 0x5d4   :  { %v920_v61 = vmul.f32 1.442695, %v900_v58  ;;  %v901_v62 = vsub.f32 %v9897_v33, %v865_v59 }
 0x5d6   :  { %9183 = vpow2.f32 %v920_v61  ;;  %v922_v63 = vmul.f32 1.442695, %v901_v62 }
 0x5d8   :  { %9185 = vpow2.f32 %v922_v63 }
 0x5d9   :  { %v868_v0 = vpop.xlane.xlu1 %867 }
 0x5da   :  { %v902_v1 = vsub.f32 %v9904_v40, %v868_v0 }
 0x5db   :  { %v871_v10 = vpop.xlane.xlu0 %870 }
 0x5dc   :  { %v924_v13 = vmul.f32 1.442695, %v902_v1  ;;  %v903_v14 = vsub.f32 %v9910_v51, %v871_v10 }
 0x5dd   :  { %v874_v15 = vpop.xlane.xlu1 %873 }
 0x5de   :  { %9187 = vpow2.f32 %v924_v13  ;;  %v926_v30 = vmul.f32 1.442695, %v903_v14  ;;  %v904_v17 = vsub.f32 %v9907_v50, %v874_v15 }
 0x5df   :  { %v877_v28 = vpop.xlane.xlu0 %876 }
 0x5e0   :  { %v9988_v19 = vpop.eup %9183  ;;  %9189 = vpow2.f32 %v926_v30  ;;  %v928_v33 = vmul.f32 1.442695, %v904_v17  ;;  %v905_v23 = vsub.f32 %v9915_v56, %v877_v28 }
 0x5e1   :  { %v880_v24 = vpop.xlane.xlu1 %879  ;;  %v956_v40 = vsel %vm450_vm7, %v9988_v19, 0.0 }
 0x5e2   :  { %v9993_v25 = vpop.eup %9185  ;;  %9191 = vpow2.f32 %v928_v33  ;;  %v930_v51 = vmul.f32 1.442695, %v905_v23  ;;  %v906_v31 = vsub.f32 %v9922_v60, %v880_v24  ;;  %957 = vadd.xlane.f32.xlu1 %v956_v40 }
 0x5e3   :  { %v883_v32 = vpop.xlane.xlu0 %882  ;;  %v959_v50 = vsel %vm450_vm7, %v9993_v25, 0.0 }
 0x5e4   :  { %9193 = vpow2.f32 %v930_v51  ;;  %v932_v34 = vmul.f32 1.442695, %v906_v31  ;;  %v907_v35 = vsub.f32 %v9930_v6, %v883_v32  ;;  %960 = vadd.xlane.f32.xlu0 %v959_v50 }
 0x5e5   :  { %v886_v56 = vpop.xlane.xlu1 %885 }
 0x5e6   :  { %9195 = vpow2.f32 %v932_v34  ;;  %v934_v36 = vmul.f32 1.442695, %v907_v35  ;;  %v908_v37 = vsub.f32 %v9927_v5, %v886_v56 }
 0x5e7   :  { %v889_v42 = vpop.xlane.xlu0 %888 }
 0x5e8   :  { %v10000_v43 = vpop.eup %9187  ;;  %9197 = vpow2.f32 %v934_v36  ;;  %v936_v60 = vmul.f32 1.442695, %v908_v37  ;;  %v909_v12 = vsub.f32 %v9935_v16, %v889_v42 }
 0x5e9   :  { %v892_v44 = vpop.xlane.xlu1 %891  ;;  %v962_v22 = vsel %vm450_vm7, %v10000_v43, 0.0 }
 0x5ea   :  { %v10005_v49 = vpop.eup %9189  ;;  %9199 = vpow2.f32 %v936_v60  ;;  %v938_v6 = vmul.f32 1.442695, %v909_v12  ;;  %v910_v4 = vsub.f32 %v9942_v20, %v892_v44  ;;  %963 = vadd.xlane.f32.xlu1 %v962_v22 }
 0x5eb   :  { %v895_v52 = vpop.xlane.xlu0 %894  ;;  %v965_v5 = vsel %vm450_vm7, %v10005_v49, 0.0 }
 0x5ec   :  { %v10010_v38 = vpop.eup %9191  ;;  %9201 = vpow2.f32 %v938_v6  ;;  %v940_v29 = vmul.f32 1.442695, %v910_v4  ;;  %v911_v16 = vsub.f32 %v9947_v26, %v895_v52  ;;  %966 = vadd.xlane.f32.xlu0 %v965_v5 }
 0x5ed   :  { %v968_v21 = vsel %vm450_vm7, %v10010_v38, 0.0  ;;  %v1127_v30 = vpop.permute.xlu1 %1126 }
 0x5ee   :  { %v10015_v54 = vpop.eup %9193  ;;  %9203 = vpow2.f32 %v940_v29  ;;  %v942_v55 = vmul.f32 1.442695, %v911_v16  ;;  %969 = vadd.xlane.f32.xlu1 %v968_v21 }
 0x5ef   :  { %v1080_v20 = vpop.permute.xlu0 %1079  ;;  %v971_v57 = vsel %vm450_vm7, %v10015_v54, 0.0 }
 0x5f0   :  { %v10019_v58 = vpop.eup %9195  ;;  %9205 = vpow2.f32 %v942_v55  ;;  %972 = vadd.xlane.f32.xlu0 %v971_v57  ;;  %8270 = vmatpush3.bf16.msra.mxu0 %v1080_v20 }
 0x5f1   :  { %v974_v26 = vsel %vm450_vm7, %v10019_v58, 0.0  ;;  %8281 = vmatprep.subr.bf16.mxu0 %v9523_v8  ;;  %v1174_v17 = vpop.permute.xlu1 %1173 }
 0x5f2   :  { %v10024_v59 = vpop.eup %9197  ;;  %975 = vadd.xlane.f32.xlu1 %v974_v26 }
 0x5f3   :  { %v977_v61 = vsel %vm450_vm7, %v10024_v59, 0.0  ;;  %v1221_v28 = vpop.permute.xlu0 %1220 }
 0x5f4   :  { %v10028_v62 = vpop.eup %9199  ;;  %978 = vadd.xlane.f32.xlu0 %v977_v61 }
 0x5f5   :  { %v980_v63 = vsel %vm450_vm7, %v10028_v62, 0.0  ;;  %v10048_v33 = vpop.permute.xlu1 %1267 }
 0x5f6   :  { %v10032_v0 = vpop.eup %9201  ;;  %981 = vadd.xlane.f32.xlu1 %v980_v63 }
 0x5f7   :  { %v983_v1 = vsel %vm450_vm7, %v10032_v0, 0.0 }
 0x5f8   :  { %v10036_v10 = vpop.eup %9203  ;;  %984 = vadd.xlane.f32.xlu0 %v983_v1 }
 0x5f9   :  { %v986_v13 = vsel %vm450_vm7, %v10036_v10, 0.0 }
 0x5fa   :  { %v10040_v14 = vpop.eup %9205  ;;  %987 = vadd.xlane.f32.xlu1 %v986_v13 }
 0x5fb   :  { %v989_v15 = vsel %vm450_vm7, %v10040_v14, 0.0 }
 0x5fc   :  { %990 = vadd.xlane.f32.xlu0 %v989_v15 }
 0x60b   :  { %1361 = vrot.lane.b32.xlu1 %v9805_v48, %s12053_s24 }
 0x612   :  { %1314 = vrot.lane.b32.xlu0 %v9803_v45, %s12053_s24 }
 0x624   :  { %v949_v23 = vpop.xlane.xlu0 %948 }
 0x625   :  { %9207 = vrcp.f32 %v949_v23 }
 0x626   :  { %v946_v24 = vpop.xlane.xlu1 %945 }
 0x627   :  { %9209 = vrcp.f32 %v946_v24 }
 0x628   :  { %v955_v40 = vpop.xlane.xlu0 %954 }
 0x629   :  { %9211 = vrcp.f32 %v955_v40 }
 0x62a   :  { %v952_v51 = vpop.xlane.xlu1 %951 }
 0x62b   :  { %9213 = vrcp.f32 %v952_v51 }
 0x62f   :  { %v9208_v31 = vpop.eup %9207 }
 0x630   :  { %v1009_v48 = vmul.f32 %v9208_v31, %v9967_v27 }
 0x631   :  { %v9210_v32 = vpop.eup %9209 }
 0x632   :  { %v1008_v50 = vmul.f32 %v9210_v32, %v9969_v53 }
 0x633   :  { %v9212_v45 = vpop.eup %9211 }
 0x634   :  { %v1024_v34 = vpack.c.bf16 %v1009_v48, %v1008_v50  ;;  %v1011_v56 = vmul.f32 %v9212_v45, %v9973_v11 }
 0x635   :  { %v9214_v35 = vpop.eup %9213 }
 0x636   :  { %v1010_v36 = vmul.f32 %v9214_v35, %v9977_v18  ;;  %8266 = vmatmul.mubr.msk.bf16.vlgmr.msra.gmra.mrb[20].mxu1 %vm450_vm7, %v1024_v34 }
 0x637   :  { %8276 = vmatpush3.bf16.msra.mxu1 %v1127_v30  ;;  %8277 = vmatprep.mubr.msk.bf16.mxu1 %vm9524_vm5, %v9523_v8 }
 0x638   :  { %v1025_v37 = vpack.c.bf16 %v1011_v56, %v1010_v36  ;;  %8287 = vmatprep.subr.bf16.mxu1 %v9523_v8 }
 0x63a   :  { %8272 = vmatmul.mubr.msk.bf16.vlgmr.msra.gmra.mrb[24].mxu0 %vm450_vm7, %v1025_v37 }
 0x63b   :  { %8282 = vmatpush3.bf16.msra.mxu0 %v1174_v17  ;;  %8283 = vmatprep.mubr.msk.bf16.mxu0 %vm9524_vm5, %v9523_v8 }
 0x63c   :  { %8293 = vmatprep.subr.bf16.mxu0 %v9523_v8 }
 0x66f   :  { %v958_v27 = vpop.xlane.xlu1 %957 }
 0x670   :  { %9215 = vrcp.f32 %v958_v27 }
 0x671   :  { %v961_v53 = vpop.xlane.xlu0 %960 }
 0x672   :  { %9217 = vrcp.f32 %v961_v53 }
 0x677   :  { %v964_v11 = vpop.xlane.xlu1 %963 }
 0x678   :  { %9219 = vrcp.f32 %v964_v11  ;;  %v8999_v11 = vld [vmem:[%s12033_s6] sm:$0xff]  }
 0x679   :  { %v967_v18 = vpop.xlane.xlu0 %966 }
 0x67a   :  { %v9216_v42 = vpop.eup %9215  ;;  %9221 = vrcp.f32 %v967_v18 }
 0x67b   :  { %v970_v60 = vpop.xlane.xlu1 %969  ;;  %v1012_v44 = vmul.f32 %v9216_v42, %v9988_v19  ;;  %v9000_v42 = vld [vmem:[%s12033_s6 + $0x8] sm:$0xff]  }
 0x67c   :  { %v9218_v12 = vpop.eup %9217  ;;  %9223 = vrcp.f32 %v970_v60 }
 0x67d   :  { %v1013_v22 = vmul.f32 %v9218_v12, %v9993_v25  ;;  %v973_v6 = vpop.xlane.xlu0 %972 }
 0x67e   :  { %9225 = vrcp.f32 %v973_v6 }
 0x67f   :  { %v976_v4 = vpop.xlane.xlu1 %975  ;;  %v1026_v52 = vpack.c.bf16 %v1013_v22, %v1012_v44 }
 0x680   :  { %9227 = vrcp.f32 %v976_v4  ;;  %v9001_v4 = vld [vmem:[%s12033_s6 + $0x10] sm:$0xff]  }
 0x681   :  { %8278 = vmatmul.mubr.msk.bf16.vlgmr.msra.gmra.mrb[24].mxu1 %vm450_vm7, %v1026_v52  ;;  %v979_v5 = vpop.xlane.xlu0 %978 }
 0x682   :  { %v9220_v29 = vpop.eup %9219  ;;  %8288 = vmatpush3.bf16.msra.mxu1 %v1221_v28  ;;  %9229 = vrcp.f32 %v979_v5  ;;  %8289 = vmatprep.mubr.msk.bf16.mxu1 %vm9524_vm5, %v9523_v8 }
 0x683   :  { %v982_v16 = vpop.xlane.xlu1 %981  ;;  %8299 = vmatprep.subr.bf16.mxu1 %v9523_v8  ;;  %v1014_v25 = vmul.f32 %v9220_v29, %v10000_v43 }
 0x684   :  { %v9222_v19 = vpop.eup %9221  ;;  %9231 = vrcp.f32 %v982_v16 }
 0x685   :  { %v1015_v21 = vmul.f32 %v9222_v19, %v10005_v49  ;;  %v985_v55 = vpop.xlane.xlu0 %984 }
 0x686   :  { %v9224_v20 = vpop.eup %9223  ;;  %9233 = vrcp.f32 %v985_v55 }
 0x687   :  { %v988_v57 = vpop.xlane.xlu1 %987  ;;  %v1027_v26 = vpack.c.bf16 %v1015_v21, %v1014_v25  ;;  %v1016_v63 = vmul.f32 %v9224_v20, %v10010_v38  ;;  %v9002_v25 = vld [vmem:[%s12033_s6 + $0x18] sm:$0xff]  }
 0x688   :  { %v9226_v61 = vpop.eup %9225  ;;  %9235 = vrcp.f32 %v988_v57 }
 0x689   :  { %v1017_v1 = vmul.f32 %v9226_v61, %v10015_v54  ;;  %8284 = vmatmul.mubr.msk.bf16.vlgmr.msra.gmra.mrb[28].mxu0 %vm450_vm7, %v1027_v26  ;;  %v991_v13 = vpop.xlane.xlu0 %990 }
 0x68a   :  { %v9228_v15 = vpop.eup %9227  ;;  %8294 = vmatpush3.bf16.msra.mxu0 %v10048_v33  ;;  %9237 = vrcp.f32 %v991_v13  ;;  %8295 = vmatprep.mubr.msk.bf16.mxu0 %vm9524_vm5, %v9523_v8 }
 0x68b   :  { %v1028_v43 = vpack.c.bf16 %v1017_v1, %v1016_v63  ;;  %8305 = vmatprep.subr.bf16.mxu0 %v9523_v8  ;;  %v1018_v30 = vmul.f32 %v9228_v15, %v10019_v58  ;;  %v1362_v40 = vpop.permute.xlu1 %1361 }
 0x68c   :  { %v9230_v49 = vpop.eup %9229 }
 0x68d   :  { %v1019_v38 = vmul.f32 %v9230_v49, %v10024_v59  ;;  %8290 = vmatmul.mubr.msk.bf16.vlgmr.msra.gmra.mrb[28].mxu1 %vm450_vm7, %v1028_v43  ;;  %v1315_v54 = vpop.permute.xlu0 %1314 }
 0x68e   :  { %v9232_v17 = vpop.eup %9231  ;;  %8300 = vmatpush3.bf16.msra.mxu1 %v1315_v54  ;;  %8301 = vmatprep.mubr.msk.bf16.mxu1 %vm9524_vm5, %v9523_v8 }
 0x68f   :  { %v1029_v28 = vpack.c.bf16 %v1019_v38, %v1018_v30  ;;  %v1020_v23 = vmul.f32 %v9232_v17, %v10028_v62  ;;  %8311 = vmatprep.subr.bf16.mxu1 %v8999_v11 }
 0x690   :  { %v9234_v33 = vpop.eup %9233 }
 0x691   :  { %v1021_v24 = vmul.f32 %v9234_v33, %v10032_v0  ;;  %8296 = vmatmul.mubr.msk.bf16.vlgmr.msra.gmra.mrb[32].mxu0 %vm450_vm7, %v1029_v28 }
 0x692   :  { %v9236_v58 = vpop.eup %9235  ;;  %8306 = vmatpush3.bf16.msra.mxu0 %v1362_v40  ;;  %8307 = vmatprep.mubr.msk.bf16.mxu0 %vm9524_vm5, %v9523_v8 }
 0x693   :  { %v1030_v59 = vpack.c.bf16 %v1021_v24, %v1020_v23  ;;  %v1022_v31 = vmul.f32 %v9236_v58, %v10036_v10 }
 0x694   :  { %v9238_v51 = vpop.eup %9237 }
 0x695   :  { %v1023_v32 = vmul.f32 %v9238_v51, %v10040_v14  ;;  %8302 = vmatmul.mubr.msk.bf16.vlgmr.msra.gmra.mrb[32].mxu1 %vm450_vm7, %v1030_v59 }
 0x696   :  { %8312 = vmatpush3.bf16.msra.mxu1 %v8999_v11 }
 0x697   :  { %v1031_v48 = vpack.c.bf16 %v1023_v32, %v1022_v31  ;;  %8313 = vmatprep.subr.bf16.mxu1 %v9000_v42 }
 0x699   :  { %8308 = vmatmul.mubr.msk.bf16.vlgmr.msra.gmra.mrb[36].mxu0 %vm450_vm7, %v1031_v48 }
 0x69a   :  { %1741 = vmatprep.mubr.bf16.mxu0 %v9519_v2  ;;  %8314 = vmatpush3.bf16.msra.mxu1 %v9000_v42 }
 0x69b   :  { %8315 = vmatprep.subr.bf16.mxu1 %v9001_v4 }
 0x69e   :  { %8316 = vmatpush3.bf16.msra.mxu1 %v9001_v4 }
 0x69f   :  { %8317 = vmatprep.subr.bf16.mxu1 %v9002_v25 }
 0x6a2   :  { %8318 = vmatpush3.bf16.msra.mxu1 %v9002_v25 }
 0x709   :  { %v10092_v62 = vpop.f32.mrb[20].mxu1 }
 0x70a   :  { %v8267_v0 = vpop.f32.mrb[21].mxu1 }
 0x70b   :  { %v10094_v50 = vpop.f32.mrb[22].mxu1 }
 0x70c   :  { %v8268_v45 = vpop.f32.mrb[23].mxu1 }
 0x70d   :  { %v10096_v34 = vpop.f32.mrb[24].mxu0 }
 0x70e   :  { %v8273_v35 = vpop.f32.mrb[25].mxu0 }
 0x70f   :  { %v10098_v56 = vpop.f32.mrb[26].mxu0 }
 0x710   :  { %v8274_v10 = vpop.f32.mrb[27].mxu0 }
 0x754   :  { %v1166_v14 = vpop.f32.mrb[24].mxu1 }
 0x755   :  { %v8279_v36 = vpop.f32.mrb[25].mxu1 }
 0x756   :  { %v1169_v37 = vpop.f32.mrb[26].mxu1 }
 0x757   :  { %v8747_v27 = vpack.i.bf16 %v1169_v37, %v1166_v14  ;;  %v8280_v53 = vpop.f32.mrb[27].mxu1 }
 0x759   :  { %8748 = vrot.lane.b32.xlu0 %v8747_v27, %s12051_s26 }
 0x75c   :  { %v1213_v18 = vpop.f32.mrb[28].mxu0 }
 0x75d   :  { %v8285_v60 = vpop.f32.mrb[29].mxu0 }
 0x75e   :  { %v1216_v12 = vpop.f32.mrb[30].mxu0 }
 0x75f   :  { %v8752_v44 = vpack.i.bf16 %v1216_v12, %v1213_v18  ;;  %v8286_v22 = vpop.f32.mrb[31].mxu0 }
 0x760   :  { %v1260_v6 = vpop.f32.mrb[28].mxu1 }
 0x761   :  { %8753 = vrot.lane.b32.xlu1 %v8752_v44, %s12051_s26  ;;  %v8291_v52 = vpop.f32.mrb[29].mxu1 }
 0x762   :  { %v1263_v5 = vpop.f32.mrb[30].mxu1 }
 0x763   :  { %v8757_v29 = vpack.i.bf16 %v1263_v5, %v1260_v6  ;;  %v8292_v16 = vpop.f32.mrb[31].mxu1 }
 0x764   :  { %v1307_v19 = vpop.f32.mrb[32].mxu0 }
 0x765   :  { %v8297_v21 = vpop.f32.mrb[33].mxu0  ;;  %8758 = vrot.lane.b32.xlu0 %v8757_v29, %s9522_s29 }
 0x766   :  { %v1310_v55 = vpop.f32.mrb[34].mxu0 }
 0x767   :  { %v8762_v20 = vpack.i.bf16 %v1310_v55, %v1307_v19  ;;  %v8298_v57 = vpop.f32.mrb[35].mxu0 }
 0x768   :  { %v1354_v26 = vpop.f32.mrb[32].mxu1 }
 0x769   :  { %8763 = vrot.lane.b32.xlu1 %v8762_v20, %s9522_s29  ;;  %v8303_v61 = vpop.f32.mrb[33].mxu1 }
 0x76a   :  { %v1357_v63 = vpop.f32.mrb[34].mxu1 }
 0x76b   :  { %v8767_v1 = vpack.i.bf16 %v1357_v63, %v1354_v26  ;;  %v8304_v13 = vpop.f32.mrb[35].mxu1 }
 0x76c   :  { %v1401_v15 = vpop.f32.mrb[36].mxu0 }
 0x76d   :  { %v8309_v43 = vpop.f32.mrb[37].mxu0  ;;  %8768 = vrot.lane.b32.xlu0 %v8767_v1, %s12049_s21 }
 0x76e   :  { %v1404_v49 = vpop.f32.mrb[38].mxu0 }
 0x76f   :  { %v8772_v30 = vpack.i.bf16 %v1404_v49, %v1401_v15  ;;  %v8310_v38 = vpop.f32.mrb[39].mxu0 }
 0x771   :  { %8773 = vrot.lane.b32.xlu1 %v8772_v30, %s12049_s21 }
 0x7cb   :  { %v8749_v54 = vpop.permute.xlu0 %8748 }
 0x7cc   :  { %v8751_v33 = vunpack.i.h.bf16 %v8749_v54  ;;  %v8750_v23 = vunpack.i.l.bf16 %v8749_v54 }
 0x7ce   :  { %v1457_v59 = vsel %vm450_vm7, %v10094_v50, %v8751_v33  ;;  %v1456_v51 = vsel %vm450_vm7, %v10092_v62, %v8750_v23 }
 0x7d3   :  { %v8754_v17 = vpop.permute.xlu1 %8753 }
 0x7d4   :  { %v8756_v32 = vunpack.i.h.bf16 %v8754_v17  ;;  %v8755_v48 = vunpack.i.l.bf16 %v8754_v17 }
 0x7d6   :  { %v1459_v62 = vsel %vm450_vm7, %v10098_v56, %v8756_v32  ;;  %v1458_v11 = vsel %vm450_vm7, %v10096_v34, %v8755_v48  ;;  %v7485_v34 = vld [vmem:[%s12034_s7] ss:$0 sm:$0xff]  ;;  %v9008_v48 = vld [vmem:[%s12037_s10 + $0x14] ss:$8 sps:$4 sm:$0xff]  }
 0x7d7   :  { %v8759_v28 = vpop.permute.xlu0 %8758  ;;  %v9003_v32 = vld [vmem:[%s12037_s10] ss:$8 sps:$4 sm:$0xff]  }
 0x7d8   :  { %v8761_v24 = vunpack.i.h.bf16 %v8759_v28  ;;  %v8760_v40 = vunpack.i.l.bf16 %v8759_v28 }
 0x7da   :  { %v1461_v35 = vsel %vm418_vm6, %v1457_v59, %v8761_v24  ;;  %v1460_v10 = vsel %vm418_vm6, %v1456_v51, %v8760_v40 }
 0x7db   :  { %v8764_v58 = vpop.permute.xlu1 %8763 }
 0x7dc   :  { %v8766_v14 = vunpack.i.h.bf16 %v8764_v58  ;;  %v8765_v36 = vunpack.i.l.bf16 %v8764_v58 }
 0x7de   :  { %v1463_v60 = vsel %vm418_vm6, %v1459_v62, %v8766_v14  ;;  %v1462_v12 = vsel %vm418_vm6, %v1458_v11, %v8765_v36  ;;  %v9014_v14 = vld [vmem:[%s12037_s10 + $0x34] ss:$8 sps:$4 sm:$0xff]   ;;  %v9015_v36 = vld [vmem:[%s12039_s12 + $0x40] sm:$0xff]  }
 0x7df   :  { %v8769_v31 = vpop.permute.xlu0 %8768  ;;  %7945 = vmatprep.subr.bf16.mxu1 %v9015_v36  ;;  %v9020_v62 = vld [vmem:[%s12039_s12 + $0x10] sm:$0xff]   ;;  %v9021_v11 = vld [vmem:[%s12039_s12 + $0x58] sm:$0xff]  }
 0x7e0   :  { %v8771_v0 = vunpack.i.h.bf16 %v8769_v31  ;;  %v8770_v45 = vunpack.i.l.bf16 %v8769_v31  ;;  %v9005_v31 = vld [vmem:[%s12037_s10 + $0x4] ss:$8 sps:$4 sm:$0xff]  }
 0x7e1   :  { %1709 = vmatprep.subr.bf16.mxu0 %v9005_v31  ;;  %v9030_v31 = vld [vmem:[%s12039_s12 + $0x38] sm:$0xff]  }
 0x7e2   :  { %v1466_v37 = vsel %vm1464_vm10, %v1461_v35, %v8771_v0  ;;  %v1465_v27 = vsel %vm1464_vm10, %v1460_v10, %v8770_v45  ;;  %1710 = vmatpush1.bf16.msra.mxu0 %v9003_v32  ;;  %v9006_v0 = vld [vmem:[%s12037_s10 + $0x10] ss:$8 sps:$4 sm:$0xff]   ;;  %v9011_v45 = vld [vmem:[%s12037_s10 + $0x24] ss:$8 sps:$4 sm:$0xff]   ;;  %v9009_v35 = vld [vmem:[%s12037_s10 + $0x20] ss:$8 sps:$4 sm:$0xff]  }
 0x7e3   :  { %v8774_v50 = vpop.permute.xlu1 %8773  ;;  %v1469_v53 = vpack.c.bf16 %v1466_v37, %v1465_v27  ;;  %1711 = vmatprep.subr.bf16.mxu0 %v9008_v48  ;;  %v9012_v10 = vld [vmem:[%s12037_s10 + $0x30] ss:$8 sps:$4 sm:$0xff]   ;;  %v9016_v37 = vld [vmem:[%s12039_s12] sm:$0xff]   ;;  %v9017_v27 = vld [vmem:[%s12039_s12 + $0x48] sm:$0xff]   ;;  %v10271_v32 = vsub.s32 0, %v9863_v3 }
 0x7e4   :  { %v8776_v18 = vunpack.i.h.bf16 %v8774_v50  ;;  %v8775_v42 = vunpack.i.l.bf16 %v8774_v50  ;;  %v9018_v50 = vld [vmem:[%s12039_s12 + $0x8] sm:$0xff]   ;;  %v1651_v48 = vld [vmem:[%s12038_s11] ss:$4 sm:$0x3] }
 0x7e5   :  { %8319 = vmatprep.mubr.msk.bf16.mxu1 %vm203_vm4, %v1469_v53  ;;  %v9019_v53 = vld [vmem:[%s12039_s12 + $0x50] sm:$0xff]  }
 0x7e6   :  { %v1468_v44 = vsel %vm1464_vm10, %v1463_v60, %v8776_v18  ;;  %v1467_v22 = vsel %vm1464_vm10, %v1462_v12, %v8775_v42  ;;  %1712 = vmatpush1.bf16.msra.mxu0 %v9006_v0  ;;  %v9022_v18 = vld [vmem:[%s12039_s12 + $0x18] sm:$0xff]   ;;  %v9023_v42 = vld [vmem:[%s12039_s12 + $0x60] sm:$0xff]   ;;  %v9025_v12 = vld [vmem:[%s12039_s12 + $0x68] sm:$0xff]   ;;  %v10277_v0 = vsub.s32 1, %v9863_v3 }
 0x7e7   :  { %v1470_v6 = vpack.c.bf16 %v1468_v44, %v1467_v22  ;;  %1713 = vmatprep.subr.bf16.mxu0 %v9011_v45  ;;  %v9024_v60 = vld [vmem:[%s12039_s12 + $0x20] sm:$0xff]   ;;  %v1656_v45 = vrot.slane %v1651_v48, %v10271_v32 }
 0x7e9   :  { %8320 = vmatmul.mubr.msk.bf16.vlgmr.msra.gmra.mrb[36].mxu1 %vm203_vm4, %v1470_v6 }
 0x7ea   :  { %1714 = vmatpush1.bf16.msra.mxu0 %v9009_v35  ;;  %7946 = vmatpush3.bf16.msra.mxu1 %v9016_v37  ;;  %v1660_v35 = vrot.slane %v1651_v48, %v10277_v0 }
 0x7eb   :  { %1715 = vmatprep.subr.bf16.mxu0 %v9014_v14  ;;  %7947 = vmatprep.subr.bf16.mxu1 %v9017_v27 }
 0x7ee   :  { %1716 = vmatpush1.bf16.msra.mxu0 %v9012_v10  ;;  %7948 = vmatpush3.bf16.msra.mxu1 %v9018_v50 }
 0x7ef   :  { %7949 = vmatprep.subr.bf16.mxu1 %v9019_v53 }
 0x7f2   :  { %7950 = vmatpush3.bf16.msra.mxu1 %v9020_v62 }
 0x7f3   :  { %7951 = vmatprep.subr.bf16.mxu1 %v9021_v11 }
 0x7f6   :  { %7952 = vmatpush3.bf16.msra.mxu1 %v9022_v18 }
 0x7f7   :  { %7953 = vmatprep.subr.bf16.mxu1 %v9023_v42 }
 0x7fa   :  { %7954 = vmatpush3.bf16.msra.mxu1 %v9024_v60 }
 0x7fb   :  { %7955 = vmatprep.subr.bf16.mxu1 %v9025_v12 }
 0x8bc   :  { %v8321_v4 = vpop.f32.mrb[36].mxu1 }
 0x8bd   :  { %v1543_v56 = vpop.f32.mrb[37].mxu1  ;;  %v1560_v52 = vadd.f32 %v8321_v4, %v9712_v46 }
 0x8be   :  { %v1558_v5 = vadd.f32 %v1543_v56, %v9706_v41  ;;  %v8322_v29 = vpop.f32.mrb[38].mxu1 }
 0x8bf   :  { %v1546_v16 = vpop.f32.mrb[39].mxu1  ;;  %v10144_v21 = vadd.f32 %v7485_v34, %v1560_v52  ;;  %v1561_v55 = vadd.f32 %v8322_v29, %v9714_v47 }
 0x8c0   :  { %v10141_v19 = vadd.f32 %v7485_v34, %v1558_v5  ;;  %v1559_v25 = vadd.f32 %v1546_v16, %v9704_v39 }
 0x8c1   :  { %v10153_v41 = vadd.f32 %v7485_v34, %v1561_v55  ;;  %v1579_v26 = vsel %vm203_vm4, %v10144_v21, 0.0 }
 0x8c2   :  { %v10147_v20 = vadd.f32 %v7485_v34, %v1559_v25  ;;  %v1573_v57 = vsel %vm203_vm4, %v10141_v19, 0.0 }
 0x8c3   :  { %1574 = vadd.xlane.f32.xlu0 %v1573_v57  ;;  %v1582_v39 = vsel %vm203_vm4, %v10153_v41, 0.0 }
 0x8c4   :  { %v1576_v46 = vsel %vm203_vm4, %v10147_v20, 0.0 }
 0x8c5   :  { %1577 = vadd.xlane.f32.xlu1 %v1576_v46  ;;  %v7486_v46 = vld [vmem:[%s12035_s8] ss:$0 sm:$0xff] }
 0x8c7   :  { %1580 = vadd.xlane.f32.xlu0 %v1579_v26 }
 0x8cb   :  { %1583 = vadd.xlane.f32.xlu0 %v1582_v39 }
 0x950   :  { %v1575_v47 = vpop.xlane.xlu0 %1574 }
 0x951   :  { %v1585_v61 = vmul.f32 0.015625, %v1575_v47 }
 0x952   :  { %v1578_v63 = vpop.xlane.xlu1 %1577 }
 0x953   :  { %v10160_v1 = vsub.f32 %v10141_v19, %v1585_v61  ;;  %v1586_v13 = vmul.f32 0.015625, %v1578_v63 }
 0x954   :  { %v1581_v15 = vpop.xlane.xlu0 %1580 }
 0x955   :  { %v10163_v43 = vsub.f32 %v10147_v20, %v1586_v13  ;;  %v1587_v49 = vmul.f32 0.015625, %v1581_v15  ;;  %v1593_v30 = vmul.f32 %v10160_v1, %v10160_v1  ;;  %v7487_v13 = vld [vmem:[%s12036_s9] ss:$0 sm:$0xff] }
 0x957   :  { %v10168_v38 = vsub.f32 %v10144_v21, %v1587_v49  ;;  %v1597_v54 = vsel %vm203_vm4, %v1593_v30, 0.0  ;;  %v1594_v17 = vmul.f32 %v10163_v43, %v10163_v43 }
 0x958   :  { %v1584_v28 = vpop.xlane.xlu0 %1583  ;;  %1598 = vadd.xlane.f32.xlu1 %v1597_v54 }
 0x959   :  { %v1588_v33 = vmul.f32 0.015625, %v1584_v28  ;;  %v1600_v23 = vsel %vm203_vm4, %v1594_v17, 0.0  ;;  %v1595_v24 = vmul.f32 %v10168_v38, %v10168_v38 }
 0x95a   :  { %1601 = vadd.xlane.f32.xlu0 %v1600_v23 }
 0x95b   :  { %v10177_v40 = vsub.f32 %v10153_v41, %v1588_v33  ;;  %v1603_v58 = vsel %vm203_vm4, %v1595_v24, 0.0 }
 0x95c   :  { %1604 = vadd.xlane.f32.xlu1 %v1603_v58 }
 0x95d   :  { %v1596_v59 = vmul.f32 %v10177_v40, %v10177_v40 }
 0x95f   :  { %v1606_v51 = vsel %vm203_vm4, %v1596_v59, 0.0  ;;  %v9028_v59 = vld [vmem:[%s12039_s12 + $0x30] sm:$0xff]  }
 0x960   :  { %1607 = vadd.xlane.f32.xlu0 %v1606_v51  ;;  %v9029_v51 = vld [vmem:[%s12039_s12 + $0x78] sm:$0xff]  }
 0x9e5   :  { %v1599_v44 = vpop.xlane.xlu1 %1598 }
 0x9e6   :  { %v1609_v22 = vmul.f32 0.015625, %v1599_v44 }
 0x9e7   :  { %v1602_v6 = vpop.xlane.xlu0 %1601 }
 0x9e8   :  { %v1613_v4 = vadd.f32 1e-05, %v1609_v22  ;;  %v1610_v34 = vmul.f32 0.015625, %v1602_v6 }
 0x9e9   :  { %v1605_v56 = vpop.xlane.xlu1 %1604 }
 0x9ea   :  { %9239 = vrsqrt.f32 %v1613_v4  ;;  %v1614_v52 = vadd.f32 1e-05, %v1610_v34  ;;  %v1611_v5 = vmul.f32 0.015625, %v1605_v56 }
 0x9ec   :  { %9241 = vrsqrt.f32 %v1614_v52  ;;  %v1615_v29 = vadd.f32 1e-05, %v1611_v5 }
 0x9ed   :  { %v1608_v16 = vpop.xlane.xlu0 %1607 }
 0x9ee   :  { %9243 = vrsqrt.f32 %v1615_v29  ;;  %v1612_v25 = vmul.f32 0.015625, %v1608_v16 }
 0x9f0   :  { %v1616_v55 = vadd.f32 1e-05, %v1612_v25 }
 0x9f2   :  { %9245 = vrsqrt.f32 %v1616_v55 }
 0x9f4   :  { %v9240_v57 = vpop.eup %9239 }
 0x9f5   :  { %v1621_v26 = vmul.f32 %v9240_v57, %v10160_v1 }
 0x9f6   :  { %v9242_v39 = vpop.eup %9241 }
 0x9f7   :  { %v1629_v47 = vmul.f32 %v7486_v46, %v1621_v26  ;;  %v1622_v61 = vmul.f32 %v9242_v39, %v10163_v43 }
 0x9f8   :  { %v9244_v63 = vpop.eup %9243 }
 0x9f9   :  { %v1630_v15 = vmul.f32 %v7486_v46, %v1622_v61  ;;  %v1637_v49 = vadd.f32 %v7487_v13, %v1629_v47  ;;  %v1623_v54 = vmul.f32 %v9244_v63, %v10168_v38  ;;  %v9026_v38 = vld [vmem:[%s12039_s12 + $0x28] sm:$0xff]   ;;  %v7514_v63 = vld [vmem:[%s12040_s13] ss:$0 sm:$0xff] }
 0x9fa   :  { %7956 = vmatpush3.bf16.msra.mxu1 %v9026_v38 }
 0x9fb   :  { %v1638_v30 = vadd.f32 %v7487_v13, %v1630_v15  ;;  %v1631_v1 = vmul.f32 %v7486_v46, %v1623_v54 }
 0x9fc   :  { %v9246_v17 = vpop.eup %9245 }
 0x9fd   :  { %v1641_v28 = vpack.c.bf16 %v1638_v30, %v1637_v49  ;;  %v1624_v33 = vmul.f32 %v9246_v17, %v10177_v40  ;;  %v1639_v24 = vadd.f32 %v7487_v13, %v1631_v1  ;;  %v9027_v40 = vld [vmem:[%s12039_s12 + $0x70] sm:$0xff]  }
 0x9fe   :  { %7957 = vmatprep.subr.bf16.mxu1 %v9027_v40 }
 0x9ff   :  { %7496 = vmatmul.mubr.msk.bf16.vlgmr.msra.gmra.mrb[40].mxu0 %vm203_vm4, %v1641_v28  ;;  %v1632_v23 = vmul.f32 %v7486_v46, %v1624_v33  ;;  %7958 = vmatpush3.bf16.msra.mxu1 %v9028_v59 }
 0xa00   :  { %1751 = vmatprep.mubr.bf16.mxu0 %v9519_v2  ;;  %7959 = vmatprep.subr.bf16.mxu1 %v9029_v51 }
 0xa01   :  { %v1640_v43 = vadd.f32 %v7487_v13, %v1632_v23 }
 0xa03   :  { %v1642_v58 = vpack.c.bf16 %v1640_v43, %v1639_v24  ;;  %7960 = vmatpush3.bf16.msra.mxu1 %v9030_v31 }
 0xa04   :  { %8335 = vmatprep.subr.bf16.mxu1 %v9523_v8 }
 0xa07   :  { %7497 = vmatmul.mubr.msk.bf16.gmra.mrb[44].mxu0 %vm203_vm4, %v1642_v58 }
 0xa08   :  { %2123 = vmatprep.mubr.bf16.mxu0 %v9519_v2 }
 0xad2   :  { %v1743_v10 = vpop.f32.mrb[40].mxu0 }
 0xad3   :  { %v1744_v14 = vadd.f32 %v1743_v10, %v1656_v45  ;;  %v1745_v36 = vpop.f32.mrb[41].mxu0 }
 0xad4   :  { %v1746_v37 = vadd.f32 %v1745_v36, %v1660_v35  ;;  %v1747_v27 = vpop.f32.mrb[42].mxu0 }
 0xad5   :  { %v1748_v50 = vadd.f32 %v1747_v27, %v1656_v45  ;;  %v1749_v53 = vpop.f32.mrb[43].mxu0  ;;  %v1762_v11 = vmax.f32 %v1744_v14, 0.0 }
 0xad6   :  { %v1750_v62 = vadd.f32 %v1749_v53, %v1660_v35  ;;  %v1763_v42 = vmax.f32 %v1746_v37, 0.0 }
 0xad7   :  { %v1764_v18 = vmax.f32 %v1748_v50, 0.0 }
 0xad8   :  { %v1765_v60 = vmax.f32 %v1750_v62, 0.0 }
 0xad9   :  { %v1770_v12 = vpack.c.bf16 %v1764_v18, %v1762_v11 }
 0xada   :  { %v1771_v44 = vpack.c.bf16 %v1765_v60, %v1763_v42  ;;  %v1753_v3 = vpop.f32.mrb[44].mxu0 }
 0xadb   :  { %v1754_v22 = vadd.f32 %v1753_v3, %v1656_v45  ;;  %v1755_v6 = vpop.f32.mrb[45].mxu0 }
 0xadc   :  { %v1756_v4 = vadd.f32 %v1755_v6, %v1660_v35  ;;  %v1757_v34 = vpop.f32.mrb[46].mxu0  ;;  %1934 = vmatprep.mubr.bf16.mxu1 %v1771_v44  ;;  %v9031_v6 = vld [vmem:[%s12032_s5 + $0x40] ss:$8 sps:$4 sm:$0xff]  }
 0xadd   :  { %v1758_v56 = vadd.f32 %v1757_v34, %v1656_v45  ;;  %v1759_v52 = vpop.f32.mrb[47].mxu0  ;;  %1935 = vmatmul.mubr.bf16.vlgmr.msra.gmra.mrb[40].mxu1 %v1770_v12  ;;  %v1766_v29 = vmax.f32 %v1754_v22, 0.0  ;;  %v9033_v22 = vld [vmem:[%s12032_s5 + $0x44] ss:$8 sps:$4 sm:$0xff]   ;;  %v9034_v34 = vld [vmem:[%s12032_s5 + $0x50] ss:$8 sps:$4 sm:$0xff]  }
 0xade   :  { %v1760_v5 = vadd.f32 %v1759_v52, %v1660_v35  ;;  %v1767_v25 = vmax.f32 %v1756_v4, 0.0  ;;  %2091 = vmatprep.subr.bf16.mxu0 %v9033_v22  ;;  %v9036_v4 = vld [vmem:[%s12032_s5 + $0x54] ss:$8 sps:$4 sm:$0xff]   ;;  %v9037_v52 = vld [vmem:[%s12032_s5 + $0x60] ss:$8 sps:$4 sm:$0xff]  }
 0xadf   :  { %v1768_v16 = vmax.f32 %v1758_v56, 0.0  ;;  %2092 = vmatpush1.bf16.msra.mxu0 %v9031_v6  ;;  %v9039_v56 = vld [vmem:[%s12032_s5 + $0x64] ss:$8 sps:$4 sm:$0xff]  }
 0xae0   :  { %v1769_v55 = vmax.f32 %v1760_v5, 0.0  ;;  %2093 = vmatprep.subr.bf16.mxu0 %v9036_v4  ;;  %v9042_v5 = vld [vmem:[%s12032_s5 + $0x74] ss:$8 sps:$4 sm:$0xff]  }
 0xae1   :  { %v1772_v57 = vpack.c.bf16 %v1768_v16, %v1766_v29  ;;  %v9040_v29 = vld [vmem:[%s12032_s5 + $0x70] ss:$8 sps:$4 sm:$0xff]  }
 0xae2   :  { %v1773_v46 = vpack.c.bf16 %v1769_v55, %v1767_v25 }
 0xae3   :  { %2094 = vmatpush1.bf16.msra.mxu0 %v9034_v34 }
 0xae4   :  { %1942 = vmatprep.mubr.bf16.mxu1 %v1773_v46  ;;  %2095 = vmatprep.subr.bf16.mxu0 %v9039_v56 }
 0xae5   :  { %1943 = vmatmul.mubr.bf16.gmra.mrb[44].mxu1 %v1772_v57 }
 0xae6   :  { %8337 = vmatprep.mubr.msk.bf16.mxu1 %vm9524_vm5, %v9523_v8 }
 0xae7   :  { %2096 = vmatpush1.bf16.msra.mxu0 %v9037_v52 }
 0xae8   :  { %2097 = vmatprep.subr.bf16.mxu0 %v9042_v5 }
 0xaeb   :  { %2098 = vmatpush1.bf16.msra.mxu0 %v9040_v29 }
 0xaec   :  { %8323 = vmatprep.subr.bf16.mxu0 %v9523_v8 }
 0xbb0   :  { %v7961_v26 = vpop.f32.mrb[40].mxu1 }
 0xbb1   :  { %v7962_v39 = vpop.f32.mrb[41].mxu1 }
 0xbb2   :  { %v7963_v47 = vadd.f32 %v7962_v39, %v7961_v26  ;;  %v7964_v61 = vpop.f32.mrb[42].mxu1 }
 0xbb3   :  { %v7965_v13 = vpop.f32.mrb[43].mxu1 }
 0xbb4   :  { %v1951_v15 = vadd.f32 %v7963_v47, %v10141_v19  ;;  %v7966_v49 = vadd.f32 %v7965_v13, %v7964_v61 }
 0xbb6   :  { %v10287_v30 = vadd.f32 %v7514_v63, %v1951_v15  ;;  %v1952_v54 = vadd.f32 %v7966_v49, %v10147_v20 }
 0xbb8   :  { %v10290_v17 = vadd.f32 %v7514_v63, %v1952_v54  ;;  %v7967_v28 = vpop.f32.mrb[44].mxu1  ;;  %v1966_v33 = vsel %vm203_vm4, %v10287_v30, 0.0  ;;  %v7515_v54 = vld [vmem:[%s12030_s3 + $0x1] ss:$0 sm:$0xff] }
 0xbb9   :  { %1967 = vadd.xlane.f32.xlu1 %v1966_v33  ;;  %v7968_v1 = vpop.f32.mrb[45].mxu1 }
 0xbba   :  { %v7969_v23 = vadd.f32 %v7968_v1, %v7967_v28  ;;  %v7970_v43 = vpop.f32.mrb[46].mxu1  ;;  %v1969_v24 = vsel %vm203_vm4, %v10290_v17, 0.0 }
 0xbbb   :  { %1970 = vadd.xlane.f32.xlu0 %v1969_v24  ;;  %v7971_v19 = vpop.f32.mrb[47].mxu1 }
 0xbbc   :  { %v1953_v58 = vadd.f32 %v7969_v23, %v10144_v21  ;;  %v7972_v38 = vadd.f32 %v7971_v19, %v7970_v43  ;;  %v7516_v43 = vld [vmem:[%s12031_s4 + $0x1] ss:$0 sm:$0xff] }
 0xbbe   :  { %v10297_v40 = vadd.f32 %v7514_v63, %v1953_v58  ;;  %v1954_v20 = vadd.f32 %v7972_v38, %v10153_v41 }
 0xbc0   :  { %v10300_v59 = vadd.f32 %v7514_v63, %v1954_v20  ;;  %v1972_v51 = vsel %vm203_vm4, %v10297_v40, 0.0 }
 0xbc1   :  { %1973 = vadd.xlane.f32.xlu1 %v1972_v51 }
 0xbc2   :  { %v1975_v31 = vsel %vm203_vm4, %v10300_v59, 0.0 }
 0xbc3   :  { %1976 = vadd.xlane.f32.xlu0 %v1975_v31 }
 0xc46   :  { %v1968_v48 = vpop.xlane.xlu1 %1967 }
 0xc47   :  { %v1978_v45 = vmul.f32 0.015625, %v1968_v48 }
 0xc48   :  { %v1971_v35 = vpop.xlane.xlu0 %1970 }
 0xc49   :  { %v1982_v21 = vsub.f32 %v10287_v30, %v1978_v45  ;;  %v1979_v10 = vmul.f32 0.015625, %v1971_v35 }
 0xc4b   :  { %v1983_v14 = vsub.f32 %v10290_v17, %v1979_v10  ;;  %v1986_v36 = vmul.f32 %v1982_v21, %v1982_v21 }
 0xc4d   :  { %v1990_v41 = vsel %vm203_vm4, %v1986_v36, 0.0  ;;  %v1987_v37 = vmul.f32 %v1983_v14, %v1983_v14 }
 0xc4e   :  { %1991 = vadd.xlane.f32.xlu1 %v1990_v41  ;;  %v1974_v27 = vpop.xlane.xlu1 %1973 }
 0xc4f   :  { %v1980_v50 = vmul.f32 0.015625, %v1974_v27  ;;  %v1993_v53 = vsel %vm203_vm4, %v1987_v37, 0.0 }
 0xc50   :  { %1994 = vadd.xlane.f32.xlu0 %v1993_v53  ;;  %v1977_v62 = vpop.xlane.xlu0 %1976 }
 0xc51   :  { %v1984_v11 = vsub.f32 %v10297_v40, %v1980_v50  ;;  %v1981_v18 = vmul.f32 0.015625, %v1977_v62 }
 0xc53   :  { %v1985_v42 = vsub.f32 %v10300_v59, %v1981_v18  ;;  %v1988_v60 = vmul.f32 %v1984_v11, %v1984_v11 }
 0xc55   :  { %v1996_v12 = vsel %vm203_vm4, %v1988_v60, 0.0  ;;  %v1989_v44 = vmul.f32 %v1985_v42, %v1985_v42 }
 0xc56   :  { %1997 = vadd.xlane.f32.xlu1 %v1996_v12 }
 0xc57   :  { %v1999_v3 = vsel %vm203_vm4, %v1989_v44, 0.0 }
 0xc58   :  { %2000 = vadd.xlane.f32.xlu0 %v1999_v3 }
 0xcdb   :  { %v1992_v16 = vpop.xlane.xlu1 %1991 }
 0xcdc   :  { %v2002_v25 = vmul.f32 0.015625, %v1992_v16 }
 0xcdd   :  { %v1995_v55 = vpop.xlane.xlu0 %1994 }
 0xcde   :  { %v2006_v57 = vadd.f32 1e-05, %v2002_v25  ;;  %v2003_v46 = vmul.f32 0.015625, %v1995_v55 }
 0xce0   :  { %9247 = vrsqrt.f32 %v2006_v57  ;;  %v2007_v26 = vadd.f32 1e-05, %v2003_v46 }
 0xce2   :  { %9249 = vrsqrt.f32 %v2007_v26 }
 0xce3   :  { %v1998_v39 = vpop.xlane.xlu1 %1997 }
 0xce4   :  { %v2004_v47 = vmul.f32 0.015625, %v1998_v39 }
 0xce5   :  { %v2001_v61 = vpop.xlane.xlu0 %2000 }
 0xce6   :  { %v2008_v63 = vadd.f32 1e-05, %v2004_v47  ;;  %v2005_v13 = vmul.f32 0.015625, %v2001_v61 }
 0xce8   :  { %9251 = vrsqrt.f32 %v2008_v63  ;;  %v2009_v15 = vadd.f32 1e-05, %v2005_v13 }
 0xcea   :  { %v9248_v49 = vpop.eup %9247  ;;  %9253 = vrsqrt.f32 %v2009_v15 }
 0xceb   :  { %v2014_v28 = vmul.f32 %v9248_v49, %v1982_v21 }
 0xcec   :  { %v9250_v33 = vpop.eup %9249 }
 0xced   :  { %v2022_v1 = vmul.f32 %v7515_v54, %v2014_v28  ;;  %v2015_v23 = vmul.f32 %v9250_v33, %v1983_v14 }
 0xcef   :  { %v2023_v24 = vmul.f32 %v7515_v54, %v2015_v23  ;;  %v2030_v19 = vadd.f32 %v7516_v43, %v2022_v1 }
 0xcf1   :  { %v2031_v58 = vadd.f32 %v7516_v43, %v2023_v24 }
 0xcf2   :  { %v9252_v38 = vpop.eup %9251 }
 0xcf3   :  { %v2034_v20 = vpack.c.bf16 %v2031_v58, %v2030_v19  ;;  %v2016_v51 = vmul.f32 %v9252_v38, %v1984_v11 }
 0xcf4   :  { %v9254_v31 = vpop.eup %9253 }
 0xcf5   :  { %7533 = vmatmul.mubr.msk.bf16.vlgmr.msra.gmra.mrb[48].mxu0 %vm203_vm4, %v2034_v20  ;;  %v2017_v48 = vmul.f32 %v9254_v31, %v1985_v42  ;;  %v2024_v45 = vmul.f32 %v7515_v54, %v2016_v51 }
 0xcf6   :  { %2133 = vmatprep.mubr.bf16.mxu0 %v9519_v2 }
 0xcf7   :  { %v2025_v35 = vmul.f32 %v7515_v54, %v2017_v48  ;;  %v2032_v21 = vadd.f32 %v7516_v43, %v2024_v45 }
 0xcf9   :  { %v2033_v10 = vadd.f32 %v7516_v43, %v2025_v35 }
 0xcfb   :  { %v2035_v14 = vpack.c.bf16 %v2033_v10, %v2032_v21 }
 0xcfd   :  { %7534 = vmatmul.mubr.msk.bf16.gmra.mrb[52].mxu0 %vm203_vm4, %v2035_v14 }
 0xcfe   :  { %8325 = vmatprep.mubr.msk.bf16.mxu0 %vm9524_vm5, %v9523_v8 }
 0xdc8   :  { %v2125_v36 = vpop.f32.mrb[48].mxu0 }
 0xdc9   :  { %v2127_v41 = vpop.f32.mrb[49].mxu0 }
 0xdca   :  { %v8787_v37 = vpack.i.bf16 %v2127_v41, %v2125_v36  ;;  %v2129_v27 = vpop.f32.mrb[50].mxu0 }
 0xdcb   :  { %v8777_v50 = vpack.i.bf16 %v2129_v27, %v2125_v36  ;;  %v10350_v53 = vpack.c.bf16 %v2129_v27, %v2125_v36  ;;  %v2131_v62 = vpop.f32.mrb[51].mxu0 }
 0xdcc   :  { %v8807_v11 = vpack.i.bf16 %v2131_v62, %v2127_v41  ;;  %v8792_v18 = vpack.i.bf16 %v2131_v62, %v2129_v27 }
 0xdcd   :  { %8778 = vrot.lane.b32.xlu1 %v8777_v50, %s9521_s2 }
 0xdd0   :  { %v2135_v42 = vpop.f32.mrb[52].mxu0 }
 0xdd1   :  { %8788 = vrot.lane.b32.xlu1 %v8787_v37, %s9522_s29  ;;  %v2137_v60 = vpop.f32.mrb[53].mxu0 }
 0xdd2   :  { %v8797_v12 = vpack.i.bf16 %v2137_v60, %v2135_v42  ;;  %v2139_v44 = vpop.f32.mrb[54].mxu0 }
 0xdd3   :  { %v8782_v3 = vpack.i.bf16 %v2139_v44, %v2135_v42  ;;  %v10354_v22 = vpack.c.bf16 %v2139_v44, %v2135_v42  ;;  %v2141_v6 = vpop.f32.mrb[55].mxu0 }
 0xdd4   :  { %v8812_v4 = vpack.i.bf16 %v2141_v6, %v2137_v60  ;;  %v8802_v34 = vpack.i.bf16 %v2141_v6, %v2139_v44 }
 0xdd5   :  { %8793 = vrot.lane.b32.xlu1 %v8792_v18, %s9522_s29  ;;  %8783 = vrot.lane.b32.xlu0 %v8782_v3, %s9521_s2 }
 0xdd9   :  { %8798 = vrot.lane.b32.xlu0 %v8797_v12, %s9522_s29  ;;  %8803 = vrot.lane.b32.xlu1 %v8802_v34, %s9522_s29 }
 0xddd   :  { %8808 = vrot.lane.b32.xlu0 %v8807_v11, %s9525_s23  ;;  %8813 = vrot.lane.b32.xlu1 %v8812_v4, %s9525_s23 }
 0xde1   :  { %2209 = vrot.lane.b32.xlu0 %v10350_v53, %s9525_s23  ;;  %2259 = vrot.lane.b32.xlu1 %v10354_v22, %s9525_s23 }
 0xe3f   :  { %v8779_v56 = vpop.permute.xlu1 %8778 }
 0xe40   :  { %v8781_v52 = vunpack.i.h.bf16 %v8779_v56  ;;  %v8780_v5 = vunpack.i.l.bf16 %v8779_v56 }
 0xe42   :  { %v10366_v29 = vpack.c.bf16 %v8781_v52, %v8780_v5 }
 0xe43   :  { %v8789_v16 = vpop.permute.xlu1 %8788 }
 0xe44   :  { %2309 = vrot.lane.b32.xlu0 %v10366_v29, %s9525_s23  ;;  %v8791_v25 = vunpack.i.h.bf16 %v8789_v16  ;;  %v8790_v55 = vunpack.i.l.bf16 %v8789_v16 }
 0xe46   :  { %v2180_v63 = vsel %vm418_vm6, %v8790_v55, %v8791_v25 }
 0xe47   :  { %v8784_v57 = vpop.permute.xlu0 %8783  ;;  %v8794_v46 = vpop.permute.xlu1 %8793 }
 0xe48   :  { %v8786_v26 = vunpack.i.h.bf16 %v8784_v57  ;;  %v8785_v39 = vunpack.i.l.bf16 %v8784_v57  ;;  %v8796_v47 = vunpack.i.h.bf16 %v8794_v46  ;;  %v8795_v61 = vunpack.i.l.bf16 %v8794_v46 }
 0xe4a   :  { %v10371_v13 = vpack.c.bf16 %v8786_v26, %v8785_v39  ;;  %v2181_v15 = vsel %vm418_vm6, %v8795_v61, %v8796_v47 }
 0xe4b   :  { %v8799_v49 = vpop.permute.xlu0 %8798  ;;  %v8804_v54 = vpop.permute.xlu1 %8803  ;;  %v10374_v28 = vpack.c.bf16 %v2181_v15, %v2180_v63 }
 0xe4c   :  { %v8801_v33 = vunpack.i.h.bf16 %v8799_v49  ;;  %v8800_v1 = vunpack.i.l.bf16 %v8799_v49  ;;  %v8806_v23 = vunpack.i.h.bf16 %v8804_v54  ;;  %v8805_v43 = vunpack.i.l.bf16 %v8804_v54  ;;  %2359 = vrot.lane.b32.xlu1 %v10371_v13, %s9525_s23 }
 0xe4d   :  { %2409 = vrot.lane.b32.xlu0 %v10374_v28, %s9525_s23 }
 0xe4e   :  { %v2182_v24 = vsel %vm418_vm6, %v8800_v1, %v8801_v33  ;;  %v2183_v19 = vsel %vm418_vm6, %v8805_v43, %v8806_v23 }
 0xe4f   :  { %v8809_v58 = vpop.permute.xlu0 %8808  ;;  %v8814_v38 = vpop.permute.xlu1 %8813  ;;  %v10382_v20 = vpack.c.bf16 %v2183_v19, %v2182_v24 }
 0xe50   :  { %v8811_v51 = vunpack.i.h.bf16 %v8809_v58  ;;  %v8810_v31 = vunpack.i.l.bf16 %v8809_v58  ;;  %v8816_v48 = vunpack.i.h.bf16 %v8814_v38  ;;  %v8815_v45 = vunpack.i.l.bf16 %v8814_v38 }
 0xe51   :  { %2459 = vrot.lane.b32.xlu1 %v10382_v20, %s9525_s23 }
 0xe52   :  { %v10386_v35 = vpack.c.bf16 %v8811_v51, %v8810_v31  ;;  %v10388_v21 = vpack.c.bf16 %v8816_v48, %v8815_v45 }
 0xe53   :  { %v2210_v10 = vpop.permute.xlu0 %2209  ;;  %v2260_v36 = vpop.permute.xlu1 %2259 }
 0xe54   :  { %v2215_v14 = vsel %vm450_vm7, %v2210_v10, 0  ;;  %2509 = vrot.lane.b32.xlu0 %v10386_v35, %s9525_s23  ;;  %v2265_v41 = vsel %vm450_vm7, %v2260_v36, 0 }
 0xe55   :  { %8324 = vmatpush3.bf16.xpose.msra.mxu0 %v2215_v14  ;;  %2559 = vrot.lane.b32.xlu1 %v10388_v21, %s9525_s23 }
 0xe56   :  { %8329 = vmatprep.subr.bf16.mxu0 %v9523_v8 }
 0xe59   :  { %2792 = vrot.lane.b32.xlu1 %v10350_v53, %s12053_s24 }
 0xe5c   :  { %8326 = vmatmul.mubr.msk.bf16.vlgmr.msra.gmra.mrb[56].mxu0 %vm450_vm7, %v10350_v53 }
 0xe5d   :  { %8330 = vmatpush3.bf16.xpose.msra.mxu0 %v2265_v41  ;;  %8331 = vmatprep.mubr.msk.bf16.mxu0 %vm9524_vm5, %v9523_v8 }
 0xe5e   :  { %8341 = vmatprep.subr.bf16.mxu0 %v9523_v8 }
 0xe64   :  { %8332 = vmatmul.mubr.msk.bf16.vlgmr.msra.gmra.mrb[60].mxu0 %vm450_vm7, %v10354_v22 }
 0xe65   :  { %8343 = vmatprep.mubr.msk.bf16.mxu0 %vm9524_vm5, %v9523_v8 }
 0xeb6   :  { %v2310_v37 = vpop.permute.xlu0 %2309 }
 0xeb7   :  { %v2315_v27 = vsel %vm450_vm7, %v2310_v37, 0 }
 0xeb8   :  { %8336 = vmatpush3.bf16.xpose.msra.mxu1 %v2315_v27 }
 0xeb9   :  { %8347 = vmatprep.subr.bf16.mxu1 %v9523_v8 }
 0xebe   :  { %v2360_v50 = vpop.permute.xlu1 %2359 }
 0xebf   :  { %v2365_v53 = vsel %vm450_vm7, %v2360_v50, 0  ;;  %8338 = vmatmul.mubr.msk.bf16.vlgmr.msra.gmra.mrb[48].mxu1 %vm450_vm7, %v10366_v29  ;;  %v2410_v62 = vpop.permute.xlu0 %2409 }
 0xec0   :  { %v2415_v11 = vsel %vm450_vm7, %v2410_v62, 0  ;;  %8342 = vmatpush3.bf16.xpose.msra.mxu0 %v2365_v53  ;;  %8349 = vmatprep.mubr.msk.bf16.mxu1 %vm9524_vm5, %v9523_v8 }
 0xec1   :  { %8348 = vmatpush3.bf16.xpose.msra.mxu1 %v2415_v11  ;;  %8353 = vmatprep.subr.bf16.mxu0 %v9523_v8 }
 0xec2   :  { %8359 = vmatprep.subr.bf16.mxu1 %v9523_v8 }
 0xec3   :  { %v2460_v18 = vpop.permute.xlu1 %2459 }
 0xec4   :  { %v2465_v60 = vsel %vm450_vm7, %v2460_v18, 0 }
 0xec6   :  { %v2510_v42 = vpop.permute.xlu0 %2509 }
 0xec7   :  { %v2515_v12 = vsel %vm450_vm7, %v2510_v42, 0  ;;  %8344 = vmatmul.mubr.msk.bf16.vlgmr.msra.gmra.mrb[64].mxu0 %vm450_vm7, %v10371_v13  ;;  %v2560_v44 = vpop.permute.xlu1 %2559 }
 0xec8   :  { %8350 = vmatmul.mubr.msk.bf16.vlgmr.msra.gmra.mrb[52].mxu1 %vm450_vm7, %v10374_v28  ;;  %8354 = vmatpush3.bf16.xpose.msra.mxu0 %v2465_v60  ;;  %v2565_v3 = vsel %vm450_vm7, %v2560_v44, 0 }
 0xec9   :  { %8360 = vmatpush3.bf16.xpose.msra.mxu1 %v2515_v12  ;;  %8355 = vmatprep.mubr.msk.bf16.mxu0 %vm9524_vm5, %v9523_v8 }
 0xeca   :  { %8361 = vmatprep.mubr.msk.bf16.mxu1 %vm9524_vm5, %v9523_v8  ;;  %8365 = vmatprep.subr.bf16.mxu0 %v9523_v8 }
 0xecb   :  { %8371 = vmatprep.subr.bf16.mxu1 %v9523_v8  ;;  %v2793_v6 = vpop.permute.xlu1 %2792 }
 0xecf   :  { %8356 = vmatmul.mubr.msk.bf16.vlgmr.msra.gmra.mrb[68].mxu0 %vm450_vm7, %v10382_v20 }
 0xed0   :  { %8362 = vmatmul.mubr.msk.bf16.vlgmr.msra.gmra.mrb[56].mxu1 %vm450_vm7, %v10386_v35  ;;  %8366 = vmatpush3.bf16.xpose.msra.mxu0 %v2565_v3 }
 0xed1   :  { %8372 = vmatpush3.bf16.msra.mxu1 %v2793_v6  ;;  %8367 = vmatprep.mubr.msk.bf16.mxu0 %vm9524_vm5, %v9523_v8 }
 0xed2   :  { %8377 = vmatprep.subr.bf16.mxu0 %v9523_v8  ;;  %8373 = vmatprep.mubr.msk.bf16.mxu1 %vm9524_vm5, %v9523_v8 }
 0xed3   :  { %8383 = vmatprep.subr.bf16.mxu1 %v9523_v8 }
 0xed7   :  { %8368 = vmatmul.mubr.msk.bf16.vlgmr.msra.gmra.mrb[72].mxu0 %vm450_vm7, %v10388_v21 }
 0xed8   :  { %8379 = vmatprep.mubr.msk.bf16.mxu0 %vm9524_vm5, %v9523_v8 }
 0xf2f   :  { %v2251_v4 = vpop.f32.mrb[56].mxu0 }
 0xf30   :  { %v10446_v34 = vadd.f32 %v2251_v4, %v9869_v7  ;;  %v8327_v56 = vpop.f32.mrb[57].mxu0 }
 0xf31   :  { %v2254_v52 = vpop.f32.mrb[58].mxu0 }
 0xf32   :  { %v10449_v5 = vadd.f32 %v2254_v52, %v9871_v9  ;;  %v8328_v16 = vpop.f32.mrb[59].mxu0  ;;  %v2608_v25 = vsel %vm450_vm7, %v10446_v34, -inf }
 0xf33   :  { %2609 = vmax.xlane.f32.xlu0 %v2608_v25 }
 0xf34   :  { %v2611_v55 = vsel %vm450_vm7, %v10449_v5, -inf }
 0xf35   :  { %2612 = vmax.xlane.f32.xlu1 %v2611_v55 }
 0xf37   :  { %v2301_v57 = vpop.f32.mrb[60].mxu0 }
 0xf38   :  { %v10456_v46 = vadd.f32 %v2301_v57, %v9869_v7  ;;  %v8333_v26 = vpop.f32.mrb[61].mxu0 }
 0xf39   :  { %v2304_v39 = vpop.f32.mrb[62].mxu0 }
 0xf3a   :  { %v10459_v47 = vadd.f32 %v2304_v39, %v9871_v9  ;;  %v8334_v61 = vpop.f32.mrb[63].mxu0  ;;  %v2614_v63 = vsel %vm450_vm7, %v10456_v46, -inf }
 0xf3b   :  { %2615 = vmax.xlane.f32.xlu0 %v2614_v63 }
 0xf3c   :  { %v2617_v15 = vsel %vm450_vm7, %v10459_v47, -inf }
 0xf3f   :  { %2618 = vmax.xlane.f32.xlu0 %v2617_v15 }
 0xf92   :  { %v2351_v49 = vpop.f32.mrb[48].mxu1 }
 0xf93   :  { %v10466_v54 = vadd.f32 %v2351_v49, %v9869_v7  ;;  %v8339_v33 = vpop.f32.mrb[49].mxu1 }
 0xf94   :  { %v2354_v1 = vpop.f32.mrb[50].mxu1 }
 0xf95   :  { %v10469_v23 = vadd.f32 %v2354_v1, %v9871_v9  ;;  %v8340_v43 = vpop.f32.mrb[51].mxu1  ;;  %v2620_v24 = vsel %vm450_vm7, %v10466_v54, -inf }
 0xf96   :  { %2621 = vmax.xlane.f32.xlu1 %v2620_v24 }
 0xf97   :  { %v2623_v19 = vsel %vm450_vm7, %v10469_v23, -inf }
 0xf98   :  { %2624 = vmax.xlane.f32.xlu0 %v2623_v19 }
 0xf9a   :  { %v2401_v58 = vpop.f32.mrb[64].mxu0 }
 0xf9b   :  { %v10476_v38 = vadd.f32 %v2401_v58, %v9869_v7  ;;  %v8345_v51 = vpop.f32.mrb[65].mxu0  ;;  %v2451_v31 = vpop.f32.mrb[52].mxu1 }
 0xf9c   :  { %v2404_v48 = vpop.f32.mrb[66].mxu0  ;;  %v8351_v45 = vpop.f32.mrb[53].mxu1  ;;  %v10479_v10 = vadd.f32 %v2451_v31, %v9869_v7 }
 0xf9d   :  { %v10482_v14 = vadd.f32 %v2404_v48, %v9871_v9  ;;  %v8346_v36 = vpop.f32.mrb[67].mxu0  ;;  %v2454_v41 = vpop.f32.mrb[54].mxu1  ;;  %v2626_v37 = vsel %vm450_vm7, %v10476_v38, -inf }
 0xf9e   :  { %2627 = vmax.xlane.f32.xlu1 %v2626_v37  ;;  %v8352_v27 = vpop.f32.mrb[55].mxu1  ;;  %v10487_v50 = vadd.f32 %v2454_v41, %v9871_v9  ;;  %v2632_v62 = vsel %vm450_vm7, %v10479_v10, -inf }
 0xf9f   :  { %v2629_v53 = vsel %vm450_vm7, %v10482_v14, -inf }
 0xfa0   :  { %2630 = vmax.xlane.f32.xlu0 %v2629_v53  ;;  %v2635_v12 = vsel %vm450_vm7, %v10487_v50, -inf }
 0xfa2   :  { %v2501_v11 = vpop.f32.mrb[68].mxu0  ;;  %2633 = vmax.xlane.f32.xlu1 %v2632_v62 }
 0xfa3   :  { %v10494_v18 = vadd.f32 %v2501_v11, %v9869_v7  ;;  %v8357_v42 = vpop.f32.mrb[69].mxu0  ;;  %v2551_v60 = vpop.f32.mrb[56].mxu1 }
 0xfa4   :  { %v2504_v44 = vpop.f32.mrb[70].mxu0  ;;  %2636 = vmax.xlane.f32.xlu0 %v2635_v12  ;;  %v8363_v3 = vpop.f32.mrb[57].mxu1  ;;  %v10499_v6 = vadd.f32 %v2551_v60, %v9869_v7 }
 0xfa5   :  { %v10502_v4 = vadd.f32 %v2504_v44, %v9871_v9  ;;  %v8358_v56 = vpop.f32.mrb[71].mxu0  ;;  %v2554_v52 = vpop.f32.mrb[58].mxu1  ;;  %v2638_v16 = vsel %vm450_vm7, %v10494_v18, -inf }
 0xfa6   :  { %2639 = vmax.xlane.f32.xlu1 %v2638_v16  ;;  %v8364_v25 = vpop.f32.mrb[59].mxu1  ;;  %v10507_v55 = vadd.f32 %v2554_v52, %v9871_v9  ;;  %v2644_v26 = vsel %vm450_vm7, %v10499_v6, -inf }
 0xfa7   :  { %v2641_v57 = vsel %vm450_vm7, %v10502_v4, -inf }
 0xfa8   :  { %2642 = vmax.xlane.f32.xlu0 %v2641_v57  ;;  %v2647_v15 = vsel %vm450_vm7, %v10507_v55, -inf }
 0xfaa   :  { %v2601_v39 = vpop.f32.mrb[72].mxu0  ;;  %2645 = vmax.xlane.f32.xlu1 %v2644_v26 }
 0xfab   :  { %v10514_v61 = vadd.f32 %v2601_v39, %v9869_v7  ;;  %v8369_v63 = vpop.f32.mrb[73].mxu0 }
 0xfac   :  { %v2604_v49 = vpop.f32.mrb[74].mxu0  ;;  %2648 = vmax.xlane.f32.xlu0 %v2647_v15 }
 0xfad   :  { %v10519_v33 = vadd.f32 %v2604_v49, %v9871_v9  ;;  %v8370_v1 = vpop.f32.mrb[75].mxu0  ;;  %v2650_v43 = vsel %vm450_vm7, %v10514_v61, -inf }
 0xfae   :  { %2651 = vmax.xlane.f32.xlu1 %v2650_v43 }
 0xfaf   :  { %v2653_v24 = vsel %vm450_vm7, %v10519_v33, -inf }
 0xfb0   :  { %2654 = vmax.xlane.f32.xlu0 %v2653_v24 }
 0xfbf   :  { %2886 = vrot.lane.b32.xlu1 %v10366_v29, %s12053_s24 }
 0xfc0   :  { %v2610_v19 = vpop.xlane.xlu0 %2609 }
 0xfc1   :  { %v2656_v29 = vsub.f32 %v10446_v34, %v2610_v19 }
 0xfc2   :  { %v2613_v51 = vpop.xlane.xlu1 %2612 }
 0xfc3   :  { %2933 = vrot.lane.b32.xlu1 %v10371_v13, %s12053_s24  ;;  %v2657_v31 = vsub.f32 %v10449_v5, %v2613_v51  ;;  %v2672_v36 = vmul.f32 1.442695, %v2656_v29 }
 0xfc5   :  { %v2674_v45 = vmul.f32 1.442695, %v2657_v31 }
 0xfc6   :  { %2839 = vrot.lane.b32.xlu0 %v10354_v22, %s12053_s24 }
 0xfc7   :  { %3027 = vrot.lane.b32.xlu1 %v10382_v20, %s12053_s24  ;;  %9255 = vpow2.f32 %v2674_v45 }
 0xfc8   :  { %v2616_v58 = vpop.xlane.xlu0 %2615  ;;  %9257 = vpow2.f32 %v2672_v36 }
 0xfc9   :  { %v2658_v22 = vsub.f32 %v10456_v46, %v2616_v58 }
 0xfca   :  { %2980 = vrot.lane.b32.xlu0 %v10374_v28, %s12053_s24 }
 0xfcb   :  { %v2676_v20 = vmul.f32 1.442695, %v2658_v22 }
 0xfcc   :  { %v2619_v48 = vpop.xlane.xlu0 %2618 }
 0xfcd   :  { %v2659_v13 = vsub.f32 %v10459_v47, %v2619_v48 }
 0xfcf   :  { %v2678_v41 = vmul.f32 1.442695, %v2659_v13 }
 0xfd1   :  { %9259 = vpow2.f32 %v2678_v41  ;;  %v10539_v28 = vpop.eup %9255 }
 0xfd2   :  { %9261 = vpow2.f32 %v2676_v20  ;;  %v10541_v37 = vpop.eup %9257  ;;  %v2707_v5 = vsel %vm450_vm7, %v10539_v28, 0.0 }
 0xfd3   :  { %v2704_v47 = vsel %vm450_vm7, %v10541_v37, 0.0 }
 0xfdb   :  { %v10545_v34 = vpop.eup %9259 }
 0xfdc   :  { %v10549_v46 = vpop.eup %9261  ;;  %v2713_v27 = vsel %vm450_vm7, %v10545_v34, 0.0 }
 0xfdd   :  { %v2710_v53 = vsel %vm450_vm7, %v10549_v46, 0.0 }
 0xfe9   :  { %2708 = vadd.xlane.f32.xlu0 %v2707_v5 }
 0xfeb   :  { %2705 = vadd.xlane.f32.xlu1 %v2704_v47 }
 0xfed   :  { %2714 = vadd.xlane.f32.xlu0 %v2713_v27 }
 0xfef   :  { %2711 = vadd.xlane.f32.xlu1 %v2710_v53 }
0x1023   :  { %v2622_v62 = vpop.xlane.xlu1 %2621 }
0x1024   :  { %v2660_v11 = vsub.f32 %v10466_v54, %v2622_v62 }
0x1025   :  { %v2625_v42 = vpop.xlane.xlu0 %2624 }
0x1026   :  { %v2680_v60 = vmul.f32 1.442695, %v2660_v11  ;;  %v2661_v12 = vsub.f32 %v10469_v23, %v2625_v42 }
0x1028   :  { %9263 = vpow2.f32 %v2680_v60  ;;  %v2682_v44 = vmul.f32 1.442695, %v2661_v12 }
0x102a   :  { %9265 = vpow2.f32 %v2682_v44 }
0x102b   :  { %v2628_v3 = vpop.xlane.xlu1 %2627 }
0x102c   :  { %v2662_v56 = vsub.f32 %v10476_v38, %v2628_v3 }
0x102d   :  { %v2631_v52 = vpop.xlane.xlu0 %2630 }
0x102e   :  { %v2684_v16 = vmul.f32 1.442695, %v2662_v56  ;;  %v2663_v25 = vsub.f32 %v10482_v14, %v2631_v52 }
0x102f   :  { %v2634_v57 = vpop.xlane.xlu1 %2633 }
0x1030   :  { %9267 = vpow2.f32 %v2684_v16  ;;  %v2686_v26 = vmul.f32 1.442695, %v2663_v25  ;;  %v2664_v39 = vsub.f32 %v10479_v10, %v2634_v57 }
0x1031   :  { %v2637_v54 = vpop.xlane.xlu0 %2636 }
0x1032   :  { %v10560_v63 = vpop.eup %9263  ;;  %9269 = vpow2.f32 %v2686_v26  ;;  %v2688_v23 = vmul.f32 1.442695, %v2664_v39  ;;  %v2665_v15 = vsub.f32 %v10487_v50, %v2637_v54 }
0x1033   :  { %v2640_v49 = vpop.xlane.xlu1 %2639  ;;  %v2716_v38 = vsel %vm450_vm7, %v10560_v63, 0.0 }
0x1034   :  { %v10565_v1 = vpop.eup %9265  ;;  %9271 = vpow2.f32 %v2688_v23  ;;  %v2690_v14 = vmul.f32 1.442695, %v2665_v15  ;;  %v2666_v43 = vsub.f32 %v10494_v18, %v2640_v49  ;;  %2717 = vadd.xlane.f32.xlu1 %v2716_v38 }
0x1035   :  { %v2643_v24 = vpop.xlane.xlu0 %2642  ;;  %v2719_v10 = vsel %vm450_vm7, %v10565_v1, 0.0 }
0x1036   :  { %9273 = vpow2.f32 %v2690_v14  ;;  %v2692_v19 = vmul.f32 1.442695, %v2666_v43  ;;  %v2667_v58 = vsub.f32 %v10502_v4, %v2643_v24  ;;  %2720 = vadd.xlane.f32.xlu0 %v2719_v10 }
0x1037   :  { %v2646_v50 = vpop.xlane.xlu1 %2645 }
0x1038   :  { %9275 = vpow2.f32 %v2692_v19  ;;  %v2694_v51 = vmul.f32 1.442695, %v2667_v58  ;;  %v2668_v31 = vsub.f32 %v10499_v6, %v2646_v50 }
0x1039   :  { %v2649_v48 = vpop.xlane.xlu0 %2648 }
0x103a   :  { %v10572_v29 = vpop.eup %9267  ;;  %9277 = vpow2.f32 %v2694_v51  ;;  %v2696_v18 = vmul.f32 1.442695, %v2668_v31  ;;  %v2669_v45 = vsub.f32 %v10507_v55, %v2649_v48 }
0x103b   :  { %v2652_v13 = vpop.xlane.xlu1 %2651  ;;  %v2722_v36 = vsel %vm450_vm7, %v10572_v29, 0.0 }
0x103c   :  { %v10577_v22 = vpop.eup %9269  ;;  %9279 = vpow2.f32 %v2696_v18  ;;  %v2698_v4 = vmul.f32 1.442695, %v2669_v45  ;;  %v2670_v41 = vsub.f32 %v10514_v61, %v2652_v13  ;;  %2723 = vadd.xlane.f32.xlu1 %v2722_v36 }
0x103d   :  { %v2655_v20 = vpop.xlane.xlu0 %2654  ;;  %v2725_v6 = vsel %vm450_vm7, %v10577_v22, 0.0 }
0x103e   :  { %v10582_v5 = vpop.eup %9271  ;;  %9281 = vpow2.f32 %v2698_v4  ;;  %v2700_v47 = vmul.f32 1.442695, %v2670_v41  ;;  %v2671_v55 = vsub.f32 %v10519_v33, %v2655_v20  ;;  %2726 = vadd.xlane.f32.xlu0 %v2725_v6 }
0x103f   :  { %v2728_v27 = vsel %vm450_vm7, %v10582_v5, 0.0  ;;  %v2887_v39 = vpop.permute.xlu1 %2886 }
0x1040   :  { %v10587_v53 = vpop.eup %9273  ;;  %9283 = vpow2.f32 %v2700_v47  ;;  %v2702_v62 = vmul.f32 1.442695, %v2671_v55  ;;  %2729 = vadd.xlane.f32.xlu1 %v2728_v27 }
0x1041   :  { %v2840_v61 = vpop.permute.xlu0 %2839  ;;  %v2731_v11 = vsel %vm450_vm7, %v10587_v53, 0.0 }
0x1042   :  { %v10591_v42 = vpop.eup %9275  ;;  %9285 = vpow2.f32 %v2702_v62  ;;  %2732 = vadd.xlane.f32.xlu0 %v2731_v11  ;;  %8378 = vmatpush3.bf16.msra.mxu0 %v2840_v61 }
0x1043   :  { %v2734_v33 = vsel %vm450_vm7, %v10591_v42, 0.0  ;;  %8389 = vmatprep.subr.bf16.mxu0 %v9523_v8  ;;  %v2934_v54 = vpop.permute.xlu1 %2933 }
0x1044   :  { %v10596_v60 = vpop.eup %9277  ;;  %2735 = vadd.xlane.f32.xlu1 %v2734_v33 }
0x1045   :  { %v2737_v12 = vsel %vm450_vm7, %v10596_v60, 0.0  ;;  %v2981_v23 = vpop.permute.xlu0 %2980 }
0x1046   :  { %v10600_v44 = vpop.eup %9279  ;;  %2738 = vadd.xlane.f32.xlu0 %v2737_v12 }
0x1047   :  { %v2740_v3 = vsel %vm450_vm7, %v10600_v44, 0.0  ;;  %v10620_v15 = vpop.permute.xlu1 %3027 }
0x1048   :  { %v10604_v56 = vpop.eup %9281  ;;  %2741 = vadd.xlane.f32.xlu1 %v2740_v3 }
0x1049   :  { %v2743_v52 = vsel %vm450_vm7, %v10604_v56, 0.0 }
0x104a   :  { %v10608_v16 = vpop.eup %9283  ;;  %2744 = vadd.xlane.f32.xlu0 %v2743_v52 }
0x104b   :  { %v2746_v25 = vsel %vm450_vm7, %v10608_v16, 0.0 }
0x104c   :  { %v10612_v57 = vpop.eup %9285  ;;  %2747 = vadd.xlane.f32.xlu1 %v2746_v25 }
0x104d   :  { %v2749_v26 = vsel %vm450_vm7, %v10612_v57, 0.0 }
0x104e   :  { %2750 = vadd.xlane.f32.xlu0 %v2749_v26 }
0x105d   :  { %3121 = vrot.lane.b32.xlu1 %v10388_v21, %s12053_s24 }
0x1064   :  { %3074 = vrot.lane.b32.xlu0 %v10386_v35, %s12053_s24 }
0x1076   :  { %v2709_v49 = vpop.xlane.xlu0 %2708 }
0x1077   :  { %9287 = vrcp.f32 %v2709_v49 }
0x1078   :  { %v2706_v38 = vpop.xlane.xlu1 %2705 }
0x1079   :  { %9289 = vrcp.f32 %v2706_v38 }
0x107a   :  { %v2715_v14 = vpop.xlane.xlu0 %2714 }
0x107b   :  { %9291 = vrcp.f32 %v2715_v14 }
0x107c   :  { %v2712_v43 = vpop.xlane.xlu1 %2711 }
0x107d   :  { %9293 = vrcp.f32 %v2712_v43 }
0x1081   :  { %v9288_v24 = vpop.eup %9287 }
0x1082   :  { %v2769_v21 = vmul.f32 %v9288_v24, %v10539_v28 }
0x1083   :  { %v9290_v10 = vpop.eup %9289 }
0x1084   :  { %v2768_v19 = vmul.f32 %v9290_v10, %v10541_v37 }
0x1085   :  { %v9292_v35 = vpop.eup %9291 }
0x1086   :  { %v2784_v58 = vpack.c.bf16 %v2769_v21, %v2768_v19  ;;  %v2771_v51 = vmul.f32 %v9292_v35, %v10545_v34 }
0x1087   :  { %v9294_v50 = vpop.eup %9293 }
0x1088   :  { %v2770_v31 = vmul.f32 %v9294_v50, %v10549_v46  ;;  %8374 = vmatmul.mubr.msk.bf16.vlgmr.msra.gmra.mrb[60].mxu1 %vm450_vm7, %v2784_v58 }
0x1089   :  { %8384 = vmatpush3.bf16.msra.mxu1 %v2887_v39  ;;  %8385 = vmatprep.mubr.msk.bf16.mxu1 %vm9524_vm5, %v9523_v8 }
0x108a   :  { %v2785_v48 = vpack.c.bf16 %v2771_v51, %v2770_v31  ;;  %8395 = vmatprep.subr.bf16.mxu1 %v9523_v8 }
0x108c   :  { %8380 = vmatmul.mubr.msk.bf16.vlgmr.msra.gmra.mrb[76].mxu0 %vm450_vm7, %v2785_v48 }
0x108d   :  { %8390 = vmatpush3.bf16.msra.mxu0 %v2934_v54  ;;  %8391 = vmatprep.mubr.msk.bf16.mxu0 %vm9524_vm5, %v9523_v8 }
0x108e   :  { %8401 = vmatprep.subr.bf16.mxu0 %v9523_v8 }
0x10c1   :  { %v2718_v28 = vpop.xlane.xlu1 %2717 }
0x10c2   :  { %9295 = vrcp.f32 %v2718_v28 }
0x10c3   :  { %v2721_v37 = vpop.xlane.xlu0 %2720 }
0x10c4   :  { %9297 = vrcp.f32 %v2721_v37 }
0x10c9   :  { %v2724_v34 = vpop.xlane.xlu1 %2723 }
0x10ca   :  { %9299 = vrcp.f32 %v2724_v34 }
0x10cb   :  { %v2727_v46 = vpop.xlane.xlu0 %2726 }
0x10cc   :  { %v9296_v18 = vpop.eup %9295  ;;  %9301 = vrcp.f32 %v2727_v46  ;;  %v9043_v46 = vld [vmem:[%s12033_s6 + $0x20] sm:$0xff]  }
0x10cd   :  { %v2730_v45 = vpop.xlane.xlu1 %2729  ;;  %v2772_v36 = vmul.f32 %v9296_v18, %v10560_v63 }
0x10ce   :  { %v9298_v13 = vpop.eup %9297  ;;  %9303 = vrcp.f32 %v2730_v45  ;;  %v9044_v45 = vld [vmem:[%s12033_s6 + $0x28] sm:$0xff]  }
0x10cf   :  { %v2773_v4 = vmul.f32 %v9298_v13, %v10565_v1  ;;  %v2733_v41 = vpop.xlane.xlu0 %2732 }
0x10d0   :  { %9305 = vrcp.f32 %v2733_v41 }
0x10d1   :  { %v2736_v20 = vpop.xlane.xlu1 %2735  ;;  %v2786_v6 = vpack.c.bf16 %v2773_v4, %v2772_v36 }
0x10d2   :  { %9307 = vrcp.f32 %v2736_v20 }
0x10d3   :  { %8386 = vmatmul.mubr.msk.bf16.vlgmr.msra.gmra.mrb[64].mxu1 %vm450_vm7, %v2786_v6  ;;  %v2739_v47 = vpop.xlane.xlu0 %2738  ;;  %v9045_v6 = vld [vmem:[%s12033_s6 + $0x30] sm:$0xff]  }
0x10d4   :  { %v9300_v55 = vpop.eup %9299  ;;  %8396 = vmatpush3.bf16.msra.mxu1 %v2981_v23  ;;  %9309 = vrcp.f32 %v2739_v47  ;;  %8397 = vmatprep.mubr.msk.bf16.mxu1 %vm9524_vm5, %v9523_v8 }
0x10d5   :  { %v2742_v27 = vpop.xlane.xlu1 %2741  ;;  %8407 = vmatprep.subr.bf16.mxu1 %v9523_v8  ;;  %v2774_v1 = vmul.f32 %v9300_v55, %v10572_v29 }
0x10d6   :  { %v9302_v63 = vpop.eup %9301  ;;  %9311 = vrcp.f32 %v2742_v27 }
0x10d7   :  { %v2775_v62 = vmul.f32 %v9302_v63, %v10577_v22  ;;  %v2745_v61 = vpop.xlane.xlu0 %2744 }
0x10d8   :  { %v9304_v11 = vpop.eup %9303  ;;  %9313 = vrcp.f32 %v2745_v61 }
0x10d9   :  { %v2748_v33 = vpop.xlane.xlu1 %2747  ;;  %v2787_v12 = vpack.c.bf16 %v2775_v62, %v2774_v1  ;;  %v2776_v52 = vmul.f32 %v9304_v11, %v10582_v5  ;;  %v9046_v62 = vld [vmem:[%s12033_s6 + $0x38] sm:$0xff]  }
0x10da   :  { %v9306_v3 = vpop.eup %9305  ;;  %9315 = vrcp.f32 %v2748_v33 }
0x10db   :  { %v2777_v25 = vmul.f32 %v9306_v3, %v10587_v53  ;;  %8392 = vmatmul.mubr.msk.bf16.vlgmr.msra.gmra.mrb[80].mxu0 %vm450_vm7, %v2787_v12  ;;  %v2751_v26 = vpop.xlane.xlu0 %2750 }
0x10dc   :  { %v9308_v39 = vpop.eup %9307  ;;  %8402 = vmatpush3.bf16.msra.mxu0 %v10620_v15  ;;  %9317 = vrcp.f32 %v2751_v26  ;;  %8403 = vmatprep.mubr.msk.bf16.mxu0 %vm9524_vm5, %v9523_v8 }
0x10dd   :  { %v2788_v29 = vpack.c.bf16 %v2777_v25, %v2776_v52  ;;  %8413 = vmatprep.subr.bf16.mxu0 %v9523_v8  ;;  %v2778_v54 = vmul.f32 %v9308_v39, %v10591_v42  ;;  %v3122_v43 = vpop.permute.xlu1 %3121 }
0x10de   :  { %v9310_v22 = vpop.eup %9309 }
0x10df   :  { %v2779_v5 = vmul.f32 %v9310_v22, %v10596_v60  ;;  %8398 = vmatmul.mubr.msk.bf16.vlgmr.msra.gmra.mrb[68].mxu1 %vm450_vm7, %v2788_v29  ;;  %v3075_v53 = vpop.permute.xlu0 %3074 }
0x10e0   :  { %v9312_v23 = vpop.eup %9311  ;;  %8408 = vmatpush3.bf16.msra.mxu1 %v3075_v53  ;;  %8409 = vmatprep.mubr.msk.bf16.mxu1 %vm9524_vm5, %v9523_v8 }
0x10e1   :  { %v2789_v15 = vpack.c.bf16 %v2779_v5, %v2778_v54  ;;  %v2780_v38 = vmul.f32 %v9312_v23, %v10600_v44  ;;  %8419 = vmatprep.subr.bf16.mxu1 %v9043_v46 }
0x10e2   :  { %v9314_v49 = vpop.eup %9313 }
0x10e3   :  { %v2781_v14 = vmul.f32 %v9314_v49, %v10604_v56  ;;  %8404 = vmatmul.mubr.msk.bf16.vlgmr.msra.gmra.mrb[84].mxu0 %vm450_vm7, %v2789_v15 }
0x10e4   :  { %v9316_v42 = vpop.eup %9315  ;;  %8414 = vmatpush3.bf16.msra.mxu0 %v3122_v43  ;;  %8415 = vmatprep.mubr.msk.bf16.mxu0 %vm9524_vm5, %v9523_v8 }
0x10e5   :  { %v2790_v60 = vpack.c.bf16 %v2781_v14, %v2780_v38  ;;  %v2782_v10 = vmul.f32 %v9316_v42, %v10608_v16 }
0x10e6   :  { %v9318_v24 = vpop.eup %9317 }
0x10e7   :  { %v2783_v21 = vmul.f32 %v9318_v24, %v10612_v57  ;;  %8410 = vmatmul.mubr.msk.bf16.vlgmr.msra.gmra.mrb[72].mxu1 %vm450_vm7, %v2790_v60 }
0x10e8   :  { %8420 = vmatpush3.bf16.msra.mxu1 %v9043_v46 }
0x10e9   :  { %v2791_v19 = vpack.c.bf16 %v2783_v21, %v2782_v10  ;;  %8421 = vmatprep.subr.bf16.mxu1 %v9044_v45 }
0x10eb   :  { %8416 = vmatmul.mubr.msk.bf16.vlgmr.msra.gmra.mrb[88].mxu0 %vm450_vm7, %v2791_v19 }
0x10ec   :  { %3503 = vmatprep.mubr.bf16.mxu0 %v9519_v2  ;;  %8422 = vmatpush3.bf16.msra.mxu1 %v9044_v45 }
0x10ed   :  { %8423 = vmatprep.subr.bf16.mxu1 %v9045_v6 }
0x10f0   :  { %8424 = vmatpush3.bf16.msra.mxu1 %v9045_v6 }
0x10f1   :  { %8425 = vmatprep.subr.bf16.mxu1 %v9046_v62 }
0x10f4   :  { %8426 = vmatpush3.bf16.msra.mxu1 %v9046_v62 }
0x115b   :  { %v10664_v44 = vpop.f32.mrb[60].mxu1 }
0x115c   :  { %v8375_v56 = vpop.f32.mrb[61].mxu1 }
0x115d   :  { %v10666_v35 = vpop.f32.mrb[62].mxu1 }
0x115e   :  { %v8376_v58 = vpop.f32.mrb[63].mxu1 }
0x115f   :  { %v10668_v50 = vpop.f32.mrb[76].mxu0 }
0x1160   :  { %v8381_v51 = vpop.f32.mrb[77].mxu0 }
0x1161   :  { %v10670_v31 = vpop.f32.mrb[78].mxu0 }
0x1162   :  { %v8382_v16 = vpop.f32.mrb[79].mxu0 }
0x11a6   :  { %v2926_v57 = vpop.f32.mrb[64].mxu1 }
0x11a7   :  { %v8387_v48 = vpop.f32.mrb[65].mxu1 }
0x11a8   :  { %v2929_v28 = vpop.f32.mrb[66].mxu1 }
0x11a9   :  { %v8817_v37 = vpack.i.bf16 %v2929_v28, %v2926_v57  ;;  %v8388_v34 = vpop.f32.mrb[67].mxu1 }
0x11ab   :  { %8818 = vrot.lane.b32.xlu0 %v8817_v37, %s12051_s26 }
0x11ae   :  { %v2973_v18 = vpop.f32.mrb[80].mxu0 }
0x11af   :  { %v8393_v13 = vpop.f32.mrb[81].mxu0 }
0x11b0   :  { %v2976_v36 = vpop.f32.mrb[82].mxu0 }
0x11b1   :  { %v8822_v4 = vpack.i.bf16 %v2976_v36, %v2973_v18  ;;  %v8394_v41 = vpop.f32.mrb[83].mxu0 }
0x11b2   :  { %v3020_v20 = vpop.f32.mrb[68].mxu1 }
0x11b3   :  { %8823 = vrot.lane.b32.xlu1 %v8822_v4, %s12051_s26  ;;  %v8399_v47 = vpop.f32.mrb[69].mxu1  ;;  %s12062_s26 = smov 16  }
0x11b4   :  { %v3023_v55 = vpop.f32.mrb[70].mxu1 }
0x11b5   :  { %v8827_v27 = vpack.i.bf16 %v3023_v55, %v3020_v20  ;;  %v8400_v63 = vpop.f32.mrb[71].mxu1 }
0x11b6   :  { %v3067_v1 = vpop.f32.mrb[84].mxu0 }
0x11b7   :  { %8828 = vrot.lane.b32.xlu0 %v8827_v27, %s9522_s29  ;;  %v8405_v61 = vpop.f32.mrb[85].mxu0 }
0x11b8   :  { %v3070_v11 = vpop.f32.mrb[86].mxu0 }
0x11b9   :  { %v8832_v33 = vpack.i.bf16 %v3070_v11, %v3067_v1  ;;  %v8406_v12 = vpop.f32.mrb[87].mxu0 }
0x11ba   :  { %v3114_v3 = vpop.f32.mrb[72].mxu1 }
0x11bb   :  { %8833 = vrot.lane.b32.xlu1 %v8832_v33, %s9522_s29  ;;  %v8411_v52 = vpop.f32.mrb[73].mxu1 }
0x11bc   :  { %v3117_v25 = vpop.f32.mrb[74].mxu1 }
0x11bd   :  { %v8837_v26 = vpack.i.bf16 %v3117_v25, %v3114_v3  ;;  %v8412_v39 = vpop.f32.mrb[75].mxu1 }
0x11be   :  { %v3161_v29 = vpop.f32.mrb[88].mxu0 }
0x11bf   :  { %v8417_v22 = vpop.f32.mrb[89].mxu0  ;;  %8838 = vrot.lane.b32.xlu0 %v8837_v26, %s12061_s0 }
0x11c0   :  { %v3164_v54 = vpop.f32.mrb[90].mxu0 }
0x11c1   :  { %v8842_v5 = vpack.i.bf16 %v3164_v54, %v3161_v29  ;;  %v8418_v53 = vpop.f32.mrb[91].mxu0 }
0x11c3   :  { %8843 = vrot.lane.b32.xlu1 %v8842_v5, %s12061_s0 }
0x121d   :  { %v8819_v23 = vpop.permute.xlu0 %8818 }
0x121e   :  { %v8821_v38 = vunpack.i.h.bf16 %v8819_v23  ;;  %v8820_v14 = vunpack.i.l.bf16 %v8819_v23 }
0x1220   :  { %v3217_v24 = vsel %vm450_vm7, %v10666_v35, %v8821_v38  ;;  %v3216_v10 = vsel %vm450_vm7, %v10664_v44, %v8820_v14 }
0x1225   :  { %v8824_v15 = vpop.permute.xlu1 %8823 }
0x1226   :  { %v8826_v19 = vunpack.i.h.bf16 %v8824_v15  ;;  %v8825_v56 = vunpack.i.l.bf16 %v8824_v15 }
0x1228   :  { %v3219_v44 = vsel %vm450_vm7, %v10670_v31, %v8826_v19  ;;  %v3218_v18 = vsel %vm450_vm7, %v10668_v50, %v8825_v56  ;;  %v7565_v50 = vld [vmem:[%s12034_s7 + $0x1] ss:$0 sm:$0xff]  ;;  %v9049_v19 = vld [vmem:[%s12037_s10 + $0x44] ss:$8 sps:$4 sm:$0xff]  }
0x1229   :  { %v8829_v49 = vpop.permute.xlu0 %8828  ;;  %v9047_v56 = vld [vmem:[%s12037_s10 + $0x40] ss:$8 sps:$4 sm:$0xff]   ;;  %3471 = vmatprep.subr.bf16.mxu0 %v9049_v19  ;;  %v9073_v19 = vld [vmem:[%s12039_s12 + $0xf8] sm:$0xff]  }
0x122a   :  { %v8831_v43 = vunpack.i.h.bf16 %v8829_v49  ;;  %v8830_v42 = vunpack.i.l.bf16 %v8829_v49  ;;  %3472 = vmatpush1.bf16.msra.mxu0 %v9047_v56  ;;  %v9074_v56 = vld [vmem:[%s12039_s12 + $0xb8] sm:$0xff]  }
0x122c   :  { %v3220_v16 = vsel %vm418_vm6, %v3216_v10, %v8830_v42  ;;  %v3221_v57 = vsel %vm418_vm6, %v3217_v24, %v8831_v43 }
0x122d   :  { %v8834_v60 = vpop.permute.xlu1 %8833 }
0x122e   :  { %v8836_v48 = vunpack.i.h.bf16 %v8834_v60  ;;  %v8835_v28 = vunpack.i.l.bf16 %v8834_v60 }
0x1230   :  { %v3223_v36 = vsel %vm418_vm6, %v3219_v44, %v8836_v48  ;;  %v3222_v4 = vsel %vm418_vm6, %v3218_v18, %v8835_v28  ;;  %v9056_v48 = vld [vmem:[%s12037_s10 + $0x70] ss:$8 sps:$4 sm:$0xff]   ;;  %v9058_v28 = vld [vmem:[%s12037_s10 + $0x74] ss:$8 sps:$4 sm:$0xff]  }
0x1231   :  { %v8839_v21 = vpop.permute.xlu0 %8838  ;;  %v9063_v44 = vld [vmem:[%s12039_s12 + $0xd0] sm:$0xff]  }
0x1232   :  { %v8841_v58 = vunpack.i.h.bf16 %v8839_v21  ;;  %v8840_v51 = vunpack.i.l.bf16 %v8839_v21  ;;  %v9064_v18 = vld [vmem:[%s12039_s12 + $0x90] sm:$0xff]  }
0x1234   :  { %v3224_v37 = vsel %vm1464_vm10, %v3220_v16, %v8840_v51  ;;  %v3225_v34 = vsel %vm1464_vm10, %v3221_v57, %v8841_v58  ;;  %v9052_v58 = vld [vmem:[%s12037_s10 + $0x54] ss:$8 sps:$4 sm:$0xff]   ;;  %v9050_v51 = vld [vmem:[%s12037_s10 + $0x50] ss:$8 sps:$4 sm:$0xff]   ;;  %v9055_v16 = vld [vmem:[%s12037_s10 + $0x64] ss:$8 sps:$4 sm:$0xff]  }
0x1235   :  { %v8844_v46 = vpop.permute.xlu1 %8843  ;;  %v3228_v35 = vpack.c.bf16 %v3225_v34, %v3224_v37  ;;  %3473 = vmatprep.subr.bf16.mxu0 %v9052_v58  ;;  %v9053_v57 = vld [vmem:[%s12037_s10 + $0x60] ss:$8 sps:$4 sm:$0xff]  }
0x1236   :  { %v8846_v45 = vunpack.i.h.bf16 %v8844_v46  ;;  %v8845_v13 = vunpack.i.l.bf16 %v8844_v46  ;;  %3474 = vmatpush1.bf16.msra.mxu0 %v9050_v51  ;;  %v9059_v37 = vld [vmem:[%s12039_s12 + $0xc0] sm:$0xff]   ;;  %v9061_v46 = vld [vmem:[%s12039_s12 + $0xc8] sm:$0xff]  }
0x1237   :  { %8427 = vmatprep.mubr.msk.bf16.mxu1 %vm203_vm4, %v3228_v35  ;;  %3475 = vmatprep.subr.bf16.mxu0 %v9055_v16  ;;  %v9060_v34 = vld [vmem:[%s12039_s12 + $0x80] sm:$0xff]   ;;  %v9062_v35 = vld [vmem:[%s12039_s12 + $0x88] sm:$0xff]  }
0x1238   :  { %v3227_v41 = vsel %vm1464_vm10, %v3223_v36, %v8846_v45  ;;  %v3226_v20 = vsel %vm1464_vm10, %v3222_v4, %v8845_v13  ;;  %8011 = vmatprep.subr.bf16.mxu1 %v9059_v37  ;;  %v9065_v45 = vld [vmem:[%s12039_s12 + $0xd8] sm:$0xff]   ;;  %v9067_v36 = vld [vmem:[%s12039_s12 + $0xe0] sm:$0xff]  }
0x1239   :  { %v3229_v6 = vpack.c.bf16 %v3227_v41, %v3226_v20  ;;  %v9066_v13 = vld [vmem:[%s12039_s12 + $0x98] sm:$0xff]   ;;  %v9068_v4 = vld [vmem:[%s12039_s12 + $0xa0] sm:$0xff]   ;;  %v9069_v41 = vld [vmem:[%s12039_s12 + $0xe8] sm:$0xff]  }
0x123a   :  { %3476 = vmatpush1.bf16.msra.mxu0 %v9053_v57  ;;  %v7576_v58 = vld [vmem:[%s12038_s11 + $0x1] ss:$4 sm:$0x3] }
0x123b   :  { %8428 = vmatmul.mubr.msk.bf16.vlgmr.msra.gmra.mrb[76].mxu1 %vm203_vm4, %v3229_v6  ;;  %3477 = vmatprep.subr.bf16.mxu0 %v9058_v28  ;;  %v3418_v51 = vrot.slane %v7576_v58, %v10271_v32  ;;  %v3422_v16 = vrot.slane %v7576_v58, %v10277_v0 }
0x123c   :  { %8012 = vmatpush3.bf16.msra.mxu1 %v9060_v34 }
0x123d   :  { %8013 = vmatprep.subr.bf16.mxu1 %v9061_v46 }
0x123e   :  { %3478 = vmatpush1.bf16.msra.mxu0 %v9056_v48 }
0x1240   :  { %8014 = vmatpush3.bf16.msra.mxu1 %v9062_v35 }
0x1241   :  { %8015 = vmatprep.subr.bf16.mxu1 %v9063_v44 }
0x1244   :  { %8016 = vmatpush3.bf16.msra.mxu1 %v9064_v18 }
0x1245   :  { %8017 = vmatprep.subr.bf16.mxu1 %v9065_v45 }
0x1248   :  { %8018 = vmatpush3.bf16.msra.mxu1 %v9066_v13 }
0x1249   :  { %8019 = vmatprep.subr.bf16.mxu1 %v9067_v36 }
0x124c   :  { %8020 = vmatpush3.bf16.msra.mxu1 %v9068_v4 }
0x124d   :  { %8021 = vmatprep.subr.bf16.mxu1 %v9069_v41 }
0x130e   :  { %v8429_v47 = vpop.f32.mrb[76].mxu1 }
0x130f   :  { %v3303_v31 = vpop.f32.mrb[77].mxu1  ;;  %v3320_v55 = vadd.f32 %v8429_v47, %v10297_v40 }
0x1310   :  { %v3318_v27 = vadd.f32 %v3303_v31, %v10287_v30  ;;  %v8430_v63 = vpop.f32.mrb[78].mxu1 }
0x1311   :  { %v3306_v1 = vpop.f32.mrb[79].mxu1  ;;  %v10716_v11 = vadd.f32 %v7565_v50, %v3320_v55  ;;  %v3321_v33 = vadd.f32 %v8430_v63, %v10300_v59 }
0x1312   :  { %v10713_v62 = vadd.f32 %v7565_v50, %v3318_v27  ;;  %v3319_v61 = vadd.f32 %v3306_v1, %v10290_v17 }
0x1313   :  { %v10725_v30 = vadd.f32 %v7565_v50, %v3321_v33  ;;  %v3339_v52 = vsel %vm203_vm4, %v10716_v11, 0.0 }
0x1314   :  { %v10719_v12 = vadd.f32 %v7565_v50, %v3319_v61  ;;  %v3333_v3 = vsel %vm203_vm4, %v10713_v62, 0.0 }
0x1315   :  { %3334 = vadd.xlane.f32.xlu0 %v3333_v3  ;;  %v3342_v17 = vsel %vm203_vm4, %v10725_v30, 0.0 }
0x1316   :  { %v3336_v40 = vsel %vm203_vm4, %v10719_v12, 0.0 }
0x1317   :  { %3337 = vadd.xlane.f32.xlu1 %v3336_v40 }
0x1319   :  { %3340 = vadd.xlane.f32.xlu0 %v3339_v52  ;;  %v7566_v52 = vld [vmem:[%s12035_s8 + $0x1] ss:$0 sm:$0xff] }
0x131d   :  { %3343 = vadd.xlane.f32.xlu0 %v3342_v17 }
0x13a2   :  { %v3335_v59 = vpop.xlane.xlu0 %3334 }
0x13a3   :  { %v3345_v25 = vmul.f32 0.015625, %v3335_v59 }
0x13a4   :  { %v3338_v26 = vpop.xlane.xlu1 %3337 }
0x13a5   :  { %v10732_v39 = vsub.f32 %v10713_v62, %v3345_v25  ;;  %v3346_v29 = vmul.f32 0.015625, %v3338_v26 }
0x13a6   :  { %v3341_v22 = vpop.xlane.xlu0 %3340 }
0x13a7   :  { %v10735_v54 = vsub.f32 %v10719_v12, %v3346_v29  ;;  %v3347_v5 = vmul.f32 0.015625, %v3341_v22  ;;  %v3353_v53 = vmul.f32 %v10732_v39, %v10732_v39  ;;  %v7567_v22 = vld [vmem:[%s12036_s9 + $0x1] ss:$0 sm:$0xff] }
0x13a9   :  { %v10740_v23 = vsub.f32 %v10716_v11, %v3347_v5  ;;  %v3357_v15 = vsel %vm203_vm4, %v3353_v53, 0.0  ;;  %v3354_v49 = vmul.f32 %v10735_v54, %v10735_v54 }
0x13aa   :  { %v3344_v38 = vpop.xlane.xlu0 %3343  ;;  %3358 = vadd.xlane.f32.xlu1 %v3357_v15 }
0x13ab   :  { %v3348_v14 = vmul.f32 0.015625, %v3344_v38  ;;  %v3360_v43 = vsel %vm203_vm4, %v3354_v49, 0.0  ;;  %v3355_v42 = vmul.f32 %v10740_v23, %v10740_v23 }
0x13ac   :  { %3361 = vadd.xlane.f32.xlu0 %v3360_v43 }
0x13ad   :  { %v10749_v60 = vsub.f32 %v10725_v30, %v3348_v14  ;;  %v3363_v24 = vsel %vm203_vm4, %v3355_v42, 0.0 }
0x13ae   :  { %3364 = vadd.xlane.f32.xlu1 %v3363_v24 }
0x13af   :  { %v3356_v10 = vmul.f32 %v10749_v60, %v10749_v60 }
0x13b1   :  { %v3366_v21 = vsel %vm203_vm4, %v3356_v10, 0.0 }
0x13b2   :  { %3367 = vadd.xlane.f32.xlu0 %v3366_v21  ;;  %v9072_v21 = vld [vmem:[%s12039_s12 + $0xb0] sm:$0xff]  }
0x1437   :  { %v3359_v20 = vpop.xlane.xlu1 %3358 }
0x1438   :  { %v3369_v6 = vmul.f32 0.015625, %v3359_v20 }
0x1439   :  { %v3362_v47 = vpop.xlane.xlu0 %3361 }
0x143a   :  { %v3373_v50 = vadd.f32 1e-05, %v3369_v6  ;;  %v3370_v31 = vmul.f32 0.015625, %v3362_v47 }
0x143b   :  { %v3365_v55 = vpop.xlane.xlu1 %3364 }
0x143c   :  { %9319 = vrsqrt.f32 %v3373_v50  ;;  %v3374_v27 = vadd.f32 1e-05, %v3370_v31  ;;  %v3371_v63 = vmul.f32 0.015625, %v3365_v55 }
0x143e   :  { %9321 = vrsqrt.f32 %v3374_v27  ;;  %v3375_v1 = vadd.f32 1e-05, %v3371_v63 }
0x143f   :  { %v3368_v61 = vpop.xlane.xlu0 %3367 }
0x1440   :  { %9323 = vrsqrt.f32 %v3375_v1  ;;  %v3372_v33 = vmul.f32 0.015625, %v3368_v61 }
0x1442   :  { %v3376_v3 = vadd.f32 1e-05, %v3372_v33 }
0x1444   :  { %9325 = vrsqrt.f32 %v3376_v3 }
0x1446   :  { %v9320_v40 = vpop.eup %9319 }
0x1447   :  { %v3381_v17 = vmul.f32 %v9320_v40, %v10732_v39 }
0x1448   :  { %v9322_v59 = vpop.eup %9321 }
0x1449   :  { %v3389_v25 = vmul.f32 %v7566_v52, %v3381_v17  ;;  %v3382_v26 = vmul.f32 %v9322_v59, %v10735_v54 }
0x144a   :  { %v9324_v29 = vpop.eup %9323 }
0x144b   :  { %v3390_v5 = vmul.f32 %v7566_v52, %v3382_v26  ;;  %v3397_v53 = vadd.f32 %v7567_v22, %v3389_v25  ;;  %v3383_v49 = vmul.f32 %v9324_v29, %v10740_v23  ;;  %v9070_v23 = vld [vmem:[%s12039_s12 + $0xa8] sm:$0xff]   ;;  %v7635_v29 = vld [vmem:[%s12040_s13 + $0x1] ss:$0 sm:$0xff] }
0x144c   :  { %8022 = vmatpush3.bf16.msra.mxu1 %v9070_v23 }
0x144d   :  { %v3398_v15 = vadd.f32 %v7567_v22, %v3390_v5  ;;  %v3391_v39 = vmul.f32 %v7566_v52, %v3383_v49 }
0x144e   :  { %v9326_v38 = vpop.eup %9325 }
0x144f   :  { %v3401_v14 = vpack.c.bf16 %v3398_v15, %v3397_v53  ;;  %v3384_v43 = vmul.f32 %v9326_v38, %v10749_v60  ;;  %v3399_v24 = vadd.f32 %v7567_v22, %v3391_v39  ;;  %v9071_v60 = vld [vmem:[%s12039_s12 + $0xf0] sm:$0xff]  }
0x1450   :  { %8023 = vmatprep.subr.bf16.mxu1 %v9071_v60 }
0x1451   :  { %7585 = vmatmul.mubr.msk.bf16.vlgmr.msra.gmra.mrb[92].mxu0 %vm203_vm4, %v3401_v14  ;;  %v3392_v42 = vmul.f32 %v7566_v52, %v3384_v43  ;;  %8024 = vmatpush3.bf16.msra.mxu1 %v9072_v21 }
0x1452   :  { %3513 = vmatprep.mubr.bf16.mxu0 %v9519_v2  ;;  %8025 = vmatprep.subr.bf16.mxu1 %v9073_v19 }
0x1453   :  { %v3400_v54 = vadd.f32 %v7567_v22, %v3392_v42 }
0x1455   :  { %v3402_v10 = vpack.c.bf16 %v3400_v54, %v3399_v24  ;;  %8026 = vmatpush3.bf16.msra.mxu1 %v9074_v56 }
0x1456   :  { %8443 = vmatprep.subr.bf16.mxu1 %v9523_v8 }
0x1459   :  { %7586 = vmatmul.mubr.msk.bf16.gmra.mrb[96].mxu0 %vm203_vm4, %v3402_v10 }
0x145a   :  { %3886 = vmatprep.mubr.bf16.mxu0 %v9519_v2 }
0x1524   :  { %v3505_v57 = vpop.f32.mrb[92].mxu0 }
0x1525   :  { %v3506_v48 = vadd.f32 %v3505_v57, %v3418_v51  ;;  %v3507_v28 = vpop.f32.mrb[93].mxu0 }
0x1526   :  { %v3508_v37 = vadd.f32 %v3507_v28, %v3422_v16  ;;  %v3509_v34 = vpop.f32.mrb[94].mxu0 }
0x1527   :  { %v3510_v46 = vadd.f32 %v3509_v34, %v3418_v51  ;;  %v3511_v35 = vpop.f32.mrb[95].mxu0  ;;  %v3524_v18 = vmax.f32 %v3506_v48, 0.0 }
0x1528   :  { %v3512_v44 = vadd.f32 %v3511_v35, %v3422_v16  ;;  %v3525_v13 = vmax.f32 %v3508_v37, 0.0 }
0x1529   :  { %v3526_v45 = vmax.f32 %v3510_v46, 0.0 }
0x152a   :  { %v3527_v36 = vmax.f32 %v3512_v44, 0.0 }
0x152b   :  { %v3532_v4 = vpack.c.bf16 %v3526_v45, %v3524_v18 }
0x152c   :  { %v3533_v41 = vpack.c.bf16 %v3527_v36, %v3525_v13  ;;  %v3515_v20 = vpop.f32.mrb[96].mxu0 }
0x152d   :  { %v3516_v6 = vadd.f32 %v3515_v20, %v3418_v51  ;;  %v3517_v47 = vpop.f32.mrb[97].mxu0 }
0x152e   :  { %v3518_v50 = vadd.f32 %v3517_v47, %v3422_v16  ;;  %v3519_v31 = vpop.f32.mrb[98].mxu0  ;;  %3697 = vmatprep.mubr.bf16.mxu1 %v3533_v41  ;;  %v9075_v47 = vld [vmem:[%s12032_s5 + $0x80] ss:$8 sps:$4 sm:$0xff]  }
0x152f   :  { %v3520_v55 = vadd.f32 %v3519_v31, %v3418_v51  ;;  %v3521_v27 = vpop.f32.mrb[99].mxu0  ;;  %3698 = vmatmul.mubr.bf16.vlgmr.msra.gmra.mrb[80].mxu1 %v3532_v4  ;;  %v3528_v1 = vmax.f32 %v3516_v6, 0.0  ;;  %v9077_v6 = vld [vmem:[%s12032_s5 + $0x84] ss:$8 sps:$4 sm:$0xff]   ;;  %v9078_v31 = vld [vmem:[%s12032_s5 + $0x90] ss:$8 sps:$4 sm:$0xff]  }
0x1530   :  { %v3522_v63 = vadd.f32 %v3521_v27, %v3422_v16  ;;  %v3529_v33 = vmax.f32 %v3518_v50, 0.0  ;;  %3854 = vmatprep.subr.bf16.mxu0 %v9077_v6  ;;  %v9080_v50 = vld [vmem:[%s12032_s5 + $0x94] ss:$8 sps:$4 sm:$0xff]   ;;  %v9081_v27 = vld [vmem:[%s12032_s5 + $0xa0] ss:$8 sps:$4 sm:$0xff]  }
0x1531   :  { %v3530_v61 = vmax.f32 %v3520_v55, 0.0  ;;  %3855 = vmatpush1.bf16.msra.mxu0 %v9075_v47  ;;  %v9083_v55 = vld [vmem:[%s12032_s5 + $0xa4] ss:$8 sps:$4 sm:$0xff]  }
0x1532   :  { %v3531_v3 = vmax.f32 %v3522_v63, 0.0  ;;  %3856 = vmatprep.subr.bf16.mxu0 %v9080_v50  ;;  %v9086_v63 = vld [vmem:[%s12032_s5 + $0xb4] ss:$8 sps:$4 sm:$0xff]  }
0x1533   :  { %v3534_v40 = vpack.c.bf16 %v3530_v61, %v3528_v1  ;;  %v9084_v1 = vld [vmem:[%s12032_s5 + $0xb0] ss:$8 sps:$4 sm:$0xff]  }
0x1534   :  { %v3535_v52 = vpack.c.bf16 %v3531_v3, %v3529_v33 }
0x1535   :  { %3857 = vmatpush1.bf16.msra.mxu0 %v9078_v31 }
0x1536   :  { %3705 = vmatprep.mubr.bf16.mxu1 %v3535_v52  ;;  %3858 = vmatprep.subr.bf16.mxu0 %v9083_v55 }
0x1537   :  { %3706 = vmatmul.mubr.bf16.gmra.mrb[84].mxu1 %v3534_v40 }
0x1538   :  { %8445 = vmatprep.mubr.msk.bf16.mxu1 %vm9524_vm5, %v9523_v8 }
0x1539   :  { %3859 = vmatpush1.bf16.msra.mxu0 %v9081_v27 }
0x153a   :  { %3860 = vmatprep.subr.bf16.mxu0 %v9086_v63 }
0x153d   :  { %3861 = vmatpush1.bf16.msra.mxu0 %v9084_v1 }
0x153e   :  { %8431 = vmatprep.subr.bf16.mxu0 %v9523_v8 }
0x1602   :  { %v8027_v17 = vpop.f32.mrb[80].mxu1 }
0x1603   :  { %v8028_v59 = vpop.f32.mrb[81].mxu1 }
0x1604   :  { %v8029_v25 = vadd.f32 %v8028_v59, %v8027_v17  ;;  %v8030_v26 = vpop.f32.mrb[82].mxu1 }
0x1605   :  { %v8031_v22 = vpop.f32.mrb[83].mxu1 }
0x1606   :  { %v3714_v5 = vadd.f32 %v8029_v25, %v10713_v62  ;;  %v8032_v53 = vadd.f32 %v8031_v22, %v8030_v26 }
0x1608   :  { %v10853_v15 = vadd.f32 %v7635_v29, %v3714_v5  ;;  %v3715_v49 = vadd.f32 %v8032_v53, %v10719_v12 }
0x160a   :  { %v10856_v38 = vadd.f32 %v7635_v29, %v3715_v49  ;;  %v8033_v14 = vpop.f32.mrb[84].mxu1  ;;  %v3729_v43 = vsel %vm203_vm4, %v10853_v15, 0.0  ;;  %v7636_v49 = vld [vmem:[%s12030_s3 + $0x2] ss:$0 sm:$0xff] }
0x160b   :  { %3730 = vadd.xlane.f32.xlu1 %v3729_v43  ;;  %v8034_v39 = vpop.f32.mrb[85].mxu1 }
0x160c   :  { %v8035_v42 = vadd.f32 %v8034_v39, %v8033_v14  ;;  %v8036_v54 = vpop.f32.mrb[86].mxu1  ;;  %v3732_v24 = vsel %vm203_vm4, %v10856_v38, 0.0 }
0x160d   :  { %3733 = vadd.xlane.f32.xlu0 %v3732_v24  ;;  %v8037_v62 = vpop.f32.mrb[87].mxu1 }
0x160e   :  { %v3716_v10 = vadd.f32 %v8035_v42, %v10716_v11  ;;  %v8038_v23 = vadd.f32 %v8037_v62, %v8036_v54  ;;  %v7637_v54 = vld [vmem:[%s12031_s4 + $0x2] ss:$0 sm:$0xff] }
0x1610   :  { %v10863_v60 = vadd.f32 %v7635_v29, %v3716_v10  ;;  %v3717_v12 = vadd.f32 %v8038_v23, %v10725_v30 }
0x1612   :  { %v10866_v21 = vadd.f32 %v7635_v29, %v3717_v12  ;;  %v3735_v19 = vsel %vm203_vm4, %v10863_v60, 0.0 }
0x1613   :  { %3736 = vadd.xlane.f32.xlu1 %v3735_v19 }
0x1614   :  { %v3738_v56 = vsel %vm203_vm4, %v10866_v21, 0.0 }
0x1615   :  { %3739 = vadd.xlane.f32.xlu0 %v3738_v56 }
0x1698   :  { %v3731_v58 = vpop.xlane.xlu1 %3730 }
0x1699   :  { %v3741_v51 = vmul.f32 0.015625, %v3731_v58 }
0x169a   :  { %v3734_v16 = vpop.xlane.xlu0 %3733 }
0x169b   :  { %v3745_v11 = vsub.f32 %v10853_v15, %v3741_v51  ;;  %v3742_v57 = vmul.f32 0.015625, %v3734_v16 }
0x169d   :  { %v3746_v48 = vsub.f32 %v10856_v38, %v3742_v57  ;;  %v3749_v28 = vmul.f32 %v3745_v11, %v3745_v11 }
0x169f   :  { %v3753_v30 = vsel %vm203_vm4, %v3749_v28, 0.0  ;;  %v3750_v37 = vmul.f32 %v3746_v48, %v3746_v48 }
0x16a0   :  { %3754 = vadd.xlane.f32.xlu1 %v3753_v30  ;;  %v3737_v34 = vpop.xlane.xlu1 %3736 }
0x16a1   :  { %v3743_v46 = vmul.f32 0.015625, %v3737_v34  ;;  %v3756_v35 = vsel %vm203_vm4, %v3750_v37, 0.0 }
0x16a2   :  { %3757 = vadd.xlane.f32.xlu0 %v3756_v35  ;;  %v3740_v44 = vpop.xlane.xlu0 %3739 }
0x16a3   :  { %v3747_v18 = vsub.f32 %v10863_v60, %v3743_v46  ;;  %v3744_v45 = vmul.f32 0.015625, %v3740_v44 }
0x16a5   :  { %v3748_v13 = vsub.f32 %v10866_v21, %v3744_v45  ;;  %v3751_v36 = vmul.f32 %v3747_v18, %v3747_v18 }
0x16a7   :  { %v3759_v4 = vsel %vm203_vm4, %v3751_v36, 0.0  ;;  %v3752_v41 = vmul.f32 %v3748_v13, %v3748_v13 }
0x16a8   :  { %3760 = vadd.xlane.f32.xlu1 %v3759_v4 }
0x16a9   :  { %v3762_v20 = vsel %vm203_vm4, %v3752_v41, 0.0 }
0x16aa   :  { %3763 = vadd.xlane.f32.xlu0 %v3762_v20 }
0x172d   :  { %v3755_v61 = vpop.xlane.xlu1 %3754 }
0x172e   :  { %v3765_v33 = vmul.f32 0.015625, %v3755_v61 }
0x172f   :  { %v3758_v3 = vpop.xlane.xlu0 %3757 }
0x1730   :  { %v3769_v40 = vadd.f32 1e-05, %v3765_v33  ;;  %v3766_v52 = vmul.f32 0.015625, %v3758_v3 }
0x1732   :  { %9327 = vrsqrt.f32 %v3769_v40  ;;  %v3770_v17 = vadd.f32 1e-05, %v3766_v52 }
0x1734   :  { %9329 = vrsqrt.f32 %v3770_v17 }
0x1735   :  { %v3761_v59 = vpop.xlane.xlu1 %3760 }
0x1736   :  { %v3767_v25 = vmul.f32 0.015625, %v3761_v59 }
0x1737   :  { %v3764_v26 = vpop.xlane.xlu0 %3763 }
0x1738   :  { %v3771_v29 = vadd.f32 1e-05, %v3767_v25  ;;  %v3768_v22 = vmul.f32 0.015625, %v3764_v26 }
0x173a   :  { %9331 = vrsqrt.f32 %v3771_v29  ;;  %v3772_v5 = vadd.f32 1e-05, %v3768_v22 }
0x173c   :  { %v9328_v53 = vpop.eup %9327  ;;  %9333 = vrsqrt.f32 %v3772_v5 }
0x173d   :  { %v3777_v14 = vmul.f32 %v9328_v53, %v3745_v11 }
0x173e   :  { %v9330_v43 = vpop.eup %9329 }
0x173f   :  { %v3785_v39 = vmul.f32 %v7636_v49, %v3777_v14  ;;  %v3778_v42 = vmul.f32 %v9330_v43, %v3746_v48 }
0x1741   :  { %v3786_v24 = vmul.f32 %v7636_v49, %v3778_v42  ;;  %v3793_v62 = vadd.f32 %v7637_v54, %v3785_v39 }
0x1743   :  { %v3794_v10 = vadd.f32 %v7637_v54, %v3786_v24 }
0x1744   :  { %v9332_v23 = vpop.eup %9331 }
0x1745   :  { %v3797_v12 = vpack.c.bf16 %v3794_v10, %v3793_v62  ;;  %v3779_v19 = vmul.f32 %v9332_v23, %v3747_v18 }
0x1746   :  { %v9334_v56 = vpop.eup %9333 }
0x1747   :  { %7654 = vmatmul.mubr.msk.bf16.vlgmr.msra.gmra.mrb[100].mxu0 %vm203_vm4, %v3797_v12  ;;  %v3780_v58 = vmul.f32 %v9334_v56, %v3748_v13  ;;  %v3787_v51 = vmul.f32 %v7636_v49, %v3779_v19 }
0x1748   :  { %3896 = vmatprep.mubr.bf16.mxu0 %v9519_v2 }
0x1749   :  { %v3788_v16 = vmul.f32 %v7636_v49, %v3780_v58  ;;  %v3795_v11 = vadd.f32 %v7637_v54, %v3787_v51 }
0x174b   :  { %v3796_v57 = vadd.f32 %v7637_v54, %v3788_v16 }
0x174d   :  { %v3798_v48 = vpack.c.bf16 %v3796_v57, %v3795_v11 }
0x174f   :  { %7655 = vmatmul.mubr.msk.bf16.gmra.mrb[104].mxu0 %vm203_vm4, %v3798_v48 }
0x1750   :  { %8433 = vmatprep.mubr.msk.bf16.mxu0 %vm9524_vm5, %v9523_v8 }
0x181a   :  { %v3888_v28 = vpop.f32.mrb[100].mxu0 }
0x181b   :  { %v3890_v30 = vpop.f32.mrb[101].mxu0 }
0x181c   :  { %v8857_v37 = vpack.i.bf16 %v3890_v30, %v3888_v28  ;;  %v3892_v34 = vpop.f32.mrb[102].mxu0 }
0x181d   :  { %v8847_v46 = vpack.i.bf16 %v3892_v34, %v3888_v28  ;;  %v10916_v35 = vpack.c.bf16 %v3892_v34, %v3888_v28  ;;  %v3894_v44 = vpop.f32.mrb[103].mxu0 }
0x181e   :  { %v8877_v18 = vpack.i.bf16 %v3894_v44, %v3890_v30  ;;  %v8862_v45 = vpack.i.bf16 %v3894_v44, %v3892_v34 }
0x181f   :  { %8848 = vrot.lane.b32.xlu1 %v8847_v46, %s9521_s2 }
0x1822   :  { %v3898_v13 = vpop.f32.mrb[104].mxu0 }
0x1823   :  { %8858 = vrot.lane.b32.xlu1 %v8857_v37, %s9522_s29  ;;  %v3900_v36 = vpop.f32.mrb[105].mxu0 }
0x1824   :  { %v8867_v4 = vpack.i.bf16 %v3900_v36, %v3898_v13  ;;  %v3902_v41 = vpop.f32.mrb[106].mxu0 }
0x1825   :  { %v8852_v20 = vpack.i.bf16 %v3902_v41, %v3898_v13  ;;  %v10920_v6 = vpack.c.bf16 %v3902_v41, %v3898_v13  ;;  %v3904_v47 = vpop.f32.mrb[107].mxu0 }
0x1826   :  { %v8882_v50 = vpack.i.bf16 %v3904_v47, %v3900_v36  ;;  %v8872_v31 = vpack.i.bf16 %v3904_v47, %v3902_v41 }
0x1827   :  { %8863 = vrot.lane.b32.xlu1 %v8862_v45, %s9522_s29  ;;  %8853 = vrot.lane.b32.xlu0 %v8852_v20, %s9521_s2 }
0x182b   :  { %8868 = vrot.lane.b32.xlu0 %v8867_v4, %s9522_s29  ;;  %8873 = vrot.lane.b32.xlu1 %v8872_v31, %s9522_s29 }
0x182f   :  { %8878 = vrot.lane.b32.xlu0 %v8877_v18, %s9525_s23  ;;  %8883 = vrot.lane.b32.xlu1 %v8882_v50, %s9525_s23 }
0x1833   :  { %3972 = vrot.lane.b32.xlu0 %v10916_v35, %s9525_s23  ;;  %4022 = vrot.lane.b32.xlu1 %v10920_v6, %s9525_s23 }
0x1891   :  { %v8849_v55 = vpop.permute.xlu1 %8848 }
0x1892   :  { %v8851_v27 = vunpack.i.h.bf16 %v8849_v55  ;;  %v8850_v63 = vunpack.i.l.bf16 %v8849_v55 }
0x1894   :  { %v10932_v1 = vpack.c.bf16 %v8851_v27, %v8850_v63 }
0x1895   :  { %v8859_v61 = vpop.permute.xlu1 %8858 }
0x1896   :  { %4072 = vrot.lane.b32.xlu0 %v10932_v1, %s9525_s23  ;;  %v8861_v33 = vunpack.i.h.bf16 %v8859_v61  ;;  %v8860_v3 = vunpack.i.l.bf16 %v8859_v61 }
0x1898   :  { %v3943_v29 = vsel %vm418_vm6, %v8860_v3, %v8861_v33 }
0x1899   :  { %v8854_v40 = vpop.permute.xlu0 %8853  ;;  %v8864_v52 = vpop.permute.xlu1 %8863 }
0x189a   :  { %v8856_v17 = vunpack.i.h.bf16 %v8854_v40  ;;  %v8855_v59 = vunpack.i.l.bf16 %v8854_v40  ;;  %v8866_v25 = vunpack.i.h.bf16 %v8864_v52  ;;  %v8865_v26 = vunpack.i.l.bf16 %v8864_v52 }
0x189c   :  { %v10937_v22 = vpack.c.bf16 %v8856_v17, %v8855_v59  ;;  %v3944_v5 = vsel %vm418_vm6, %v8865_v26, %v8866_v25 }
0x189d   :  { %v8869_v53 = vpop.permute.xlu0 %8868  ;;  %v8874_v49 = vpop.permute.xlu1 %8873  ;;  %v10940_v14 = vpack.c.bf16 %v3944_v5, %v3943_v29 }
0x189e   :  { %v8871_v43 = vunpack.i.h.bf16 %v8869_v53  ;;  %v8870_v39 = vunpack.i.l.bf16 %v8869_v53  ;;  %v8876_v42 = vunpack.i.h.bf16 %v8874_v49  ;;  %v8875_v54 = vunpack.i.l.bf16 %v8874_v49  ;;  %4122 = vrot.lane.b32.xlu1 %v10937_v22, %s9525_s23 }
0x189f   :  { %4172 = vrot.lane.b32.xlu0 %v10940_v14, %s9525_s23 }
0x18a0   :  { %v3945_v24 = vsel %vm418_vm6, %v8870_v39, %v8871_v43  ;;  %v3946_v62 = vsel %vm418_vm6, %v8875_v54, %v8876_v42 }
0x18a1   :  { %v8879_v10 = vpop.permute.xlu0 %8878  ;;  %v8884_v23 = vpop.permute.xlu1 %8883  ;;  %v10948_v12 = vpack.c.bf16 %v3946_v62, %v3945_v24 }
0x18a2   :  { %v8881_v19 = vunpack.i.h.bf16 %v8879_v10  ;;  %v8880_v56 = vunpack.i.l.bf16 %v8879_v10  ;;  %v8886_v58 = vunpack.i.h.bf16 %v8884_v23  ;;  %v8885_v51 = vunpack.i.l.bf16 %v8884_v23 }
0x18a3   :  { %4222 = vrot.lane.b32.xlu1 %v10948_v12, %s9525_s23 }
0x18a4   :  { %v10952_v16 = vpack.c.bf16 %v8881_v19, %v8880_v56  ;;  %v10954_v11 = vpack.c.bf16 %v8886_v58, %v8885_v51 }
0x18a5   :  { %v3973_v57 = vpop.permute.xlu0 %3972  ;;  %v4023_v28 = vpop.permute.xlu1 %4022 }
0x18a6   :  { %v3978_v48 = vsel %vm450_vm7, %v3973_v57, 0  ;;  %4272 = vrot.lane.b32.xlu0 %v10952_v16, %s9525_s23  ;;  %v4028_v30 = vsel %vm450_vm7, %v4023_v28, 0 }
0x18a7   :  { %8432 = vmatpush3.bf16.xpose.msra.mxu0 %v3978_v48  ;;  %4322 = vrot.lane.b32.xlu1 %v10954_v11, %s9525_s23 }
0x18a8   :  { %8437 = vmatprep.subr.bf16.mxu0 %v9523_v8 }
0x18ab   :  { %4555 = vrot.lane.b32.xlu1 %v10916_v35, %s12053_s24 }
0x18ae   :  { %8434 = vmatmul.mubr.msk.bf16.vlgmr.msra.gmra.mrb[108].mxu0 %vm450_vm7, %v10916_v35 }
0x18af   :  { %8438 = vmatpush3.bf16.xpose.msra.mxu0 %v4028_v30  ;;  %8439 = vmatprep.mubr.msk.bf16.mxu0 %vm9524_vm5, %v9523_v8 }
0x18b0   :  { %8449 = vmatprep.subr.bf16.mxu0 %v9523_v8 }
0x18b6   :  { %8440 = vmatmul.mubr.msk.bf16.vlgmr.msra.gmra.mrb[112].mxu0 %vm450_vm7, %v10920_v6 }
0x18b7   :  { %8451 = vmatprep.mubr.msk.bf16.mxu0 %vm9524_vm5, %v9523_v8 }
0x1908   :  { %v4073_v37 = vpop.permute.xlu0 %4072 }
0x1909   :  { %v4078_v34 = vsel %vm450_vm7, %v4073_v37, 0 }
0x190a   :  { %8444 = vmatpush3.bf16.xpose.msra.mxu1 %v4078_v34 }
0x190b   :  { %8455 = vmatprep.subr.bf16.mxu1 %v9523_v8 }
0x1910   :  { %v4123_v46 = vpop.permute.xlu1 %4122 }
0x1911   :  { %v4128_v35 = vsel %vm450_vm7, %v4123_v46, 0  ;;  %8446 = vmatmul.mubr.msk.bf16.vlgmr.msra.gmra.mrb[88].mxu1 %vm450_vm7, %v10932_v1  ;;  %v4173_v44 = vpop.permute.xlu0 %4172 }
0x1912   :  { %v4178_v18 = vsel %vm450_vm7, %v4173_v44, 0  ;;  %8450 = vmatpush3.bf16.xpose.msra.mxu0 %v4128_v35  ;;  %8457 = vmatprep.mubr.msk.bf16.mxu1 %vm9524_vm5, %v9523_v8 }
0x1913   :  { %8456 = vmatpush3.bf16.xpose.msra.mxu1 %v4178_v18  ;;  %8461 = vmatprep.subr.bf16.mxu0 %v9523_v8 }
0x1914   :  { %8467 = vmatprep.subr.bf16.mxu1 %v9523_v8 }
0x1915   :  { %v4223_v45 = vpop.permute.xlu1 %4222 }
0x1916   :  { %v4228_v36 = vsel %vm450_vm7, %v4223_v45, 0 }
0x1918   :  { %v4273_v13 = vpop.permute.xlu0 %4272 }
0x1919   :  { %v4278_v4 = vsel %vm450_vm7, %v4273_v13, 0  ;;  %8452 = vmatmul.mubr.msk.bf16.vlgmr.msra.gmra.mrb[116].mxu0 %vm450_vm7, %v10937_v22  ;;  %v4323_v41 = vpop.permute.xlu1 %4322 }
0x191a   :  { %8458 = vmatmul.mubr.msk.bf16.vlgmr.msra.gmra.mrb[92].mxu1 %vm450_vm7, %v10940_v14  ;;  %8462 = vmatpush3.bf16.xpose.msra.mxu0 %v4228_v36  ;;  %v4328_v20 = vsel %vm450_vm7, %v4323_v41, 0 }
0x191b   :  { %8468 = vmatpush3.bf16.xpose.msra.mxu1 %v4278_v4  ;;  %8463 = vmatprep.mubr.msk.bf16.mxu0 %vm9524_vm5, %v9523_v8 }
0x191c   :  { %8469 = vmatprep.mubr.msk.bf16.mxu1 %vm9524_vm5, %v9523_v8  ;;  %8473 = vmatprep.subr.bf16.mxu0 %v9523_v8 }
0x191d   :  { %8479 = vmatprep.subr.bf16.mxu1 %v9523_v8  ;;  %v4556_v47 = vpop.permute.xlu1 %4555 }
0x1921   :  { %8464 = vmatmul.mubr.msk.bf16.vlgmr.msra.gmra.mrb[120].mxu0 %vm450_vm7, %v10948_v12 }
0x1922   :  { %8470 = vmatmul.mubr.msk.bf16.vlgmr.msra.gmra.mrb[96].mxu1 %vm450_vm7, %v10952_v16  ;;  %8474 = vmatpush3.bf16.xpose.msra.mxu0 %v4328_v20 }
0x1923   :  { %8480 = vmatpush3.bf16.msra.mxu1 %v4556_v47  ;;  %8475 = vmatprep.mubr.msk.bf16.mxu0 %vm9524_vm5, %v9523_v8 }
0x1924   :  { %8485 = vmatprep.subr.bf16.mxu0 %v9523_v8  ;;  %8481 = vmatprep.mubr.msk.bf16.mxu1 %vm9524_vm5, %v9523_v8 }
0x1925   :  { %8491 = vmatprep.subr.bf16.mxu1 %v9523_v8 }
0x1929   :  { %8476 = vmatmul.mubr.msk.bf16.vlgmr.msra.gmra.mrb[124].mxu0 %vm450_vm7, %v10954_v11 }
0x192a   :  { %8487 = vmatprep.mubr.msk.bf16.mxu0 %vm9524_vm5, %v9523_v8 }
0x1981   :  { %v4014_v50 = vpop.f32.mrb[108].mxu0 }
0x1982   :  { %v11012_v31 = vadd.f32 %v4014_v50, %v9869_v7  ;;  %v8435_v55 = vpop.f32.mrb[109].mxu0 }
0x1983   :  { %v4017_v27 = vpop.f32.mrb[110].mxu0 }
0x1984   :  { %v11015_v63 = vadd.f32 %v4017_v27, %v9871_v9  ;;  %v8436_v61 = vpop.f32.mrb[111].mxu0  ;;  %v4371_v33 = vsel %vm450_vm7, %v11012_v31, -inf }
0x1985   :  { %4372 = vmax.xlane.f32.xlu0 %v4371_v33 }
0x1986   :  { %v4374_v3 = vsel %vm450_vm7, %v11015_v63, -inf }
0x1987   :  { %4375 = vmax.xlane.f32.xlu1 %v4374_v3 }
0x1989   :  { %v4064_v40 = vpop.f32.mrb[112].mxu0 }
0x198a   :  { %v11022_v52 = vadd.f32 %v4064_v40, %v9869_v7  ;;  %v8441_v17 = vpop.f32.mrb[113].mxu0 }
0x198b   :  { %v4067_v59 = vpop.f32.mrb[114].mxu0 }
0x198c   :  { %v11025_v25 = vadd.f32 %v4067_v59, %v9871_v9  ;;  %v8442_v26 = vpop.f32.mrb[115].mxu0  ;;  %v4377_v29 = vsel %vm450_vm7, %v11022_v52, -inf }
0x198d   :  { %4378 = vmax.xlane.f32.xlu0 %v4377_v29 }
0x198e   :  { %v4380_v5 = vsel %vm450_vm7, %v11025_v25, -inf }
0x1991   :  { %4381 = vmax.xlane.f32.xlu0 %v4380_v5 }
0x19e4   :  { %v4114_v53 = vpop.f32.mrb[88].mxu1 }
0x19e5   :  { %v11032_v49 = vadd.f32 %v4114_v53, %v9869_v7  ;;  %v8447_v43 = vpop.f32.mrb[89].mxu1 }
0x19e6   :  { %v4117_v39 = vpop.f32.mrb[90].mxu1 }
0x19e7   :  { %v11035_v42 = vadd.f32 %v4117_v39, %v9871_v9  ;;  %v8448_v54 = vpop.f32.mrb[91].mxu1  ;;  %v4383_v24 = vsel %vm450_vm7, %v11032_v49, -inf }
0x19e8   :  { %4384 = vmax.xlane.f32.xlu1 %v4383_v24 }
0x19e9   :  { %v4386_v62 = vsel %vm450_vm7, %v11035_v42, -inf }
0x19ea   :  { %4387 = vmax.xlane.f32.xlu0 %v4386_v62 }
0x19ec   :  { %v4164_v10 = vpop.f32.mrb[116].mxu0 }
0x19ed   :  { %v11042_v23 = vadd.f32 %v4164_v10, %v9869_v7  ;;  %v8453_v19 = vpop.f32.mrb[117].mxu0  ;;  %v4214_v56 = vpop.f32.mrb[92].mxu1 }
0x19ee   :  { %v4167_v58 = vpop.f32.mrb[118].mxu0  ;;  %v8459_v51 = vpop.f32.mrb[93].mxu1  ;;  %v11045_v57 = vadd.f32 %v4214_v56, %v9869_v7 }
0x19ef   :  { %v11048_v48 = vadd.f32 %v4167_v58, %v9871_v9  ;;  %v8454_v28 = vpop.f32.mrb[119].mxu0  ;;  %v4217_v30 = vpop.f32.mrb[94].mxu1  ;;  %v4389_v37 = vsel %vm450_vm7, %v11042_v23, -inf }
0x19f0   :  { %4390 = vmax.xlane.f32.xlu1 %v4389_v37  ;;  %v8460_v34 = vpop.f32.mrb[95].mxu1  ;;  %v11053_v46 = vadd.f32 %v4217_v30, %v9871_v9  ;;  %v4395_v44 = vsel %vm450_vm7, %v11045_v57, -inf }
0x19f1   :  { %v4392_v35 = vsel %vm450_vm7, %v11048_v48, -inf }
0x19f2   :  { %4393 = vmax.xlane.f32.xlu0 %v4392_v35  ;;  %v4398_v4 = vsel %vm450_vm7, %v11053_v46, -inf }
0x19f4   :  { %v4264_v18 = vpop.f32.mrb[120].mxu0  ;;  %4396 = vmax.xlane.f32.xlu1 %v4395_v44 }
0x19f5   :  { %v11060_v45 = vadd.f32 %v4264_v18, %v9869_v7  ;;  %v8465_v13 = vpop.f32.mrb[121].mxu0  ;;  %v4314_v36 = vpop.f32.mrb[96].mxu1 }
0x19f6   :  { %v4267_v41 = vpop.f32.mrb[122].mxu0  ;;  %4399 = vmax.xlane.f32.xlu0 %v4398_v4  ;;  %v8471_v20 = vpop.f32.mrb[97].mxu1  ;;  %v11065_v47 = vadd.f32 %v4314_v36, %v9869_v7 }
0x19f7   :  { %v11068_v50 = vadd.f32 %v4267_v41, %v9871_v9  ;;  %v8466_v55 = vpop.f32.mrb[123].mxu0  ;;  %v4317_v27 = vpop.f32.mrb[98].mxu1  ;;  %v4401_v61 = vsel %vm450_vm7, %v11060_v45, -inf }
0x19f8   :  { %4402 = vmax.xlane.f32.xlu1 %v4401_v61  ;;  %v8472_v33 = vpop.f32.mrb[99].mxu1  ;;  %v11073_v3 = vadd.f32 %v4317_v27, %v9871_v9  ;;  %v4407_v17 = vsel %vm450_vm7, %v11065_v47, -inf }
0x19f9   :  { %v4404_v40 = vsel %vm450_vm7, %v11068_v50, -inf }
0x19fa   :  { %4405 = vmax.xlane.f32.xlu0 %v4404_v40  ;;  %v4410_v5 = vsel %vm450_vm7, %v11073_v3, -inf }
0x19fc   :  { %v4364_v59 = vpop.f32.mrb[124].mxu0  ;;  %4408 = vmax.xlane.f32.xlu1 %v4407_v17 }
0x19fd   :  { %v11080_v26 = vadd.f32 %v4364_v59, %v9869_v7  ;;  %v8477_v29 = vpop.f32.mrb[125].mxu0 }
0x19fe   :  { %v4367_v53 = vpop.f32.mrb[126].mxu0  ;;  %4411 = vmax.xlane.f32.xlu0 %v4410_v5 }
0x19ff   :  { %v11085_v43 = vadd.f32 %v4367_v53, %v9871_v9  ;;  %v8478_v39 = vpop.f32.mrb[127].mxu0  ;;  %v4413_v54 = vsel %vm450_vm7, %v11080_v26, -inf }
0x1a00   :  { %4414 = vmax.xlane.f32.xlu1 %v4413_v54 }
0x1a01   :  { %v4416_v24 = vsel %vm450_vm7, %v11085_v43, -inf }
0x1a02   :  { %4417 = vmax.xlane.f32.xlu0 %v4416_v24 }
0x1a11   :  { %4649 = vrot.lane.b32.xlu1 %v10932_v1, %s12053_s24 }
0x1a12   :  { %v4373_v62 = vpop.xlane.xlu0 %4372 }
0x1a13   :  { %v4419_v1 = vsub.f32 %v11012_v31, %v4373_v62 }
0x1a14   :  { %v4376_v19 = vpop.xlane.xlu1 %4375 }
0x1a15   :  { %4696 = vrot.lane.b32.xlu1 %v10937_v22, %s12053_s24  ;;  %v4420_v56 = vsub.f32 %v11015_v63, %v4376_v19  ;;  %v4435_v28 = vmul.f32 1.442695, %v4419_v1 }
0x1a17   :  { %v4437_v51 = vmul.f32 1.442695, %v4420_v56 }
0x1a18   :  { %4602 = vrot.lane.b32.xlu0 %v10920_v6, %s12053_s24 }
0x1a19   :  { %4790 = vrot.lane.b32.xlu1 %v10948_v12, %s12053_s24  ;;  %9335 = vpow2.f32 %v4437_v51 }
0x1a1a   :  { %v4379_v10 = vpop.xlane.xlu0 %4378  ;;  %9337 = vpow2.f32 %v4435_v28 }
0x1a1b   :  { %v4421_v6 = vsub.f32 %v11022_v52, %v4379_v10 }
0x1a1c   :  { %4743 = vrot.lane.b32.xlu0 %v10940_v14, %s12053_s24 }
0x1a1d   :  { %v4439_v12 = vmul.f32 1.442695, %v4421_v6 }
0x1a1e   :  { %v4382_v58 = vpop.xlane.xlu0 %4381 }
0x1a1f   :  { %v4422_v22 = vsub.f32 %v11025_v25, %v4382_v58 }
0x1a21   :  { %v4441_v30 = vmul.f32 1.442695, %v4422_v22 }
0x1a23   :  { %9339 = vpow2.f32 %v4441_v30  ;;  %v11105_v14 = vpop.eup %9335 }
0x1a24   :  { %9341 = vpow2.f32 %v4439_v12  ;;  %v11107_v37 = vpop.eup %9337  ;;  %v4470_v63 = vsel %vm450_vm7, %v11105_v14, 0.0 }
0x1a25   :  { %v4467_v25 = vsel %vm450_vm7, %v11107_v37, 0.0 }
0x1a2d   :  { %v11111_v31 = vpop.eup %9339 }
0x1a2e   :  { %v11115_v52 = vpop.eup %9341  ;;  %v4476_v34 = vsel %vm450_vm7, %v11111_v31, 0.0 }
0x1a2f   :  { %v4473_v35 = vsel %vm450_vm7, %v11115_v52, 0.0 }
0x1a3b   :  { %4471 = vadd.xlane.f32.xlu0 %v4470_v63 }
0x1a3d   :  { %4468 = vadd.xlane.f32.xlu1 %v4467_v25 }
0x1a3f   :  { %4477 = vadd.xlane.f32.xlu0 %v4476_v34 }
0x1a41   :  { %4474 = vadd.xlane.f32.xlu1 %v4473_v35 }
0x1a75   :  { %v4385_v44 = vpop.xlane.xlu1 %4384 }
0x1a76   :  { %v4423_v18 = vsub.f32 %v11032_v49, %v4385_v44 }
0x1a77   :  { %v4388_v13 = vpop.xlane.xlu0 %4387 }
0x1a78   :  { %v4443_v36 = vmul.f32 1.442695, %v4423_v18  ;;  %v4424_v4 = vsub.f32 %v11035_v42, %v4388_v13 }
0x1a7a   :  { %9343 = vpow2.f32 %v4443_v36  ;;  %v4445_v41 = vmul.f32 1.442695, %v4424_v4 }
0x1a7c   :  { %9345 = vpow2.f32 %v4445_v41 }
0x1a7d   :  { %v4391_v20 = vpop.xlane.xlu1 %4390 }
0x1a7e   :  { %v4425_v55 = vsub.f32 %v11042_v23, %v4391_v20 }
0x1a7f   :  { %v4394_v27 = vpop.xlane.xlu0 %4393 }
0x1a80   :  { %v4447_v61 = vmul.f32 1.442695, %v4425_v55  ;;  %v4426_v33 = vsub.f32 %v11048_v48, %v4394_v27 }
0x1a81   :  { %v4397_v40 = vpop.xlane.xlu1 %4396 }
0x1a82   :  { %9347 = vpow2.f32 %v4447_v61  ;;  %v4449_v17 = vmul.f32 1.442695, %v4426_v33  ;;  %v4427_v59 = vsub.f32 %v11045_v57, %v4397_v40 }
0x1a83   :  { %v4400_v49 = vpop.xlane.xlu0 %4399 }
0x1a84   :  { %v11126_v29 = vpop.eup %9343  ;;  %9349 = vpow2.f32 %v4449_v17  ;;  %v4451_v42 = vmul.f32 1.442695, %v4427_v59  ;;  %v4428_v5 = vsub.f32 %v11053_v46, %v4400_v49 }
0x1a85   :  { %v4403_v53 = vpop.xlane.xlu1 %4402  ;;  %v4479_v23 = vsel %vm450_vm7, %v11126_v29, 0.0 }
0x1a86   :  { %v11131_v39 = vpop.eup %9345  ;;  %9351 = vpow2.f32 %v4451_v42  ;;  %v4453_v48 = vmul.f32 1.442695, %v4428_v5  ;;  %v4429_v54 = vsub.f32 %v11060_v45, %v4403_v53  ;;  %4480 = vadd.xlane.f32.xlu1 %v4479_v23 }
0x1a87   :  { %v4406_v24 = vpop.xlane.xlu0 %4405  ;;  %v4482_v57 = vsel %vm450_vm7, %v11131_v39, 0.0 }
0x1a88   :  { %9353 = vpow2.f32 %v4453_v48  ;;  %v4455_v62 = vmul.f32 1.442695, %v4429_v54  ;;  %v4430_v10 = vsub.f32 %v11068_v50, %v4406_v24  ;;  %4483 = vadd.xlane.f32.xlu0 %v4482_v57 }
0x1a89   :  { %v4409_v46 = vpop.xlane.xlu1 %4408 }
0x1a8a   :  { %9355 = vpow2.f32 %v4455_v62  ;;  %v4457_v19 = vmul.f32 1.442695, %v4430_v10  ;;  %v4431_v56 = vsub.f32 %v11065_v47, %v4409_v46 }
0x1a8b   :  { %v4412_v58 = vpop.xlane.xlu0 %4411 }
0x1a8c   :  { %v11138_v1 = vpop.eup %9347  ;;  %9357 = vpow2.f32 %v4457_v19  ;;  %v4459_v45 = vmul.f32 1.442695, %v4431_v56  ;;  %v4432_v51 = vsub.f32 %v11073_v3, %v4412_v58 }
0x1a8d   :  { %v4415_v22 = vpop.xlane.xlu1 %4414  ;;  %v4485_v28 = vsel %vm450_vm7, %v11138_v1, 0.0 }
0x1a8e   :  { %v11143_v6 = vpop.eup %9349  ;;  %9359 = vpow2.f32 %v4459_v45  ;;  %v4461_v50 = vmul.f32 1.442695, %v4432_v51  ;;  %v4433_v30 = vsub.f32 %v11080_v26, %v4415_v22  ;;  %4486 = vadd.xlane.f32.xlu1 %v4485_v28 }
0x1a8f   :  { %v4418_v12 = vpop.xlane.xlu0 %4417  ;;  %v4488_v47 = vsel %vm450_vm7, %v11143_v6, 0.0 }
0x1a90   :  { %v11148_v63 = vpop.eup %9351  ;;  %9361 = vpow2.f32 %v4461_v50  ;;  %v4463_v25 = vmul.f32 1.442695, %v4433_v30  ;;  %v4434_v3 = vsub.f32 %v11085_v43, %v4418_v12  ;;  %4489 = vadd.xlane.f32.xlu0 %v4488_v47 }
0x1a91   :  { %v4491_v34 = vsel %vm450_vm7, %v11148_v63, 0.0  ;;  %v4650_v59 = vpop.permute.xlu1 %4649 }
0x1a92   :  { %v11153_v35 = vpop.eup %9353  ;;  %9363 = vpow2.f32 %v4463_v25  ;;  %v4465_v44 = vmul.f32 1.442695, %v4434_v3  ;;  %4492 = vadd.xlane.f32.xlu1 %v4491_v34 }
0x1a93   :  { %v4603_v26 = vpop.permute.xlu0 %4602  ;;  %v4494_v18 = vsel %vm450_vm7, %v11153_v35, 0.0 }
0x1a94   :  { %v11157_v13 = vpop.eup %9355  ;;  %9365 = vpow2.f32 %v4465_v44  ;;  %4495 = vadd.xlane.f32.xlu0 %v4494_v18  ;;  %8486 = vmatpush3.bf16.msra.mxu0 %v4603_v26 }
0x1a95   :  { %v4497_v43 = vsel %vm450_vm7, %v11157_v13, 0.0  ;;  %8497 = vmatprep.subr.bf16.mxu0 %v9523_v8  ;;  %v4697_v49 = vpop.permute.xlu1 %4696 }
0x1a96   :  { %v11162_v36 = vpop.eup %9357  ;;  %4498 = vadd.xlane.f32.xlu1 %v4497_v43 }
0x1a97   :  { %v4500_v4 = vsel %vm450_vm7, %v11162_v36, 0.0  ;;  %v4744_v42 = vpop.permute.xlu0 %4743 }
0x1a98   :  { %v11166_v41 = vpop.eup %9359  ;;  %4501 = vadd.xlane.f32.xlu0 %v4500_v4 }
0x1a99   :  { %v4503_v20 = vsel %vm450_vm7, %v11166_v41, 0.0  ;;  %v11186_v5 = vpop.permute.xlu1 %4790 }
0x1a9a   :  { %v11170_v55 = vpop.eup %9361  ;;  %4504 = vadd.xlane.f32.xlu1 %v4503_v20 }
0x1a9b   :  { %v4506_v27 = vsel %vm450_vm7, %v11170_v55, 0.0 }
0x1a9c   :  { %v11174_v61 = vpop.eup %9363  ;;  %4507 = vadd.xlane.f32.xlu0 %v4506_v27 }
0x1a9d   :  { %v4509_v33 = vsel %vm450_vm7, %v11174_v61, 0.0 }
0x1a9e   :  { %v11178_v40 = vpop.eup %9365  ;;  %4510 = vadd.xlane.f32.xlu1 %v4509_v33 }
0x1a9f   :  { %v4512_v17 = vsel %vm450_vm7, %v11178_v40, 0.0 }
0x1aa0   :  { %4513 = vadd.xlane.f32.xlu0 %v4512_v17 }
0x1aaf   :  { %4884 = vrot.lane.b32.xlu1 %v10954_v11, %s12053_s24 }
0x1ab6   :  { %4837 = vrot.lane.b32.xlu0 %v10952_v16, %s12053_s24 }
0x1ac8   :  { %v4472_v53 = vpop.xlane.xlu0 %4471 }
0x1ac9   :  { %9367 = vrcp.f32 %v4472_v53 }
0x1aca   :  { %v4469_v23 = vpop.xlane.xlu1 %4468 }
0x1acb   :  { %9369 = vrcp.f32 %v4469_v23 }
0x1acc   :  { %v4478_v48 = vpop.xlane.xlu0 %4477 }
0x1acd   :  { %9371 = vrcp.f32 %v4478_v48 }
0x1ace   :  { %v4475_v54 = vpop.xlane.xlu1 %4474 }
0x1acf   :  { %9373 = vrcp.f32 %v4475_v54 }
0x1ad3   :  { %v9368_v24 = vpop.eup %9367 }
0x1ad4   :  { %v4532_v11 = vmul.f32 %v9368_v24, %v11105_v14 }
0x1ad5   :  { %v9370_v57 = vpop.eup %9369 }
0x1ad6   :  { %v4531_v62 = vmul.f32 %v9370_v57, %v11107_v37 }
0x1ad7   :  { %v9372_v16 = vpop.eup %9371 }
0x1ad8   :  { %v4547_v10 = vpack.c.bf16 %v4532_v11, %v4531_v62  ;;  %v4534_v19 = vmul.f32 %v9372_v16, %v11111_v31 }
0x1ad9   :  { %v9374_v46 = vpop.eup %9373 }
0x1ada   :  { %v4533_v56 = vmul.f32 %v9374_v46, %v11115_v52  ;;  %8482 = vmatmul.mubr.msk.bf16.vlgmr.msra.gmra.mrb[100].mxu1 %vm450_vm7, %v4547_v10 }
0x1adb   :  { %8492 = vmatpush3.bf16.msra.mxu1 %v4650_v59  ;;  %8493 = vmatprep.mubr.msk.bf16.mxu1 %vm9524_vm5, %v9523_v8 }
0x1adc   :  { %v4548_v58 = vpack.c.bf16 %v4534_v19, %v4533_v56  ;;  %8503 = vmatprep.subr.bf16.mxu1 %v9523_v8 }
0x1ade   :  { %8488 = vmatmul.mubr.msk.bf16.vlgmr.msra.gmra.mrb[128].mxu0 %vm450_vm7, %v4548_v58 }
0x1adf   :  { %8498 = vmatpush3.bf16.msra.mxu0 %v4697_v49  ;;  %8499 = vmatprep.mubr.msk.bf16.mxu0 %vm9524_vm5, %v9523_v8 }
0x1ae0   :  { %8509 = vmatprep.subr.bf16.mxu0 %v9523_v8 }
0x1b13   :  { %v4481_v14 = vpop.xlane.xlu1 %4480 }
0x1b14   :  { %9375 = vrcp.f32 %v4481_v14 }
0x1b15   :  { %v4484_v37 = vpop.xlane.xlu0 %4483 }
0x1b16   :  { %9377 = vrcp.f32 %v4484_v37 }
0x1b1b   :  { %v4487_v31 = vpop.xlane.xlu1 %4486 }
0x1b1c   :  { %9379 = vrcp.f32 %v4487_v31 }
0x1b1d   :  { %v4490_v52 = vpop.xlane.xlu0 %4489 }
0x1b1e   :  { %v9376_v45 = vpop.eup %9375  ;;  %9381 = vrcp.f32 %v4490_v52  ;;  %v9087_v52 = vld [vmem:[%s12033_s6 + $0x40] sm:$0xff]  }
0x1b1f   :  { %v4493_v51 = vpop.xlane.xlu1 %4492  ;;  %v4535_v28 = vmul.f32 %v9376_v45, %v11126_v29 }
0x1b20   :  { %v9378_v22 = vpop.eup %9377  ;;  %9383 = vrcp.f32 %v4493_v51  ;;  %v9088_v51 = vld [vmem:[%s12033_s6 + $0x48] sm:$0xff]  }
0x1b21   :  { %v4536_v50 = vmul.f32 %v9378_v22, %v11131_v39  ;;  %v4496_v30 = vpop.xlane.xlu0 %4495 }
0x1b22   :  { %9385 = vrcp.f32 %v4496_v30 }
0x1b23   :  { %v4499_v12 = vpop.xlane.xlu1 %4498  ;;  %v4549_v47 = vpack.c.bf16 %v4536_v50, %v4535_v28 }
0x1b24   :  { %9387 = vrcp.f32 %v4499_v12 }
0x1b25   :  { %8494 = vmatmul.mubr.msk.bf16.vlgmr.msra.gmra.mrb[104].mxu1 %vm450_vm7, %v4549_v47  ;;  %v4502_v25 = vpop.xlane.xlu0 %4501  ;;  %v9089_v47 = vld [vmem:[%s12033_s6 + $0x50] sm:$0xff]  }
0x1b26   :  { %v9380_v3 = vpop.eup %9379  ;;  %8504 = vmatpush3.bf16.msra.mxu1 %v4744_v42  ;;  %9389 = vrcp.f32 %v4502_v25  ;;  %8505 = vmatprep.mubr.msk.bf16.mxu1 %vm9524_vm5, %v9523_v8 }
0x1b27   :  { %v4505_v34 = vpop.xlane.xlu1 %4504  ;;  %8515 = vmatprep.subr.bf16.mxu1 %v9523_v8  ;;  %v4537_v39 = vmul.f32 %v9380_v3, %v11138_v1 }
0x1b28   :  { %v9382_v29 = vpop.eup %9381  ;;  %9391 = vrcp.f32 %v4505_v34 }
0x1b29   :  { %v4538_v44 = vmul.f32 %v9382_v29, %v11143_v6  ;;  %v4508_v26 = vpop.xlane.xlu0 %4507 }
0x1b2a   :  { %v9384_v18 = vpop.eup %9383  ;;  %9393 = vrcp.f32 %v4508_v26 }
0x1b2b   :  { %v4511_v43 = vpop.xlane.xlu1 %4510  ;;  %v4550_v4 = vpack.c.bf16 %v4538_v44, %v4537_v39  ;;  %v4539_v27 = vmul.f32 %v9384_v18, %v11148_v63  ;;  %v9090_v44 = vld [vmem:[%s12033_s6 + $0x58] sm:$0xff]  }
0x1b2c   :  { %v9386_v20 = vpop.eup %9385  ;;  %9395 = vrcp.f32 %v4511_v43 }
0x1b2d   :  { %v4540_v33 = vmul.f32 %v9386_v20, %v11153_v35  ;;  %8500 = vmatmul.mubr.msk.bf16.vlgmr.msra.gmra.mrb[132].mxu0 %vm450_vm7, %v4550_v4  ;;  %v4514_v17 = vpop.xlane.xlu0 %4513 }
0x1b2e   :  { %v9388_v59 = vpop.eup %9387  ;;  %8510 = vmatpush3.bf16.msra.mxu0 %v11186_v5  ;;  %9397 = vrcp.f32 %v4514_v17  ;;  %8511 = vmatprep.mubr.msk.bf16.mxu0 %vm9524_vm5, %v9523_v8 }
0x1b2f   :  { %v4551_v1 = vpack.c.bf16 %v4540_v33, %v4539_v27  ;;  %8521 = vmatprep.subr.bf16.mxu0 %v9523_v8  ;;  %v4541_v49 = vmul.f32 %v9388_v59, %v11157_v13  ;;  %v4885_v54 = vpop.permute.xlu1 %4884 }
0x1b30   :  { %v9390_v6 = vpop.eup %9389 }
0x1b31   :  { %v4542_v63 = vmul.f32 %v9390_v6, %v11162_v36  ;;  %8506 = vmatmul.mubr.msk.bf16.vlgmr.msra.gmra.mrb[108].mxu1 %vm450_vm7, %v4551_v1  ;;  %v4838_v35 = vpop.permute.xlu0 %4837 }
0x1b32   :  { %v9392_v42 = vpop.eup %9391  ;;  %8516 = vmatpush3.bf16.msra.mxu1 %v4838_v35  ;;  %8517 = vmatprep.mubr.msk.bf16.mxu1 %vm9524_vm5, %v9523_v8 }
0x1b33   :  { %v4552_v5 = vpack.c.bf16 %v4542_v63, %v4541_v49  ;;  %v4543_v23 = vmul.f32 %v9392_v42, %v11166_v41  ;;  %8527 = vmatprep.subr.bf16.mxu1 %v9087_v52 }
0x1b34   :  { %v9394_v53 = vpop.eup %9393 }
0x1b35   :  { %v4544_v48 = vmul.f32 %v9394_v53, %v11170_v55  ;;  %8512 = vmatmul.mubr.msk.bf16.vlgmr.msra.gmra.mrb[136].mxu0 %vm450_vm7, %v4552_v5 }
0x1b36   :  { %v9396_v13 = vpop.eup %9395  ;;  %8522 = vmatpush3.bf16.msra.mxu0 %v4885_v54  ;;  %8523 = vmatprep.mubr.msk.bf16.mxu0 %vm9524_vm5, %v9523_v8 }
0x1b37   :  { %v4553_v36 = vpack.c.bf16 %v4544_v48, %v4543_v23  ;;  %v4545_v57 = vmul.f32 %v9396_v13, %v11174_v61 }
0x1b38   :  { %v9398_v24 = vpop.eup %9397 }
0x1b39   :  { %v4546_v11 = vmul.f32 %v9398_v24, %v11178_v40  ;;  %8518 = vmatmul.mubr.msk.bf16.vlgmr.msra.gmra.mrb[112].mxu1 %vm450_vm7, %v4553_v36 }
0x1b3a   :  { %8528 = vmatpush3.bf16.msra.mxu1 %v9087_v52 }
0x1b3b   :  { %v4554_v62 = vpack.c.bf16 %v4546_v11, %v4545_v57  ;;  %8529 = vmatprep.subr.bf16.mxu1 %v9088_v51 }
0x1b3d   :  { %8524 = vmatmul.mubr.msk.bf16.vlgmr.msra.gmra.mrb[140].mxu0 %vm450_vm7, %v4554_v62 }
0x1b3e   :  { %5266 = vmatprep.mubr.bf16.mxu0 %v9519_v2  ;;  %8530 = vmatpush3.bf16.msra.mxu1 %v9088_v51 }
0x1b3f   :  { %8531 = vmatprep.subr.bf16.mxu1 %v9089_v47 }
0x1b42   :  { %8532 = vmatpush3.bf16.msra.mxu1 %v9089_v47 }
0x1b43   :  { %8533 = vmatprep.subr.bf16.mxu1 %v9090_v44 }
0x1b46   :  { %8534 = vmatpush3.bf16.msra.mxu1 %v9090_v44 }
0x1bad   :  { %v11230_v41 = vpop.f32.mrb[100].mxu1 }
0x1bae   :  { %v8483_v55 = vpop.f32.mrb[101].mxu1 }
0x1baf   :  { %v11232_v16 = vpop.f32.mrb[102].mxu1 }
0x1bb0   :  { %v8484_v10 = vpop.f32.mrb[103].mxu1 }
0x1bb1   :  { %v11234_v46 = vpop.f32.mrb[128].mxu0 }
0x1bb2   :  { %v8489_v19 = vpop.f32.mrb[129].mxu0 }
0x1bb3   :  { %v11236_v56 = vpop.f32.mrb[130].mxu0 }
0x1bb4   :  { %v8490_v61 = vpop.f32.mrb[131].mxu0 }
0x1bf8   :  { %v4689_v40 = vpop.f32.mrb[104].mxu1 }
0x1bf9   :  { %v8495_v58 = vpop.f32.mrb[105].mxu1 }
0x1bfa   :  { %v4692_v14 = vpop.f32.mrb[106].mxu1 }
0x1bfb   :  { %v8887_v37 = vpack.i.bf16 %v4692_v14, %v4689_v40  ;;  %v8496_v31 = vpop.f32.mrb[107].mxu1 }
0x1bfd   :  { %8888 = vrot.lane.b32.xlu0 %v8887_v37, %s12062_s26 }
0x1c00   :  { %v4736_v45 = vpop.f32.mrb[132].mxu0 }
0x1c01   :  { %v8501_v22 = vpop.f32.mrb[133].mxu0 }
0x1c02   :  { %v4739_v28 = vpop.f32.mrb[134].mxu0 }
0x1c03   :  { %v8892_v50 = vpack.i.bf16 %v4739_v28, %v4736_v45  ;;  %v8502_v30 = vpop.f32.mrb[135].mxu0 }
0x1c04   :  { %v4783_v12 = vpop.f32.mrb[108].mxu1 }
0x1c05   :  { %8893 = vrot.lane.b32.xlu1 %v8892_v50, %s12062_s26  ;;  %v8507_v25 = vpop.f32.mrb[109].mxu1 }
0x1c06   :  { %v4786_v3 = vpop.f32.mrb[110].mxu1 }
0x1c07   :  { %v8897_v34 = vpack.i.bf16 %v4786_v3, %v4783_v12  ;;  %v8508_v29 = vpop.f32.mrb[111].mxu1 }
0x1c08   :  { %v4830_v39 = vpop.f32.mrb[136].mxu0 }
0x1c09   :  { %8898 = vrot.lane.b32.xlu0 %v8897_v34, %s9522_s29  ;;  %v8513_v26 = vpop.f32.mrb[137].mxu0 }
0x1c0a   :  { %v4833_v18 = vpop.f32.mrb[138].mxu0 }
0x1c0b   :  { %v8902_v43 = vpack.i.bf16 %v4833_v18, %v4830_v39  ;;  %v8514_v4 = vpop.f32.mrb[139].mxu0 }
0x1c0c   :  { %v4877_v20 = vpop.f32.mrb[112].mxu1 }
0x1c0d   :  { %8903 = vrot.lane.b32.xlu1 %v8902_v43, %s9522_s29  ;;  %v8519_v27 = vpop.f32.mrb[113].mxu1 }
0x1c0e   :  { %v4880_v33 = vpop.f32.mrb[114].mxu1 }
0x1c0f   :  { %v8907_v17 = vpack.i.bf16 %v4880_v33, %v4877_v20  ;;  %v8520_v59 = vpop.f32.mrb[115].mxu1 }
0x1c10   :  { %v4924_v1 = vpop.f32.mrb[140].mxu0 }
0x1c11   :  { %v8525_v6 = vpop.f32.mrb[141].mxu0  ;;  %8908 = vrot.lane.b32.xlu0 %v8907_v17, %s12061_s0 }
0x1c12   :  { %v4927_v49 = vpop.f32.mrb[142].mxu0 }
0x1c13   :  { %v8912_v63 = vpack.i.bf16 %v4927_v49, %v4924_v1  ;;  %v8526_v35 = vpop.f32.mrb[143].mxu0 }
0x1c15   :  { %8913 = vrot.lane.b32.xlu1 %v8912_v63, %s12061_s0 }
0x1c6f   :  { %v8889_v42 = vpop.permute.xlu0 %8888 }
0x1c70   :  { %v8891_v23 = vunpack.i.h.bf16 %v8889_v42  ;;  %v8890_v48 = vunpack.i.l.bf16 %v8889_v42 }
0x1c72   :  { %v4980_v24 = vsel %vm450_vm7, %v11232_v16, %v8891_v23  ;;  %v4979_v57 = vsel %vm450_vm7, %v11230_v41, %v8890_v48 }
0x1c77   :  { %v8894_v5 = vpop.permute.xlu1 %8893 }
0x1c78   :  { %v8896_v62 = vunpack.i.h.bf16 %v8894_v5  ;;  %v8895_v55 = vunpack.i.l.bf16 %v8894_v5 }
0x1c7a   :  { %v4982_v41 = vsel %vm450_vm7, %v11236_v56, %v8896_v62  ;;  %v4981_v45 = vsel %vm450_vm7, %v11234_v46, %v8895_v55  ;;  %v7686_v46 = vld [vmem:[%s12034_s7 + $0x2] ss:$0 sm:$0xff]  ;;  %v9093_v62 = vld [vmem:[%s12037_s10 + $0x84] ss:$8 sps:$4 sm:$0xff]  }
0x1c7b   :  { %v8899_v53 = vpop.permute.xlu0 %8898  ;;  %v9091_v55 = vld [vmem:[%s12037_s10 + $0x80] ss:$8 sps:$4 sm:$0xff]   ;;  %5234 = vmatprep.subr.bf16.mxu0 %v9093_v62  ;;  %v9117_v62 = vld [vmem:[%s12039_s12 + $0x178] sm:$0xff]  }
0x1c7c   :  { %v8901_v54 = vunpack.i.h.bf16 %v8899_v53  ;;  %v8900_v13 = vunpack.i.l.bf16 %v8899_v53  ;;  %5235 = vmatpush1.bf16.msra.mxu0 %v9091_v55  ;;  %v9118_v55 = vld [vmem:[%s12039_s12 + $0x138] sm:$0xff]  }
0x1c7e   :  { %v4983_v61 = vsel %vm418_vm6, %v4979_v57, %v8900_v13  ;;  %v4984_v40 = vsel %vm418_vm6, %v4980_v24, %v8901_v54 }
0x1c7f   :  { %v8904_v36 = vpop.permute.xlu1 %8903 }
0x1c80   :  { %v8906_v58 = vunpack.i.h.bf16 %v8904_v36  ;;  %v8905_v14 = vunpack.i.l.bf16 %v8904_v36 }
0x1c82   :  { %v4986_v28 = vsel %vm418_vm6, %v4982_v41, %v8906_v58  ;;  %v4985_v50 = vsel %vm418_vm6, %v4981_v45, %v8905_v14  ;;  %v9102_v58 = vld [vmem:[%s12037_s10 + $0xb4] ss:$8 sps:$4 sm:$0xff]   ;;  %v9100_v14 = vld [vmem:[%s12037_s10 + $0xb0] ss:$8 sps:$4 sm:$0xff]  }
0x1c83   :  { %v8909_v11 = vpop.permute.xlu0 %8908  ;;  %v9107_v41 = vld [vmem:[%s12039_s12 + $0x150] sm:$0xff]  }
0x1c84   :  { %v8911_v10 = vunpack.i.h.bf16 %v8909_v11  ;;  %v8910_v19 = vunpack.i.l.bf16 %v8909_v11  ;;  %v9108_v45 = vld [vmem:[%s12039_s12 + $0x110] sm:$0xff]  }
0x1c86   :  { %v4987_v37 = vsel %vm1464_vm10, %v4983_v61, %v8910_v19  ;;  %v4988_v31 = vsel %vm1464_vm10, %v4984_v40, %v8911_v10  ;;  %v9096_v10 = vld [vmem:[%s12037_s10 + $0x94] ss:$8 sps:$4 sm:$0xff]   ;;  %v9094_v19 = vld [vmem:[%s12037_s10 + $0x90] ss:$8 sps:$4 sm:$0xff]   ;;  %v9099_v61 = vld [vmem:[%s12037_s10 + $0xa4] ss:$8 sps:$4 sm:$0xff]  }
0x1c87   :  { %v4991_v52 = vpack.c.bf16 %v4988_v31, %v4987_v37  ;;  %v8914_v16 = vpop.permute.xlu1 %8913  ;;  %5236 = vmatprep.subr.bf16.mxu0 %v9096_v10  ;;  %v9097_v40 = vld [vmem:[%s12037_s10 + $0xa0] ss:$8 sps:$4 sm:$0xff]  }
0x1c88   :  { %v8916_v51 = vunpack.i.h.bf16 %v8914_v16  ;;  %v8915_v22 = vunpack.i.l.bf16 %v8914_v16  ;;  %5237 = vmatpush1.bf16.msra.mxu0 %v9094_v19  ;;  %v9103_v37 = vld [vmem:[%s12039_s12 + $0x140] sm:$0xff]   ;;  %v9106_v16 = vld [vmem:[%s12039_s12 + $0x108] sm:$0xff]  }
0x1c89   :  { %8535 = vmatprep.mubr.msk.bf16.mxu1 %vm203_vm4, %v4991_v52  ;;  %5238 = vmatprep.subr.bf16.mxu0 %v9099_v61  ;;  %v9104_v31 = vld [vmem:[%s12039_s12 + $0x100] sm:$0xff]   ;;  %v9105_v52 = vld [vmem:[%s12039_s12 + $0x148] sm:$0xff]  }
0x1c8a   :  { %v4990_v30 = vsel %vm1464_vm10, %v4986_v28, %v8916_v51  ;;  %v4989_v12 = vsel %vm1464_vm10, %v4985_v50, %v8915_v22  ;;  %8077 = vmatprep.subr.bf16.mxu1 %v9103_v37  ;;  %v9109_v51 = vld [vmem:[%s12039_s12 + $0x158] sm:$0xff]   ;;  %v9111_v28 = vld [vmem:[%s12039_s12 + $0x160] sm:$0xff]  }
0x1c8b   :  { %v4992_v47 = vpack.c.bf16 %v4990_v30, %v4989_v12  ;;  %v9110_v22 = vld [vmem:[%s12039_s12 + $0x118] sm:$0xff]   ;;  %v9112_v50 = vld [vmem:[%s12039_s12 + $0x120] sm:$0xff]   ;;  %v9113_v30 = vld [vmem:[%s12039_s12 + $0x168] sm:$0xff]  }
0x1c8c   :  { %5239 = vmatpush1.bf16.msra.mxu0 %v9097_v40  ;;  %v7697_v10 = vld [vmem:[%s12038_s11 + $0x2] ss:$4 sm:$0x3] }
0x1c8d   :  { %8536 = vmatmul.mubr.msk.bf16.vlgmr.msra.gmra.mrb[116].mxu1 %vm203_vm4, %v4992_v47  ;;  %5240 = vmatprep.subr.bf16.mxu0 %v9102_v58  ;;  %v5181_v19 = vrot.slane %v7697_v10, %v10271_v32  ;;  %v5185_v61 = vrot.slane %v7697_v10, %v10277_v0 }
0x1c8e   :  { %8078 = vmatpush3.bf16.msra.mxu1 %v9104_v31 }
0x1c8f   :  { %8079 = vmatprep.subr.bf16.mxu1 %v9105_v52 }
0x1c90   :  { %5241 = vmatpush1.bf16.msra.mxu0 %v9100_v14 }
0x1c92   :  { %8080 = vmatpush3.bf16.msra.mxu1 %v9106_v16 }
0x1c93   :  { %8081 = vmatprep.subr.bf16.mxu1 %v9107_v41 }
0x1c96   :  { %8082 = vmatpush3.bf16.msra.mxu1 %v9108_v45 }
0x1c97   :  { %8083 = vmatprep.subr.bf16.mxu1 %v9109_v51 }
0x1c9a   :  { %8084 = vmatpush3.bf16.msra.mxu1 %v9110_v22 }
0x1c9b   :  { %8085 = vmatprep.subr.bf16.mxu1 %v9111_v28 }
0x1c9e   :  { %8086 = vmatpush3.bf16.msra.mxu1 %v9112_v50 }
0x1c9f   :  { %8087 = vmatprep.subr.bf16.mxu1 %v9113_v30 }
0x1d60   :  { %v8537_v25 = vpop.f32.mrb[116].mxu1 }
0x1d61   :  { %v5066_v56 = vpop.f32.mrb[117].mxu1  ;;  %v5083_v3 = vadd.f32 %v8537_v25, %v10863_v60 }
0x1d62   :  { %v5081_v34 = vadd.f32 %v5066_v56, %v10853_v15  ;;  %v8538_v29 = vpop.f32.mrb[118].mxu1 }
0x1d63   :  { %v5069_v39 = vpop.f32.mrb[119].mxu1  ;;  %v11282_v18 = vadd.f32 %v7686_v46, %v5083_v3  ;;  %v5084_v43 = vadd.f32 %v8538_v29, %v10866_v21 }
0x1d64   :  { %v11279_v44 = vadd.f32 %v7686_v46, %v5081_v34  ;;  %v5082_v26 = vadd.f32 %v5069_v39, %v10856_v38 }
0x1d65   :  { %v11291_v15 = vadd.f32 %v7686_v46, %v5084_v43  ;;  %v5102_v27 = vsel %vm203_vm4, %v11282_v18, 0.0 }
0x1d66   :  { %v11285_v4 = vadd.f32 %v7686_v46, %v5082_v26  ;;  %v5096_v20 = vsel %vm203_vm4, %v11279_v44, 0.0 }
0x1d67   :  { %5097 = vadd.xlane.f32.xlu0 %v5096_v20  ;;  %v5105_v38 = vsel %vm203_vm4, %v11291_v15, 0.0 }
0x1d68   :  { %v5099_v60 = vsel %vm203_vm4, %v11285_v4, 0.0 }
0x1d69   :  { %5100 = vadd.xlane.f32.xlu1 %v5099_v60 }
0x1d6b   :  { %5103 = vadd.xlane.f32.xlu0 %v5102_v27  ;;  %v7687_v27 = vld [vmem:[%s12035_s8 + $0x2] ss:$0 sm:$0xff] }
0x1d6f   :  { %5106 = vadd.xlane.f32.xlu0 %v5105_v38 }
0x1df4   :  { %v5098_v21 = vpop.xlane.xlu0 %5097 }
0x1df5   :  { %v5108_v33 = vmul.f32 0.015625, %v5098_v21 }
0x1df6   :  { %v5101_v17 = vpop.xlane.xlu1 %5100 }
0x1df7   :  { %v11298_v59 = vsub.f32 %v11279_v44, %v5108_v33  ;;  %v5109_v1 = vmul.f32 0.015625, %v5101_v17 }
0x1df8   :  { %v5104_v6 = vpop.xlane.xlu0 %5103 }
0x1df9   :  { %v11301_v49 = vsub.f32 %v11285_v4, %v5109_v1  ;;  %v5110_v63 = vmul.f32 0.015625, %v5104_v6  ;;  %v5116_v35 = vmul.f32 %v11298_v59, %v11298_v59  ;;  %v7688_v6 = vld [vmem:[%s12036_s9 + $0x2] ss:$0 sm:$0xff] }
0x1dfb   :  { %v11306_v42 = vsub.f32 %v11282_v18, %v5110_v63  ;;  %v5120_v5 = vsel %vm203_vm4, %v5116_v35, 0.0  ;;  %v5117_v53 = vmul.f32 %v11301_v49, %v11301_v49 }
0x1dfc   :  { %v5107_v23 = vpop.xlane.xlu0 %5106  ;;  %5121 = vadd.xlane.f32.xlu1 %v5120_v5 }
0x1dfd   :  { %v5111_v48 = vmul.f32 0.015625, %v5107_v23  ;;  %v5123_v54 = vsel %vm203_vm4, %v5117_v53, 0.0  ;;  %v5118_v13 = vmul.f32 %v11306_v42, %v11306_v42 }
0x1dfe   :  { %5124 = vadd.xlane.f32.xlu0 %v5123_v54 }
0x1dff   :  { %v11315_v36 = vsub.f32 %v11291_v15, %v5111_v48  ;;  %v5126_v24 = vsel %vm203_vm4, %v5118_v13, 0.0 }
0x1e00   :  { %5127 = vadd.xlane.f32.xlu1 %v5126_v24 }
0x1e01   :  { %v5119_v57 = vmul.f32 %v11315_v36, %v11315_v36 }
0x1e03   :  { %v5129_v11 = vsel %vm203_vm4, %v5119_v57, 0.0 }
0x1e04   :  { %5130 = vadd.xlane.f32.xlu0 %v5129_v11  ;;  %v9116_v11 = vld [vmem:[%s12039_s12 + $0x130] sm:$0xff]  }
0x1e89   :  { %v5122_v12 = vpop.xlane.xlu1 %5121 }
0x1e8a   :  { %v5132_v47 = vmul.f32 0.015625, %v5122_v12 }
0x1e8b   :  { %v5125_v25 = vpop.xlane.xlu0 %5124 }
0x1e8c   :  { %v5136_v46 = vadd.f32 1e-05, %v5132_v47  ;;  %v5133_v56 = vmul.f32 0.015625, %v5125_v25 }
0x1e8d   :  { %v5128_v3 = vpop.xlane.xlu1 %5127 }
0x1e8e   :  { %9399 = vrsqrt.f32 %v5136_v46  ;;  %v5137_v34 = vadd.f32 1e-05, %v5133_v56  ;;  %v5134_v29 = vmul.f32 0.015625, %v5128_v3 }
0x1e90   :  { %9401 = vrsqrt.f32 %v5137_v34  ;;  %v5138_v39 = vadd.f32 1e-05, %v5134_v29 }
0x1e91   :  { %v5131_v26 = vpop.xlane.xlu0 %5130 }
0x1e92   :  { %9403 = vrsqrt.f32 %v5138_v39  ;;  %v5135_v43 = vmul.f32 0.015625, %v5131_v26 }
0x1e94   :  { %v5139_v20 = vadd.f32 1e-05, %v5135_v43 }
0x1e96   :  { %9405 = vrsqrt.f32 %v5139_v20 }
0x1e98   :  { %v9400_v60 = vpop.eup %9399 }
0x1e99   :  { %v5144_v38 = vmul.f32 %v9400_v60, %v11298_v59 }
0x1e9a   :  { %v9402_v21 = vpop.eup %9401 }
0x1e9b   :  { %v5152_v33 = vmul.f32 %v7687_v27, %v5144_v38  ;;  %v5145_v17 = vmul.f32 %v9402_v21, %v11301_v49 }
0x1e9c   :  { %v9404_v1 = vpop.eup %9403 }
0x1e9d   :  { %v5153_v63 = vmul.f32 %v7687_v27, %v5145_v17  ;;  %v5146_v35 = vmul.f32 %v9404_v1, %v11306_v42  ;;  %v5160_v5 = vadd.f32 %v7688_v6, %v5152_v33  ;;  %v9114_v42 = vld [vmem:[%s12039_s12 + $0x128] sm:$0xff]   ;;  %v7756_v1 = vld [vmem:[%s12040_s13 + $0x2] ss:$0 sm:$0xff] }
0x1e9e   :  { %8088 = vmatpush3.bf16.msra.mxu1 %v9114_v42 }
0x1e9f   :  { %v5161_v53 = vadd.f32 %v7688_v6, %v5153_v63  ;;  %v5154_v59 = vmul.f32 %v7687_v27, %v5146_v35 }
0x1ea0   :  { %v9406_v23 = vpop.eup %9405 }
0x1ea1   :  { %v5147_v48 = vmul.f32 %v9406_v23, %v11315_v36  ;;  %v5164_v54 = vpack.c.bf16 %v5161_v53, %v5160_v5  ;;  %v5162_v24 = vadd.f32 %v7688_v6, %v5154_v59  ;;  %v9115_v36 = vld [vmem:[%s12039_s12 + $0x170] sm:$0xff]  }
0x1ea2   :  { %8089 = vmatprep.subr.bf16.mxu1 %v9115_v36 }
0x1ea3   :  { %7706 = vmatmul.mubr.msk.bf16.vlgmr.msra.gmra.mrb[144].mxu0 %vm203_vm4, %v5164_v54  ;;  %v5155_v13 = vmul.f32 %v7687_v27, %v5147_v48  ;;  %8090 = vmatpush3.bf16.msra.mxu1 %v9116_v11 }
0x1ea4   :  { %5276 = vmatprep.mubr.bf16.mxu0 %v9519_v2  ;;  %8091 = vmatprep.subr.bf16.mxu1 %v9117_v62 }
0x1ea5   :  { %v5163_v49 = vadd.f32 %v7688_v6, %v5155_v13 }
0x1ea7   :  { %v5165_v57 = vpack.c.bf16 %v5163_v49, %v5162_v24  ;;  %8092 = vmatpush3.bf16.msra.mxu1 %v9118_v55 }
0x1ea8   :  { %8551 = vmatprep.subr.bf16.mxu1 %v9523_v8 }
0x1eab   :  { %7707 = vmatmul.mubr.msk.bf16.gmra.mrb[148].mxu0 %vm203_vm4, %v5165_v57 }
0x1eac   :  { %5649 = vmatprep.mubr.bf16.mxu0 %v9519_v2 }
0x1f76   :  { %v5268_v40 = vpop.f32.mrb[144].mxu0 }
0x1f77   :  { %v5269_v58 = vadd.f32 %v5268_v40, %v5181_v19  ;;  %v5270_v14 = vpop.f32.mrb[145].mxu0 }
0x1f78   :  { %v5271_v37 = vadd.f32 %v5270_v14, %v5185_v61  ;;  %v5272_v31 = vpop.f32.mrb[146].mxu0 }
0x1f79   :  { %v5273_v52 = vadd.f32 %v5272_v31, %v5181_v19  ;;  %v5274_v16 = vpop.f32.mrb[147].mxu0  ;;  %v5287_v45 = vmax.f32 %v5269_v58, 0.0 }
0x1f7a   :  { %v5275_v41 = vadd.f32 %v5274_v16, %v5185_v61  ;;  %v5288_v22 = vmax.f32 %v5271_v37, 0.0 }
0x1f7b   :  { %v5289_v51 = vmax.f32 %v5273_v52, 0.0 }
0x1f7c   :  { %v5290_v28 = vmax.f32 %v5275_v41, 0.0 }
0x1f7d   :  { %v5295_v50 = vpack.c.bf16 %v5289_v51, %v5287_v45 }
0x1f7e   :  { %v5296_v30 = vpack.c.bf16 %v5290_v28, %v5288_v22  ;;  %v5278_v12 = vpop.f32.mrb[148].mxu0 }
0x1f7f   :  { %v5279_v47 = vadd.f32 %v5278_v12, %v5181_v19  ;;  %v5280_v25 = vpop.f32.mrb[149].mxu0 }
0x1f80   :  { %v5281_v46 = vadd.f32 %v5280_v25, %v5185_v61  ;;  %v5282_v56 = vpop.f32.mrb[150].mxu0  ;;  %5460 = vmatprep.mubr.bf16.mxu1 %v5296_v30  ;;  %v9119_v25 = vld [vmem:[%s12032_s5 + $0xc0] ss:$8 sps:$4 sm:$0xff]  }
0x1f81   :  { %v5283_v3 = vadd.f32 %v5282_v56, %v5181_v19  ;;  %v5284_v34 = vpop.f32.mrb[151].mxu0  ;;  %5461 = vmatmul.mubr.bf16.vlgmr.msra.gmra.mrb[120].mxu1 %v5295_v50  ;;  %v5291_v39 = vmax.f32 %v5279_v47, 0.0  ;;  %v9121_v47 = vld [vmem:[%s12032_s5 + $0xc4] ss:$8 sps:$4 sm:$0xff]   ;;  %v9122_v56 = vld [vmem:[%s12032_s5 + $0xd0] ss:$8 sps:$4 sm:$0xff]  }
0x1f82   :  { %v5285_v29 = vadd.f32 %v5284_v34, %v5185_v61  ;;  %v5292_v43 = vmax.f32 %v5281_v46, 0.0  ;;  %5617 = vmatprep.subr.bf16.mxu0 %v9121_v47  ;;  %v9124_v46 = vld [vmem:[%s12032_s5 + $0xd4] ss:$8 sps:$4 sm:$0xff]   ;;  %v9125_v34 = vld [vmem:[%s12032_s5 + $0xe0] ss:$8 sps:$4 sm:$0xff]  }
0x1f83   :  { %v5293_v26 = vmax.f32 %v5283_v3, 0.0  ;;  %5618 = vmatpush1.bf16.msra.mxu0 %v9119_v25  ;;  %v9127_v3 = vld [vmem:[%s12032_s5 + $0xe4] ss:$8 sps:$4 sm:$0xff]  }
0x1f84   :  { %v5294_v20 = vmax.f32 %v5285_v29, 0.0  ;;  %5619 = vmatprep.subr.bf16.mxu0 %v9124_v46  ;;  %v9130_v29 = vld [vmem:[%s12032_s5 + $0xf4] ss:$8 sps:$4 sm:$0xff]  }
0x1f85   :  { %v5297_v60 = vpack.c.bf16 %v5293_v26, %v5291_v39  ;;  %v9128_v39 = vld [vmem:[%s12032_s5 + $0xf0] ss:$8 sps:$4 sm:$0xff]  }
0x1f86   :  { %v5298_v27 = vpack.c.bf16 %v5294_v20, %v5292_v43 }
0x1f87   :  { %5620 = vmatpush1.bf16.msra.mxu0 %v9122_v56 }
0x1f88   :  { %5468 = vmatprep.mubr.bf16.mxu1 %v5298_v27  ;;  %5621 = vmatprep.subr.bf16.mxu0 %v9127_v3 }
0x1f89   :  { %5469 = vmatmul.mubr.bf16.gmra.mrb[124].mxu1 %v5297_v60 }
0x1f8a   :  { %8553 = vmatprep.mubr.msk.bf16.mxu1 %vm9524_vm5, %v9523_v8 }
0x1f8b   :  { %5622 = vmatpush1.bf16.msra.mxu0 %v9125_v34 }
0x1f8c   :  { %5623 = vmatprep.subr.bf16.mxu0 %v9130_v29 }
0x1f8f   :  { %5624 = vmatpush1.bf16.msra.mxu0 %v9128_v39 }
0x1f90   :  { %8539 = vmatprep.subr.bf16.mxu0 %v9523_v8 }
0x2054   :  { %v8093_v38 = vpop.f32.mrb[120].mxu1 }
0x2055   :  { %v8094_v21 = vpop.f32.mrb[121].mxu1 }
0x2056   :  { %v8095_v33 = vadd.f32 %v8094_v21, %v8093_v38  ;;  %v8096_v17 = vpop.f32.mrb[122].mxu1 }
0x2057   :  { %v8097_v6 = vpop.f32.mrb[123].mxu1 }
0x2058   :  { %v5477_v63 = vadd.f32 %v8095_v33, %v11279_v44  ;;  %v8098_v35 = vadd.f32 %v8097_v6, %v8096_v17 }
0x205a   :  { %v11419_v5 = vadd.f32 %v7756_v1, %v5477_v63  ;;  %v5478_v53 = vadd.f32 %v8098_v35, %v11285_v4 }
0x205c   :  { %v11422_v23 = vadd.f32 %v7756_v1, %v5478_v53  ;;  %v8099_v48 = vpop.f32.mrb[124].mxu1  ;;  %v5492_v54 = vsel %vm203_vm4, %v11419_v5, 0.0  ;;  %v7757_v53 = vld [vmem:[%s12030_s3 + $0x3] ss:$0 sm:$0xff]  ;;  %s12063_s3 = smov 96  }
0x205d   :  { %5493 = vadd.xlane.f32.xlu1 %v5492_v54  ;;  %v8100_v59 = vpop.f32.mrb[125].mxu1 }
0x205e   :  { %v8101_v13 = vadd.f32 %v8100_v59, %v8099_v48  ;;  %v8102_v49 = vpop.f32.mrb[126].mxu1  ;;  %v5495_v24 = vsel %vm203_vm4, %v11422_v23, 0.0 }
0x205f   :  { %5496 = vadd.xlane.f32.xlu0 %v5495_v24  ;;  %v8103_v44 = vpop.f32.mrb[127].mxu1 }
0x2060   :  { %v5479_v57 = vadd.f32 %v8101_v13, %v11282_v18  ;;  %v8104_v42 = vadd.f32 %v8103_v44, %v8102_v49  ;;  %v7758_v49 = vld [vmem:[%s12031_s4 + $0x3] ss:$0 sm:$0xff] }
0x2062   :  { %v11429_v36 = vadd.f32 %v7756_v1, %v5479_v57  ;;  %v5480_v4 = vadd.f32 %v8104_v42, %v11291_v15 }
0x2064   :  { %v11432_v11 = vadd.f32 %v7756_v1, %v5480_v4  ;;  %v5498_v62 = vsel %vm203_vm4, %v11429_v36, 0.0 }
0x2065   :  { %5499 = vadd.xlane.f32.xlu1 %v5498_v62 }
0x2066   :  { %v5501_v55 = vsel %vm203_vm4, %v11432_v11, 0.0 }
0x2067   :  { %5502 = vadd.xlane.f32.xlu0 %v5501_v55 }
0x20ea   :  { %v5494_v10 = vpop.xlane.xlu1 %5493 }
0x20eb   :  { %v5504_v19 = vmul.f32 0.015625, %v5494_v10 }
0x20ec   :  { %v5497_v61 = vpop.xlane.xlu0 %5496 }
0x20ed   :  { %v5508_v18 = vsub.f32 %v11419_v5, %v5504_v19  ;;  %v5505_v40 = vmul.f32 0.015625, %v5497_v61 }
0x20ef   :  { %v5509_v58 = vsub.f32 %v11422_v23, %v5505_v40  ;;  %v5512_v14 = vmul.f32 %v5508_v18, %v5508_v18 }
0x20f1   :  { %v5516_v15 = vsel %vm203_vm4, %v5512_v14, 0.0  ;;  %v5513_v37 = vmul.f32 %v5509_v58, %v5509_v58 }
0x20f2   :  { %5517 = vadd.xlane.f32.xlu1 %v5516_v15  ;;  %v5500_v31 = vpop.xlane.xlu1 %5499 }
0x20f3   :  { %v5506_v52 = vmul.f32 0.015625, %v5500_v31  ;;  %v5519_v16 = vsel %vm203_vm4, %v5513_v37, 0.0 }
0x20f4   :  { %5520 = vadd.xlane.f32.xlu0 %v5519_v16  ;;  %v5503_v41 = vpop.xlane.xlu0 %5502 }
0x20f5   :  { %v5510_v45 = vsub.f32 %v11429_v36, %v5506_v52  ;;  %v5507_v51 = vmul.f32 0.015625, %v5503_v41 }
0x20f7   :  { %v5511_v22 = vsub.f32 %v11432_v11, %v5507_v51  ;;  %v5514_v28 = vmul.f32 %v5510_v45, %v5510_v45 }
0x20f9   :  { %v5522_v50 = vsel %vm203_vm4, %v5514_v28, 0.0  ;;  %v5515_v30 = vmul.f32 %v5511_v22, %v5511_v22 }
0x20fa   :  { %5523 = vadd.xlane.f32.xlu1 %v5522_v50 }
0x20fb   :  { %v5525_v12 = vsel %vm203_vm4, %v5515_v30, 0.0 }
0x20fc   :  { %5526 = vadd.xlane.f32.xlu0 %v5525_v12 }
0x217f   :  { %v5518_v26 = vpop.xlane.xlu1 %5517 }
0x2180   :  { %v5528_v43 = vmul.f32 0.015625, %v5518_v26 }
0x2181   :  { %v5521_v20 = vpop.xlane.xlu0 %5520 }
0x2182   :  { %v5532_v60 = vadd.f32 1e-05, %v5528_v43  ;;  %v5529_v27 = vmul.f32 0.015625, %v5521_v20 }
0x2184   :  { %9407 = vrsqrt.f32 %v5532_v60  ;;  %v5533_v38 = vadd.f32 1e-05, %v5529_v27 }
0x2186   :  { %9409 = vrsqrt.f32 %v5533_v38 }
0x2187   :  { %v5524_v21 = vpop.xlane.xlu1 %5523 }
0x2188   :  { %v5530_v33 = vmul.f32 0.015625, %v5524_v21 }
0x2189   :  { %v5527_v17 = vpop.xlane.xlu0 %5526 }
0x218a   :  { %v5534_v1 = vadd.f32 1e-05, %v5530_v33  ;;  %v5531_v6 = vmul.f32 0.015625, %v5527_v17 }
0x218c   :  { %9411 = vrsqrt.f32 %v5534_v1  ;;  %v5535_v63 = vadd.f32 1e-05, %v5531_v6 }
0x218e   :  { %v9408_v35 = vpop.eup %9407  ;;  %9413 = vrsqrt.f32 %v5535_v63 }
0x218f   :  { %v5540_v48 = vmul.f32 %v9408_v35, %v5508_v18 }
0x2190   :  { %v9410_v54 = vpop.eup %9409 }
0x2191   :  { %v5548_v59 = vmul.f32 %v7757_v53, %v5540_v48  ;;  %v5541_v13 = vmul.f32 %v9410_v54, %v5509_v58 }
0x2193   :  { %v5549_v24 = vmul.f32 %v7757_v53, %v5541_v13  ;;  %v5556_v44 = vadd.f32 %v7758_v49, %v5548_v59 }
0x2195   :  { %v5557_v57 = vadd.f32 %v7758_v49, %v5549_v24 }
0x2196   :  { %v9412_v42 = vpop.eup %9411 }
0x2197   :  { %v5542_v4 = vmul.f32 %v9412_v42, %v5510_v45  ;;  %v5560_v62 = vpack.c.bf16 %v5557_v57, %v5556_v44 }
0x2198   :  { %v9414_v55 = vpop.eup %9413 }
0x2199   :  { %v5543_v10 = vmul.f32 %v9414_v55, %v5511_v22  ;;  %7775 = vmatmul.mubr.msk.bf16.vlgmr.msra.gmra.mrb[152].mxu0 %vm203_vm4, %v5560_v62  ;;  %v5550_v19 = vmul.f32 %v7757_v53, %v5542_v4 }
0x219a   :  { %5659 = vmatprep.mubr.bf16.mxu0 %v9519_v2 }
0x219b   :  { %v5551_v61 = vmul.f32 %v7757_v53, %v5543_v10  ;;  %v5558_v18 = vadd.f32 %v7758_v49, %v5550_v19 }
0x219d   :  { %v5559_v40 = vadd.f32 %v7758_v49, %v5551_v61 }
0x219f   :  { %v5561_v58 = vpack.c.bf16 %v5559_v40, %v5558_v18 }
0x21a1   :  { %7776 = vmatmul.mubr.msk.bf16.gmra.mrb[156].mxu0 %vm203_vm4, %v5561_v58 }
0x21a2   :  { %8541 = vmatprep.mubr.msk.bf16.mxu0 %vm9524_vm5, %v9523_v8 }
0x226c   :  { %v5651_v14 = vpop.f32.mrb[152].mxu0 }
0x226d   :  { %v5653_v15 = vpop.f32.mrb[153].mxu0 }
0x226e   :  { %v8927_v37 = vpack.i.bf16 %v5653_v15, %v5651_v14  ;;  %v5655_v31 = vpop.f32.mrb[154].mxu0 }
0x226f   :  { %v8917_v52 = vpack.i.bf16 %v5655_v31, %v5651_v14  ;;  %v11482_v16 = vpack.c.bf16 %v5655_v31, %v5651_v14  ;;  %v5657_v41 = vpop.f32.mrb[155].mxu0 }
0x2270   :  { %v8947_v45 = vpack.i.bf16 %v5657_v41, %v5653_v15  ;;  %v8932_v51 = vpack.i.bf16 %v5657_v41, %v5655_v31 }
0x2271   :  { %8918 = vrot.lane.b32.xlu1 %v8917_v52, %s9521_s2 }
0x2274   :  { %v5661_v22 = vpop.f32.mrb[156].mxu0 }
0x2275   :  { %8928 = vrot.lane.b32.xlu1 %v8927_v37, %s9522_s29  ;;  %v5663_v28 = vpop.f32.mrb[157].mxu0 }
0x2276   :  { %v8937_v50 = vpack.i.bf16 %v5663_v28, %v5661_v22  ;;  %v5665_v30 = vpop.f32.mrb[158].mxu0 }
0x2277   :  { %v8922_v12 = vpack.i.bf16 %v5665_v30, %v5661_v22  ;;  %v11486_v47 = vpack.c.bf16 %v5665_v30, %v5661_v22  ;;  %v5667_v25 = vpop.f32.mrb[159].mxu0 }
0x2278   :  { %v8952_v46 = vpack.i.bf16 %v5667_v25, %v5663_v28  ;;  %v8942_v56 = vpack.i.bf16 %v5667_v25, %v5665_v30 }
0x2279   :  { %8933 = vrot.lane.b32.xlu1 %v8932_v51, %s9522_s29  ;;  %8923 = vrot.lane.b32.xlu0 %v8922_v12, %s9521_s2 }
0x227d   :  { %8938 = vrot.lane.b32.xlu0 %v8937_v50, %s9522_s29  ;;  %8943 = vrot.lane.b32.xlu1 %v8942_v56, %s9522_s29 }
0x2281   :  { %8948 = vrot.lane.b32.xlu0 %v8947_v45, %s9525_s23  ;;  %8953 = vrot.lane.b32.xlu1 %v8952_v46, %s9525_s23 }
0x2285   :  { %5735 = vrot.lane.b32.xlu0 %v11482_v16, %s9525_s23  ;;  %5785 = vrot.lane.b32.xlu1 %v11486_v47, %s9525_s23 }
0x22e3   :  { %v8919_v3 = vpop.permute.xlu1 %8918 }
0x22e4   :  { %v8921_v34 = vunpack.i.h.bf16 %v8919_v3  ;;  %v8920_v29 = vunpack.i.l.bf16 %v8919_v3 }
0x22e6   :  { %v11498_v39 = vpack.c.bf16 %v8921_v34, %v8920_v29 }
0x22e7   :  { %v8929_v26 = vpop.permute.xlu1 %8928 }
0x22e8   :  { %5835 = vrot.lane.b32.xlu0 %v11498_v39, %s9525_s23  ;;  %v8931_v43 = vunpack.i.h.bf16 %v8929_v26  ;;  %v8930_v20 = vunpack.i.l.bf16 %v8929_v26 }
0x22ea   :  { %v5706_v1 = vsel %vm418_vm6, %v8930_v20, %v8931_v43 }
0x22eb   :  { %v8924_v60 = vpop.permute.xlu0 %8923  ;;  %v8934_v27 = vpop.permute.xlu1 %8933 }
0x22ec   :  { %v8926_v38 = vunpack.i.h.bf16 %v8924_v60  ;;  %v8925_v21 = vunpack.i.l.bf16 %v8924_v60  ;;  %v8936_v33 = vunpack.i.h.bf16 %v8934_v27  ;;  %v8935_v17 = vunpack.i.l.bf16 %v8934_v27 }
0x22ee   :  { %v11503_v6 = vpack.c.bf16 %v8926_v38, %v8925_v21  ;;  %v5707_v63 = vsel %vm418_vm6, %v8935_v17, %v8936_v33 }
0x22ef   :  { %v11506_v35 = vpack.c.bf16 %v5707_v63, %v5706_v1  ;;  %v8939_v53 = vpop.permute.xlu0 %8938  ;;  %v8944_v48 = vpop.permute.xlu1 %8943 }
0x22f0   :  { %v8941_v54 = vunpack.i.h.bf16 %v8939_v53  ;;  %v8940_v59 = vunpack.i.l.bf16 %v8939_v53  ;;  %v8946_v13 = vunpack.i.h.bf16 %v8944_v48  ;;  %v8945_v49 = vunpack.i.l.bf16 %v8944_v48  ;;  %5885 = vrot.lane.b32.xlu1 %v11503_v6, %s9525_s23 }
0x22f1   :  { %5935 = vrot.lane.b32.xlu0 %v11506_v35, %s9525_s23 }
0x22f2   :  { %v5708_v24 = vsel %vm418_vm6, %v8940_v59, %v8941_v54  ;;  %v5709_v44 = vsel %vm418_vm6, %v8945_v49, %v8946_v13 }
0x22f3   :  { %v11514_v57 = vpack.c.bf16 %v5709_v44, %v5708_v24  ;;  %v8949_v42 = vpop.permute.xlu0 %8948  ;;  %v8954_v4 = vpop.permute.xlu1 %8953 }
0x22f4   :  { %v8951_v62 = vunpack.i.h.bf16 %v8949_v42  ;;  %v8950_v55 = vunpack.i.l.bf16 %v8949_v42  ;;  %v8956_v10 = vunpack.i.h.bf16 %v8954_v4  ;;  %v8955_v19 = vunpack.i.l.bf16 %v8954_v4 }
0x22f5   :  { %5985 = vrot.lane.b32.xlu1 %v11514_v57, %s9525_s23 }
0x22f6   :  { %v11518_v61 = vpack.c.bf16 %v8951_v62, %v8950_v55  ;;  %v11520_v18 = vpack.c.bf16 %v8956_v10, %v8955_v19 }
0x22f7   :  { %v5736_v40 = vpop.permute.xlu0 %5735  ;;  %v5786_v14 = vpop.permute.xlu1 %5785 }
0x22f8   :  { %v5741_v58 = vsel %vm450_vm7, %v5736_v40, 0  ;;  %6035 = vrot.lane.b32.xlu0 %v11518_v61, %s9525_s23  ;;  %v5791_v15 = vsel %vm450_vm7, %v5786_v14, 0 }
0x22f9   :  { %8540 = vmatpush3.bf16.xpose.msra.mxu0 %v5741_v58  ;;  %6085 = vrot.lane.b32.xlu1 %v11520_v18, %s9525_s23 }
0x22fa   :  { %8545 = vmatprep.subr.bf16.mxu0 %v9523_v8 }
0x22fd   :  { %6318 = vrot.lane.b32.xlu1 %v11482_v16, %s12063_s3 }
0x2300   :  { %8542 = vmatmul.mubr.msk.bf16.vlgmr.msra.gmra.mrb[160].mxu0 %vm450_vm7, %v11482_v16 }
0x2301   :  { %8546 = vmatpush3.bf16.xpose.msra.mxu0 %v5791_v15  ;;  %8547 = vmatprep.mubr.msk.bf16.mxu0 %vm9524_vm5, %v9523_v8 }
0x2302   :  { %8557 = vmatprep.subr.bf16.mxu0 %v9523_v8 }
0x2308   :  { %8548 = vmatmul.mubr.msk.bf16.vlgmr.msra.gmra.mrb[164].mxu0 %vm450_vm7, %v11486_v47 }
0x2309   :  { %8559 = vmatprep.mubr.msk.bf16.mxu0 %vm9524_vm5, %v9523_v8 }
0x235a   :  { %v5836_v37 = vpop.permute.xlu0 %5835 }
0x235b   :  { %v5841_v31 = vsel %vm450_vm7, %v5836_v37, 0 }
0x235c   :  { %8552 = vmatpush3.bf16.xpose.msra.mxu1 %v5841_v31 }
0x235d   :  { %8563 = vmatprep.subr.bf16.mxu1 %v9523_v8 }
0x2362   :  { %v5886_v52 = vpop.permute.xlu1 %5885 }
0x2363   :  { %v5891_v16 = vsel %vm450_vm7, %v5886_v52, 0  ;;  %8554 = vmatmul.mubr.msk.bf16.vlgmr.msra.gmra.mrb[128].mxu1 %vm450_vm7, %v11498_v39  ;;  %v5936_v41 = vpop.permute.xlu0 %5935 }
0x2364   :  { %v5941_v45 = vsel %vm450_vm7, %v5936_v41, 0  ;;  %8558 = vmatpush3.bf16.xpose.msra.mxu0 %v5891_v16  ;;  %8565 = vmatprep.mubr.msk.bf16.mxu1 %vm9524_vm5, %v9523_v8 }
0x2365   :  { %8564 = vmatpush3.bf16.xpose.msra.mxu1 %v5941_v45  ;;  %8569 = vmatprep.subr.bf16.mxu0 %v9523_v8 }
0x2366   :  { %8575 = vmatprep.subr.bf16.mxu1 %v9523_v8 }
0x2367   :  { %v5986_v51 = vpop.permute.xlu1 %5985 }
0x2368   :  { %v5991_v28 = vsel %vm450_vm7, %v5986_v51, 0 }
0x236a   :  { %v6036_v22 = vpop.permute.xlu0 %6035 }
0x236b   :  { %v6041_v50 = vsel %vm450_vm7, %v6036_v22, 0  ;;  %8560 = vmatmul.mubr.msk.bf16.vlgmr.msra.gmra.mrb[168].mxu0 %vm450_vm7, %v11503_v6  ;;  %v6086_v30 = vpop.permute.xlu1 %6085 }
0x236c   :  { %8566 = vmatmul.mubr.msk.bf16.vlgmr.msra.gmra.mrb[132].mxu1 %vm450_vm7, %v11506_v35  ;;  %8570 = vmatpush3.bf16.xpose.msra.mxu0 %v5991_v28  ;;  %v6091_v12 = vsel %vm450_vm7, %v6086_v30, 0 }
0x236d   :  { %8576 = vmatpush3.bf16.xpose.msra.mxu1 %v6041_v50  ;;  %8571 = vmatprep.mubr.msk.bf16.mxu0 %vm9524_vm5, %v9523_v8 }
0x236e   :  { %8577 = vmatprep.mubr.msk.bf16.mxu1 %vm9524_vm5, %v9523_v8  ;;  %8581 = vmatprep.subr.bf16.mxu0 %v9523_v8 }
0x236f   :  { %8587 = vmatprep.subr.bf16.mxu1 %v9523_v8  ;;  %v6319_v25 = vpop.permute.xlu1 %6318 }
0x2373   :  { %8572 = vmatmul.mubr.msk.bf16.vlgmr.msra.gmra.mrb[172].mxu0 %vm450_vm7, %v11514_v57 }
0x2374   :  { %8578 = vmatmul.mubr.msk.bf16.vlgmr.msra.gmra.mrb[136].mxu1 %vm450_vm7, %v11518_v61  ;;  %8582 = vmatpush3.bf16.xpose.msra.mxu0 %v6091_v12 }
0x2375   :  { %8588 = vmatpush3.bf16.msra.mxu1 %v6319_v25  ;;  %8583 = vmatprep.mubr.msk.bf16.mxu0 %vm9524_vm5, %v9523_v8 }
0x2376   :  { %8593 = vmatprep.subr.bf16.mxu0 %v9523_v8  ;;  %8589 = vmatprep.mubr.msk.bf16.mxu1 %vm9524_vm5, %v9523_v8 }
0x2377   :  { %8599 = vmatprep.subr.bf16.mxu1 %v9523_v8 }
0x237b   :  { %8584 = vmatmul.mubr.msk.bf16.vlgmr.msra.gmra.mrb[176].mxu0 %vm450_vm7, %v11520_v18 }
0x237c   :  { %8595 = vmatprep.mubr.msk.bf16.mxu0 %vm9524_vm5, %v9523_v8 }
0x23d3   :  { %v5777_v46 = vpop.f32.mrb[160].mxu0 }
0x23d4   :  { %v11578_v56 = vadd.f32 %v5777_v46, %v9869_v7  ;;  %v8543_v3 = vpop.f32.mrb[161].mxu0 }
0x23d5   :  { %v5780_v34 = vpop.f32.mrb[162].mxu0 }
0x23d6   :  { %v11581_v29 = vadd.f32 %v5780_v34, %v9871_v9  ;;  %v8544_v26 = vpop.f32.mrb[163].mxu0  ;;  %v6134_v43 = vsel %vm450_vm7, %v11578_v56, -inf }
0x23d7   :  { %6135 = vmax.xlane.f32.xlu0 %v6134_v43 }
0x23d8   :  { %v6137_v20 = vsel %vm450_vm7, %v11581_v29, -inf }
0x23d9   :  { %6138 = vmax.xlane.f32.xlu1 %v6137_v20 }
0x23db   :  { %v5827_v60 = vpop.f32.mrb[164].mxu0 }
0x23dc   :  { %v11588_v27 = vadd.f32 %v5827_v60, %v9869_v7  ;;  %v8549_v38 = vpop.f32.mrb[165].mxu0 }
0x23dd   :  { %v5830_v21 = vpop.f32.mrb[166].mxu0 }
0x23de   :  { %v11591_v33 = vadd.f32 %v5830_v21, %v9871_v9  ;;  %v8550_v17 = vpop.f32.mrb[167].mxu0  ;;  %v6140_v1 = vsel %vm450_vm7, %v11588_v27, -inf }
0x23df   :  { %6141 = vmax.xlane.f32.xlu0 %v6140_v1 }
0x23e0   :  { %v6143_v63 = vsel %vm450_vm7, %v11591_v33, -inf }
0x23e3   :  { %6144 = vmax.xlane.f32.xlu0 %v6143_v63 }
0x2436   :  { %v5877_v53 = vpop.f32.mrb[128].mxu1 }
0x2437   :  { %v11598_v48 = vadd.f32 %v5877_v53, %v9869_v7  ;;  %v8555_v54 = vpop.f32.mrb[129].mxu1 }
0x2438   :  { %v5880_v59 = vpop.f32.mrb[130].mxu1 }
0x2439   :  { %v11601_v13 = vadd.f32 %v5880_v59, %v9871_v9  ;;  %v8556_v49 = vpop.f32.mrb[131].mxu1  ;;  %v6146_v24 = vsel %vm450_vm7, %v11598_v48, -inf }
0x243a   :  { %6147 = vmax.xlane.f32.xlu1 %v6146_v24 }
0x243b   :  { %v6149_v44 = vsel %vm450_vm7, %v11601_v13, -inf }
0x243c   :  { %6150 = vmax.xlane.f32.xlu0 %v6149_v44 }
0x243e   :  { %v5927_v42 = vpop.f32.mrb[168].mxu0 }
0x243f   :  { %v11608_v4 = vadd.f32 %v5927_v42, %v9869_v7  ;;  %v8561_v62 = vpop.f32.mrb[169].mxu0  ;;  %v5977_v55 = vpop.f32.mrb[132].mxu1 }
0x2440   :  { %v5930_v10 = vpop.f32.mrb[170].mxu0  ;;  %v8567_v19 = vpop.f32.mrb[133].mxu1  ;;  %v11611_v40 = vadd.f32 %v5977_v55, %v9869_v7 }
0x2441   :  { %v11614_v58 = vadd.f32 %v5930_v10, %v9871_v9  ;;  %v8562_v14 = vpop.f32.mrb[171].mxu0  ;;  %v5980_v15 = vpop.f32.mrb[134].mxu1  ;;  %v6152_v37 = vsel %vm450_vm7, %v11608_v4, -inf }
0x2442   :  { %6153 = vmax.xlane.f32.xlu1 %v6152_v37  ;;  %v8568_v31 = vpop.f32.mrb[135].mxu1  ;;  %v11619_v52 = vadd.f32 %v5980_v15, %v9871_v9  ;;  %v6158_v41 = vsel %vm450_vm7, %v11611_v40, -inf }
0x2443   :  { %v6155_v16 = vsel %vm450_vm7, %v11614_v58, -inf }
0x2444   :  { %6156 = vmax.xlane.f32.xlu0 %v6155_v16  ;;  %v6161_v50 = vsel %vm450_vm7, %v11619_v52, -inf }
0x2446   :  { %v6027_v45 = vpop.f32.mrb[172].mxu0  ;;  %6159 = vmax.xlane.f32.xlu1 %v6158_v41 }
0x2447   :  { %v11626_v51 = vadd.f32 %v6027_v45, %v9869_v7  ;;  %v8573_v22 = vpop.f32.mrb[173].mxu0  ;;  %v6077_v28 = vpop.f32.mrb[136].mxu1 }
0x2448   :  { %v6030_v30 = vpop.f32.mrb[174].mxu0  ;;  %6162 = vmax.xlane.f32.xlu0 %v6161_v50  ;;  %v8579_v12 = vpop.f32.mrb[137].mxu1  ;;  %v11631_v25 = vadd.f32 %v6077_v28, %v9869_v7 }
0x2449   :  { %v11634_v46 = vadd.f32 %v6030_v30, %v9871_v9  ;;  %v8574_v3 = vpop.f32.mrb[175].mxu0  ;;  %v6080_v34 = vpop.f32.mrb[138].mxu1  ;;  %v6164_v26 = vsel %vm450_vm7, %v11626_v51, -inf }
0x244a   :  { %6165 = vmax.xlane.f32.xlu1 %v6164_v26  ;;  %v8580_v43 = vpop.f32.mrb[139].mxu1  ;;  %v11639_v20 = vadd.f32 %v6080_v34, %v9871_v9  ;;  %v6170_v38 = vsel %vm450_vm7, %v11631_v25, -inf }
0x244b   :  { %v6167_v60 = vsel %vm450_vm7, %v11634_v46, -inf }
0x244c   :  { %6168 = vmax.xlane.f32.xlu0 %v6167_v60  ;;  %v6173_v63 = vsel %vm450_vm7, %v11639_v20, -inf }
0x244e   :  { %v6127_v21 = vpop.f32.mrb[176].mxu0  ;;  %6171 = vmax.xlane.f32.xlu1 %v6170_v38 }
0x244f   :  { %v11646_v17 = vadd.f32 %v6127_v21, %v9869_v7  ;;  %v8585_v1 = vpop.f32.mrb[177].mxu0 }
0x2450   :  { %v6130_v53 = vpop.f32.mrb[178].mxu0  ;;  %6174 = vmax.xlane.f32.xlu0 %v6173_v63 }
0x2451   :  { %v11651_v54 = vadd.f32 %v6130_v53, %v9871_v9  ;;  %v8586_v59 = vpop.f32.mrb[179].mxu0  ;;  %v6176_v49 = vsel %vm450_vm7, %v11646_v17, -inf }
0x2452   :  { %6177 = vmax.xlane.f32.xlu1 %v6176_v49 }
0x2453   :  { %v6179_v24 = vsel %vm450_vm7, %v11651_v54, -inf }
0x2454   :  { %6180 = vmax.xlane.f32.xlu0 %v6179_v24 }
0x2463   :  { %6412 = vrot.lane.b32.xlu1 %v11498_v39, %s12063_s3 }
0x2464   :  { %v6136_v7 = vpop.xlane.xlu0 %6135 }
0x2465   :  { %v6182_v39 = vsub.f32 %v11578_v56, %v6136_v7 }
0x2466   :  { %v6139_v44 = vpop.xlane.xlu1 %6138 }
0x2467   :  { %6459 = vrot.lane.b32.xlu1 %v11503_v6, %s12063_s3  ;;  %v6183_v42 = vsub.f32 %v11581_v29, %v6139_v44  ;;  %v6198_v10 = vmul.f32 1.442695, %v6182_v39 }
0x2469   :  { %v6200_v55 = vmul.f32 1.442695, %v6183_v42 }
0x246a   :  { %6365 = vrot.lane.b32.xlu0 %v11486_v47, %s12063_s3 }
0x246b   :  { %6553 = vrot.lane.b32.xlu1 %v11514_v57, %s12063_s3  ;;  %9415 = vpow2.f32 %v6200_v55 }
0x246c   :  { %v6142_v9 = vpop.xlane.xlu0 %6141  ;;  %9417 = vpow2.f32 %v6198_v10 }
0x246d   :  { %v6184_v47 = vsub.f32 %v11588_v27, %v6142_v9 }
0x246e   :  { %6506 = vrot.lane.b32.xlu0 %v11506_v35, %s12063_s3 }
0x246f   :  { %v6202_v57 = vmul.f32 1.442695, %v6184_v47 }
0x2470   :  { %v6145_v62 = vpop.xlane.xlu0 %6144 }
0x2471   :  { %v6185_v6 = vsub.f32 %v11591_v33, %v6145_v62 }
0x2473   :  { %v6204_v19 = vmul.f32 1.442695, %v6185_v6 }
0x2475   :  { %9419 = vpow2.f32 %v6204_v19  ;;  %v11671_v35 = vpop.eup %9415 }
0x2476   :  { %9421 = vpow2.f32 %v6202_v57  ;;  %v11673_v14 = vpop.eup %9417  ;;  %v6233_v29 = vsel %vm450_vm7, %v11671_v35, 0.0 }
0x2477   :  { %v6230_v33 = vsel %vm450_vm7, %v11673_v14, 0.0 }
0x247f   :  { %v11677_v56 = vpop.eup %9419 }
0x2480   :  { %v11681_v27 = vpop.eup %9421  ;;  %v6239_v15 = vsel %vm450_vm7, %v11677_v56, 0.0 }
0x2481   :  { %v6236_v37 = vsel %vm450_vm7, %v11681_v27, 0.0 }
0x248d   :  { %6234 = vadd.xlane.f32.xlu0 %v6233_v29 }
0x248f   :  { %6231 = vadd.xlane.f32.xlu1 %v6230_v33 }
0x2491   :  { %6240 = vadd.xlane.f32.xlu0 %v6239_v15 }
0x2493   :  { %6237 = vadd.xlane.f32.xlu1 %v6236_v37 }
0x24c7   :  { %v6148_v31 = vpop.xlane.xlu1 %6147 }
0x24c8   :  { %v6186_v16 = vsub.f32 %v11598_v48, %v6148_v31 }
0x24c9   :  { %v6151_v41 = vpop.xlane.xlu0 %6150 }
0x24ca   :  { %v6206_v45 = vmul.f32 1.442695, %v6186_v16  ;;  %v6187_v22 = vsub.f32 %v11601_v13, %v6151_v41 }
0x24cc   :  { %9423 = vpow2.f32 %v6206_v45  ;;  %v6208_v28 = vmul.f32 1.442695, %v6187_v22 }
0x24ce   :  { %9425 = vpow2.f32 %v6208_v28 }
0x24cf   :  { %v6154_v50 = vpop.xlane.xlu1 %6153 }
0x24d0   :  { %v6188_v30 = vsub.f32 %v11608_v4, %v6154_v50 }
0x24d1   :  { %v6157_v12 = vpop.xlane.xlu0 %6156 }
0x24d2   :  { %v6210_v3 = vmul.f32 1.442695, %v6188_v30  ;;  %v6189_v34 = vsub.f32 %v11614_v58, %v6157_v12 }
0x24d3   :  { %v6160_v26 = vpop.xlane.xlu1 %6159 }
0x24d4   :  { %9427 = vpow2.f32 %v6210_v3  ;;  %v6212_v43 = vmul.f32 1.442695, %v6189_v34  ;;  %v6190_v60 = vsub.f32 %v11611_v40, %v6160_v26 }
0x24d5   :  { %v6163_v48 = vpop.xlane.xlu0 %6162 }
0x24d6   :  { %v11692_v38 = vpop.eup %9423  ;;  %9429 = vpow2.f32 %v6212_v43  ;;  %v6214_v13 = vmul.f32 1.442695, %v6190_v60  ;;  %v6191_v21 = vsub.f32 %v11619_v52, %v6163_v48 }
0x24d7   :  { %v6166_v1 = vpop.xlane.xlu1 %6165  ;;  %v6242_v4 = vsel %vm450_vm7, %v11692_v38, 0.0 }
0x24d8   :  { %v11697_v63 = vpop.eup %9425  ;;  %9431 = vpow2.f32 %v6214_v13  ;;  %v6216_v58 = vmul.f32 1.442695, %v6191_v21  ;;  %v6192_v53 = vsub.f32 %v11626_v51, %v6166_v1  ;;  %6243 = vadd.xlane.f32.xlu1 %v6242_v4 }
0x24d9   :  { %v6169_v59 = vpop.xlane.xlu0 %6168  ;;  %v6245_v40 = vsel %vm450_vm7, %v11697_v63, 0.0 }
0x24da   :  { %9433 = vpow2.f32 %v6216_v58  ;;  %v6218_v49 = vmul.f32 1.442695, %v6192_v53  ;;  %v6193_v24 = vsub.f32 %v11634_v46, %v6169_v59  ;;  %6246 = vadd.xlane.f32.xlu0 %v6245_v40 }
0x24db   :  { %v6172_v52 = vpop.xlane.xlu1 %6171 }
0x24dc   :  { %9435 = vpow2.f32 %v6218_v49  ;;  %v6220_v7 = vmul.f32 1.442695, %v6193_v24  ;;  %v6194_v9 = vsub.f32 %v11631_v25, %v6172_v52 }
0x24dd   :  { %v6175_v44 = vpop.xlane.xlu0 %6174 }
0x24de   :  { %v11704_v42 = vpop.eup %9427  ;;  %9437 = vpow2.f32 %v6220_v7  ;;  %v6222_v51 = vmul.f32 1.442695, %v6194_v9  ;;  %v6195_v62 = vsub.f32 %v11639_v20, %v6175_v44 }
0x24df   :  { %v6178_v39 = vpop.xlane.xlu1 %6177  ;;  %v6248_v55 = vsel %vm450_vm7, %v11704_v42, 0.0 }
0x24e0   :  { %v11709_v6 = vpop.eup %9429  ;;  %9439 = vpow2.f32 %v6222_v51  ;;  %v6224_v46 = vmul.f32 1.442695, %v6195_v62  ;;  %v6196_v10 = vsub.f32 %v11646_v17, %v6178_v39  ;;  %6249 = vadd.xlane.f32.xlu1 %v6248_v55 }
0x24e1   :  { %v6181_v47 = vpop.xlane.xlu0 %6180  ;;  %v6251_v25 = vsel %vm450_vm7, %v11709_v6, 0.0 }
0x24e2   :  { %v11714_v19 = vpop.eup %9431  ;;  %9441 = vpow2.f32 %v6224_v46  ;;  %v6226_v57 = vmul.f32 1.442695, %v6196_v10  ;;  %v6197_v20 = vsub.f32 %v11651_v54, %v6181_v47  ;;  %6252 = vadd.xlane.f32.xlu0 %v6251_v25 }
0x24e3   :  { %v6254_v29 = vsel %vm450_vm7, %v11714_v19, 0.0  ;;  %v6413_v26 = vpop.permute.xlu1 %6412 }
0x24e4   :  { %v11719_v33 = vpop.eup %9433  ;;  %9443 = vpow2.f32 %v6226_v57  ;;  %v6228_v15 = vmul.f32 1.442695, %v6197_v20  ;;  %6255 = vadd.xlane.f32.xlu1 %v6254_v29 }
0x24e5   :  { %v6366_v17 = vpop.permute.xlu0 %6365  ;;  %v6257_v37 = vsel %vm450_vm7, %v11719_v33, 0.0 }
0x24e6   :  { %v11723_v31 = vpop.eup %9435  ;;  %9445 = vpow2.f32 %v6228_v15  ;;  %6258 = vadd.xlane.f32.xlu0 %v6257_v37  ;;  %8594 = vmatpush3.bf16.msra.mxu0 %v6366_v17 }
0x24e7   :  { %v6260_v54 = vsel %vm450_vm7, %v11723_v31, 0.0  ;;  %8605 = vmatprep.subr.bf16.mxu0 %v9523_v8  ;;  %v6460_v43 = vpop.permute.xlu1 %6459 }
0x24e8   :  { %v11728_v16 = vpop.eup %9437  ;;  %6261 = vadd.xlane.f32.xlu1 %v6260_v54 }
0x24e9   :  { %v6263_v41 = vsel %vm450_vm7, %v11728_v16, 0.0  ;;  %v6507_v60 = vpop.permute.xlu0 %6506 }
0x24ea   :  { %v11732_v45 = vpop.eup %9439  ;;  %6264 = vadd.xlane.f32.xlu0 %v6263_v41 }
0x24eb   :  { %v6266_v22 = vsel %vm450_vm7, %v11732_v45, 0.0  ;;  %v11752_v48 = vpop.permute.xlu1 %6553 }
0x24ec   :  { %v11736_v28 = vpop.eup %9441  ;;  %6267 = vadd.xlane.f32.xlu1 %v6266_v22 }
0x24ed   :  { %v6269_v50 = vsel %vm450_vm7, %v11736_v28, 0.0 }
0x24ee   :  { %v11740_v30 = vpop.eup %9443  ;;  %6270 = vadd.xlane.f32.xlu0 %v6269_v50 }
0x24ef   :  { %v6272_v12 = vsel %vm450_vm7, %v11740_v30, 0.0 }
0x24f0   :  { %v11744_v3 = vpop.eup %9445  ;;  %6273 = vadd.xlane.f32.xlu1 %v6272_v12 }
0x24f1   :  { %v6275_v34 = vsel %vm450_vm7, %v11744_v3, 0.0 }
0x24f2   :  { %6276 = vadd.xlane.f32.xlu0 %v6275_v34 }
0x2501   :  { %6647 = vrot.lane.b32.xlu1 %v11520_v18, %s12063_s3 }
0x2508   :  { %6600 = vrot.lane.b32.xlu0 %v11518_v61, %s12063_s3 }
0x251a   :  { %v6235_v13 = vpop.xlane.xlu0 %6234 }
0x251b   :  { %9447 = vrcp.f32 %v6235_v13 }
0x251c   :  { %v6232_v21 = vpop.xlane.xlu1 %6231 }
0x251d   :  { %9449 = vrcp.f32 %v6232_v21 }
0x251e   :  { %v6241_v1 = vpop.xlane.xlu0 %6240 }
0x251f   :  { %9451 = vrcp.f32 %v6241_v1 }
0x2520   :  { %v6238_v4 = vpop.xlane.xlu1 %6237 }
0x2521   :  { %9453 = vrcp.f32 %v6238_v4 }
0x2525   :  { %v9448_v58 = vpop.eup %9447 }
0x2526   :  { %v6295_v18 = vmul.f32 %v9448_v58, %v11671_v35 }
0x2527   :  { %v9450_v53 = vpop.eup %9449 }
0x2528   :  { %v6294_v59 = vmul.f32 %v9450_v53, %v11673_v14 }
0x2529   :  { %v9452_v61 = vpop.eup %9451 }
0x252a   :  { %v6310_v40 = vpack.c.bf16 %v6295_v18, %v6294_v59  ;;  %v6297_v24 = vmul.f32 %v9452_v61, %v11677_v56 }
0x252b   :  { %v9454_v49 = vpop.eup %9453 }
0x252c   :  { %v6296_v52 = vmul.f32 %v9454_v49, %v11681_v27  ;;  %8590 = vmatmul.mubr.msk.bf16.vlgmr.msra.gmra.mrb[140].mxu1 %vm450_vm7, %v6310_v40 }
0x252d   :  { %8600 = vmatpush3.bf16.msra.mxu1 %v6413_v26  ;;  %8601 = vmatprep.mubr.msk.bf16.mxu1 %vm9524_vm5, %v9523_v8 }
0x252e   :  { %v6311_v7 = vpack.c.bf16 %v6297_v24, %v6296_v52  ;;  %8611 = vmatprep.subr.bf16.mxu1 %v9523_v8 }
0x2530   :  { %8596 = vmatmul.mubr.msk.bf16.vlgmr.msra.gmra.mrb[180].mxu0 %vm450_vm7, %v6311_v7 }
0x2531   :  { %8606 = vmatpush3.bf16.msra.mxu0 %v6460_v43  ;;  %8607 = vmatprep.mubr.msk.bf16.mxu0 %vm9524_vm5, %v9523_v8 }
0x2532   :  { %8617 = vmatprep.subr.bf16.mxu0 %v9523_v8 }
0x2565   :  { %v6244_v35 = vpop.xlane.xlu1 %6243 }
0x2566   :  { %9455 = vrcp.f32 %v6244_v35  ;;  %v9131_v35 = vld [vmem:[%s12033_s6 + $0x60] sm:$0xff]  }
0x2567   :  { %v6247_v14 = vpop.xlane.xlu0 %6246 }
0x2568   :  { %9457 = vrcp.f32 %v6247_v14 }
0x256d   :  { %v6250_v56 = vpop.xlane.xlu1 %6249 }
0x256e   :  { %9459 = vrcp.f32 %v6250_v56  ;;  %v9132_v56 = vld [vmem:[%s12033_s6 + $0x68] sm:$0xff]  }
0x256f   :  { %v6253_v27 = vpop.xlane.xlu0 %6252 }
0x2570   :  { %v9456_v9 = vpop.eup %9455  ;;  %9461 = vrcp.f32 %v6253_v27 }
0x2571   :  { %v6256_v44 = vpop.xlane.xlu1 %6255  ;;  %v6298_v62 = vmul.f32 %v9456_v9, %v11692_v38 }
0x2572   :  { %v9458_v51 = vpop.eup %9457  ;;  %9463 = vrcp.f32 %v6256_v44 }
0x2573   :  { %v6299_v39 = vmul.f32 %v9458_v51, %v11697_v63  ;;  %v6259_v55 = vpop.xlane.xlu0 %6258 }
0x2574   :  { %9465 = vrcp.f32 %v6259_v55 }
0x2575   :  { %v6262_v46 = vpop.xlane.xlu1 %6261  ;;  %v6312_v10 = vpack.c.bf16 %v6299_v39, %v6298_v62  ;;  %v9133_v39 = vld [vmem:[%s12033_s6 + $0x70] sm:$0xff]  }
0x2576   :  { %9467 = vrcp.f32 %v6262_v46 }
0x2577   :  { %8602 = vmatmul.mubr.msk.bf16.vlgmr.msra.gmra.mrb[144].mxu1 %vm450_vm7, %v6312_v10  ;;  %v6265_v47 = vpop.xlane.xlu0 %6264 }
0x2578   :  { %v9460_v25 = vpop.eup %9459  ;;  %8612 = vmatpush3.bf16.msra.mxu1 %v6507_v60  ;;  %9469 = vrcp.f32 %v6265_v47  ;;  %8613 = vmatprep.mubr.msk.bf16.mxu1 %vm9524_vm5, %v9523_v8 }
0x2579   :  { %v6268_v57 = vpop.xlane.xlu1 %6267  ;;  %8623 = vmatprep.subr.bf16.mxu1 %v9523_v8  ;;  %v6300_v63 = vmul.f32 %v9460_v25, %v11704_v42 }
0x257a   :  { %v9462_v38 = vpop.eup %9461  ;;  %9471 = vrcp.f32 %v6268_v57  ;;  %v9134_v57 = vld [vmem:[%s12033_s6 + $0x78] sm:$0xff]  }
0x257b   :  { %v6301_v20 = vmul.f32 %v9462_v38, %v11709_v6  ;;  %v6271_v29 = vpop.xlane.xlu0 %6270 }
0x257c   :  { %v9464_v15 = vpop.eup %9463  ;;  %9473 = vrcp.f32 %v6271_v29 }
0x257d   :  { %v6274_v17 = vpop.xlane.xlu1 %6273  ;;  %v6313_v37 = vpack.c.bf16 %v6301_v20, %v6300_v63  ;;  %v6302_v41 = vmul.f32 %v9464_v15, %v11714_v19 }
0x257e   :  { %v9466_v54 = vpop.eup %9465  ;;  %9475 = vrcp.f32 %v6274_v17 }
0x257f   :  { %v6303_v22 = vmul.f32 %v9466_v54, %v11719_v33  ;;  %8608 = vmatmul.mubr.msk.bf16.vlgmr.msra.gmra.mrb[184].mxu0 %vm450_vm7, %v6313_v37  ;;  %v6277_v50 = vpop.xlane.xlu0 %6276 }
0x2580   :  { %v9468_v12 = vpop.eup %9467  ;;  %8618 = vmatpush3.bf16.msra.mxu0 %v11752_v48  ;;  %9477 = vrcp.f32 %v6277_v50  ;;  %8619 = vmatprep.mubr.msk.bf16.mxu0 %vm9524_vm5, %v9523_v8 }
0x2581   :  { %v6314_v42 = vpack.c.bf16 %v6303_v22, %v6302_v41  ;;  %8629 = vmatprep.subr.bf16.mxu0 %v9523_v8  ;;  %v6304_v34 = vmul.f32 %v9468_v12, %v11723_v31  ;;  %v6648_v21 = vpop.permute.xlu1 %6647 }
0x2582   :  { %v9470_v6 = vpop.eup %9469 }
0x2583   :  { %v6305_v19 = vmul.f32 %v9470_v6, %v11728_v16  ;;  %8614 = vmatmul.mubr.msk.bf16.vlgmr.msra.gmra.mrb[148].mxu1 %vm450_vm7, %v6314_v42  ;;  %v6601_v33 = vpop.permute.xlu0 %6600 }
0x2584   :  { %v9472_v26 = vpop.eup %9471  ;;  %8624 = vmatpush3.bf16.msra.mxu1 %v6601_v33  ;;  %8625 = vmatprep.mubr.msk.bf16.mxu1 %vm9524_vm5, %v9523_v8 }
0x2585   :  { %v6315_v43 = vpack.c.bf16 %v6305_v19, %v6304_v34  ;;  %v6306_v48 = vmul.f32 %v9472_v26, %v11732_v45  ;;  %8635 = vmatprep.subr.bf16.mxu1 %v9131_v35 }
0x2586   :  { %v9474_v60 = vpop.eup %9473 }
0x2587   :  { %v6307_v13 = vmul.f32 %v9474_v60, %v11736_v28  ;;  %8620 = vmatmul.mubr.msk.bf16.vlgmr.msra.gmra.mrb[188].mxu0 %vm450_vm7, %v6315_v43 }
0x2588   :  { %v9476_v31 = vpop.eup %9475  ;;  %8630 = vmatpush3.bf16.msra.mxu0 %v6648_v21  ;;  %8631 = vmatprep.mubr.msk.bf16.mxu0 %vm9524_vm5, %v9523_v8 }
0x2589   :  { %v6316_v16 = vpack.c.bf16 %v6307_v13, %v6306_v48  ;;  %v6308_v4 = vmul.f32 %v9476_v31, %v11740_v30 }
0x258a   :  { %v9478_v1 = vpop.eup %9477 }
0x258b   :  { %v6309_v58 = vmul.f32 %v9478_v1, %v11744_v3  ;;  %8626 = vmatmul.mubr.msk.bf16.vlgmr.msra.gmra.mrb[152].mxu1 %vm450_vm7, %v6316_v16 }
0x258c   :  { %8636 = vmatpush3.bf16.msra.mxu1 %v9131_v35 }
0x258d   :  { %v6317_v53 = vpack.c.bf16 %v6309_v58, %v6308_v4  ;;  %8637 = vmatprep.subr.bf16.mxu1 %v9132_v56 }
0x258f   :  { %8632 = vmatmul.mubr.msk.bf16.vlgmr.msra.gmra.mrb[192].mxu0 %vm450_vm7, %v6317_v53 }
0x2590   :  { %7029 = vmatprep.mubr.bf16.mxu0 %v9519_v2  ;;  %8638 = vmatpush3.bf16.msra.mxu1 %v9132_v56 }
0x2591   :  { %8639 = vmatprep.subr.bf16.mxu1 %v9133_v39 }
0x2594   :  { %8640 = vmatpush3.bf16.msra.mxu1 %v9133_v39 }
0x2595   :  { %8641 = vmatprep.subr.bf16.mxu1 %v9134_v57 }
0x2598   :  { %8642 = vmatpush3.bf16.msra.mxu1 %v9134_v57 }
0x25ff   :  { %v11796_v45 = vpop.f32.mrb[140].mxu1 }
0x2600   :  { %v8591_v28 = vpop.f32.mrb[141].mxu1 }
0x2601   :  { %v11798_v18 = vpop.f32.mrb[142].mxu1 }
0x2602   :  { %v8592_v59 = vpop.f32.mrb[143].mxu1 }
0x2603   :  { %v11800_v8 = vpop.f32.mrb[180].mxu0 }
0x2604   :  { %v8597_v61 = vpop.f32.mrb[181].mxu0 }
0x2605   :  { %v11802_v40 = vpop.f32.mrb[182].mxu0 }
0x2606   :  { %v8598_v30 = vpop.f32.mrb[183].mxu0 }
0x264a   :  { %v6452_v3 = vpop.f32.mrb[144].mxu1 }
0x264b   :  { %v8603_v49 = vpop.f32.mrb[145].mxu1 }
0x264c   :  { %v6455_v24 = vpop.f32.mrb[146].mxu1 }
0x264d   :  { %v8957_v52 = vpack.i.bf16 %v6455_v24, %v6452_v3  ;;  %v8604_v7 = vpop.f32.mrb[147].mxu1 }
0x264f   :  { %8958 = vrot.lane.b32.xlu0 %v8957_v52, %s12062_s26 }
0x2652   :  { %v6499_v14 = vpop.f32.mrb[184].mxu0 }
0x2653   :  { %v8609_v27 = vpop.f32.mrb[185].mxu0 }
0x2654   :  { %v6502_v9 = vpop.f32.mrb[186].mxu0 }
0x2655   :  { %v8962_v44 = vpack.i.bf16 %v6502_v9, %v6499_v14  ;;  %v8610_v51 = vpop.f32.mrb[187].mxu0 }
0x2656   :  { %v6546_v62 = vpop.f32.mrb[148].mxu1 }
0x2657   :  { %8963 = vrot.lane.b32.xlu1 %v8962_v44, %s12062_s26  ;;  %v8615_v55 = vpop.f32.mrb[149].mxu1 }
0x2658   :  { %v6549_v46 = vpop.f32.mrb[150].mxu1 }
0x2659   :  { %v8967_v10 = vpack.i.bf16 %v6549_v46, %v6546_v62  ;;  %v8616_v47 = vpop.f32.mrb[151].mxu1 }
0x265a   :  { %v6593_v25 = vpop.f32.mrb[188].mxu0 }
0x265b   :  { %8968 = vrot.lane.b32.xlu0 %v8967_v10, %s9522_s29  ;;  %v8621_v38 = vpop.f32.mrb[189].mxu0 }
0x265c   :  { %v6596_v63 = vpop.f32.mrb[190].mxu0 }
0x265d   :  { %v8972_v20 = vpack.i.bf16 %v6596_v63, %v6593_v25  ;;  %v8622_v29 = vpop.f32.mrb[191].mxu0 }
0x265e   :  { %v6640_v15 = vpop.f32.mrb[152].mxu1 }
0x265f   :  { %8973 = vrot.lane.b32.xlu1 %v8972_v20, %s9522_s29  ;;  %v8627_v17 = vpop.f32.mrb[153].mxu1 }
0x2660   :  { %v6643_v37 = vpop.f32.mrb[154].mxu1 }
0x2661   :  { %v8977_v54 = vpack.i.bf16 %v6643_v37, %v6640_v15  ;;  %v8628_v41 = vpop.f32.mrb[155].mxu1 }
0x2662   :  { %v6687_v22 = vpop.f32.mrb[192].mxu0 }
0x2663   :  { %v8633_v50 = vpop.f32.mrb[193].mxu0  ;;  %8978 = vrot.lane.b32.xlu0 %v8977_v54, %s12061_s0 }
0x2664   :  { %v6690_v12 = vpop.f32.mrb[194].mxu0 }
0x2665   :  { %v8982_v42 = vpack.i.bf16 %v6690_v12, %v6687_v22  ;;  %v8634_v6 = vpop.f32.mrb[195].mxu0 }
0x2667   :  { %8983 = vrot.lane.b32.xlu1 %v8982_v42, %s12061_s0 }
0x26c1   :  { %v8959_v34 = vpop.permute.xlu0 %8958 }
0x26c2   :  { %v8961_v26 = vunpack.i.h.bf16 %v8959_v34  ;;  %v8960_v43 = vunpack.i.l.bf16 %v8959_v34 }
0x26c4   :  { %v6743_v21 = vsel %vm450_vm7, %v11798_v18, %v8961_v26  ;;  %v6742_v31 = vsel %vm450_vm7, %v11796_v45, %v8960_v43 }
0x26c9   :  { %v8964_v19 = vpop.permute.xlu1 %8963 }
0x26ca   :  { %v8966_v1 = vunpack.i.h.bf16 %v8964_v19  ;;  %v8965_v4 = vunpack.i.l.bf16 %v8964_v19 }
0x26cc   :  { %v6745_v45 = vsel %vm450_vm7, %v11802_v40, %v8966_v1  ;;  %v6744_v52 = vsel %vm450_vm7, %v11800_v8, %v8965_v4  ;;  %v7807_v8 = vld [vmem:[%s12034_s7 + $0x3] ss:$0 sm:$0xff]  ;;  %v9138_v1 = vld [vmem:[%s12037_s10 + $0xd0] ss:$8 sps:$4 sm:$0xff]   ;;  %v9143_v4 = vld [vmem:[%s12037_s10 + $0xe4] ss:$8 sps:$4 sm:$0xff]  }
0x26cd   :  { %v8969_v33 = vpop.permute.xlu0 %8968 }
0x26ce   :  { %v8971_v60 = vunpack.i.h.bf16 %v8969_v33  ;;  %v8970_v48 = vunpack.i.l.bf16 %v8969_v33 }
0x26d0   :  { %v6746_v28 = vsel %vm418_vm6, %v6742_v31, %v8970_v48  ;;  %v6747_v59 = vsel %vm418_vm6, %v6743_v21, %v8971_v60  ;;  %v9137_v21 = vld [vmem:[%s12037_s10 + $0xc4] ss:$8 sps:$4 sm:$0xff]   ;;  %v9135_v31 = vld [vmem:[%s12037_s10 + $0xc0] ss:$8 sps:$4 sm:$0xff]  }
0x26d1   :  { %v8974_v13 = vpop.permute.xlu1 %8973  ;;  %6997 = vmatprep.subr.bf16.mxu0 %v9137_v21 }
0x26d2   :  { %v8976_v61 = vunpack.i.h.bf16 %v8974_v13  ;;  %v8975_v30 = vunpack.i.l.bf16 %v8974_v13  ;;  %6998 = vmatpush1.bf16.msra.mxu0 %v9135_v31 }
0x26d4   :  { %v6749_v14 = vsel %vm418_vm6, %v6745_v45, %v8976_v61  ;;  %v6748_v56 = vsel %vm418_vm6, %v6744_v52, %v8975_v30  ;;  %v9148_v61 = vld [vmem:[%s12039_s12 + $0x180] sm:$0xff]   ;;  %v9149_v30 = vld [vmem:[%s12039_s12 + $0x1c8] sm:$0xff]   ;;  %v9154_v45 = vld [vmem:[%s12039_s12 + $0x198] sm:$0xff]  }
0x26d5   :  { %v8979_v16 = vpop.permute.xlu0 %8978  ;;  %v9155_v52 = vld [vmem:[%s12039_s12 + $0x1e0] sm:$0xff]  }
0x26d6   :  { %v8981_v58 = vunpack.i.h.bf16 %v8979_v16  ;;  %v8980_v53 = vunpack.i.l.bf16 %v8979_v16  ;;  %v9140_v16 = vld [vmem:[%s12037_s10 + $0xd4] ss:$8 sps:$4 sm:$0xff]  }
0x26d7   :  { %6999 = vmatprep.subr.bf16.mxu0 %v9140_v16 }
0x26d8   :  { %v6750_v3 = vsel %vm1464_vm10, %v6746_v28, %v8980_v53  ;;  %v6751_v49 = vsel %vm1464_vm10, %v6747_v59, %v8981_v58  ;;  %7000 = vmatpush1.bf16.msra.mxu0 %v9138_v1  ;;  %v9141_v58 = vld [vmem:[%s12037_s10 + $0xe0] ss:$8 sps:$4 sm:$0xff]   ;;  %v9146_v53 = vld [vmem:[%s12037_s10 + $0xf4] ss:$8 sps:$4 sm:$0xff]   ;;  %v9144_v28 = vld [vmem:[%s12037_s10 + $0xf0] ss:$8 sps:$4 sm:$0xff]  }
0x26d9   :  { %v6754_v24 = vpack.c.bf16 %v6751_v49, %v6750_v3  ;;  %v8984_v18 = vpop.permute.xlu1 %8983  ;;  %7001 = vmatprep.subr.bf16.mxu0 %v9143_v4  ;;  %v9147_v59 = vld [vmem:[%s12039_s12 + $0x1c0] sm:$0xff]   ;;  %v9150_v3 = vld [vmem:[%s12039_s12 + $0x188] sm:$0xff]   ;;  %v9151_v49 = vld [vmem:[%s12039_s12 + $0x1d0] sm:$0xff]  }
0x26da   :  { %v8986_v7 = vunpack.i.h.bf16 %v8984_v18  ;;  %v8985_v35 = vunpack.i.l.bf16 %v8984_v18  ;;  %8143 = vmatprep.subr.bf16.mxu1 %v9147_v59  ;;  %v9153_v18 = vld [vmem:[%s12039_s12 + $0x1d8] sm:$0xff]  }
0x26db   :  { %8643 = vmatprep.mubr.msk.bf16.mxu1 %vm203_vm4, %v6754_v24  ;;  %v9152_v24 = vld [vmem:[%s12039_s12 + $0x190] sm:$0xff]  }
0x26dc   :  { %v6753_v27 = vsel %vm1464_vm10, %v6749_v14, %v8986_v7  ;;  %v6752_v9 = vsel %vm1464_vm10, %v6748_v56, %v8985_v35  ;;  %7002 = vmatpush1.bf16.msra.mxu0 %v9141_v58  ;;  %v9156_v7 = vld [vmem:[%s12039_s12 + $0x1a0] sm:$0xff]   ;;  %v9157_v35 = vld [vmem:[%s12039_s12 + $0x1e8] sm:$0xff]  }
0x26dd   :  { %v6755_v44 = vpack.c.bf16 %v6753_v27, %v6752_v9  ;;  %7003 = vmatprep.subr.bf16.mxu0 %v9146_v53 }
0x26df   :  { %8644 = vmatmul.mubr.msk.bf16.vlgmr.msra.gmra.mrb[156].mxu1 %vm203_vm4, %v6755_v44 }
0x26e0   :  { %7004 = vmatpush1.bf16.msra.mxu0 %v9144_v28  ;;  %8144 = vmatpush3.bf16.msra.mxu1 %v9148_v61 }
0x26e1   :  { %8145 = vmatprep.subr.bf16.mxu1 %v9149_v30 }
0x26e4   :  { %8146 = vmatpush3.bf16.msra.mxu1 %v9150_v3 }
0x26e5   :  { %8147 = vmatprep.subr.bf16.mxu1 %v9151_v49 }
0x26e8   :  { %8148 = vmatpush3.bf16.msra.mxu1 %v9152_v24 }
0x26e9   :  { %8149 = vmatprep.subr.bf16.mxu1 %v9153_v18 }
0x26ec   :  { %8150 = vmatpush3.bf16.msra.mxu1 %v9154_v45 }
0x26ed   :  { %8151 = vmatprep.subr.bf16.mxu1 %v9155_v52 }
0x26f0   :  { %8152 = vmatpush3.bf16.msra.mxu1 %v9156_v7 }
0x26f1   :  { %8153 = vmatprep.subr.bf16.mxu1 %v9157_v35 }
0x27b2   :  { %v8645_v51 = vpop.f32.mrb[156].mxu1 }
0x27b3   :  { %v6829_v40 = vpop.f32.mrb[157].mxu1  ;;  %v6846_v62 = vadd.f32 %v8645_v51, %v11429_v36 }
0x27b4   :  { %v6844_v39 = vadd.f32 %v6829_v40, %v11419_v5  ;;  %v8646_v55 = vpop.f32.mrb[158].mxu1 }
0x27b5   :  { %v6832_v46 = vpop.f32.mrb[159].mxu1  ;;  %v11848_v25 = vadd.f32 %v7807_v8, %v6846_v62  ;;  %v6847_v57 = vadd.f32 %v8646_v55, %v11432_v11 }
0x27b6   :  { %v11845_v10 = vadd.f32 %v7807_v8, %v6844_v39  ;;  %v6845_v47 = vadd.f32 %v6832_v46, %v11422_v23 }
0x27b7   :  { %v11857_v5 = vadd.f32 %v7807_v8, %v6847_v57  ;;  %v6865_v20 = vsel %vm203_vm4, %v11848_v25, 0.0  ;;  %v7808_v57 = vld [vmem:[%s12035_s8 + $0x3] ss:$0 sm:$0xff] }
0x27b8   :  { %v11851_v38 = vadd.f32 %v7807_v8, %v6845_v47  ;;  %v6859_v63 = vsel %vm203_vm4, %v11845_v10, 0.0 }
0x27b9   :  { %6860 = vadd.xlane.f32.xlu0 %v6859_v63  ;;  %v6868_v23 = vsel %vm203_vm4, %v11857_v5, 0.0 }
0x27ba   :  { %v6862_v36 = vsel %vm203_vm4, %v11851_v38, 0.0 }
0x27bb   :  { %6863 = vadd.xlane.f32.xlu1 %v6862_v36 }
0x27bd   :  { %6866 = vadd.xlane.f32.xlu0 %v6865_v20 }
0x27c1   :  { %6869 = vadd.xlane.f32.xlu0 %v6868_v23 }
0x2846   :  { %v6861_v11 = vpop.xlane.xlu0 %6860 }
0x2847   :  { %v6871_v29 = vmul.f32 0.015625, %v6861_v11 }
0x2848   :  { %v6864_v15 = vpop.xlane.xlu1 %6863 }
0x2849   :  { %v11864_v17 = vsub.f32 %v11845_v10, %v6871_v29  ;;  %v6872_v37 = vmul.f32 0.015625, %v6864_v15  ;;  %v7809_v29 = vld [vmem:[%s12036_s9 + $0x3] ss:$0 sm:$0xff] }
0x284a   :  { %v6867_v54 = vpop.xlane.xlu0 %6866 }
0x284b   :  { %v11867_v41 = vsub.f32 %v11851_v38, %v6872_v37  ;;  %v6873_v22 = vmul.f32 0.015625, %v6867_v54  ;;  %v6879_v50 = vmul.f32 %v11864_v17, %v11864_v17 }
0x284d   :  { %v11872_v12 = vsub.f32 %v11848_v25, %v6873_v22  ;;  %v6883_v42 = vsel %vm203_vm4, %v6879_v50, 0.0  ;;  %v6880_v6 = vmul.f32 %v11867_v41, %v11867_v41 }
0x284e   :  { %v6870_v34 = vpop.xlane.xlu0 %6869  ;;  %6884 = vadd.xlane.f32.xlu1 %v6883_v42 }
0x284f   :  { %v6874_v19 = vmul.f32 0.015625, %v6870_v34  ;;  %v6886_v33 = vsel %vm203_vm4, %v6880_v6, 0.0  ;;  %v6881_v26 = vmul.f32 %v11872_v12, %v11872_v12 }
0x2850   :  { %6887 = vadd.xlane.f32.xlu0 %v6886_v33 }
0x2851   :  { %v11881_v43 = vsub.f32 %v11857_v5, %v6874_v19  ;;  %v6889_v60 = vsel %vm203_vm4, %v6881_v26, 0.0  ;;  %v9159_v26 = vld [vmem:[%s12039_s12 + $0x1f0] sm:$0xff]  }
0x2852   :  { %6890 = vadd.xlane.f32.xlu1 %v6889_v60  ;;  %v9162_v60 = vld [vmem:[%s12039_s12 + $0x1b8] sm:$0xff]  }
0x2853   :  { %v6882_v48 = vmul.f32 %v11881_v43, %v11881_v43 }
0x2855   :  { %v6892_v13 = vsel %vm203_vm4, %v6882_v48, 0.0  ;;  %v7818_v48 = vld [vmem:[%s12038_s11 + $0x3] ss:$4 sm:$0x3] }
0x2856   :  { %6893 = vadd.xlane.f32.xlu0 %v6892_v13  ;;  %v6944_v13 = vrot.slane %v7818_v48, %v10271_v32  ;;  %v6948_v21 = vrot.slane %v7818_v48, %v10277_v0 }
0x28db   :  { %v6885_v14 = vpop.xlane.xlu1 %6884 }
0x28dc   :  { %v6895_v56 = vmul.f32 0.015625, %v6885_v14 }
0x28dd   :  { %v6888_v27 = vpop.xlane.xlu0 %6887 }
0x28de   :  { %v6899_v9 = vadd.f32 1e-05, %v6895_v56  ;;  %v6896_v44 = vmul.f32 0.015625, %v6888_v27 }
0x28df   :  { %v6891_v51 = vpop.xlane.xlu1 %6890 }
0x28e0   :  { %9479 = vrsqrt.f32 %v6899_v9  ;;  %v6900_v8 = vadd.f32 1e-05, %v6896_v44  ;;  %v6897_v40 = vmul.f32 0.015625, %v6891_v51 }
0x28e2   :  { %9481 = vrsqrt.f32 %v6900_v8  ;;  %v6901_v62 = vadd.f32 1e-05, %v6897_v40 }
0x28e3   :  { %v6894_v39 = vpop.xlane.xlu0 %6893 }
0x28e4   :  { %9483 = vrsqrt.f32 %v6901_v62  ;;  %v6898_v55 = vmul.f32 0.015625, %v6894_v39 }
0x28e6   :  { %v6902_v46 = vadd.f32 1e-05, %v6898_v55 }
0x28e8   :  { %9485 = vrsqrt.f32 %v6902_v46 }
0x28ea   :  { %v9480_v47 = vpop.eup %9479 }
0x28eb   :  { %v6907_v63 = vmul.f32 %v9480_v47, %v11864_v17 }
0x28ec   :  { %v9482_v36 = vpop.eup %9481 }
0x28ed   :  { %v6915_v20 = vmul.f32 %v7808_v57, %v6907_v63  ;;  %v6908_v23 = vmul.f32 %v9482_v36, %v11867_v41 }
0x28ee   :  { %v9484_v11 = vpop.eup %9483 }
0x28ef   :  { %v6916_v15 = vmul.f32 %v7808_v57, %v6908_v23  ;;  %v6909_v37 = vmul.f32 %v9484_v11, %v11872_v12  ;;  %v6923_v54 = vadd.f32 %v7809_v29, %v6915_v20  ;;  %v9158_v12 = vld [vmem:[%s12039_s12 + $0x1a8] sm:$0xff]  }
0x28f0   :  { %8154 = vmatpush3.bf16.msra.mxu1 %v9158_v12 }
0x28f1   :  { %v6924_v22 = vadd.f32 %v7809_v29, %v6916_v15  ;;  %v6917_v17 = vmul.f32 %v7808_v57, %v6909_v37  ;;  %8155 = vmatprep.subr.bf16.mxu1 %v9159_v26 }
0x28f2   :  { %v9486_v50 = vpop.eup %9485 }
0x28f3   :  { %v6910_v42 = vmul.f32 %v9486_v50, %v11881_v43  ;;  %v6927_v6 = vpack.c.bf16 %v6924_v22, %v6923_v54  ;;  %v6925_v19 = vadd.f32 %v7809_v29, %v6917_v17  ;;  %v9160_v43 = vld [vmem:[%s12039_s12 + $0x1b0] sm:$0xff]  }
0x28f4   :  { %8156 = vmatpush3.bf16.msra.mxu1 %v9160_v43 }
0x28f5   :  { %7827 = vmatmul.mubr.msk.bf16.vlgmr.msra.gmra.mrb[196].mxu0 %vm203_vm4, %v6927_v6  ;;  %v6918_v34 = vmul.f32 %v7808_v57, %v6910_v42  ;;  %v7877_v57 = vld [vmem:[%s12040_s13 + $0x3] ss:$0 sm:$0xff] }
0x28f6   :  { %7039 = vmatprep.mubr.bf16.mxu0 %v9519_v2  ;;  %v9161_v2 = vld [vmem:[%s12039_s12 + $0x1f8] sm:$0xff]  }
0x28f7   :  { %v6926_v41 = vadd.f32 %v7809_v29, %v6918_v34  ;;  %8157 = vmatprep.subr.bf16.mxu1 %v9161_v2 }
0x28f8   :  { %8158 = vmatpush3.bf16.msra.mxu1 %v9162_v60 }
0x28f9   :  { %v6928_v33 = vpack.c.bf16 %v6926_v41, %v6925_v19 }
0x28fd   :  { %7828 = vmatmul.mubr.msk.bf16.gmra.mrb[200].mxu0 %vm203_vm4, %v6928_v33 }
0x29c8   :  { %v7031_v31 = vpop.f32.mrb[196].mxu0 }
0x29c9   :  { %v7032_v16 = vadd.f32 %v7031_v31, %v6944_v13  ;;  %v7033_v1 = vpop.f32.mrb[197].mxu0 }
0x29ca   :  { %v7034_v4 = vadd.f32 %v7033_v1, %v6948_v21  ;;  %v7035_v58 = vpop.f32.mrb[198].mxu0 }
0x29cb   :  { %v7036_v53 = vadd.f32 %v7035_v58, %v6944_v13  ;;  %v7037_v28 = vpop.f32.mrb[199].mxu0  ;;  %v7050_v61 = vmax.f32 %v7032_v16, 0.0 }
0x29cc   :  { %v7038_v59 = vadd.f32 %v7037_v28, %v6948_v21  ;;  %v7051_v3 = vmax.f32 %v7034_v4, 0.0 }
0x29cd   :  { %v7052_v30 = vmax.f32 %v7036_v53, 0.0 }
0x29ce   :  { %v7053_v49 = vmax.f32 %v7038_v59, 0.0 }
0x29cf   :  { %v7058_v24 = vpack.c.bf16 %v7052_v30, %v7050_v61  ;;  %v9163_v30 = vld [vmem:[%s12043_s16] sm:$0xff]  }
0x29d0   :  { %v7059_v18 = vpack.c.bf16 %v7053_v49, %v7051_v3  ;;  %v7041_v45 = vpop.f32.mrb[200].mxu0  ;;  %8647 = vmatprep.subr.bf16.mxu0 %v9163_v30  ;;  %v9164_v3 = vld [vmem:[%s12043_s16 + $0x8] sm:$0xff]   ;;  %v9165_v49 = vld [vmem:[%s12043_s16 + $0x10] sm:$0xff]  }
0x29d1   :  { %v7042_v52 = vadd.f32 %v7041_v45, %v6944_v13  ;;  %v7043_v7 = vpop.f32.mrb[201].mxu0  ;;  %8648 = vmatpush3.bf16.msra.mxu0 %v9163_v30 }
0x29d2   :  { %v7044_v32 = vadd.f32 %v7043_v7, %v6948_v21  ;;  %v7045_v35 = vpop.f32.mrb[202].mxu0  ;;  %7223 = vmatprep.mubr.bf16.mxu1 %v7059_v18  ;;  %8649 = vmatprep.subr.bf16.mxu0 %v9164_v3 }
0x29d3   :  { %v7046_v0 = vadd.f32 %v7045_v35, %v6944_v13  ;;  %v7047_v14 = vpop.f32.mrb[203].mxu0  ;;  %7224 = vmatmul.mubr.bf16.vlgmr.msra.gmra.mrb[160].mxu1 %v7058_v24  ;;  %v7054_v27 = vmax.f32 %v7042_v52, 0.0  ;;  %v9166_v24 = vld [vmem:[%s12043_s16 + $0x18] sm:$0xff]  }
0x29d4   :  { %v7048_v56 = vadd.f32 %v7047_v14, %v6948_v21  ;;  %v7055_v44 = vmax.f32 %v7044_v32, 0.0 }
0x29d5   :  { %v7056_v9 = vmax.f32 %v7046_v0, 0.0  ;;  %8650 = vmatpush3.bf16.msra.mxu0 %v9164_v3 }
0x29d6   :  { %v7057_v51 = vmax.f32 %v7048_v56, 0.0  ;;  %8651 = vmatprep.subr.bf16.mxu0 %v9165_v49 }
0x29d7   :  { %v7060_v8 = vpack.c.bf16 %v7056_v9, %v7054_v27 }
0x29d8   :  { %v7061_v40 = vpack.c.bf16 %v7057_v51, %v7055_v44 }
0x29d9   :  { %8652 = vmatpush3.bf16.msra.mxu0 %v9165_v49 }
0x29da   :  { %7231 = vmatprep.mubr.bf16.mxu1 %v7061_v40  ;;  %8653 = vmatprep.subr.bf16.mxu0 %v9166_v24 }
0x29db   :  { %7232 = vmatmul.mubr.bf16.gmra.mrb[164].mxu1 %v7060_v8  ;;  %v7878_v8 = vld [vmem:[%s12041_s14] ss:$0 sm:$0xff] }
0x29dd   :  { %8654 = vmatpush3.bf16.msra.mxu0 %v9166_v24 }
0x2aa6   :  { %v8159_v62 = vpop.f32.mrb[160].mxu1 }
0x2aa7   :  { %v8160_v39 = vpop.f32.mrb[161].mxu1 }
0x2aa8   :  { %v8161_v55 = vadd.f32 %v8160_v39, %v8159_v62  ;;  %v8162_v46 = vpop.f32.mrb[162].mxu1 }
0x2aa9   :  { %v8163_v47 = vpop.f32.mrb[163].mxu1 }
0x2aaa   :  { %v7240_v63 = vadd.f32 %v8161_v55, %v11845_v10  ;;  %v8164_v36 = vadd.f32 %v8163_v47, %v8162_v46  ;;  %v7879_v46 = vld [vmem:[%s12042_s15] ss:$0 sm:$0xff]  ;;  %s9530_s15 = smov [#allocation2]  }
0x2aab   :  { %s7432_s8 = sshll.u32 %s9530_s15, 4  ;;  %s7433_s8 = int_to_ptr.vmem [resolvable:$true] %s7432_s8 }
0x2aac   :  { %v7241_v20 = vadd.f32 %v8164_v36, %v11851_v38  ;;  %v7249_v23 = vadd.f32 %v7877_v57, %v7240_v63  ;;  %s9495_s9 = scalar_lea.vmem %s7433_s8, 512  ;;  %p9500_p1 = scmp.lt.s32.totalorder %s7433_s8, %s7433_s8 }
0x2aad   :  { %p9496_p0 = scmp.ne.s32.totalorder %s7433_s8, %s9495_s9  ;;  %p9501_p2 = scmp.lt.s32.totalorder %s9495_s9, %s9495_s9 }
0x2aae   :  { %v8165_v11 = vpop.f32.mrb[164].mxu1  ;;  %v7255_v29 = vsel %vm203_vm4, %v7249_v23, 0.0  ;;  %v7250_v15 = vadd.f32 %v7877_v57, %v7241_v20 }
0x2aaf   :  { %7256 = vadd.xlane.f32.xlu1 %v7255_v29  ;;  %v8166_v37 = vpop.f32.mrb[165].mxu1  ;;  %p9502_p3 = por %p9501_p2, %p9500_p1 }
0x2ab0   :  { %v8167_v54 = vadd.f32 %v8166_v37, %v8165_v11  ;;  %v8168_v22 = vpop.f32.mrb[166].mxu1  ;;  %v7258_v50 = vsel %vm203_vm4, %v7250_v15, 0.0 }
0x2ab1   :  { %7259 = vadd.xlane.f32.xlu0 %v7258_v50  ;;  %v8169_v42 = vpop.f32.mrb[167].mxu1  ;;  %p9503_p4 = pnand %p9502_p3, %p9496_p0 }
0x2ab2   :  { %v7242_v6 = vadd.f32 %v8167_v54, %v11848_v25  ;;  %v8170_v17 = vadd.f32 %v8169_v42, %v8168_v22  ;;  %v7880_v42 = vld [vmem:[%s12044_s17] ss:$0 sm:$0xff] }
0x2ab4   :  { %v7243_v10 = vadd.f32 %v8170_v17, %v11857_v5  ;;  %v7251_v34 = vadd.f32 %v7877_v57, %v7242_v6 }
0x2ab6   :  { %v7261_v38 = vsel %vm203_vm4, %v7251_v34, 0.0  ;;  %v7252_v41 = vadd.f32 %v7877_v57, %v7243_v10 }
0x2ab7   :  { %7262 = vadd.xlane.f32.xlu1 %v7261_v38 }
0x2ab8   :  { %v7264_v19 = vsel %vm203_vm4, %v7252_v41, 0.0 }
0x2ab9   :  { %7265 = vadd.xlane.f32.xlu0 %v7264_v19 }
0x2b3c   :  { %v7257_v33 = vpop.xlane.xlu1 %7256 }
0x2b3d   :  { %v7267_v12 = vmul.f32 0.015625, %v7257_v33 }
0x2b3e   :  { %v7260_v26 = vpop.xlane.xlu0 %7259 }
0x2b3f   :  { %v7271_v43 = vsub.f32 %v7249_v23, %v7267_v12  ;;  %v7268_v2 = vmul.f32 0.015625, %v7260_v26 }
0x2b41   :  { %v7272_v60 = vsub.f32 %v7250_v15, %v7268_v2  ;;  %v7275_v48 = vmul.f32 %v7271_v43, %v7271_v43 }
0x2b43   :  { %v7279_v25 = vsel %vm203_vm4, %v7275_v48, 0.0  ;;  %v7276_v13 = vmul.f32 %v7272_v60, %v7272_v60 }
0x2b44   :  { %7280 = vadd.xlane.f32.xlu1 %v7279_v25  ;;  %v7263_v5 = vpop.xlane.xlu1 %7262 }
0x2b45   :  { %v7269_v21 = vmul.f32 0.015625, %v7263_v5  ;;  %v7282_v31 = vsel %vm203_vm4, %v7276_v13, 0.0 }
0x2b46   :  { %7283 = vadd.xlane.f32.xlu0 %v7282_v31  ;;  %v7266_v16 = vpop.xlane.xlu0 %7265 }
0x2b47   :  { %v7273_v1 = vsub.f32 %v7251_v34, %v7269_v21  ;;  %v7270_v4 = vmul.f32 0.015625, %v7266_v16 }
0x2b49   :  { %v7274_v58 = vsub.f32 %v7252_v41, %v7270_v4  ;;  %v7277_v53 = vmul.f32 %v7273_v1, %v7273_v1 }
0x2b4b   :  { %v7285_v28 = vsel %vm203_vm4, %v7277_v53, 0.0  ;;  %v7278_v59 = vmul.f32 %v7274_v58, %v7274_v58 }
0x2b4c   :  { %7286 = vadd.xlane.f32.xlu1 %v7285_v28 }
0x2b4d   :  { %v7288_v61 = vsel %vm203_vm4, %v7278_v59, 0.0 }
0x2b4e   :  { %7289 = vadd.xlane.f32.xlu0 %v7288_v61 }
0x2bd1   :  { %v7281_v18 = vpop.xlane.xlu1 %7280 }
0x2bd2   :  { %v7291_v45 = vmul.f32 0.015625, %v7281_v18 }
0x2bd3   :  { %v7284_v52 = vpop.xlane.xlu0 %7283 }
0x2bd4   :  { %v7295_v7 = vadd.f32 1e-05, %v7291_v45  ;;  %v7292_v32 = vmul.f32 0.015625, %v7284_v52 }
0x2bd6   :  { %9487 = vrsqrt.f32 %v7295_v7  ;;  %v7296_v35 = vadd.f32 1e-05, %v7292_v32 }
0x2bd8   :  { %9489 = vrsqrt.f32 %v7296_v35 }
0x2bd9   :  { %v7287_v0 = vpop.xlane.xlu1 %7286 }
0x2bda   :  { %v7293_v14 = vmul.f32 0.015625, %v7287_v0 }
0x2bdb   :  { %v7290_v56 = vpop.xlane.xlu0 %7289 }
0x2bdc   :  { %v7297_v27 = vadd.f32 1e-05, %v7293_v14  ;;  %v7294_v9 = vmul.f32 0.015625, %v7290_v56 }
0x2bde   :  { %9491 = vrsqrt.f32 %v7297_v27  ;;  %v7298_v44 = vadd.f32 1e-05, %v7294_v9 }
0x2be0   :  { %v9488_v51 = vpop.eup %9487  ;;  %9493 = vrsqrt.f32 %v7298_v44 }
0x2be1   :  { %v7303_v40 = vmul.f32 %v9488_v51, %v7271_v43 }
0x2be2   :  { %v9490_v62 = vpop.eup %9489 }
0x2be3   :  { %v7304_v39 = vmul.f32 %v9490_v62, %v7272_v60  ;;  %v7313_v55 = vmul.f32 %v7878_v8, %v7303_v40 }
0x2be5   :  { %v7314_v47 = vmul.f32 %v7878_v8, %v7304_v39  ;;  %v7323_v57 = vadd.f32 %v7879_v46, %v7313_v55 }
0x2be7   :  { %v7324_v63 = vadd.f32 %v7879_v46, %v7314_v47 }
0x2be8   :  { %v9492_v36 = vpop.eup %9491 }
0x2be9   :  { %v7305_v20 = vmul.f32 %v9492_v36, %v7273_v1  ;;  %v7327_v23 = vpack.c.bf16 %v7324_v63, %v7323_v57 }
0x2bea   :  { %v9494_v11 = vpop.eup %9493 }
0x2beb   :  { %v7315_v29 = vmul.f32 %v7878_v8, %v7305_v20  ;;  %v7306_v15 = vmul.f32 %v9494_v11, %v7274_v58  ;;  %8655 = vmatprep.mubr.msk.bf16.mxu0 %vm203_vm4, %v7327_v23 }
0x2bed   :  { %v7316_v37 = vmul.f32 %v7878_v8, %v7306_v15  ;;  %v7325_v54 = vadd.f32 %v7879_v46, %v7315_v29 }
0x2bef   :  { %v7326_v22 = vadd.f32 %v7879_v46, %v7316_v37 }
0x2bf1   :  { %v7328_v50 = vpack.c.bf16 %v7326_v22, %v7325_v54 }
0x2bf3   :  { %8656 = vmatmul.mubr.msk.bf16.vlgmr.msra.gmra.mrb[204].mxu0 %vm203_vm4, %v7328_v50 }
0x2cc6   :  { %v8657_v6 = vpop.f32.mrb[204].mxu0 }
0x2cc7   :  { %v7417_v17 = vadd.f32 %v8657_v6, %v7880_v42  ;;  %v7408_v10 = vpop.f32.mrb[205].mxu0 }
0x2cc8   :  { %v7409_v34 = vadd.f32 %v7880_v42, %v7408_v10  ;;  %v8658_v38 = vpop.f32.mrb[206].mxu0 }
0x2cc9   :  { %7425 = vst [vmem:[#allocation2 + $0x10] sm:$0xff] %v7417_v17  ;;  %v7420_v41 = vadd.f32 %v8658_v38, %v7880_v42  ;;  %v7411_v19 = vpop.f32.mrb[207].mxu0 }
0x2cca   :  { %7423 = vst [vmem:[#allocation2] sm:$0xff] %v7409_v34  ;;  %v7412_v33 = vadd.f32 %v7880_v42, %v7411_v19 }
0x2ccb   :  { %7426 = vst [vmem:[#allocation2 + $0x18] sm:$0xff] %v7420_v41 }
0x2ccc   :  { %7424 = vst [vmem:[#allocation2 + $0x8] sm:$0xff] %v7412_v33 }
0x2ccd   :  { %9506 = shalt.err (!%p9503_p4)
}
0x2cce   :  { %s9507_s26 = scalar_lea.hbm %s12045_s18, 512 }
0x2ccf   :  { %p9508_p5 = scmp.ne.s32.totalorder %s12045_s18, %s9507_s26  ;;  %p9511_p6 = scmp.lt.u32.totalorder %s9507_s26, %s12045_s18 }
0x2cd1   :  { %p9513_p7 = pnand %p9511_p6, %p9508_p5 }
0x2cd3   :  { %9516 = shalt.err (!%p9513_p7)
}
0x2cd4   :  { %s9531_s22 = smov 128   ;;  %s9532_s21 = smov 8  }
0x2cd5   :  { %7438 = dma.vmem_to_hbm [thread:$0]  %s7433_s8, 512, %s12045_s18, [#allocation3], %s9531_s22, %s9531_s22, %s9532_s21  }
0x2cd6   :  { %9517 = dma.done.wait [#allocation3], 512  }
0x2cd7   :  { %9518 = vsyncadd [#allocation3], 4294966784 }
0x2cd8   :  { %7442 = vsyncpa [#allocation3], 1 }

</bundles_post_ra>
